<compile_context>
chip_gen: v7x
topology: tpu7x:2x2x1
jax: 0.10.0
libtpu: 0.0.40
codegen_flags: <defaults>
</compile_context>

<pallas_src>
import functools

import jax
import jax.numpy as jnp
from jax import lax
from jax.experimental import pallas as pl
from jax.experimental.pallas import tpu as pltpu

# Compat shim: newer jax exposes pltpu.CompilerParams, older exposes TPUCompilerParams.
_CompilerParams = getattr(pltpu, "CompilerParams", None)
if _CompilerParams is None:  # pragma: no cover
    _CompilerParams = getattr(pltpu, "TPUCompilerParams")

D = 128
ZSIZE = 32
LAYER_COUNT = 2
CHANNELS = 3
IMG = 4 * (2 ** LAYER_COUNT)          # 16 (spatial size implied by fc1 shape)
D_MAX = D * (2 ** (LAYER_COUNT - 1))  # 256
BN_EPS = 1e-5
LANES = 128                            # lane-dense padding target


# -----------------------------------------------------------------------------
# Pallas kernels
# -----------------------------------------------------------------------------

def _conv_bn_act_kernel(a_ref, w_ref, b_ref, g_ref, beta_ref, o_ref, *, eps, slope):
    """im2col matmul (bf16 -> f32 acc) + conv bias + training-mode BN + (leaky)ReLU."""
    acc = jnp.dot(a_ref[...], w_ref[...], preferred_element_type=jnp.float32)
    acc = acc + b_ref[...]
    mean = jnp.mean(acc, axis=0, keepdims=True)
    var = jnp.mean(jnp.square(acc - mean), axis=0, keepdims=True)   # biased (PyTorch train)
    y = (acc - mean) * lax.rsqrt(var + eps) * g_ref[...] + beta_ref[...]
    o_ref[...] = jnp.where(y >= 0, y, slope * y).astype(o_ref.dtype)


def conv_bn_act(a, w, b, gamma, beta, slope):
    """a: [M, K] bf16 im2col rows, w: [K, N] bf16.  Returns [M, N] bf16."""
    M, K = a.shape
    _, N = w.shape
    kernel = functools.partial(_conv_bn_act_kernel, eps=BN_EPS, slope=slope)
    # TODO(synk): for large batches, tile M and switch BN to a two-pass partial
    # sum/sumsq scheme instead of single-block whole-array statistics.
    return pl.pallas_call(
        kernel,
        out_shape=jax.ShapeDtypeStruct((M, N), jnp.bfloat16),
        grid=(1,),
        in_specs=[
            pl.BlockSpec((M, K), lambda i: (0, 0)),
            pl.BlockSpec((K, N), lambda i: (0, 0)),
            pl.BlockSpec((1, N), lambda i: (0, 0)),
            pl.BlockSpec((1, N), lambda i: (0, 0)),
            pl.BlockSpec((1, N), lambda i: (0, 0)),
        ],
        out_specs=pl.BlockSpec((M, N), lambda i: (0, 0)),
    )(a, w, b, gamma, beta)


def _latent_kernel(flat_ref, wcat_ref, bcat_ref, eps_ref, d1w_ref, d1b_ref,
                   lat_ref, h_ref):
    """fc1 + fc2 (fused, lane-padded RHS) + reparameterize + d1 + leaky_relu(0.2)."""
    hl = jnp.dot(flat_ref[...], wcat_ref[...], preferred_element_type=jnp.float32)
    hl = hl + bcat_ref[...]                     # [B, 128]: mu | logvar | 0-pad
    mu = hl[:, :ZSIZE]
    logvar = hl[:, ZSIZE:2 * ZSIZE]
    z = eps_ref[...] * jnp.exp(0.5 * logvar) + mu
    h = jnp.dot(z.astype(d1w_ref.dtype), d1w_ref[...],
                preferred_element_type=jnp.float32)
    h = h + d1b_ref[...]
    h = jnp.where(h >= 0, h, 0.2 * h)           # F.leaky_relu(x, 0.2)
    lat_ref[...] = hl
    h_ref[...] = h.astype(h_ref.dtype)


def fc_fused(flat, wcat, bcat, eps, d1w, d1b):
    B, K = flat.shape
    _, NL = wcat.shape
    _, ND = d1w.shape
    return pl.pallas_call(
        _latent_kernel,
        out_shape=(jax.ShapeDtypeStruct((B, NL), jnp.float32),
                   jax.ShapeDtypeStruct((B, ND), jnp.bfloat16)),
        grid=(1,),
        in_specs=[
            pl.BlockSpec((B, K), lambda i: (0, 0)),
            pl.BlockSpec((K, NL), lambda i: (0, 0)),
            pl.BlockSpec((1, NL), lambda i: (0, 0)),
            pl.BlockSpec((B, ZSIZE), lambda i: (0, 0)),
            pl.BlockSpec((ZSIZE, ND), lambda i: (0, 0)),
            pl.BlockSpec((1, ND), lambda i: (0, 0)),
        ],
        out_specs=(pl.BlockSpec((B, NL), lambda i: (0, 0)),
                   pl.BlockSpec((B, ND), lambda i: (0, 0))),
    )(flat, wcat, bcat, eps, d1w, d1b)


def _deconv_bn_act_kernel(a_ref, w_ref, b_ref, g_ref, beta_ref, o_ref, *, eps, slope):
    """4 stride-phase matmuls + ConvTranspose bias + BN over all phases + leaky_relu."""
    nphase, m, _ = a_ref.shape
    accs = []
    for p in range(nphase):
        acc = jnp.dot(a_ref[p], w_ref[p], preferred_element_type=jnp.float32)
        accs.append(acc + b_ref[...])
    cnt = float(nphase * m)
    mean = sum(jnp.sum(a, axis=0, keepdims=True) for a in accs) / cnt
    var = sum(jnp.sum(jnp.square(a - mean), axis=0, keepdims=True) for a in accs) / cnt
    inv = lax.rsqrt(var + eps)
    for p in range(nphase):
        y = (accs[p] - mean) * inv * g_ref[...] + beta_ref[...]
        o_ref[p * m:(p + 1) * m, :] = jnp.where(y >= 0, y, slope * y).astype(o_ref.dtype)


def deconv_bn_act(a_phases, w_phases, b, gamma, beta, slope):
    """a_phases: [4, M, 4*Cin] bf16, w_phases: [4, 4*Cin, Cout] bf16 -> [4*M, Cout] bf16."""
    P, M, K = a_phases.shape
    _, _, N = w_phases.shape
    kernel = functools.partial(_deconv_bn_act_kernel, eps=BN_EPS, slope=slope)
    return pl.pallas_call(
        kernel,
        out_shape=jax.ShapeDtypeStruct((P * M, N), jnp.bfloat16),
        grid=(1,),
        in_specs=[
            pl.BlockSpec((P, M, K), lambda i: (0, 0, 0)),
            pl.BlockSpec((P, K, N), lambda i: (0, 0, 0)),
            pl.BlockSpec((1, N), lambda i: (0, 0)),
            pl.BlockSpec((1, N), lambda i: (0, 0)),
            pl.BlockSpec((1, N), lambda i: (0, 0)),
        ],
        out_specs=pl.BlockSpec((P * M, N), lambda i: (0, 0)),
    )(a_phases, w_phases, b, gamma, beta)


def _deconv_out_kernel(a_ref, w_ref, b_ref, o_ref):
    """Stride-phase deconv matmul + bias + tanh, lane-padded (Cout=128) output."""
    acc = jnp.dot(a_ref[...], w_ref[...], preferred_element_type=jnp.float32)
    acc = acc + b_ref[...]
    o_ref[...] = jnp.tanh(acc)


def deconv_out(a_phases, w_phases, b_pad, tm_cap=256):
    """Tiled (phase, M) grid; both axes parallel so v7x's two TCs split the work."""
    P, M, K = a_phases.shape
    _, _, N = w_phases.shape
    tm = min(tm_cap, M)
    while M % tm != 0:
        tm //= 2
    grid = (P, M // tm)
    return pl.pallas_call(
        _deconv_out_kernel,
        out_shape=jax.ShapeDtypeStruct((P, M, N), jnp.float32),
        grid=grid,
        in_specs=[
            pl.BlockSpec((None, tm, K), lambda p, i: (p, i, 0)),
            pl.BlockSpec((None, K, N), lambda p, i: (p, 0, 0)),
            pl.BlockSpec((1, N), lambda p, i: (0, 0)),
        ],
        out_specs=pl.BlockSpec((None, tm, N), lambda p, i: (p, i, 0)),
        compiler_params=_CompilerParams(
            dimension_semantics=("parallel", "parallel"),
            vmem_limit_bytes=32 * 1024 * 1024,
        ),
    )(a_phases, w_phases, b_pad)


# -----------------------------------------------------------------------------
# JAX glue: im2col (encoder), stride-phase gather (decoder), interleave
# -----------------------------------------------------------------------------

def _im2col(x, ksize, stride, pad):
    """x: [N,H,W,C] -> ([N*Ho*Wo, k*k*C], (N,Ho,Wo)); tap order (kh, kw, c)."""
    # TODO(synk): fold im2col into the Pallas grid (tap axis + accumulator) to avoid
    # materializing the k*k-expanded patches array through HBM.
    N, H, W, C = x.shape
    xp = jnp.pad(x, ((0, 0), (pad, pad), (pad, pad), (0, 0)))
    Ho = (H + 2 * pad - ksize) // stride + 1
    Wo = (W + 2 * pad - ksize) // stride + 1
    cols = []
    for kh in range(ksize):
        for kw in range(ksize):
            cols.append(xp[:, kh:kh + stride * (Ho - 1) + 1:stride,
                           kw:kw + stride * (Wo - 1) + 1:stride, :])
    patches = jnp.stack(cols, axis=3)                      # [N,Ho,Wo,k*k,C]
    return patches.reshape(N * Ho * Wo, ksize * ksize * C), (N, Ho, Wo)


def _deconv_phase_im2col(x):
    """x: [N,H,W,C] -> [4, N*H*W, 4*C] for ConvTranspose2d(k=4, stride=2, pad=1).

    Phase p = 2*py+px of the output at (2*by+py, 2*bx+px) only reads the 2x2
    neighborhood Xp[by+py+jy, bx+px+jx] of the 1-padded input (jy,jx in {0,1})."""
    N, H, W, C = x.shape
    xp = jnp.pad(x, ((0, 0), (1, 1), (1, 1), (0, 0)))
    phases = []
    for py in range(2):
        for px in range(2):
            taps = []
            for jy in range(2):
                for jx in range(2):
                    taps.append(xp[:, py + jy:py + jy + H, px + jx:px + jx + W, :])
            phases.append(jnp.stack(taps, axis=3).reshape(N * H * W, 4 * C))
    return jnp.stack(phases, axis=0)


def _deconv_phase_weights(w_t):
    """w_t: [Cin, Cout, 4, 4] (PyTorch ConvTranspose2d) -> [4, 4*Cin, Cout].

    For phase py: tap jy uses kernel row (3-2*jy) if py==0 else (2-2*jy); same in x."""
    Cin, Cout = w_t.shape[0], w_t.shape[1]
    mats = []
    for py in range(2):
        for px in range(2):
            taps = []
            for jy in range(2):
                ky = 3 - 2 * jy if py == 0 else 2 - 2 * jy
                for jx in range(2):
                    kx = 3 - 2 * jx if px == 0 else 2 - 2 * jx
                    taps.append(w_t[:, :, ky, kx])          # [Cin, Cout]
            mats.append(jnp.stack(taps, axis=0).reshape(4 * Cin, Cout))
    return jnp.stack(mats, axis=0)


def _interleave_phases(y, N, H, W, C):
    """y: [4, N*H*W, C] (p = 2*py+px) -> [N, 2H, 2W, C] pixel-shuffle."""
    y = y.reshape(2, 2, N, H, W, C)
    y = jnp.transpose(y, (2, 3, 0, 4, 1, 5))               # [N, H, py, W, px, C]
    return y.reshape(N, 2 * H, 2 * W, C)


# -----------------------------------------------------------------------------
# Parameters
# -----------------------------------------------------------------------------

def init_params(key):
    """PyTorch-layout parameters (weight_init(0, 0.02) semantics, zero biases)."""
    std = 0.02
    p = {}
    ks = iter(jax.random.split(key, 32))
    mul, inputs = 1, CHANNELS
    for i in range(LAYER_COUNT):
        cout = D * mul
        p[f"conv{i+1}_w"] = std * jax.random.normal(next(ks), (cout, inputs, 4, 4), jnp.float32)
        p[f"conv{i+1}_b"] = jnp.zeros((cout,), jnp.float32)
        p[f"bn{i+1}_g"] = jnp.ones((cout,), jnp.float32)
        p[f"bn{i+1}_b"] = jnp.zeros((cout,), jnp.float32)
        inputs, mul = cout, mul * 2
    p["fc1_w"] = std * jax.random.normal(next(ks), (ZSIZE, D_MAX * 16), jnp.float32)
    p["fc1_b"] = jnp.zeros((ZSIZE,), jnp.float32)
    p["fc2_w"] = std * jax.random.normal(next(ks), (ZSIZE, D_MAX * 16), jnp.float32)
    p["fc2_b"] = jnp.zeros((ZSIZE,), jnp.float32)
    p["d1_w"] = std * jax.random.normal(next(ks), (D_MAX * 16, ZSIZE), jnp.float32)
    p["d1_b"] = jnp.zeros((D_MAX * 16,), jnp.float32)
    inputs = D_MAX
    mul = inputs // D // 2
    for i in range(1, LAYER_COUNT):
        cout = D * mul
        p[f"deconv{i+1}_w"] = std * jax.random.normal(next(ks), (inputs, cout, 4, 4), jnp.float32)
        p[f"deconv{i+1}_b"] = jnp.zeros((cout,), jnp.float32)
        p[f"debn{i+1}_g"] = jnp.ones((cout,), jnp.float32)
        p[f"debn{i+1}_b"] = jnp.zeros((cout,), jnp.float32)
        inputs, mul = cout, mul // 2
    p[f"deconv{LAYER_COUNT+1}_w"] = std * jax.random.normal(
        next(ks), (inputs, CHANNELS, 4, 4), jnp.float32)
    p[f"deconv{LAYER_COUNT+1}_b"] = jnp.zeros((CHANNELS,), jnp.float32)
    return p


def prepare_params(p):
    """One-time weight packing: transposes / phase decomposition / lane padding / bf16."""
    q = {}
    # encoder convs: [Cout, Cin, 4, 4] -> [kh*kw*Cin, Cout] bf16 (tap order kh,kw,cin)
    for i in range(LAYER_COUNT):
        w = p[f"conv{i+1}_w"]
        Cout, Cin, kh, kw = w.shape
        q[f"conv{i+1}_w"] = jnp.transpose(w, (2, 3, 1, 0)).reshape(
            kh * kw * Cin, Cout).astype(jnp.bfloat16)
        q[f"conv{i+1}_b"] = p[f"conv{i+1}_b"].reshape(1, Cout)
        q[f"bn{i+1}_g"] = p[f"bn{i+1}_g"].reshape(1, Cout)
        q[f"bn{i+1}_b"] = p[f"bn{i+1}_b"].reshape(1, Cout)
    # fused fc1/fc2 head: [4096, 128] (mu | logvar | zero pad), lane-dense
    K = D_MAX * 16
    wcat = jnp.zeros((K, LANES), jnp.float32)
    wcat = wcat.at[:, :ZSIZE].set(p["fc1_w"].T).at[:, ZSIZE:2 * ZSIZE].set(p["fc2_w"].T)
    bcat = jnp.zeros((1, LANES), jnp.float32)
    bcat = bcat.at[0, :ZSIZE].set(p["fc1_b"]).at[0, ZSIZE:2 * ZSIZE].set(p["fc2_b"])
    q["fc_wcat"] = wcat.astype(jnp.bfloat16)
    q["fc_bcat"] = bcat
    q["d1_w"] = p["d1_w"].T.astype(jnp.bfloat16)            # [ZSIZE, 4096]
    q["d1_b"] = p["d1_b"].reshape(1, -1)
    # decoder deconvs with BN: stride-phase weights [4, 4*Cin, Cout] bf16
    for i in range(1, LAYER_COUNT):
        w = p[f"deconv{i+1}_w"]
        Cout = w.shape[1]
        q[f"deconv{i+1}_w"] = _deconv_phase_weights(w).astype(jnp.bfloat16)
        q[f"deconv{i+1}_b"] = p[f"deconv{i+1}_b"].reshape(1, Cout)
        q[f"debn{i+1}_g"] = p[f"debn{i+1}_g"].reshape(1, Cout)
        q[f"debn{i+1}_b"] = p[f"debn{i+1}_b"].reshape(1, Cout)
    # final deconv: phase weights, output channels padded 3 -> 128 for lane-dense stores
    wl = p[f"deconv{LAYER_COUNT+1}_w"]
    Cin = wl.shape[0]
    wp = _deconv_phase_weights(wl)                          # [4, 4*Cin, 3]
    wpad = jnp.zeros((4, 4 * Cin, LANES), jnp.float32).at[:, :, :CHANNELS].set(wp)
    q["deconv_out_w"] = wpad.astype(jnp.bfloat16)
    q["deconv_out_b"] = jnp.zeros((1, LANES), jnp.float32).at[0, :CHANNELS].set(
        p[f"deconv{LAYER_COUNT+1}_b"])
    return q


# -----------------------------------------------------------------------------
# Forward
# -----------------------------------------------------------------------------

def vae_forward(params, x_nchw, eps):
    """Returns (reconstruction NCHW f32, mu, logvar). Training-mode semantics
    (batch-stat BatchNorm, stochastic reparameterization with provided eps)."""
    q = params
    B = x_nchw.shape[0]
    x = jnp.transpose(x_nchw, (0, 2, 3, 1)).astype(jnp.bfloat16)      # NCHW -> NHWC

    # ---- encode: conv + BN + ReLU fused per layer ----
    for i in range(LAYER_COUNT):
        A, (N, Ho, Wo) = _im2col(x, 4, 2, 1)
        w = q[f"conv{i+1}_w"]
        y = conv_bn_act(A, w, q[f"conv{i+1}_b"], q[f"bn{i+1}_g"], q[f"bn{i+1}_b"],
                        slope=0.0)                                     # ReLU
        x = y.reshape(N, Ho, Wo, w.shape[1])

    # flatten exactly like PyTorch's x.view(B, C*H*W) on NCHW
    flat = jnp.transpose(x, (0, 3, 1, 2)).reshape(B, D_MAX * 16)

    # ---- fc1 + fc2 + reparameterize + d1 + leaky_relu: one kernel ----
    lat, h = fc_fused(flat, q["fc_wcat"], q["fc_bcat"], eps, q["d1_w"], q["d1_b"])
    mu = lat[:, :ZSIZE]
    logvar = lat[:, ZSIZE:2 * ZSIZE]

    # ---- decode ----
    x = jnp.transpose(h.reshape(B, D_MAX, 4, 4), (0, 2, 3, 1))         # NCHW view -> NHWC
    for i in range(1, LAYER_COUNT):
        N, H, W, _ = x.shape
        Ap = _deconv_phase_im2col(x)                                   # [4, N*H*W, 4*Cin]
        w = q[f"deconv{i+1}_w"]
        Cout = w.shape[2]
        y = deconv_bn_act(Ap, w, q[f"deconv{i+1}_b"], q[f"debn{i+1}_g"],
                          q[f"debn{i+1}_b"], slope=0.2)                # [4*N*H*W, Cout]
        x = _interleave_phases(y.reshape(4, N * H * W, Cout), N, H, W, Cout)

    # final deconv + tanh (lane-padded 128 channels, tiled parallel grid)
    N, H, W, _ = x.shape
    Ap = _deconv_phase_im2col(x)
    y = deconv_out(Ap, q["deconv_out_w"], q["deconv_out_b"])           # [4, N*H*W, 128]
    xo = _interleave_phases(y, N, H, W, LANES)[..., :CHANNELS]
    recon = jnp.transpose(xo, (0, 3, 1, 2))                            # NHWC -> NCHW
    return recon, mu, logvar


# -----------------------------------------------------------------------------

if __name__ == "__main__":
    key = jax.random.PRNGKey(0)
    k_param, k_x, k_eps = jax.random.split(key, 3)

    raw_params = init_params(k_param)
    params = prepare_params(raw_params)

    x = jax.random.normal(k_x, (2, CHANNELS, IMG, IMG), jnp.float32)   # NCHW input
    eps = jax.random.normal(k_eps, (2, ZSIZE), jnp.float32)            # reparam noise

    recon, mu, logvar = jax.jit(vae_forward)(params, x, eps)
    jax.block_until_ready((recon, mu, logvar))

    assert recon.shape == (2, CHANNELS, IMG, IMG)
    assert mu.shape == (2, ZSIZE) and logvar.shape == (2, ZSIZE)
    print("KERNEL_OK")
</pallas_src>

<mosaic_0001>
module attributes {stable_mosaic.version = 11 : i64} {
  func.func @_conv_bn_act_kernel(%arg0: i32, %arg1: memref<128x48xbf16, #tpu.memory_space<vmem>>, %arg2: memref<48x128xbf16, #tpu.memory_space<vmem>>, %arg3: memref<1x128xf32, #tpu.memory_space<vmem>>, %arg4: memref<1x128xf32, #tpu.memory_space<vmem>>, %arg5: memref<1x128xf32, #tpu.memory_space<vmem>>, %arg6: memref<128x128xbf16, #tpu.memory_space<vmem>>) attributes {dimension_semantics = [#tpu.dimension_semantics<arbitrary>], iteration_bounds = array<i64: 1>, scalar_prefetch = 0 : i64, scratch_operands = 0 : i64, tpu.core_type = #tpu.core_type<tc>, window_params = [{pipeline_mode = #tpu.pipeline_mode<synchronous>, transform_indices = @transform_0, window_bounds = array<i64: 128, 48>}, {pipeline_mode = #tpu.pipeline_mode<synchronous>, transform_indices = @transform_1, window_bounds = array<i64: 48, 128>}, {pipeline_mode = #tpu.pipeline_mode<synchronous>, transform_indices = @transform_2, window_bounds = array<i64: 1, 128>}, {pipeline_mode = #tpu.pipeline_mode<synchronous>, transform_indices = @transform_3, window_bounds = array<i64: 1, 128>}, {pipeline_mode = #tpu.pipeline_mode<synchronous>, transform_indices = @transform_4, window_bounds = array<i64: 1, 128>}, {pipeline_mode = #tpu.pipeline_mode<synchronous>, transform_indices = @transform_5, window_bounds = array<i64: 128, 128>}]} {
    %c0 = arith.constant 0 : index
    %c0_0 = arith.constant 0 : index
    %0 = vector.load %arg1[%c0, %c0_0] : memref<128x48xbf16, #tpu.memory_space<vmem>>, vector<128x48xbf16>
    %c0_1 = arith.constant 0 : index
    %c0_2 = arith.constant 0 : index
    %1 = vector.load %arg2[%c0_1, %c0_2] : memref<48x128xbf16, #tpu.memory_space<vmem>>, vector<48x128xbf16>
    %cst = arith.constant dense<0.000000e+00> : vector<128x128xf32>
    %2 = tpu.matmul %0, %1, %cst {dimension_numbers = #tpu.dot_dimension_numbers<[1], [0], [0], [1], [0, 0, 1, 1], [], []>} : vector<128x48xbf16>, vector<48x128xbf16>, vector<128x128xf32> -> vector<128x128xf32>
    %c0_3 = arith.constant 0 : index
    %c0_4 = arith.constant 0 : index
    %3 = vector.load %arg3[%c0_3, %c0_4] : memref<1x128xf32, #tpu.memory_space<vmem>>, vector<1x128xf32>
    %4 = vector.broadcast %3 : vector<1x128xf32> to vector<128x128xf32>
    %5 = arith.addf %2, %4 : vector<128x128xf32>
    %cst_5 = arith.constant dense<0.000000e+00> : vector<128xf32>
    %6 = vector.multi_reduction <add>, %5, %cst_5 [0] : vector<128x128xf32> to vector<128xf32>
    %7 = vector.shape_cast %6 : vector<128xf32> to vector<1x128xf32>
    %cst_6 = arith.constant 1.280000e+02 : f32
    %8 = vector.broadcast %cst_6 : f32 to vector<1x128xf32>
    %9 = arith.divf %7, %8 : vector<1x128xf32>
    %10 = vector.broadcast %9 : vector<1x128xf32> to vector<128x128xf32>
    %11 = arith.subf %5, %10 : vector<128x128xf32>
    %12 = arith.mulf %11, %11 : vector<128x128xf32>
    %cst_7 = arith.constant dense<0.000000e+00> : vector<128xf32>
    %13 = vector.multi_reduction <add>, %12, %cst_7 [0] : vector<128x128xf32> to vector<128xf32>
    %14 = vector.shape_cast %13 : vector<128xf32> to vector<1x128xf32>
    %cst_8 = arith.constant 1.280000e+02 : f32
    %15 = vector.broadcast %cst_8 : f32 to vector<1x128xf32>
    %16 = arith.divf %14, %15 : vector<1x128xf32>
    %17 = vector.broadcast %9 : vector<1x128xf32> to vector<128x128xf32>
    %18 = arith.subf %5, %17 : vector<128x128xf32>
    %cst_9 = arith.constant 9.99999974E-6 : f32
    %19 = vector.broadcast %cst_9 : f32 to vector<1x128xf32>
    %20 = arith.addf %16, %19 : vector<1x128xf32>
    %21 = math.rsqrt %20 : vector<1x128xf32>
    %22 = vector.broadcast %21 : vector<1x128xf32> to vector<128x128xf32>
    %23 = arith.mulf %18, %22 : vector<128x128xf32>
    %c0_10 = arith.constant 0 : index
    %c0_11 = arith.constant 0 : index
    %24 = vector.load %arg4[%c0_10, %c0_11] : memref<1x128xf32, #tpu.memory_space<vmem>>, vector<1x128xf32>
    %25 = vector.broadcast %24 : vector<1x128xf32> to vector<128x128xf32>
    %26 = arith.mulf %23, %25 : vector<128x128xf32>
    %c0_12 = arith.constant 0 : index
    %c0_13 = arith.constant 0 : index
    %27 = vector.load %arg5[%c0_12, %c0_13] : memref<1x128xf32, #tpu.memory_space<vmem>>, vector<1x128xf32>
    %28 = vector.broadcast %27 : vector<1x128xf32> to vector<128x128xf32>
    %29 = arith.addf %26, %28 : vector<128x128xf32>
    %cst_14 = arith.constant 0.000000e+00 : f32
    %30 = vector.broadcast %cst_14 : f32 to vector<128x128xf32>
    %31 = arith.cmpf oge, %29, %30 : vector<128x128xf32>
    %cst_15 = arith.constant 0.000000e+00 : f32
    %32 = vector.broadcast %cst_15 : f32 to vector<128x128xf32>
    %33 = arith.mulf %32, %29 : vector<128x128xf32>
    %34 = arith.select %31, %29, %33 : vector<128x128xi1>, vector<128x128xf32>
    %35 = arith.truncf %34 : vector<128x128xf32> to vector<128x128xbf16>
    %c0_16 = arith.constant 0 : index
    %c0_17 = arith.constant 0 : index
    %36 = vector.load %arg6[%c0_16, %c0_17] : memref<128x128xbf16, #tpu.memory_space<vmem>>, vector<128x128xbf16>
    tpu.vector_store %arg6[%c0_16, %c0_17], %35 {strides = array<i32>} : memref<128x128xbf16, #tpu.memory_space<vmem>>, vector<128x128xbf16>,
    return
  }
  func.func @transform_0(%arg0: i32) -> (i32, i32) {
    %c0_i32 = arith.constant 0 : i32
    %c0_i32_0 = arith.constant 0 : i32
    %c0_i32_1 = arith.constant 0 : i32
    return %c0_i32, %c0_i32_0 : i32, i32
  }
  func.func @transform_1(%arg0: i32) -> (i32, i32) {
    %c0_i32 = arith.constant 0 : i32
    %c0_i32_0 = arith.constant 0 : i32
    %c0_i32_1 = arith.constant 0 : i32
    return %c0_i32, %c0_i32_0 : i32, i32
  }
  func.func @transform_2(%arg0: i32) -> (i32, i32) {
    %c0_i32 = arith.constant 0 : i32
    %c0_i32_0 = arith.constant 0 : i32
    %c0_i32_1 = arith.constant 0 : i32
    return %c0_i32, %c0_i32_0 : i32, i32
  }
  func.func @transform_3(%arg0: i32) -> (i32, i32) {
    %c0_i32 = arith.constant 0 : i32
    %c0_i32_0 = arith.constant 0 : i32
    %c0_i32_1 = arith.constant 0 : i32
    return %c0_i32, %c0_i32_0 : i32, i32
  }
  func.func @transform_4(%arg0: i32) -> (i32, i32) {
    %c0_i32 = arith.constant 0 : i32
    %c0_i32_0 = arith.constant 0 : i32
    %c0_i32_1 = arith.constant 0 : i32
    return %c0_i32, %c0_i32_0 : i32, i32
  }
  func.func @transform_5(%arg0: i32) -> (i32, i32) {
    %c0_i32 = arith.constant 0 : i32
    %c0_i32_0 = arith.constant 0 : i32
    %c0_i32_1 = arith.constant 0 : i32
    return %c0_i32, %c0_i32_0 : i32, i32
  }
}

module attributes {stable_mosaic.version = 11 : i64} {
  func.func @_conv_bn_act_kernel(%arg0: i32, %arg1: memref<32x2048xbf16, #tpu.memory_space<vmem>>, %arg2: memref<2048x256xbf16, #tpu.memory_space<vmem>>, %arg3: memref<1x256xf32, #tpu.memory_space<vmem>>, %arg4: memref<1x256xf32, #tpu.memory_space<vmem>>, %arg5: memref<1x256xf32, #tpu.memory_space<vmem>>, %arg6: memref<32x256xbf16, #tpu.memory_space<vmem>>) attributes {dimension_semantics = [#tpu.dimension_semantics<arbitrary>], iteration_bounds = array<i64: 1>, scalar_prefetch = 0 : i64, scratch_operands = 0 : i64, tpu.core_type = #tpu.core_type<tc>, window_params = [{pipeline_mode = #tpu.pipeline_mode<synchronous>, transform_indices = @transform_0, window_bounds = array<i64: 32, 2048>}, {pipeline_mode = #tpu.pipeline_mode<synchronous>, transform_indices = @transform_1, window_bounds = array<i64: 2048, 256>}, {pipeline_mode = #tpu.pipeline_mode<synchronous>, transform_indices = @transform_2, window_bounds = array<i64: 1, 256>}, {pipeline_mode = #tpu.pipeline_mode<synchronous>, transform_indices = @transform_3, window_bounds = array<i64: 1, 256>}, {pipeline_mode = #tpu.pipeline_mode<synchronous>, transform_indices = @transform_4, window_bounds = array<i64: 1, 256>}, {pipeline_mode = #tpu.pipeline_mode<synchronous>, transform_indices = @transform_5, window_bounds = array<i64: 32, 256>}]} {
    %c0 = arith.constant 0 : index
    %c0_0 = arith.constant 0 : index
    %0 = vector.load %arg1[%c0, %c0_0] : memref<32x2048xbf16, #tpu.memory_space<vmem>>, vector<32x2048xbf16>
    %c0_1 = arith.constant 0 : index
    %c0_2 = arith.constant 0 : index
    %1 = vector.load %arg2[%c0_1, %c0_2] : memref<2048x256xbf16, #tpu.memory_space<vmem>>, vector<2048x256xbf16>
    %cst = arith.constant dense<0.000000e+00> : vector<32x256xf32>
    %2 = tpu.matmul %0, %1, %cst {dimension_numbers = #tpu.dot_dimension_numbers<[1], [0], [0], [1], [0, 0, 1, 1], [], []>} : vector<32x2048xbf16>, vector<2048x256xbf16>, vector<32x256xf32> -> vector<32x256xf32>
    %c0_3 = arith.constant 0 : index
    %c0_4 = arith.constant 0 : index
    %3 = vector.load %arg3[%c0_3, %c0_4] : memref<1x256xf32, #tpu.memory_space<vmem>>, vector<1x256xf32>
    %4 = vector.broadcast %3 : vector<1x256xf32> to vector<32x256xf32>
    %5 = arith.addf %2, %4 : vector<32x256xf32>
    %cst_5 = arith.constant dense<0.000000e+00> : vector<256xf32>
    %6 = vector.multi_reduction <add>, %5, %cst_5 [0] : vector<32x256xf32> to vector<256xf32>
    %7 = vector.shape_cast %6 : vector<256xf32> to vector<1x256xf32>
    %cst_6 = arith.constant 3.200000e+01 : f32
    %8 = vector.broadcast %cst_6 : f32 to vector<1x256xf32>
    %9 = arith.divf %7, %8 : vector<1x256xf32>
    %10 = vector.broadcast %9 : vector<1x256xf32> to vector<32x256xf32>
    %11 = arith.subf %5, %10 : vector<32x256xf32>
    %12 = arith.mulf %11, %11 : vector<32x256xf32>
    %cst_7 = arith.constant dense<0.000000e+00> : vector<256xf32>
    %13 = vector.multi_reduction <add>, %12, %cst_7 [0] : vector<32x256xf32> to vector<256xf32>
    %14 = vector.shape_cast %13 : vector<256xf32> to vector<1x256xf32>
    %cst_8 = arith.constant 3.200000e+01 : f32
    %15 = vector.broadcast %cst_8 : f32 to vector<1x256xf32>
    %16 = arith.divf %14, %15 : vector<1x256xf32>
    %17 = vector.broadcast %9 : vector<1x256xf32> to vector<32x256xf32>
    %18 = arith.subf %5, %17 : vector<32x256xf32>
    %cst_9 = arith.constant 9.99999974E-6 : f32
    %19 = vector.broadcast %cst_9 : f32 to vector<1x256xf32>
    %20 = arith.addf %16, %19 : vector<1x256xf32>
    %21 = math.rsqrt %20 : vector<1x256xf32>
    %22 = vector.broadcast %21 : vector<1x256xf32> to vector<32x256xf32>
    %23 = arith.mulf %18, %22 : vector<32x256xf32>
    %c0_10 = arith.constant 0 : index
    %c0_11 = arith.constant 0 : index
    %24 = vector.load %arg4[%c0_10, %c0_11] : memref<1x256xf32, #tpu.memory_space<vmem>>, vector<1x256xf32>
    %25 = vector.broadcast %24 : vector<1x256xf32> to vector<32x256xf32>
    %26 = arith.mulf %23, %25 : vector<32x256xf32>
    %c0_12 = arith.constant 0 : index
    %c0_13 = arith.constant 0 : index
    %27 = vector.load %arg5[%c0_12, %c0_13] : memref<1x256xf32, #tpu.memory_space<vmem>>, vector<1x256xf32>
    %28 = vector.broadcast %27 : vector<1x256xf32> to vector<32x256xf32>
    %29 = arith.addf %26, %28 : vector<32x256xf32>
    %cst_14 = arith.constant 0.000000e+00 : f32
    %30 = vector.broadcast %cst_14 : f32 to vector<32x256xf32>
    %31 = arith.cmpf oge, %29, %30 : vector<32x256xf32>
    %cst_15 = arith.constant 0.000000e+00 : f32
    %32 = vector.broadcast %cst_15 : f32 to vector<32x256xf32>
    %33 = arith.mulf %32, %29 : vector<32x256xf32>
    %34 = arith.select %31, %29, %33 : vector<32x256xi1>, vector<32x256xf32>
    %35 = arith.truncf %34 : vector<32x256xf32> to vector<32x256xbf16>
    %c0_16 = arith.constant 0 : index
    %c0_17 = arith.constant 0 : index
    %36 = vector.load %arg6[%c0_16, %c0_17] : memref<32x256xbf16, #tpu.memory_space<vmem>>, vector<32x256xbf16>
    tpu.vector_store %arg6[%c0_16, %c0_17], %35 {strides = array<i32>} : memref<32x256xbf16, #tpu.memory_space<vmem>>, vector<32x256xbf16>,
    return
  }
  func.func @transform_0(%arg0: i32) -> (i32, i32) {
    %c0_i32 = arith.constant 0 : i32
    %c0_i32_0 = arith.constant 0 : i32
    %c0_i32_1 = arith.constant 0 : i32
    return %c0_i32, %c0_i32_0 : i32, i32
  }
  func.func @transform_1(%arg0: i32) -> (i32, i32) {
    %c0_i32 = arith.constant 0 : i32
    %c0_i32_0 = arith.constant 0 : i32
    %c0_i32_1 = arith.constant 0 : i32
    return %c0_i32, %c0_i32_0 : i32, i32
  }
  func.func @transform_2(%arg0: i32) -> (i32, i32) {
    %c0_i32 = arith.constant 0 : i32
    %c0_i32_0 = arith.constant 0 : i32
    %c0_i32_1 = arith.constant 0 : i32
    return %c0_i32, %c0_i32_0 : i32, i32
  }
  func.func @transform_3(%arg0: i32) -> (i32, i32) {
    %c0_i32 = arith.constant 0 : i32
    %c0_i32_0 = arith.constant 0 : i32
    %c0_i32_1 = arith.constant 0 : i32
    return %c0_i32, %c0_i32_0 : i32, i32
  }
  func.func @transform_4(%arg0: i32) -> (i32, i32) {
    %c0_i32 = arith.constant 0 : i32
    %c0_i32_0 = arith.constant 0 : i32
    %c0_i32_1 = arith.constant 0 : i32
    return %c0_i32, %c0_i32_0 : i32, i32
  }
  func.func @transform_5(%arg0: i32) -> (i32, i32) {
    %c0_i32 = arith.constant 0 : i32
    %c0_i32_0 = arith.constant 0 : i32
    %c0_i32_1 = arith.constant 0 : i32
    return %c0_i32, %c0_i32_0 : i32, i32
  }
}

module attributes {stable_mosaic.version = 11 : i64} {
  func.func @_latent_kernel(%arg0: i32, %arg1: memref<2x4096xbf16, #tpu.memory_space<vmem>>, %arg2: memref<4096x128xbf16, #tpu.memory_space<vmem>>, %arg3: memref<1x128xf32, #tpu.memory_space<vmem>>, %arg4: memref<2x32xf32, #tpu.memory_space<vmem>>, %arg5: memref<32x4096xbf16, #tpu.memory_space<vmem>>, %arg6: memref<1x4096xf32, #tpu.memory_space<vmem>>, %arg7: memref<2x128xf32, #tpu.memory_space<vmem>>, %arg8: memref<2x4096xbf16, #tpu.memory_space<vmem>>) attributes {dimension_semantics = [#tpu.dimension_semantics<arbitrary>], iteration_bounds = array<i64: 1>, scalar_prefetch = 0 : i64, scratch_operands = 0 : i64, tpu.core_type = #tpu.core_type<tc>, window_params = [{pipeline_mode = #tpu.pipeline_mode<synchronous>, transform_indices = @transform_0, window_bounds = array<i64: 2, 4096>}, {pipeline_mode = #tpu.pipeline_mode<synchronous>, transform_indices = @transform_1, window_bounds = array<i64: 4096, 128>}, {pipeline_mode = #tpu.pipeline_mode<synchronous>, transform_indices = @transform_2, window_bounds = array<i64: 1, 128>}, {pipeline_mode = #tpu.pipeline_mode<synchronous>, transform_indices = @transform_3, window_bounds = array<i64: 2, 32>}, {pipeline_mode = #tpu.pipeline_mode<synchronous>, transform_indices = @transform_4, window_bounds = array<i64: 32, 4096>}, {pipeline_mode = #tpu.pipeline_mode<synchronous>, transform_indices = @transform_5, window_bounds = array<i64: 1, 4096>}, {pipeline_mode = #tpu.pipeline_mode<synchronous>, transform_indices = @transform_6, window_bounds = array<i64: 2, 128>}, {pipeline_mode = #tpu.pipeline_mode<synchronous>, transform_indices = @transform_7, window_bounds = array<i64: 2, 4096>}]} {
    %c0 = arith.constant 0 : index
    %c0_0 = arith.constant 0 : index
    %0 = vector.load %arg1[%c0, %c0_0] : memref<2x4096xbf16, #tpu.memory_space<vmem>>, vector<2x4096xbf16>
    %c0_1 = arith.constant 0 : index
    %c0_2 = arith.constant 0 : index
    %1 = vector.load %arg2[%c0_1, %c0_2] : memref<4096x128xbf16, #tpu.memory_space<vmem>>, vector<4096x128xbf16>
    %cst = arith.constant dense<0.000000e+00> : vector<2x128xf32>
    %2 = tpu.matmul %0, %1, %cst {dimension_numbers = #tpu.dot_dimension_numbers<[1], [0], [0], [1], [0, 0, 1, 1], [], []>} : vector<2x4096xbf16>, vector<4096x128xbf16>, vector<2x128xf32> -> vector<2x128xf32>
    %c0_3 = arith.constant 0 : index
    %c0_4 = arith.constant 0 : index
    %3 = vector.load %arg3[%c0_3, %c0_4] : memref<1x128xf32, #tpu.memory_space<vmem>>, vector<1x128xf32>
    %4 = vector.broadcast %3 : vector<1x128xf32> to vector<2x128xf32>
    %5 = arith.addf %2, %4 : vector<2x128xf32>
    %6 = vector.extract_strided_slice %5 {offsets = [0, 0], sizes = [2, 32], strides = [1, 1]} : vector<2x128xf32> to vector<2x32xf32>
    %7 = vector.extract_strided_slice %5 {offsets = [0, 32], sizes = [2, 32], strides = [1, 1]} : vector<2x128xf32> to vector<2x32xf32>
    %c0_5 = arith.constant 0 : index
    %c0_6 = arith.constant 0 : index
    %8 = vector.load %arg4[%c0_5, %c0_6] : memref<2x32xf32, #tpu.memory_space<vmem>>, vector<2x32xf32>
    %cst_7 = arith.constant 5.000000e-01 : f32
    %9 = vector.broadcast %cst_7 : f32 to vector<2x32xf32>
    %10 = arith.mulf %9, %7 : vector<2x32xf32>
    %11 = math.exp %10 : vector<2x32xf32>
    %12 = arith.mulf %8, %11 : vector<2x32xf32>
    %13 = arith.addf %12, %6 : vector<2x32xf32>
    %14 = arith.truncf %13 : vector<2x32xf32> to vector<2x32xbf16>
    %c0_8 = arith.constant 0 : index
    %c0_9 = arith.constant 0 : index
    %15 = vector.load %arg5[%c0_8, %c0_9] : memref<32x4096xbf16, #tpu.memory_space<vmem>>, vector<32x4096xbf16>
    %cst_10 = arith.constant dense<0.000000e+00> : vector<2x4096xf32>
    %16 = tpu.matmul %14, %15, %cst_10 {dimension_numbers = #tpu.dot_dimension_numbers<[1], [0], [0], [1], [0, 0, 1, 1], [], []>} : vector<2x32xbf16>, vector<32x4096xbf16>, vector<2x4096xf32> -> vector<2x4096xf32>
    %c0_11 = arith.constant 0 : index
    %c0_12 = arith.constant 0 : index
    %17 = vector.load %arg6[%c0_11, %c0_12] : memref<1x4096xf32, #tpu.memory_space<vmem>>, vector<1x4096xf32>
    %18 = vector.broadcast %17 : vector<1x4096xf32> to vector<2x4096xf32>
    %19 = arith.addf %16, %18 : vector<2x4096xf32>
    %cst_13 = arith.constant 0.000000e+00 : f32
    %20 = vector.broadcast %cst_13 : f32 to vector<2x4096xf32>
    %21 = arith.cmpf oge, %19, %20 : vector<2x4096xf32>
    %cst_14 = arith.constant 2.000000e-01 : f32
    %22 = vector.broadcast %cst_14 : f32 to vector<2x4096xf32>
    %23 = arith.mulf %22, %19 : vector<2x4096xf32>
    %24 = arith.select %21, %19, %23 : vector<2x4096xi1>, vector<2x4096xf32>
    %c0_15 = arith.constant 0 : index
    %c0_16 = arith.constant 0 : index
    %25 = vector.load %arg7[%c0_15, %c0_16] : memref<2x128xf32, #tpu.memory_space<vmem>>, vector<2x128xf32>
    tpu.vector_store %arg7[%c0_15, %c0_16], %5 {strides = array<i32>} : memref<2x128xf32, #tpu.memory_space<vmem>>, vector<2x128xf32>,
    %26 = arith.truncf %24 : vector<2x4096xf32> to vector<2x4096xbf16>
    %c0_17 = arith.constant 0 : index
    %c0_18 = arith.constant 0 : index
    %27 = vector.load %arg8[%c0_17, %c0_18] : memref<2x4096xbf16, #tpu.memory_space<vmem>>, vector<2x4096xbf16>
    tpu.vector_store %arg8[%c0_17, %c0_18], %26 {strides = array<i32>} : memref<2x4096xbf16, #tpu.memory_space<vmem>>, vector<2x4096xbf16>,
    return
  }
  func.func @transform_0(%arg0: i32) -> (i32, i32) {
    %c0_i32 = arith.constant 0 : i32
    %c0_i32_0 = arith.constant 0 : i32
    %c0_i32_1 = arith.constant 0 : i32
    return %c0_i32, %c0_i32_0 : i32, i32
  }
  func.func @transform_1(%arg0: i32) -> (i32, i32) {
    %c0_i32 = arith.constant 0 : i32
    %c0_i32_0 = arith.constant 0 : i32
    %c0_i32_1 = arith.constant 0 : i32
    return %c0_i32, %c0_i32_0 : i32, i32
  }
  func.func @transform_2(%arg0: i32) -> (i32, i32) {
    %c0_i32 = arith.constant 0 : i32
    %c0_i32_0 = arith.constant 0 : i32
    %c0_i32_1 = arith.constant 0 : i32
    return %c0_i32, %c0_i32_0 : i32, i32
  }
  func.func @transform_3(%arg0: i32) -> (i32, i32) {
    %c0_i32 = arith.constant 0 : i32
    %c0_i32_0 = arith.constant 0 : i32
    %c0_i32_1 = arith.constant 0 : i32
    return %c0_i32, %c0_i32_0 : i32, i32
  }
  func.func @transform_4(%arg0: i32) -> (i32, i32) {
    %c0_i32 = arith.constant 0 : i32
    %c0_i32_0 = arith.constant 0 : i32
    %c0_i32_1 = arith.constant 0 : i32
    return %c0_i32, %c0_i32_0 : i32, i32
  }
  func.func @transform_5(%arg0: i32) -> (i32, i32) {
    %c0_i32 = arith.constant 0 : i32
    %c0_i32_0 = arith.constant 0 : i32
    %c0_i32_1 = arith.constant 0 : i32
    return %c0_i32, %c0_i32_0 : i32, i32
  }
  func.func @transform_6(%arg0: i32) -> (i32, i32) {
    %c0_i32 = arith.constant 0 : i32
    %c0_i32_0 = arith.constant 0 : i32
    %c0_i32_1 = arith.constant 0 : i32
    return %c0_i32, %c0_i32_0 : i32, i32
  }
  func.func @transform_7(%arg0: i32) -> (i32, i32) {
    %c0_i32 = arith.constant 0 : i32
    %c0_i32_0 = arith.constant 0 : i32
    %c0_i32_1 = arith.constant 0 : i32
    return %c0_i32, %c0_i32_0 : i32, i32
  }
}

module attributes {stable_mosaic.version = 11 : i64} {
  func.func @_deconv_bn_act_kernel(%arg0: i32, %arg1: memref<4x32x1024xbf16, #tpu.memory_space<vmem>>, %arg2: memref<4x1024x128xbf16, #tpu.memory_space<vmem>>, %arg3: memref<1x128xf32, #tpu.memory_space<vmem>>, %arg4: memref<1x128xf32, #tpu.memory_space<vmem>>, %arg5: memref<1x128xf32, #tpu.memory_space<vmem>>, %arg6: memref<128x128xbf16, #tpu.memory_space<vmem>>) attributes {dimension_semantics = [#tpu.dimension_semantics<arbitrary>], iteration_bounds = array<i64: 1>, scalar_prefetch = 0 : i64, scratch_operands = 0 : i64, tpu.core_type = #tpu.core_type<tc>, window_params = [{pipeline_mode = #tpu.pipeline_mode<synchronous>, transform_indices = @transform_0, window_bounds = array<i64: 4, 32, 1024>}, {pipeline_mode = #tpu.pipeline_mode<synchronous>, transform_indices = @transform_1, window_bounds = array<i64: 4, 1024, 128>}, {pipeline_mode = #tpu.pipeline_mode<synchronous>, transform_indices = @transform_2, window_bounds = array<i64: 1, 128>}, {pipeline_mode = #tpu.pipeline_mode<synchronous>, transform_indices = @transform_3, window_bounds = array<i64: 1, 128>}, {pipeline_mode = #tpu.pipeline_mode<synchronous>, transform_indices = @transform_4, window_bounds = array<i64: 1, 128>}, {pipeline_mode = #tpu.pipeline_mode<synchronous>, transform_indices = @transform_5, window_bounds = array<i64: 128, 128>}]} {
    %c0 = arith.constant 0 : index
    %c0_0 = arith.constant 0 : index
    %c0_1 = arith.constant 0 : index
    %0 = vector.load %arg1[%c0, %c0_0, %c0_1] : memref<4x32x1024xbf16, #tpu.memory_space<vmem>>, vector<1x32x1024xbf16>
    %1 = vector.shape_cast %0 : vector<1x32x1024xbf16> to vector<32x1024xbf16>
    %c0_2 = arith.constant 0 : index
    %c0_3 = arith.constant 0 : index
    %c0_4 = arith.constant 0 : index
    %2 = vector.load %arg2[%c0_2, %c0_3, %c0_4] : memref<4x1024x128xbf16, #tpu.memory_space<vmem>>, vector<1x1024x128xbf16>
    %3 = vector.shape_cast %2 : vector<1x1024x128xbf16> to vector<1024x128xbf16>
    %cst = arith.constant dense<0.000000e+00> : vector<32x128xf32>
    %4 = tpu.matmul %1, %3, %cst {dimension_numbers = #tpu.dot_dimension_numbers<[1], [0], [0], [1], [0, 0, 1, 1], [], []>} : vector<32x1024xbf16>, vector<1024x128xbf16>, vector<32x128xf32> -> vector<32x128xf32>
    %c0_5 = arith.constant 0 : index
    %c0_6 = arith.constant 0 : index
    %5 = vector.load %arg3[%c0_5, %c0_6] : memref<1x128xf32, #tpu.memory_space<vmem>>, vector<1x128xf32>
    %6 = vector.broadcast %5 : vector<1x128xf32> to vector<32x128xf32>
    %7 = arith.addf %4, %6 : vector<32x128xf32>
    %c1 = arith.constant 1 : index
    %c0_7 = arith.constant 0 : index
    %c0_8 = arith.constant 0 : index
    %8 = vector.load %arg1[%c1, %c0_7, %c0_8] : memref<4x32x1024xbf16, #tpu.memory_space<vmem>>, vector<1x32x1024xbf16>
    %9 = vector.shape_cast %8 : vector<1x32x1024xbf16> to vector<32x1024xbf16>
    %c1_9 = arith.constant 1 : index
    %c0_10 = arith.constant 0 : index
    %c0_11 = arith.constant 0 : index
    %10 = vector.load %arg2[%c1_9, %c0_10, %c0_11] : memref<4x1024x128xbf16, #tpu.memory_space<vmem>>, vector<1x1024x128xbf16>
    %11 = vector.shape_cast %10 : vector<1x1024x128xbf16> to vector<1024x128xbf16>
    %cst_12 = arith.constant dense<0.000000e+00> : vector<32x128xf32>
    %12 = tpu.matmul %9, %11, %cst_12 {dimension_numbers = #tpu.dot_dimension_numbers<[1], [0], [0], [1], [0, 0, 1, 1], [], []>} : vector<32x1024xbf16>, vector<1024x128xbf16>, vector<32x128xf32> -> vector<32x128xf32>
    %c0_13 = arith.constant 0 : index
    %c0_14 = arith.constant 0 : index
    %13 = vector.load %arg3[%c0_13, %c0_14] : memref<1x128xf32, #tpu.memory_space<vmem>>, vector<1x128xf32>
    %14 = vector.broadcast %13 : vector<1x128xf32> to vector<32x128xf32>
    %15 = arith.addf %12, %14 : vector<32x128xf32>
    %c2 = arith.constant 2 : index
    %c0_15 = arith.constant 0 : index
    %c0_16 = arith.constant 0 : index
    %16 = vector.load %arg1[%c2, %c0_15, %c0_16] : memref<4x32x1024xbf16, #tpu.memory_space<vmem>>, vector<1x32x1024xbf16>
    %17 = vector.shape_cast %16 : vector<1x32x1024xbf16> to vector<32x1024xbf16>
    %c2_17 = arith.constant 2 : index
    %c0_18 = arith.constant 0 : index
    %c0_19 = arith.constant 0 : index
    %18 = vector.load %arg2[%c2_17, %c0_18, %c0_19] : memref<4x1024x128xbf16, #tpu.memory_space<vmem>>, vector<1x1024x128xbf16>
    %19 = vector.shape_cast %18 : vector<1x1024x128xbf16> to vector<1024x128xbf16>
    %cst_20 = arith.constant dense<0.000000e+00> : vector<32x128xf32>
    %20 = tpu.matmul %17, %19, %cst_20 {dimension_numbers = #tpu.dot_dimension_numbers<[1], [0], [0], [1], [0, 0, 1, 1], [], []>} : vector<32x1024xbf16>, vector<1024x128xbf16>, vector<32x128xf32> -> vector<32x128xf32>
    %c0_21 = arith.constant 0 : index
    %c0_22 = arith.constant 0 : index
    %21 = vector.load %arg3[%c0_21, %c0_22] : memref<1x128xf32, #tpu.memory_space<vmem>>, vector<1x128xf32>
    %22 = vector.broadcast %21 : vector<1x128xf32> to vector<32x128xf32>
    %23 = arith.addf %20, %22 : vector<32x128xf32>
    %c3 = arith.constant 3 : index
    %c0_23 = arith.constant 0 : index
    %c0_24 = arith.constant 0 : index
    %24 = vector.load %arg1[%c3, %c0_23, %c0_24] : memref<4x32x1024xbf16, #tpu.memory_space<vmem>>, vector<1x32x1024xbf16>
    %25 = vector.shape_cast %24 : vector<1x32x1024xbf16> to vector<32x1024xbf16>
    %c3_25 = arith.constant 3 : index
    %c0_26 = arith.constant 0 : index
    %c0_27 = arith.constant 0 : index
    %26 = vector.load %arg2[%c3_25, %c0_26, %c0_27] : memref<4x1024x128xbf16, #tpu.memory_space<vmem>>, vector<1x1024x128xbf16>
    %27 = vector.shape_cast %26 : vector<1x1024x128xbf16> to vector<1024x128xbf16>
    %cst_28 = arith.constant dense<0.000000e+00> : vector<32x128xf32>
    %28 = tpu.matmul %25, %27, %cst_28 {dimension_numbers = #tpu.dot_dimension_numbers<[1], [0], [0], [1], [0, 0, 1, 1], [], []>} : vector<32x1024xbf16>, vector<1024x128xbf16>, vector<32x128xf32> -> vector<32x128xf32>
    %c0_29 = arith.constant 0 : index
    %c0_30 = arith.constant 0 : index
    %29 = vector.load %arg3[%c0_29, %c0_30] : memref<1x128xf32, #tpu.memory_space<vmem>>, vector<1x128xf32>
    %30 = vector.broadcast %29 : vector<1x128xf32> to vector<32x128xf32>
    %31 = arith.addf %28, %30 : vector<32x128xf32>
    %cst_31 = arith.constant dense<0.000000e+00> : vector<128xf32>
    %32 = vector.multi_reduction <add>, %7, %cst_31 [0] : vector<32x128xf32> to vector<128xf32>
    %33 = vector.shape_cast %32 : vector<128xf32> to vector<1x128xf32>
    %cst_32 = arith.constant 0.000000e+00 : f32
    %34 = vector.broadcast %cst_32 : f32 to vector<1x128xf32>
    %35 = arith.addf %34, %33 : vector<1x128xf32>
    %cst_33 = arith.constant dense<0.000000e+00> : vector<128xf32>
    %36 = vector.multi_reduction <add>, %15, %cst_33 [0] : vector<32x128xf32> to vector<128xf32>
    %37 = vector.shape_cast %36 : vector<128xf32> to vector<1x128xf32>
    %38 = arith.addf %35, %37 : vector<1x128xf32>
    %cst_34 = arith.constant dense<0.000000e+00> : vector<128xf32>
    %39 = vector.multi_reduction <add>, %23, %cst_34 [0] : vector<32x128xf32> to vector<128xf32>
    %40 = vector.shape_cast %39 : vector<128xf32> to vector<1x128xf32>
    %41 = arith.addf %38, %40 : vector<1x128xf32>
    %cst_35 = arith.constant dense<0.000000e+00> : vector<128xf32>
    %42 = vector.multi_reduction <add>, %31, %cst_35 [0] : vector<32x128xf32> to vector<128xf32>
    %43 = vector.shape_cast %42 : vector<128xf32> to vector<1x128xf32>
    %44 = arith.addf %41, %43 : vector<1x128xf32>
    %cst_36 = arith.constant 1.280000e+02 : f32
    %45 = vector.broadcast %cst_36 : f32 to vector<1x128xf32>
    %46 = arith.divf %44, %45 : vector<1x128xf32>
    %47 = vector.broadcast %46 : vector<1x128xf32> to vector<32x128xf32>
    %48 = arith.subf %7, %47 : vector<32x128xf32>
    %49 = arith.mulf %48, %48 : vector<32x128xf32>
    %cst_37 = arith.constant dense<0.000000e+00> : vector<128xf32>
    %50 = vector.multi_reduction <add>, %49, %cst_37 [0] : vector<32x128xf32> to vector<128xf32>
    %51 = vector.shape_cast %50 : vector<128xf32> to vector<1x128xf32>
    %cst_38 = arith.constant 0.000000e+00 : f32
    %52 = vector.broadcast %cst_38 : f32 to vector<1x128xf32>
    %53 = arith.addf %52, %51 : vector<1x128xf32>
    %54 = vector.broadcast %46 : vector<1x128xf32> to vector<32x128xf32>
    %55 = arith.subf %15, %54 : vector<32x128xf32>
    %56 = arith.mulf %55, %55 : vector<32x128xf32>
    %cst_39 = arith.constant dense<0.000000e+00> : vector<128xf32>
    %57 = vector.multi_reduction <add>, %56, %cst_39 [0] : vector<32x128xf32> to vector<128xf32>
    %58 = vector.shape_cast %57 : vector<128xf32> to vector<1x128xf32>
    %59 = arith.addf %53, %58 : vector<1x128xf32>
    %60 = vector.broadcast %46 : vector<1x128xf32> to vector<32x128xf32>
    %61 = arith.subf %23, %60 : vector<32x128xf32>
    %62 = arith.mulf %61, %61 : vector<32x128xf32>
    %cst_40 = arith.constant dense<0.000000e+00> : vector<128xf32>
    %63 = vector.multi_reduction <add>, %62, %cst_40 [0] : vector<32x128xf32> to vector<128xf32>
    %64 = vector.shape_cast %63 : vector<128xf32> to vector<1x128xf32>
    %65 = arith.addf %59, %64 : vector<1x128xf32>
    %66 = vector.broadcast %46 : vector<1x128xf32> to vector<32x128xf32>
    %67 = arith.subf %31, %66 : vector<32x128xf32>
    %68 = arith.mulf %67, %67 : vector<32x128xf32>
    %cst_41 = arith.constant dense<0.000000e+00> : vector<128xf32>
    %69 = vector.multi_reduction <add>, %68, %cst_41 [0] : vector<32x128xf32> to vector<128xf32>
    %70 = vector.shape_cast %69 : vector<128xf32> to vector<1x128xf32>
    %71 = arith.addf %65, %70 : vector<1x128xf32>
    %cst_42 = arith.constant 1.280000e+02 : f32
    %72 = vector.broadcast %cst_42 : f32 to vector<1x128xf32>
    %73 = arith.divf %71, %72 : vector<1x128xf32>
    %cst_43 = arith.constant 9.99999974E-6 : f32
    %74 = vector.broadcast %cst_43 : f32 to vector<1x128xf32>
    %75 = arith.addf %73, %74 : vector<1x128xf32>
    %76 = math.rsqrt %75 : vector<1x128xf32>
    %77 = vector.broadcast %46 : vector<1x128xf32> to vector<32x128xf32>
    %78 = arith.subf %7, %77 : vector<32x128xf32>
    %79 = vector.broadcast %76 : vector<1x128xf32> to vector<32x128xf32>
    %80 = arith.mulf %78, %79 : vector<32x128xf32>
    %c0_44 = arith.constant 0 : index
    %c0_45 = arith.constant 0 : index
    %81 = vector.load %arg4[%c0_44, %c0_45] : memref<1x128xf32, #tpu.memory_space<vmem>>, vector<1x128xf32>
    %82 = vector.broadcast %81 : vector<1x128xf32> to vector<32x128xf32>
    %83 = arith.mulf %80, %82 : vector<32x128xf32>
    %c0_46 = arith.constant 0 : index
    %c0_47 = arith.constant 0 : index
    %84 = vector.load %arg5[%c0_46, %c0_47] : memref<1x128xf32, #tpu.memory_space<vmem>>, vector<1x128xf32>
    %85 = vector.broadcast %84 : vector<1x128xf32> to vector<32x128xf32>
    %86 = arith.addf %83, %85 : vector<32x128xf32>
    %cst_48 = arith.constant 0.000000e+00 : f32
    %87 = vector.broadcast %cst_48 : f32 to vector<32x128xf32>
    %88 = arith.cmpf oge, %86, %87 : vector<32x128xf32>
    %cst_49 = arith.constant 2.000000e-01 : f32
    %89 = vector.broadcast %cst_49 : f32 to vector<32x128xf32>
    %90 = arith.mulf %89, %86 : vector<32x128xf32>
    %91 = arith.select %88, %86, %90 : vector<32x128xi1>, vector<32x128xf32>
    %92 = arith.truncf %91 : vector<32x128xf32> to vector<32x128xbf16>
    %c0_50 = arith.constant 0 : index
    %c0_51 = arith.constant 0 : index
    %93 = vector.load %arg6[%c0_50, %c0_51] : memref<128x128xbf16, #tpu.memory_space<vmem>>, vector<32x128xbf16>
    tpu.vector_store %arg6[%c0_50, %c0_51], %92 {strides = array<i32>} : memref<128x128xbf16, #tpu.memory_space<vmem>>, vector<32x128xbf16>,
    %94 = vector.broadcast %46 : vector<1x128xf32> to vector<32x128xf32>
    %95 = arith.subf %15, %94 : vector<32x128xf32>
    %96 = vector.broadcast %76 : vector<1x128xf32> to vector<32x128xf32>
    %97 = arith.mulf %95, %96 : vector<32x128xf32>
    %c0_52 = arith.constant 0 : index
    %c0_53 = arith.constant 0 : index
    %98 = vector.load %arg4[%c0_52, %c0_53] : memref<1x128xf32, #tpu.memory_space<vmem>>, vector<1x128xf32>
    %99 = vector.broadcast %98 : vector<1x128xf32> to vector<32x128xf32>
    %100 = arith.mulf %97, %99 : vector<32x128xf32>
    %c0_54 = arith.constant 0 : index
    %c0_55 = arith.constant 0 : index
    %101 = vector.load %arg5[%c0_54, %c0_55] : memref<1x128xf32, #tpu.memory_space<vmem>>, vector<1x128xf32>
    %102 = vector.broadcast %101 : vector<1x128xf32> to vector<32x128xf32>
    %103 = arith.addf %100, %102 : vector<32x128xf32>
    %cst_56 = arith.constant 0.000000e+00 : f32
    %104 = vector.broadcast %cst_56 : f32 to vector<32x128xf32>
    %105 = arith.cmpf oge, %103, %104 : vector<32x128xf32>
    %cst_57 = arith.constant 2.000000e-01 : f32
    %106 = vector.broadcast %cst_57 : f32 to vector<32x128xf32>
    %107 = arith.mulf %106, %103 : vector<32x128xf32>
    %108 = arith.select %105, %103, %107 : vector<32x128xi1>, vector<32x128xf32>
    %109 = arith.truncf %108 : vector<32x128xf32> to vector<32x128xbf16>
    %c32 = arith.constant 32 : index
    %c0_58 = arith.constant 0 : index
    %110 = vector.load %arg6[%c32, %c0_58] : memref<128x128xbf16, #tpu.memory_space<vmem>>, vector<32x128xbf16>
    tpu.vector_store %arg6[%c32, %c0_58], %109 {strides = array<i32>} : memref<128x128xbf16, #tpu.memory_space<vmem>>, vector<32x128xbf16>,
    %111 = vector.broadcast %46 : vector<1x128xf32> to vector<32x128xf32>
    %112 = arith.subf %23, %111 : vector<32x128xf32>
    %113 = vector.broadcast %76 : vector<1x128xf32> to vector<32x128xf32>
    %114 = arith.mulf %112, %113 : vector<32x128xf32>
    %c0_59 = arith.constant 0 : index
    %c0_60 = arith.constant 0 : index
    %115 = vector.load %arg4[%c0_59, %c0_60] : memref<1x128xf32, #tpu.memory_space<vmem>>, vector<1x128xf32>
    %116 = vector.broadcast %115 : vector<1x128xf32> to vector<32x128xf32>
    %117 = arith.mulf %114, %116 : vector<32x128xf32>
    %c0_61 = arith.constant 0 : index
    %c0_62 = arith.constant 0 : index
    %118 = vector.load %arg5[%c0_61, %c0_62] : memref<1x128xf32, #tpu.memory_space<vmem>>, vector<1x128xf32>
    %119 = vector.broadcast %118 : vector<1x128xf32> to vector<32x128xf32>
    %120 = arith.addf %117, %119 : vector<32x128xf32>
    %cst_63 = arith.constant 0.000000e+00 : f32
    %121 = vector.broadcast %cst_63 : f32 to vector<32x128xf32>
    %122 = arith.cmpf oge, %120, %121 : vector<32x128xf32>
    %cst_64 = arith.constant 2.000000e-01 : f32
    %123 = vector.broadcast %cst_64 : f32 to vector<32x128xf32>
    %124 = arith.mulf %123, %120 : vector<32x128xf32>
    %125 = arith.select %122, %120, %124 : vector<32x128xi1>, vector<32x128xf32>
    %126 = arith.truncf %125 : vector<32x128xf32> to vector<32x128xbf16>
    %c64 = arith.constant 64 : index
    %c0_65 = arith.constant 0 : index
    %127 = vector.load %arg6[%c64, %c0_65] : memref<128x128xbf16, #tpu.memory_space<vmem>>, vector<32x128xbf16>
    tpu.vector_store %arg6[%c64, %c0_65], %126 {strides = array<i32>} : memref<128x128xbf16, #tpu.memory_space<vmem>>, vector<32x128xbf16>,
    %128 = vector.broadcast %46 : vector<1x128xf32> to vector<32x128xf32>
    %129 = arith.subf %31, %128 : vector<32x128xf32>
    %130 = vector.broadcast %76 : vector<1x128xf32> to vector<32x128xf32>
    %131 = arith.mulf %129, %130 : vector<32x128xf32>
    %c0_66 = arith.constant 0 : index
    %c0_67 = arith.constant 0 : index
    %132 = vector.load %arg4[%c0_66, %c0_67] : memref<1x128xf32, #tpu.memory_space<vmem>>, vector<1x128xf32>
    %133 = vector.broadcast %132 : vector<1x128xf32> to vector<32x128xf32>
    %134 = arith.mulf %131, %133 : vector<32x128xf32>
    %c0_68 = arith.constant 0 : index
    %c0_69 = arith.constant 0 : index
    %135 = vector.load %arg5[%c0_68, %c0_69] : memref<1x128xf32, #tpu.memory_space<vmem>>, vector<1x128xf32>
    %136 = vector.broadcast %135 : vector<1x128xf32> to vector<32x128xf32>
    %137 = arith.addf %134, %136 : vector<32x128xf32>
    %cst_70 = arith.constant 0.000000e+00 : f32
    %138 = vector.broadcast %cst_70 : f32 to vector<32x128xf32>
    %139 = arith.cmpf oge, %137, %138 : vector<32x128xf32>
    %cst_71 = arith.constant 2.000000e-01 : f32
    %140 = vector.broadcast %cst_71 : f32 to vector<32x128xf32>
    %141 = arith.mulf %140, %137 : vector<32x128xf32>
    %142 = arith.select %139, %137, %141 : vector<32x128xi1>, vector<32x128xf32>
    %143 = arith.truncf %142 : vector<32x128xf32> to vector<32x128xbf16>
    %c96 = arith.constant 96 : index
    %c0_72 = arith.constant 0 : index
    %144 = vector.load %arg6[%c96, %c0_72] : memref<128x128xbf16, #tpu.memory_space<vmem>>, vector<32x128xbf16>
    tpu.vector_store %arg6[%c96, %c0_72], %143 {strides = array<i32>} : memref<128x128xbf16, #tpu.memory_space<vmem>>, vector<32x128xbf16>,
    return
  }
  func.func @transform_0(%arg0: i32) -> (i32, i32, i32) {
    %c0_i32 = arith.constant 0 : i32
    %c0_i32_0 = arith.constant 0 : i32
    %c0_i32_1 = arith.constant 0 : i32
    %c0_i32_2 = arith.constant 0 : i32
    return %c0_i32, %c0_i32_0, %c0_i32_1 : i32, i32, i32
  }
  func.func @transform_1(%arg0: i32) -> (i32, i32, i32) {
    %c0_i32 = arith.constant 0 : i32
    %c0_i32_0 = arith.constant 0 : i32
    %c0_i32_1 = arith.constant 0 : i32
    %c0_i32_2 = arith.constant 0 : i32
    return %c0_i32, %c0_i32_0, %c0_i32_1 : i32, i32, i32
  }
  func.func @transform_2(%arg0: i32) -> (i32, i32) {
    %c0_i32 = arith.constant 0 : i32
    %c0_i32_0 = arith.constant 0 : i32
    %c0_i32_1 = arith.constant 0 : i32
    return %c0_i32, %c0_i32_0 : i32, i32
  }
  func.func @transform_3(%arg0: i32) -> (i32, i32) {
    %c0_i32 = arith.constant 0 : i32
    %c0_i32_0 = arith.constant 0 : i32
    %c0_i32_1 = arith.constant 0 : i32
    return %c0_i32, %c0_i32_0 : i32, i32
  }
  func.func @transform_4(%arg0: i32) -> (i32, i32) {
    %c0_i32 = arith.constant 0 : i32
    %c0_i32_0 = arith.constant 0 : i32
    %c0_i32_1 = arith.constant 0 : i32
    return %c0_i32, %c0_i32_0 : i32, i32
  }
  func.func @transform_5(%arg0: i32) -> (i32, i32) {
    %c0_i32 = arith.constant 0 : i32
    %c0_i32_0 = arith.constant 0 : i32
    %c0_i32_1 = arith.constant 0 : i32
    return %c0_i32, %c0_i32_0 : i32, i32
  }
}

module attributes {stable_mosaic.version = 11 : i64} {
  func.func @_deconv_out_kernel(%arg0: i32, %arg1: i32, %arg2: memref<1x128x512xbf16, #tpu.memory_space<vmem>>, %arg3: memref<1x512x128xbf16, #tpu.memory_space<vmem>>, %arg4: memref<1x128xf32, #tpu.memory_space<vmem>>, %arg5: memref<1x128x128xf32, #tpu.memory_space<vmem>>) attributes {dimension_semantics = [#tpu.dimension_semantics<parallel>, #tpu.dimension_semantics<parallel>], iteration_bounds = array<i64: 4, 1>, scalar_prefetch = 0 : i64, scratch_operands = 0 : i64, tpu.core_type = #tpu.core_type<tc>, window_params = [{transform_indices = @transform_0, window_bounds = array<i64: 1, 128, 512>}, {transform_indices = @transform_1, window_bounds = array<i64: 1, 512, 128>}, {pipeline_mode = #tpu.pipeline_mode<synchronous>, transform_indices = @transform_2, window_bounds = array<i64: 1, 128>}, {transform_indices = @transform_3, window_bounds = array<i64: 1, 128, 128>}]} {
    %c0 = arith.constant 0 : index
    %c0_0 = arith.constant 0 : index
    %c0_1 = arith.constant 0 : index
    %0 = vector.load %arg2[%c0, %c0_0, %c0_1] : memref<1x128x512xbf16, #tpu.memory_space<vmem>>, vector<1x128x512xbf16>
    %1 = vector.shape_cast %0 : vector<1x128x512xbf16> to vector<128x512xbf16>
    %c0_2 = arith.constant 0 : index
    %c0_3 = arith.constant 0 : index
    %c0_4 = arith.constant 0 : index
    %2 = vector.load %arg3[%c0_2, %c0_3, %c0_4] : memref<1x512x128xbf16, #tpu.memory_space<vmem>>, vector<1x512x128xbf16>
    %3 = vector.shape_cast %2 : vector<1x512x128xbf16> to vector<512x128xbf16>
    %cst = arith.constant dense<0.000000e+00> : vector<128x128xf32>
    %4 = tpu.matmul %1, %3, %cst {dimension_numbers = #tpu.dot_dimension_numbers<[1], [0], [0], [1], [0, 0, 1, 1], [], []>} : vector<128x512xbf16>, vector<512x128xbf16>, vector<128x128xf32> -> vector<128x128xf32>
    %c0_5 = arith.constant 0 : index
    %c0_6 = arith.constant 0 : index
    %5 = vector.load %arg4[%c0_5, %c0_6] : memref<1x128xf32, #tpu.memory_space<vmem>>, vector<1x128xf32>
    %6 = vector.broadcast %5 : vector<1x128xf32> to vector<128x128xf32>
    %7 = arith.addf %4, %6 : vector<128x128xf32>
    %8 = math.tanh %7 : vector<128x128xf32>
    %c0_7 = arith.constant 0 : index
    %c0_8 = arith.constant 0 : index
    %c0_9 = arith.constant 0 : index
    %9 = vector.load %arg5[%c0_7, %c0_8, %c0_9] : memref<1x128x128xf32, #tpu.memory_space<vmem>>, vector<1x128x128xf32>
    %10 = vector.shape_cast %9 : vector<1x128x128xf32> to vector<128x128xf32>
    %11 = vector.shape_cast %8 : vector<128x128xf32> to vector<1x128x128xf32>
    tpu.vector_store %arg5[%c0_7, %c0_8, %c0_9], %11 {strides = array<i32>} : memref<1x128x128xf32, #tpu.memory_space<vmem>>, vector<1x128x128xf32>,
    return
  }
  func.func @transform_0(%arg0: i32, %arg1: i32) -> (i32, i32, i32) {
    %c0_i32 = arith.constant 0 : i32
    %c0_i32_0 = arith.constant 0 : i32
    return %arg0, %arg1, %c0_i32 : i32, i32, i32
  }
  func.func @transform_1(%arg0: i32, %arg1: i32) -> (i32, i32, i32) {
    %c0_i32 = arith.constant 0 : i32
    %c0_i32_0 = arith.constant 0 : i32
    %c0_i32_1 = arith.constant 0 : i32
    return %arg0, %c0_i32, %c0_i32_0 : i32, i32, i32
  }
  func.func @transform_2(%arg0: i32, %arg1: i32) -> (i32, i32) {
    %c0_i32 = arith.constant 0 : i32
    %c0_i32_0 = arith.constant 0 : i32
    %c0_i32_1 = arith.constant 0 : i32
    return %c0_i32, %c0_i32_0 : i32, i32
  }
  func.func @transform_3(%arg0: i32, %arg1: i32) -> (i32, i32, i32) {
    %c0_i32 = arith.constant 0 : i32
    %c0_i32_0 = arith.constant 0 : i32
    return %arg0, %arg1, %c0_i32 : i32, i32, i32
  }
}

</mosaic_0001>

<bundles_post_ra>
// kernel: vae_forward.5
= control target key start
LH: loop header
LB: loop body
LE: loop exit
PB: predicated region body
PF: predicated region fallthrough
CT: control target
= control target key end

     0   :  { %vm108_vm0 = vcmask 392192   ;;  %s776_s1 = inlined_call_operand.vmem [shape: bf16[48,128], index: 1, kind: input, shape index: {}]   ;;  %s777_s0 = inlined_call_operand.vmem [shape: bf16[128,48], index: 0, kind: input, shape index: {}]   ;;  %s778_s2 = inlined_call_operand.vmem [shape: f32[1,128], index: 2, kind: input, shape index: {}]   ;;  %s779_s3 = inlined_call_operand.vmem [shape: f32[1,128], index: 3, kind: input, shape index: {}]   ;;  %s780_s4 = inlined_call_operand.vmem [shape: f32[1,128], index: 4, kind: input, shape index: {}]   ;;  %s781_s5 = inlined_call_operand.vmem [shape: bf16[128,128], index: 5, kind: output, shape index: {}]  }
   0x1   :  { %v643_v0 = vld [vmem:[%s776_s1] sm:$0xff]   ;;  %v644_v1 = vld [vmem:[%s776_s1 + $0x8] sm:$0xff]   ;;  %v645_v3 = vld [vmem:[%s776_s1 + $0x10] sm:$0xff]  }
   0x2   :  { %615 = vmatprep.subr.bf16.mxu0 %v643_v0  ;;  %637 = vmatprep.subr.bf16.mxu1 %v643_v0  ;;  %v646_v2 = vld [vmem:[%s777_s0] sm:$0xff]   ;;  %v647_v5 = vld [vmem:[%s777_s0 + $0x8] sm:$0xff]   ;;  %v648_v7 = vld [vmem:[%s777_s0 + $0x10] sm:$0xff]  }
   0x3   :  { %616 = vmatpush3.bf16.msra.mxu0 %v643_v0  ;;  %640 = vmatpush3.bf16.msra.mxu1 %v643_v0  ;;  %v650_v4 = vld [vmem:[%s777_s0 + $0x20] sm:$0xff]   ;;  %v651_v6 = vld [vmem:[%s777_s0 + $0x28] sm:$0xff]   ;;  %v652_v8 = vld [vmem:[%s777_s0 + $0x30] sm:$0xff]  }
   0x4   :  { %617 = vmatprep.subr.bf16.mxu0 %v644_v1  ;;  %638 = vmatprep.subr.bf16.mxu1 %v644_v1  ;;  %v649_v9 = vld [vmem:[%s777_s0 + $0x18] sm:$0xff]   ;;  %v503_v13 = vld [vmem:[%s778_s2] ss:$0 sm:$0xff] }
   0x5   :  { %621 = vmatprep.mubr.msk.bf16.mxu0 %vm108_vm0, %v646_v2  ;;  %629 = vmatprep.mubr.msk.bf16.mxu1 %vm108_vm0, %v650_v4  ;;  %v653_v10 = vld [vmem:[%s777_s0 + $0x38] sm:$0xff]  }
   0x7   :  { %618 = vmatpush3.bf16.msra.mxu0 %v644_v1  ;;  %641 = vmatpush3.bf16.msra.mxu1 %v644_v1 }
   0x8   :  { %619 = vmatprep.subr.bf16.mxu0 %v645_v3  ;;  %639 = vmatprep.subr.bf16.mxu1 %v645_v3 }
   0xb   :  { %620 = vmatpush3.bf16.msra.mxu0 %v645_v3  ;;  %642 = vmatpush3.bf16.msra.mxu1 %v645_v3 }
   0xe   :  { %622 = vmatmul.mubr.msk.bf16.vlgmr.msra.gmra.mrb[0].mxu0 %vm108_vm0, %v647_v5  ;;  %630 = vmatmul.mubr.msk.bf16.vlgmr.msra.gmra.mrb[0].mxu1 %vm108_vm0, %v651_v6 }
   0xf   :  { %625 = vmatprep.mubr.msk.bf16.mxu0 %vm108_vm0, %v648_v7  ;;  %633 = vmatprep.mubr.msk.bf16.mxu1 %vm108_vm0, %v652_v8 }
  0x16   :  { %626 = vmatmul.mubr.msk.bf16.gmra.mrb[4].mxu0 %vm108_vm0, %v649_v9  ;;  %634 = vmatmul.mubr.msk.bf16.gmra.mrb[4].mxu1 %vm108_vm0, %v653_v10 }
  0xe1   :  { %v623_v11 = vpop.f32.mrb[0].mxu0  ;;  %v631_v12 = vpop.f32.mrb[0].mxu1 }
  0xe2   :  { %v167_v14 = vpop.f32.mrb[1].mxu0  ;;  %v199_v15 = vpop.f32.mrb[1].mxu1  ;;  %v176_v22 = vadd.f32 %v623_v11, %v503_v13  ;;  %v208_v46 = vadd.f32 %v631_v12, %v503_v13 }
  0xe3   :  { %v624_v16 = vpop.f32.mrb[2].mxu0  ;;  %v632_v17 = vpop.f32.mrb[2].mxu1  ;;  %v168_v20 = vadd.f32 %v503_v13, %v167_v14  ;;  %v200_v42 = vadd.f32 %v503_v13, %v199_v15 }
  0xe4   :  { %v170_v18 = vpop.f32.mrb[3].mxu0  ;;  %v202_v19 = vpop.f32.mrb[3].mxu1  ;;  %v179_v24 = vadd.f32 %v624_v16, %v503_v13  ;;  %v211_v48 = vadd.f32 %v632_v17, %v503_v13 }
  0xe5   :  { %v171_v21 = vadd.f32 %v503_v13, %v170_v18  ;;  %v203_v45 = vadd.f32 %v503_v13, %v202_v19 }
  0xe7   :  { %v230_v23 = vadd.f32 %v171_v21, %v168_v20 }
  0xe9   :  { %v231_v25 = vadd.f32 %v230_v23, %v176_v22  ;;  %v627_v26 = vpop.f32.mrb[4].mxu0  ;;  %v635_v27 = vpop.f32.mrb[4].mxu1 }
  0xea   :  { %v183_v28 = vpop.f32.mrb[5].mxu0  ;;  %v215_v29 = vpop.f32.mrb[5].mxu1  ;;  %v192_v38 = vadd.f32 %v627_v26, %v503_v13  ;;  %v224_v54 = vadd.f32 %v635_v27, %v503_v13 }
  0xeb   :  { %v184_v30 = vadd.f32 %v503_v13, %v183_v28  ;;  %v232_v31 = vadd.f32 %v231_v25, %v179_v24  ;;  %v628_v32 = vpop.f32.mrb[6].mxu0  ;;  %v636_v33 = vpop.f32.mrb[6].mxu1  ;;  %v216_v50 = vadd.f32 %v503_v13, %v215_v29 }
  0xec   :  { %v186_v34 = vpop.f32.mrb[7].mxu0  ;;  %v218_v35 = vpop.f32.mrb[7].mxu1  ;;  %v195_v40 = vadd.f32 %v628_v32, %v503_v13  ;;  %v227_v56 = vadd.f32 %v636_v33, %v503_v13 }
  0xed   :  { %v233_v36 = vadd.f32 %v232_v31, %v184_v30  ;;  %v187_v37 = vadd.f32 %v503_v13, %v186_v34  ;;  %v219_v53 = vadd.f32 %v503_v13, %v218_v35 }
  0xef   :  { %v234_v39 = vadd.f32 %v233_v36, %v187_v37 }
  0xf1   :  { %v235_v41 = vadd.f32 %v234_v39, %v192_v38 }
  0xf3   :  { %v236_v43 = vadd.f32 %v235_v41, %v195_v40 }
  0xf5   :  { %v237_v44 = vadd.f32 %v236_v43, %v200_v42 }
  0xf7   :  { %v238_v47 = vadd.f32 %v237_v44, %v203_v45 }
  0xf9   :  { %v239_v49 = vadd.f32 %v238_v47, %v208_v46 }
  0xfb   :  { %v240_v51 = vadd.f32 %v239_v49, %v211_v48 }
  0xfd   :  { %v241_v52 = vadd.f32 %v240_v51, %v216_v50 }
  0xff   :  { %v242_v55 = vadd.f32 %v241_v52, %v219_v53 }
 0x101   :  { %v243_v57 = vadd.f32 %v242_v55, %v224_v54 }
 0x103   :  { %v244_v58 = vadd.f32 %v243_v57, %v227_v56 }
 0x105   :  { %v245_v59 = vrot.slane %v244_v58, 4 }
 0x107   :  { %v246_v60 = vadd.f32 %v245_v59, %v244_v58 }
 0x109   :  { %v247_v61 = vrot.slane %v246_v60, 2 }
 0x10b   :  { %v248_v62 = vadd.f32 %v247_v61, %v246_v60 }
 0x10d   :  { %v249_v63 = vrot.slane %v248_v62, 1 }
 0x10f   :  { %v250_v0 = vadd.f32 %v249_v63, %v248_v62 }
 0x111   :  { %v252_v1 = vmul.f32 0.0078125, %v250_v0 }
 0x113   :  { %v253_v2 = vsub.f32 %v168_v20, %v252_v1  ;;  %v254_v3 = vsub.f32 %v171_v21, %v252_v1  ;;  %v255_v4 = vsub.f32 %v176_v22, %v252_v1  ;;  %v256_v5 = vsub.f32 %v179_v24, %v252_v1 }
 0x114   :  { %v257_v6 = vsub.f32 %v184_v30, %v252_v1  ;;  %v258_v7 = vsub.f32 %v187_v37, %v252_v1  ;;  %v259_v8 = vsub.f32 %v192_v38, %v252_v1  ;;  %v260_v9 = vsub.f32 %v195_v40, %v252_v1 }
 0x115   :  { %v261_v10 = vsub.f32 %v200_v42, %v252_v1  ;;  %v262_v11 = vsub.f32 %v203_v45, %v252_v1  ;;  %v263_v12 = vsub.f32 %v208_v46, %v252_v1  ;;  %v264_v13 = vsub.f32 %v211_v48, %v252_v1 }
 0x116   :  { %v265_v14 = vsub.f32 %v216_v50, %v252_v1  ;;  %v266_v15 = vsub.f32 %v219_v53, %v252_v1  ;;  %v267_v16 = vsub.f32 %v224_v54, %v252_v1  ;;  %v268_v17 = vsub.f32 %v227_v56, %v252_v1 }
 0x117   :  { %v269_v18 = vmul.f32 %v253_v2, %v253_v2  ;;  %v270_v19 = vmul.f32 %v254_v3, %v254_v3  ;;  %v271_v23 = vmul.f32 %v255_v4, %v255_v4  ;;  %v272_v20 = vmul.f32 %v256_v5, %v256_v5 }
 0x118   :  { %v273_v22 = vmul.f32 %v257_v6, %v257_v6  ;;  %v274_v26 = vmul.f32 %v258_v7, %v258_v7  ;;  %v275_v28 = vmul.f32 %v259_v8, %v259_v8  ;;  %v276_v30 = vmul.f32 %v260_v9, %v260_v9 }
 0x119   :  { %v285_v25 = vadd.f32 %v270_v19, %v269_v18  ;;  %v277_v32 = vmul.f32 %v261_v10, %v261_v10  ;;  %v278_v34 = vmul.f32 %v262_v11, %v262_v11  ;;  %v279_v36 = vmul.f32 %v263_v12, %v263_v12  ;;  %v523_v18 = vld [vmem:[%s779_s3] ss:$0 sm:$0xff] }
 0x11a   :  { %v280_v38 = vmul.f32 %v264_v13, %v264_v13  ;;  %v281_v40 = vmul.f32 %v265_v14, %v265_v14  ;;  %v282_v42 = vmul.f32 %v266_v15, %v266_v15  ;;  %v283_v44 = vmul.f32 %v267_v16, %v267_v16 }
 0x11b   :  { %v286_v21 = vadd.f32 %v285_v25, %v271_v23  ;;  %v284_v46 = vmul.f32 %v268_v17, %v268_v17 }
 0x11d   :  { %v287_v24 = vadd.f32 %v286_v21, %v272_v20 }
 0x11f   :  { %v288_v27 = vadd.f32 %v287_v24, %v273_v22 }
 0x121   :  { %v289_v29 = vadd.f32 %v288_v27, %v274_v26  ;;  %v524_v27 = vld [vmem:[%s780_s4] ss:$0 sm:$0xff] }
 0x123   :  { %v290_v31 = vadd.f32 %v289_v29, %v275_v28 }
 0x125   :  { %v291_v33 = vadd.f32 %v290_v31, %v276_v30 }
 0x127   :  { %v292_v35 = vadd.f32 %v291_v33, %v277_v32 }
 0x129   :  { %v293_v37 = vadd.f32 %v292_v35, %v278_v34 }
 0x12b   :  { %v294_v39 = vadd.f32 %v293_v37, %v279_v36 }
 0x12d   :  { %v295_v41 = vadd.f32 %v294_v39, %v280_v38 }
 0x12f   :  { %v296_v43 = vadd.f32 %v295_v41, %v281_v40 }
 0x131   :  { %v297_v45 = vadd.f32 %v296_v43, %v282_v42 }
 0x133   :  { %v298_v47 = vadd.f32 %v297_v45, %v283_v44 }
 0x135   :  { %v299_v48 = vadd.f32 %v298_v47, %v284_v46 }
 0x137   :  { %v300_v49 = vrot.slane %v299_v48, 4 }
 0x139   :  { %v301_v50 = vadd.f32 %v300_v49, %v299_v48 }
 0x13b   :  { %v302_v51 = vrot.slane %v301_v50, 2 }
 0x13d   :  { %v303_v52 = vadd.f32 %v302_v51, %v301_v50 }
 0x13f   :  { %v304_v53 = vrot.slane %v303_v52, 1 }
 0x141   :  { %v305_v54 = vadd.f32 %v304_v53, %v303_v52 }
 0x143   :  { %v306_v55 = vmul.f32 0.0078125, %v305_v54 }
 0x145   :  { %v307_v56 = vadd.f32 1e-05, %v306_v55 }
 0x147   :  { %654 = vrsqrt.f32 %v307_v56 }
 0x151   :  { %v655_v57 = vpop.eup %654 }
 0x152   :  { %v309_v58 = vmul.f32 %v655_v57, %v253_v2  ;;  %v310_v59 = vmul.f32 %v655_v57, %v254_v3  ;;  %v311_v60 = vmul.f32 %v655_v57, %v255_v4  ;;  %v312_v61 = vmul.f32 %v655_v57, %v256_v5 }
 0x153   :  { %v313_v62 = vmul.f32 %v655_v57, %v257_v6  ;;  %v314_v63 = vmul.f32 %v655_v57, %v258_v7  ;;  %v315_v0 = vmul.f32 %v655_v57, %v259_v8  ;;  %v316_v1 = vmul.f32 %v655_v57, %v260_v9 }
 0x154   :  { %v317_v19 = vmul.f32 %v655_v57, %v261_v10  ;;  %v318_v23 = vmul.f32 %v655_v57, %v262_v11  ;;  %v319_v25 = vmul.f32 %v655_v57, %v263_v12  ;;  %v320_v20 = vmul.f32 %v655_v57, %v264_v13 }
 0x155   :  { %v321_v21 = vmul.f32 %v655_v57, %v265_v14  ;;  %v322_v22 = vmul.f32 %v655_v57, %v266_v15  ;;  %v323_v24 = vmul.f32 %v655_v57, %v267_v16  ;;  %v324_v26 = vmul.f32 %v655_v57, %v268_v17 }
 0x156   :  { %v332_v2 = vmul.f32 %v523_v18, %v309_v58  ;;  %v333_v3 = vmul.f32 %v523_v18, %v310_v59  ;;  %v334_v4 = vmul.f32 %v523_v18, %v311_v60  ;;  %v335_v5 = vmul.f32 %v523_v18, %v312_v61 }
 0x157   :  { %v336_v6 = vmul.f32 %v523_v18, %v313_v62  ;;  %v337_v7 = vmul.f32 %v523_v18, %v314_v63  ;;  %v338_v8 = vmul.f32 %v523_v18, %v315_v0  ;;  %v339_v9 = vmul.f32 %v523_v18, %v316_v1 }
 0x158   :  { %v340_v10 = vmul.f32 %v523_v18, %v317_v19  ;;  %v341_v11 = vmul.f32 %v523_v18, %v318_v23  ;;  %v342_v12 = vmul.f32 %v523_v18, %v319_v25  ;;  %v343_v13 = vmul.f32 %v523_v18, %v320_v20 }
 0x159   :  { %v344_v14 = vmul.f32 %v523_v18, %v321_v21  ;;  %v345_v15 = vmul.f32 %v523_v18, %v322_v22  ;;  %v346_v16 = vmul.f32 %v523_v18, %v323_v24  ;;  %v347_v17 = vmul.f32 %v523_v18, %v324_v26 }
 0x15a   :  { %v355_v28 = vadd.f32 %v524_v27, %v332_v2  ;;  %v356_v29 = vadd.f32 %v524_v27, %v333_v3  ;;  %v357_v30 = vadd.f32 %v524_v27, %v334_v4  ;;  %v358_v31 = vadd.f32 %v524_v27, %v335_v5 }
 0x15b   :  { %v359_v32 = vadd.f32 %v524_v27, %v336_v6  ;;  %v360_v33 = vadd.f32 %v524_v27, %v337_v7  ;;  %v361_v34 = vadd.f32 %v524_v27, %v338_v8  ;;  %v362_v35 = vadd.f32 %v524_v27, %v339_v9 }
 0x15c   :  { %v363_v36 = vadd.f32 %v524_v27, %v340_v10  ;;  %v364_v37 = vadd.f32 %v524_v27, %v341_v11  ;;  %v365_v38 = vadd.f32 %v524_v27, %v342_v12  ;;  %v366_v39 = vadd.f32 %v524_v27, %v343_v13 }
 0x15d   :  { %v367_v40 = vadd.f32 %v524_v27, %v344_v14  ;;  %v368_v41 = vadd.f32 %v524_v27, %v345_v15  ;;  %v369_v42 = vadd.f32 %v524_v27, %v346_v16  ;;  %v370_v43 = vadd.f32 %v524_v27, %v347_v17 }
 0x15e   :  { %vm371_vm1 = vcmp.ge.f32.partialorder %v355_v28, 0.0  ;;  %vm372_vm2 = vcmp.ge.f32.partialorder %v356_v29, 0.0  ;;  %vm373_vm3 = vcmp.ge.f32.partialorder %v357_v30, 0.0  ;;  %vm374_vm4 = vcmp.ge.f32.partialorder %v358_v31, 0.0 }
 0x15f   :  { %vm375_vm5 = vcmp.ge.f32.partialorder %v359_v32, 0.0  ;;  %vm376_vm6 = vcmp.ge.f32.partialorder %v360_v33, 0.0  ;;  %vm377_vm7 = vcmp.ge.f32.partialorder %v361_v34, 0.0  ;;  %vm378_vm8 = vcmp.ge.f32.partialorder %v362_v35, 0.0 }
 0x160   :  { %vm379_vm9 = vcmp.ge.f32.partialorder %v363_v36, 0.0  ;;  %vm380_vm10 = vcmp.ge.f32.partialorder %v364_v37, 0.0  ;;  %vm381_vm11 = vcmp.ge.f32.partialorder %v365_v38, 0.0  ;;  %vm382_vm12 = vcmp.ge.f32.partialorder %v366_v39, 0.0 }
 0x161   :  { %vm383_vm13 = vcmp.ge.f32.partialorder %v367_v40, 0.0  ;;  %vm384_vm14 = vcmp.ge.f32.partialorder %v368_v41, 0.0  ;;  %vm385_vm15 = vcmp.ge.f32.partialorder %v369_v42, 0.0  ;;  %vm386_vm0 = vcmp.ge.f32.partialorder %v370_v43, 0.0 }
 0x162   :  { %v387_v44 = vmul.f32 0.0, %v355_v28  ;;  %v388_v45 = vmul.f32 0.0, %v356_v29  ;;  %v389_v46 = vmul.f32 0.0, %v357_v30  ;;  %v390_v47 = vmul.f32 0.0, %v358_v31 }
 0x163   :  { %v391_v48 = vmul.f32 0.0, %v359_v32  ;;  %v392_v49 = vmul.f32 0.0, %v360_v33  ;;  %v393_v50 = vmul.f32 0.0, %v361_v34  ;;  %v394_v51 = vmul.f32 0.0, %v362_v35 }
 0x164   :  { %v395_v52 = vmul.f32 0.0, %v363_v36  ;;  %v396_v53 = vmul.f32 0.0, %v364_v37  ;;  %v397_v54 = vmul.f32 0.0, %v365_v38  ;;  %v398_v55 = vmul.f32 0.0, %v366_v39 }
 0x165   :  { %v399_v56 = vmul.f32 0.0, %v367_v40  ;;  %v400_v57 = vmul.f32 0.0, %v368_v41  ;;  %v401_v58 = vmul.f32 0.0, %v369_v42  ;;  %v402_v59 = vmul.f32 0.0, %v370_v43 }
 0x166   :  { %v403_v60 = vsel %vm371_vm1, %v355_v28, %v387_v44  ;;  %v404_v61 = vsel %vm372_vm2, %v356_v29, %v388_v45  ;;  %v405_v62 = vsel %vm373_vm3, %v357_v30, %v389_v46  ;;  %v406_v63 = vsel %vm374_vm4, %v358_v31, %v390_v47 }
 0x167   :  { %v407_v0 = vsel %vm375_vm5, %v359_v32, %v391_v48  ;;  %v408_v1 = vsel %vm376_vm6, %v360_v33, %v392_v49  ;;  %v409_v18 = vsel %vm377_vm7, %v361_v34, %v393_v50  ;;  %v410_v19 = vsel %vm378_vm8, %v362_v35, %v394_v51 }
 0x168   :  { %v411_v23 = vsel %vm379_vm9, %v363_v36, %v395_v52  ;;  %v412_v25 = vsel %vm380_vm10, %v364_v37, %v396_v53  ;;  %v413_v20 = vsel %vm381_vm11, %v365_v38, %v397_v54  ;;  %v414_v21 = vsel %vm382_vm12, %v366_v39, %v398_v55 }
 0x169   :  { %v415_v22 = vsel %vm383_vm13, %v367_v40, %v399_v56  ;;  %v416_v24 = vsel %vm384_vm14, %v368_v41, %v400_v57  ;;  %v417_v26 = vsel %vm385_vm15, %v369_v42, %v401_v58  ;;  %v418_v2 = vsel %vm386_vm0, %v370_v43, %v402_v59 }
 0x16a   :  { %v560_v3 = vpack.c.bf16 %v404_v61, %v403_v60  ;;  %v565_v4 = vpack.c.bf16 %v406_v63, %v405_v62  ;;  %v570_v5 = vpack.c.bf16 %v408_v1, %v407_v0  ;;  %v575_v6 = vpack.c.bf16 %v410_v19, %v409_v18 }
 0x16b   :  { %v580_v7 = vpack.c.bf16 %v412_v25, %v411_v23  ;;  %v585_v8 = vpack.c.bf16 %v414_v21, %v413_v20  ;;  %v590_v9 = vpack.c.bf16 %v416_v24, %v415_v22  ;;  %v595_v27 = vpack.c.bf16 %v418_v2, %v417_v26 }
 0x16c   :  { %561 = vst [vmem:[%s781_s5] sm:$0xff] %v560_v3   ;;  %597 = vst [vmem:[%s781_s5 + $0x8] sm:$0xff] %v565_v4  }
 0x16d   :  { %598 = vst [vmem:[%s781_s5 + $0x10] sm:$0xff] %v570_v5   ;;  %599 = vst [vmem:[%s781_s5 + $0x18] sm:$0xff] %v575_v6  }
 0x16e   :  { %600 = vst [vmem:[%s781_s5 + $0x20] sm:$0xff] %v580_v7   ;;  %601 = vst [vmem:[%s781_s5 + $0x28] sm:$0xff] %v585_v8  }
 0x16f   :  { %602 = vst [vmem:[%s781_s5 + $0x30] sm:$0xff] %v590_v9   ;;  %603 = vst [vmem:[%s781_s5 + $0x38] sm:$0xff] %v595_v27  }

// kernel: vae_forward.6
= control target key start
LH: loop header
LB: loop body
LE: loop exit
PB: predicated region body
PF: predicated region fallthrough
CT: control target
= control target key end

     0   :  { %s4070_s1 = inlined_call_operand.vmem [shape: bf16[2048,256], index: 1, kind: input, shape index: {}]   ;;  %s4071_s0 = inlined_call_operand.vmem [shape: bf16[32,2048], index: 0, kind: input, shape index: {}]   ;;  %s4072_s2 = inlined_call_operand.vmem [shape: f32[1,256], index: 2, kind: input, shape index: {}]   ;;  %s4073_s3 = inlined_call_operand.vmem [shape: f32[1,256], index: 3, kind: input, shape index: {}]   ;;  %s4074_s4 = inlined_call_operand.vmem [shape: f32[1,256], index: 4, kind: input, shape index: {}]   ;;  %s4075_s5 = inlined_call_operand.vmem [shape: bf16[32,256], index: 5, kind: output, shape index: {}]  }
   0x1   :  { %v2709_v0 = vld [vmem:[%s4070_s1 + $0x4] ss:$8 sps:$4 sm:$0xff]   ;;  %v2713_v2 = vld [vmem:[%s4070_s1] ss:$8 sps:$4 sm:$0xff]   ;;  %v2715_v4 = vld [vmem:[%s4070_s1 + $0x14] ss:$8 sps:$4 sm:$0xff]  }
   0x2   :  { %v2711_v1 = vld [vmem:[%s4070_s1 + $0x404] ss:$8 sps:$4 sm:$0xff]   ;;  %1760 = vmatprep.subr.bf16.mxu1 %v2709_v0  ;;  %v2714_v3 = vld [vmem:[%s4070_s1 + $0x400] ss:$8 sps:$4 sm:$0xff]   ;;  %v2717_v5 = vld [vmem:[%s4070_s1 + $0x414] ss:$8 sps:$4 sm:$0xff]  }
   0x3   :  { %1972 = vmatprep.subr.bf16.mxu0 %v2711_v1  ;;  %1761 = vmatpush1.bf16.msra.mxu1 %v2713_v2  ;;  %v2719_v6 = vld [vmem:[%s4070_s1 + $0x10] ss:$8 sps:$4 sm:$0xff]   ;;  %v2721_v8 = vld [vmem:[%s4070_s1 + $0x24] ss:$8 sps:$4 sm:$0xff]   ;;  %v2725_v10 = vld [vmem:[%s4070_s1 + $0x20] ss:$8 sps:$4 sm:$0xff]  }
   0x4   :  { %1973 = vmatpush1.bf16.msra.mxu0 %v2714_v3  ;;  %1762 = vmatprep.subr.bf16.mxu1 %v2715_v4  ;;  %v2720_v7 = vld [vmem:[%s4070_s1 + $0x410] ss:$8 sps:$4 sm:$0xff]   ;;  %v2723_v9 = vld [vmem:[%s4070_s1 + $0x424] ss:$8 sps:$4 sm:$0xff]   ;;  %v2726_v11 = vld [vmem:[%s4070_s1 + $0x420] ss:$8 sps:$4 sm:$0xff]  }
   0x5   :  { %1974 = vmatprep.subr.bf16.mxu0 %v2717_v5  ;;  %v2727_v12 = vld [vmem:[%s4070_s1 + $0x34] ss:$8 sps:$4 sm:$0xff]   ;;  %v2731_v14 = vld [vmem:[%s4070_s1 + $0x30] ss:$8 sps:$4 sm:$0xff]   ;;  %v2733_v16 = vld [vmem:[%s4070_s1 + $0x44] ss:$8 sps:$4 sm:$0xff]  }
   0x6   :  { %v2729_v13 = vld [vmem:[%s4070_s1 + $0x434] ss:$8 sps:$4 sm:$0xff]   ;;  %v2732_v15 = vld [vmem:[%s4070_s1 + $0x430] ss:$8 sps:$4 sm:$0xff]   ;;  %v2735_v17 = vld [vmem:[%s4070_s1 + $0x444] ss:$8 sps:$4 sm:$0xff]  }
   0x7   :  { %1763 = vmatpush1.bf16.msra.mxu1 %v2719_v6  ;;  %v2737_v18 = vld [vmem:[%s4070_s1 + $0x40] ss:$8 sps:$4 sm:$0xff]   ;;  %v2739_v20 = vld [vmem:[%s4070_s1 + $0x54] ss:$8 sps:$4 sm:$0xff]   ;;  %v2743_v22 = vld [vmem:[%s4070_s1 + $0x50] ss:$8 sps:$4 sm:$0xff]  }
   0x8   :  { %1975 = vmatpush1.bf16.msra.mxu0 %v2720_v7  ;;  %1764 = vmatprep.subr.bf16.mxu1 %v2721_v8  ;;  %v2738_v19 = vld [vmem:[%s4070_s1 + $0x440] ss:$8 sps:$4 sm:$0xff]   ;;  %v2741_v21 = vld [vmem:[%s4070_s1 + $0x454] ss:$8 sps:$4 sm:$0xff]   ;;  %v2744_v23 = vld [vmem:[%s4070_s1 + $0x450] ss:$8 sps:$4 sm:$0xff]  }
   0x9   :  { %1976 = vmatprep.subr.bf16.mxu0 %v2723_v9  ;;  %v2745_v24 = vld [vmem:[%s4070_s1 + $0x64] ss:$8 sps:$4 sm:$0xff]   ;;  %v2749_v26 = vld [vmem:[%s4070_s1 + $0x60] ss:$8 sps:$4 sm:$0xff]   ;;  %v2751_v28 = vld [vmem:[%s4070_s1 + $0x74] ss:$8 sps:$4 sm:$0xff]  }
   0xa   :  { %v2747_v25 = vld [vmem:[%s4070_s1 + $0x464] ss:$8 sps:$4 sm:$0xff]   ;;  %v2750_v27 = vld [vmem:[%s4070_s1 + $0x460] ss:$8 sps:$4 sm:$0xff]   ;;  %v2753_v29 = vld [vmem:[%s4070_s1 + $0x474] ss:$8 sps:$4 sm:$0xff]  }
   0xb   :  { %1765 = vmatpush1.bf16.msra.mxu1 %v2725_v10  ;;  %v2755_v30 = vld [vmem:[%s4070_s1 + $0x70] ss:$8 sps:$4 sm:$0xff]   ;;  %v2757_v32 = vld [vmem:[%s4070_s1 + $0x84] ss:$8 sps:$4 sm:$0xff]   ;;  %v2761_v34 = vld [vmem:[%s4070_s1 + $0x80] ss:$8 sps:$4 sm:$0xff]  }
   0xc   :  { %1977 = vmatpush1.bf16.msra.mxu0 %v2726_v11  ;;  %1766 = vmatprep.subr.bf16.mxu1 %v2727_v12  ;;  %v2756_v31 = vld [vmem:[%s4070_s1 + $0x470] ss:$8 sps:$4 sm:$0xff]   ;;  %v2759_v33 = vld [vmem:[%s4070_s1 + $0x484] ss:$8 sps:$4 sm:$0xff]   ;;  %v2762_v35 = vld [vmem:[%s4070_s1 + $0x480] ss:$8 sps:$4 sm:$0xff]  }
   0xd   :  { %1978 = vmatprep.subr.bf16.mxu0 %v2729_v13  ;;  %v2763_v36 = vld [vmem:[%s4070_s1 + $0x94] ss:$8 sps:$4 sm:$0xff]   ;;  %v2767_v38 = vld [vmem:[%s4070_s1 + $0x90] ss:$8 sps:$4 sm:$0xff]   ;;  %v2769_v40 = vld [vmem:[%s4070_s1 + $0xa4] ss:$8 sps:$4 sm:$0xff]  }
   0xe   :  { %v2765_v37 = vld [vmem:[%s4070_s1 + $0x494] ss:$8 sps:$4 sm:$0xff]   ;;  %v2768_v39 = vld [vmem:[%s4070_s1 + $0x490] ss:$8 sps:$4 sm:$0xff]   ;;  %v2771_v41 = vld [vmem:[%s4070_s1 + $0x4a4] ss:$8 sps:$4 sm:$0xff]  }
   0xf   :  { %1767 = vmatpush1.bf16.msra.mxu1 %v2731_v14  ;;  %v2773_v42 = vld [vmem:[%s4070_s1 + $0xa0] ss:$8 sps:$4 sm:$0xff]   ;;  %v2775_v44 = vld [vmem:[%s4070_s1 + $0xb4] ss:$8 sps:$4 sm:$0xff]   ;;  %v2779_v46 = vld [vmem:[%s4070_s1 + $0xb0] ss:$8 sps:$4 sm:$0xff]  }
  0x10   :  { %1979 = vmatpush1.bf16.msra.mxu0 %v2732_v15  ;;  %1768 = vmatprep.subr.bf16.mxu1 %v2733_v16  ;;  %v2774_v43 = vld [vmem:[%s4070_s1 + $0x4a0] ss:$8 sps:$4 sm:$0xff]   ;;  %v2777_v45 = vld [vmem:[%s4070_s1 + $0x4b4] ss:$8 sps:$4 sm:$0xff]   ;;  %v2780_v47 = vld [vmem:[%s4070_s1 + $0x4b0] ss:$8 sps:$4 sm:$0xff]  }
  0x11   :  { %1980 = vmatprep.subr.bf16.mxu0 %v2735_v17  ;;  %v20_v48 = vld [vmem:[%s4071_s0] sm:$0xff]  ;;  %v2787_v58 = vld [vmem:[%s4070_s1 + $0xd4] ss:$8 sps:$4 sm:$0xff]   ;;  %v2791_v60 = vld [vmem:[%s4070_s1 + $0xd0] ss:$8 sps:$4 sm:$0xff]  }
  0x12   :  { %v28_v49 = vld [vmem:[%s4071_s0 + $0x40] sm:$0xff]  ;;  %v2789_v59 = vld [vmem:[%s4070_s1 + $0x4d4] ss:$8 sps:$4 sm:$0xff]   ;;  %v2792_v61 = vld [vmem:[%s4070_s1 + $0x4d0] ss:$8 sps:$4 sm:$0xff]  }
  0x13   :  { %1769 = vmatpush1.bf16.msra.mxu1 %v2737_v18  ;;  %v2781_v50 = vld [vmem:[%s4070_s1 + $0xc4] ss:$8 sps:$4 sm:$0xff]   ;;  %v2350_v52 = vcombine.high %v20_v48, %v28_v49  ;;  %v2785_v56 = vld [vmem:[%s4070_s1 + $0xc0] ss:$8 sps:$4 sm:$0xff]   ;;  %v2799_v2 = vld [vmem:[%s4070_s1 + $0xf4] ss:$8 sps:$4 sm:$0xff]   ;;  %v2349_v8 = vcombine.low %v20_v48, %v28_v49 }
  0x14   :  { %1981 = vmatpush1.bf16.msra.mxu0 %v2738_v19  ;;  %1770 = vmatprep.subr.bf16.mxu1 %v2739_v20  ;;  %v2783_v51 = vld [vmem:[%s4070_s1 + $0x4c4] ss:$8 sps:$4 sm:$0xff]   ;;  %v2786_v57 = vld [vmem:[%s4070_s1 + $0x4c0] ss:$8 sps:$4 sm:$0xff]   ;;  %v2801_v3 = vld [vmem:[%s4070_s1 + $0x4f4] ss:$8 sps:$4 sm:$0xff]  }
  0x15   :  { %1982 = vmatprep.subr.bf16.mxu0 %v2741_v21  ;;  %v24_v53 = vld [vmem:[%s4071_s0 + $0x20] sm:$0xff]  ;;  %1792 = vmatprep.mubr.bf16.mxu1 %v2350_v52  ;;  %v2803_v4 = vld [vmem:[%s4070_s1 + $0xf0] ss:$8 sps:$4 sm:$0xff]   ;;  %v2813_v12 = vld [vmem:[%s4070_s1 + $0x114] ss:$8 sps:$4 sm:$0xff]  }
  0x16   :  { %v32_v54 = vld [vmem:[%s4071_s0 + $0x60] sm:$0xff]  ;;  %v2804_v5 = vld [vmem:[%s4070_s1 + $0x4f0] ss:$8 sps:$4 sm:$0xff]   ;;  %v2816_v13 = vld [vmem:[%s4070_s1 + $0x514] ss:$8 sps:$4 sm:$0xff]  }
  0x17   :  { %1771 = vmatpush1.bf16.msra.mxu1 %v2743_v22  ;;  %v2358_v55 = vcombine.high %v24_v53, %v32_v54  ;;  %v2793_v62 = vld [vmem:[%s4070_s1 + $0xe4] ss:$8 sps:$4 sm:$0xff]   ;;  %v2797_v0 = vld [vmem:[%s4070_s1 + $0xe0] ss:$8 sps:$4 sm:$0xff]   ;;  %v2357_v10 = vcombine.low %v24_v53, %v32_v54  ;;  %v2811_v14 = vld [vmem:[%s4070_s1 + $0x110] ss:$8 sps:$4 sm:$0xff]  }
  0x18   :  { %1983 = vmatpush1.bf16.msra.mxu0 %v2744_v23  ;;  %1772 = vmatprep.subr.bf16.mxu1 %v2745_v24  ;;  %v2795_v63 = vld [vmem:[%s4070_s1 + $0x4e4] ss:$8 sps:$4 sm:$0xff]   ;;  %v2798_v1 = vld [vmem:[%s4070_s1 + $0x4e0] ss:$8 sps:$4 sm:$0xff]   ;;  %v2814_v15 = vld [vmem:[%s4070_s1 + $0x510] ss:$8 sps:$4 sm:$0xff]  }
  0x19   :  { %1984 = vmatprep.subr.bf16.mxu0 %v2747_v25  ;;  %2004 = vmatprep.mubr.bf16.mxu0 %v2358_v55  ;;  %v2807_v6 = vld [vmem:[%s4070_s1 + $0x104] ss:$8 sps:$4 sm:$0xff]   ;;  %v2805_v9 = vld [vmem:[%s4070_s1 + $0x100] ss:$8 sps:$4 sm:$0xff]   ;;  %v2825_v20 = vld [vmem:[%s4070_s1 + $0x134] ss:$8 sps:$4 sm:$0xff]  }
  0x1a   :  { %v2810_v7 = vld [vmem:[%s4070_s1 + $0x504] ss:$8 sps:$4 sm:$0xff]   ;;  %v2808_v11 = vld [vmem:[%s4070_s1 + $0x500] ss:$8 sps:$4 sm:$0xff]   ;;  %v2828_v21 = vld [vmem:[%s4070_s1 + $0x534] ss:$8 sps:$4 sm:$0xff]  }
  0x1b   :  { %1773 = vmatpush1.bf16.msra.mxu1 %v2749_v26  ;;  %v2819_v16 = vld [vmem:[%s4070_s1 + $0x124] ss:$8 sps:$4 sm:$0xff]   ;;  %v2817_v18 = vld [vmem:[%s4070_s1 + $0x120] ss:$8 sps:$4 sm:$0xff]   ;;  %v2823_v22 = vld [vmem:[%s4070_s1 + $0x130] ss:$8 sps:$4 sm:$0xff]  }
  0x1c   :  { %1985 = vmatpush1.bf16.msra.mxu0 %v2750_v27  ;;  %1774 = vmatprep.subr.bf16.mxu1 %v2751_v28  ;;  %v2822_v17 = vld [vmem:[%s4070_s1 + $0x524] ss:$8 sps:$4 sm:$0xff]   ;;  %v2820_v19 = vld [vmem:[%s4070_s1 + $0x520] ss:$8 sps:$4 sm:$0xff]   ;;  %v2826_v23 = vld [vmem:[%s4070_s1 + $0x530] ss:$8 sps:$4 sm:$0xff]  }
  0x1d   :  { %1986 = vmatprep.subr.bf16.mxu0 %v2753_v29  ;;  %v2831_v24 = vld [vmem:[%s4070_s1 + $0x144] ss:$8 sps:$4 sm:$0xff]   ;;  %v2829_v26 = vld [vmem:[%s4070_s1 + $0x140] ss:$8 sps:$4 sm:$0xff]   ;;  %v2837_v28 = vld [vmem:[%s4070_s1 + $0x154] ss:$8 sps:$4 sm:$0xff]  }
  0x1e   :  { %v2834_v25 = vld [vmem:[%s4070_s1 + $0x544] ss:$8 sps:$4 sm:$0xff]   ;;  %v2832_v27 = vld [vmem:[%s4070_s1 + $0x540] ss:$8 sps:$4 sm:$0xff]   ;;  %v2840_v29 = vld [vmem:[%s4070_s1 + $0x554] ss:$8 sps:$4 sm:$0xff]  }
  0x1f   :  { %1775 = vmatpush1.bf16.msra.mxu1 %v2755_v30  ;;  %v36_v30 = vld [vmem:[%s4071_s0 + $0x80] sm:$0xff]  ;;  %v3448_v49 = vld [vmem:[%s4071_s0 + $0x28] sm:$0xff]  ;;  %v2850_v52 = vld [vmem:[%s4070_s1 + $0x570] ss:$8 sps:$4 sm:$0xff]  }
  0x20   :  { %1987 = vmatpush1.bf16.msra.mxu0 %v2756_v31  ;;  %1776 = vmatprep.subr.bf16.mxu1 %v2757_v32  ;;  %v44_v31 = vld [vmem:[%s4071_s0 + $0xc0] sm:$0xff]  ;;  %v2835_v32 = vld [vmem:[%s4070_s1 + $0x150] ss:$8 sps:$4 sm:$0xff]  }
  0x21   :  { %1988 = vmatprep.subr.bf16.mxu0 %v2759_v33  ;;  %v2366_v33 = vcombine.high %v36_v30, %v44_v31  ;;  %v2855_v54 = vld [vmem:[%s4070_s1 + $0x184] ss:$8 sps:$4 sm:$0xff]  }
  0x22   :  { %v2858_v55 = vld [vmem:[%s4070_s1 + $0x584] ss:$8 sps:$4 sm:$0xff]  }
  0x23   :  { %1777 = vmatpush1.bf16.msra.mxu1 %v2761_v34  ;;  %v2838_v34 = vld [vmem:[%s4070_s1 + $0x550] ss:$8 sps:$4 sm:$0xff]  }
  0x24   :  { %1989 = vmatpush1.bf16.msra.mxu0 %v2762_v35  ;;  %1778 = vmatprep.subr.bf16.mxu1 %v2763_v36  ;;  %v40_v35 = vld [vmem:[%s4071_s0 + $0xa0] sm:$0xff] }
  0x25   :  { %1990 = vmatprep.subr.bf16.mxu0 %v2765_v37  ;;  %v48_v36 = vld [vmem:[%s4071_s0 + $0xe0] sm:$0xff]  ;;  %v2365_v37 = vcombine.low %v36_v30, %v44_v31  ;;  %v2909_v30 = vld [vmem:[%s4070_s1 + $0x214] ss:$8 sps:$4 sm:$0xff]  }
  0x26   :  { %v2912_v31 = vld [vmem:[%s4070_s1 + $0x614] ss:$8 sps:$4 sm:$0xff]  }
  0x27   :  { %1779 = vmatpush1.bf16.msra.mxu1 %v2767_v38  ;;  %v2843_v38 = vld [vmem:[%s4070_s1 + $0x164] ss:$8 sps:$4 sm:$0xff]  }
  0x28   :  { %1991 = vmatpush1.bf16.msra.mxu0 %v2768_v39  ;;  %1780 = vmatprep.subr.bf16.mxu1 %v2769_v40  ;;  %v2374_v39 = vcombine.high %v40_v35, %v48_v36  ;;  %v2373_v40 = vcombine.low %v40_v35, %v48_v36  ;;  %v2907_v36 = vld [vmem:[%s4070_s1 + $0x210] ss:$8 sps:$4 sm:$0xff]  }
  0x29   :  { %1992 = vmatprep.subr.bf16.mxu0 %v2771_v41  ;;  %v2846_v41 = vld [vmem:[%s4070_s1 + $0x564] ss:$8 sps:$4 sm:$0xff]  }
  0x2b   :  { %1781 = vmatpush1.bf16.msra.mxu1 %v2773_v42  ;;  %v2841_v42 = vld [vmem:[%s4070_s1 + $0x160] ss:$8 sps:$4 sm:$0xff]  }
  0x2c   :  { %1993 = vmatpush1.bf16.msra.mxu0 %v2774_v43  ;;  %1782 = vmatprep.subr.bf16.mxu1 %v2775_v44  ;;  %v2844_v43 = vld [vmem:[%s4070_s1 + $0x560] ss:$8 sps:$4 sm:$0xff]  }
  0x2d   :  { %1994 = vmatprep.subr.bf16.mxu0 %v2777_v45  ;;  %v3430_v44 = vld [vmem:[%s4071_s0 + $0x8] sm:$0xff] }
  0x2e   :  { %v3435_v45 = vld [vmem:[%s4071_s0 + $0x48] sm:$0xff] }
  0x2f   :  { %1783 = vmatpush1.bf16.msra.mxu1 %v2779_v46  ;;  %v2849_v46 = vld [vmem:[%s4070_s1 + $0x174] ss:$8 sps:$4 sm:$0xff]   ;;  %v2352_v48 = vcombine.high %v3430_v44, %v3435_v45 }
  0x30   :  { %1995 = vmatpush1.bf16.msra.mxu0 %v2780_v47  ;;  %1784 = vmatprep.subr.bf16.mxu1 %v2781_v50  ;;  %v2852_v47 = vld [vmem:[%s4070_s1 + $0x574] ss:$8 sps:$4 sm:$0xff]   ;;  %v3453_v50 = vld [vmem:[%s4071_s0 + $0x68] sm:$0xff] }
  0x31   :  { %1996 = vmatprep.subr.bf16.mxu0 %v2783_v51  ;;  %v2847_v51 = vld [vmem:[%s4070_s1 + $0x170] ss:$8 sps:$4 sm:$0xff]   ;;  %v2360_v53 = vcombine.high %v3448_v49, %v3453_v50 }
  0x33   :  { %1785 = vmatpush1.bf16.msra.mxu1 %v2785_v56  ;;  %v2853_v56 = vld [vmem:[%s4070_s1 + $0x180] ss:$8 sps:$4 sm:$0xff]  }
  0x34   :  { %1997 = vmatpush1.bf16.msra.mxu0 %v2786_v57  ;;  %1786 = vmatprep.subr.bf16.mxu1 %v2787_v58  ;;  %v2856_v57 = vld [vmem:[%s4070_s1 + $0x580] ss:$8 sps:$4 sm:$0xff]   ;;  %v2861_v58 = vld [vmem:[%s4070_s1 + $0x194] ss:$8 sps:$4 sm:$0xff]  }
  0x35   :  { %1998 = vmatprep.subr.bf16.mxu0 %v2789_v59  ;;  %v2864_v59 = vld [vmem:[%s4070_s1 + $0x594] ss:$8 sps:$4 sm:$0xff]  }
  0x37   :  { %1787 = vmatpush1.bf16.msra.mxu1 %v2791_v60  ;;  %v2859_v60 = vld [vmem:[%s4070_s1 + $0x190] ss:$8 sps:$4 sm:$0xff]  }
  0x38   :  { %1999 = vmatpush1.bf16.msra.mxu0 %v2792_v61  ;;  %1788 = vmatprep.subr.bf16.mxu1 %v2793_v62  ;;  %v2862_v61 = vld [vmem:[%s4070_s1 + $0x590] ss:$8 sps:$4 sm:$0xff]   ;;  %v2867_v62 = vld [vmem:[%s4070_s1 + $0x1a4] ss:$8 sps:$4 sm:$0xff]  }
  0x39   :  { %2000 = vmatprep.subr.bf16.mxu0 %v2795_v63  ;;  %v2870_v63 = vld [vmem:[%s4070_s1 + $0x5a4] ss:$8 sps:$4 sm:$0xff]  }
  0x3b   :  { %1789 = vmatpush1.bf16.msra.mxu1 %v2797_v0  ;;  %v2865_v0 = vld [vmem:[%s4070_s1 + $0x1a0] ss:$8 sps:$4 sm:$0xff]  }
  0x3c   :  { %2001 = vmatpush1.bf16.msra.mxu0 %v2798_v1  ;;  %1790 = vmatprep.subr.bf16.mxu1 %v2799_v2  ;;  %v2868_v1 = vld [vmem:[%s4070_s1 + $0x5a0] ss:$8 sps:$4 sm:$0xff]   ;;  %v2873_v2 = vld [vmem:[%s4070_s1 + $0x1b4] ss:$8 sps:$4 sm:$0xff]  }
  0x3d   :  { %2002 = vmatprep.subr.bf16.mxu0 %v2801_v3  ;;  %v2876_v3 = vld [vmem:[%s4070_s1 + $0x5b4] ss:$8 sps:$4 sm:$0xff]  }
  0x3f   :  { %1791 = vmatpush1.bf16.msra.mxu1 %v2803_v4  ;;  %v2871_v4 = vld [vmem:[%s4070_s1 + $0x1b0] ss:$8 sps:$4 sm:$0xff]  }
  0x40   :  { %2003 = vmatpush1.bf16.msra.mxu0 %v2804_v5  ;;  %1813 = vmatprep.subr.bf16.mxu1 %v2807_v6  ;;  %v2874_v5 = vld [vmem:[%s4070_s1 + $0x5b0] ss:$8 sps:$4 sm:$0xff]   ;;  %v2879_v6 = vld [vmem:[%s4070_s1 + $0x1c4] ss:$8 sps:$4 sm:$0xff]  }
  0x41   :  { %2025 = vmatprep.subr.bf16.mxu0 %v2810_v7  ;;  %v2882_v7 = vld [vmem:[%s4070_s1 + $0x5c4] ss:$8 sps:$4 sm:$0xff]  }
  0x42   :  { %1793 = vmatmul.mubr.bf16.vlgmr.msra.gmra.mrb[0].mxu1 %v2349_v8  ;;  %v2877_v8 = vld [vmem:[%s4070_s1 + $0x1c0] ss:$8 sps:$4 sm:$0xff]  }
  0x43   :  { %2005 = vmatmul.mubr.bf16.vlgmr.msra.gmra.mrb[0].mxu0 %v2357_v10  ;;  %1814 = vmatpush1.bf16.msra.mxu1 %v2805_v9  ;;  %v2880_v9 = vld [vmem:[%s4070_s1 + $0x5c0] ss:$8 sps:$4 sm:$0xff]   ;;  %v2885_v10 = vld [vmem:[%s4070_s1 + $0x1d4] ss:$8 sps:$4 sm:$0xff]  }
  0x44   :  { %2026 = vmatpush1.bf16.msra.mxu0 %v2808_v11  ;;  %1815 = vmatprep.subr.bf16.mxu1 %v2813_v12  ;;  %v2888_v11 = vld [vmem:[%s4070_s1 + $0x5d4] ss:$8 sps:$4 sm:$0xff]   ;;  %v2883_v12 = vld [vmem:[%s4070_s1 + $0x1d0] ss:$8 sps:$4 sm:$0xff]  }
  0x45   :  { %2027 = vmatprep.subr.bf16.mxu0 %v2816_v13  ;;  %1802 = vmatprep.mubr.bf16.mxu1 %v2366_v33  ;;  %v2886_v13 = vld [vmem:[%s4070_s1 + $0x5d0] ss:$8 sps:$4 sm:$0xff]   ;;  %v49_v33 = vld [vmem:[%s4071_s0 + $0xe8] sm:$0xff] }
  0x46   :  { %2014 = vmatprep.mubr.bf16.mxu0 %v2374_v39  ;;  %v2918_v39 = vld [vmem:[%s4070_s1 + $0x624] ss:$8 sps:$4 sm:$0xff]  }
  0x47   :  { %1816 = vmatpush1.bf16.msra.mxu1 %v2811_v14  ;;  %v2891_v14 = vld [vmem:[%s4070_s1 + $0x1e4] ss:$8 sps:$4 sm:$0xff]  }
  0x48   :  { %2028 = vmatpush1.bf16.msra.mxu0 %v2814_v15  ;;  %1817 = vmatprep.subr.bf16.mxu1 %v2819_v16  ;;  %v2894_v15 = vld [vmem:[%s4070_s1 + $0x5e4] ss:$8 sps:$4 sm:$0xff]   ;;  %v2889_v16 = vld [vmem:[%s4070_s1 + $0x1e0] ss:$8 sps:$4 sm:$0xff]  }
  0x49   :  { %2029 = vmatprep.subr.bf16.mxu0 %v2822_v17  ;;  %v2892_v17 = vld [vmem:[%s4070_s1 + $0x5e0] ss:$8 sps:$4 sm:$0xff]  }
  0x4a   :  { %1803 = vmatmul.mubr.bf16.gmra.mrb[4].mxu1 %v2365_v37  ;;  %v2910_v37 = vld [vmem:[%s4070_s1 + $0x610] ss:$8 sps:$4 sm:$0xff]  }
  0x4b   :  { %1818 = vmatpush1.bf16.msra.mxu1 %v2817_v18  ;;  %2015 = vmatmul.mubr.bf16.gmra.mrb[4].mxu0 %v2373_v40  ;;  %v2897_v18 = vld [vmem:[%s4070_s1 + $0x1f4] ss:$8 sps:$4 sm:$0xff]   ;;  %v2913_v40 = vld [vmem:[%s4070_s1 + $0x220] ss:$8 sps:$4 sm:$0xff]  }
  0x4c   :  { %2030 = vmatpush1.bf16.msra.mxu0 %v2820_v19  ;;  %1819 = vmatprep.subr.bf16.mxu1 %v2825_v20  ;;  %v2900_v19 = vld [vmem:[%s4070_s1 + $0x5f4] ss:$8 sps:$4 sm:$0xff]   ;;  %v2895_v20 = vld [vmem:[%s4070_s1 + $0x1f0] ss:$8 sps:$4 sm:$0xff]  }
  0x4d   :  { %2031 = vmatprep.subr.bf16.mxu0 %v2828_v21  ;;  %1845 = vmatprep.mubr.bf16.mxu1 %v2352_v48  ;;  %v2898_v21 = vld [vmem:[%s4070_s1 + $0x5f0] ss:$8 sps:$4 sm:$0xff]   ;;  %v2921_v48 = vld [vmem:[%s4070_s1 + $0x234] ss:$8 sps:$4 sm:$0xff]  }
  0x4e   :  { %2057 = vmatprep.mubr.bf16.mxu0 %v2360_v53  ;;  %v2922_v53 = vld [vmem:[%s4070_s1 + $0x630] ss:$8 sps:$4 sm:$0xff]  }
  0x4f   :  { %1820 = vmatpush1.bf16.msra.mxu1 %v2823_v22  ;;  %v2903_v22 = vld [vmem:[%s4070_s1 + $0x204] ss:$8 sps:$4 sm:$0xff]  }
  0x50   :  { %2032 = vmatpush1.bf16.msra.mxu0 %v2826_v23  ;;  %1821 = vmatprep.subr.bf16.mxu1 %v2831_v24  ;;  %v2906_v23 = vld [vmem:[%s4070_s1 + $0x604] ss:$8 sps:$4 sm:$0xff]   ;;  %v2901_v24 = vld [vmem:[%s4070_s1 + $0x200] ss:$8 sps:$4 sm:$0xff]  }
  0x51   :  { %2033 = vmatprep.subr.bf16.mxu0 %v2834_v25  ;;  %v2904_v25 = vld [vmem:[%s4070_s1 + $0x600] ss:$8 sps:$4 sm:$0xff]  }
  0x53   :  { %1822 = vmatpush1.bf16.msra.mxu1 %v2829_v26  ;;  %v37_v26 = vld [vmem:[%s4071_s0 + $0x88] sm:$0xff] }
  0x54   :  { %2034 = vmatpush1.bf16.msra.mxu0 %v2832_v27  ;;  %1823 = vmatprep.subr.bf16.mxu1 %v2837_v28  ;;  %v2351_v27 = vcombine.low %v3430_v44, %v3435_v45  ;;  %v2359_v28 = vcombine.low %v3448_v49, %v3453_v50  ;;  %v3619_v45 = vld [vmem:[%s4071_s0 + $0x50] sm:$0xff] }
  0x55   :  { %2035 = vmatprep.subr.bf16.mxu0 %v2840_v29  ;;  %v45_v29 = vld [vmem:[%s4071_s0 + $0xc8] sm:$0xff]  ;;  %v2924_v49 = vld [vmem:[%s4070_s1 + $0x634] ss:$8 sps:$4 sm:$0xff]  }
  0x57   :  { %1824 = vmatpush1.bf16.msra.mxu1 %v2835_v32  ;;  %v41_v32 = vld [vmem:[%s4071_s0 + $0xa8] sm:$0xff] }
  0x58   :  { %2036 = vmatpush1.bf16.msra.mxu0 %v2838_v34  ;;  %1825 = vmatprep.subr.bf16.mxu1 %v2843_v38  ;;  %v2368_v34 = vcombine.high %v37_v26, %v45_v29  ;;  %v2376_v35 = vcombine.high %v41_v32, %v49_v33  ;;  %v2915_v38 = vld [vmem:[%s4070_s1 + $0x224] ss:$8 sps:$4 sm:$0xff]   ;;  %v2375_v44 = vcombine.low %v41_v32, %v49_v33  ;;  %v2985_v32 = vld [vmem:[%s4070_s1 + $0x2e0] ss:$8 sps:$4 sm:$0xff]  }
  0x59   :  { %2037 = vmatprep.subr.bf16.mxu0 %v2846_v41  ;;  %v2916_v41 = vld [vmem:[%s4070_s1 + $0x620] ss:$8 sps:$4 sm:$0xff]  }
  0x5a   :  { %v2988_v33 = vld [vmem:[%s4070_s1 + $0x6e0] ss:$8 sps:$4 sm:$0xff]  }
  0x5b   :  { %1826 = vmatpush1.bf16.msra.mxu1 %v2841_v42  ;;  %v3614_v42 = vld [vmem:[%s4071_s0 + $0x10] sm:$0xff] }
  0x5c   :  { %2038 = vmatpush1.bf16.msra.mxu0 %v2844_v43  ;;  %1827 = vmatprep.subr.bf16.mxu1 %v2849_v46  ;;  %v2367_v43 = vcombine.low %v37_v26, %v45_v29  ;;  %v3624_v46 = vld [vmem:[%s4071_s0 + $0x30] sm:$0xff]  ;;  %v2354_v50 = vcombine.high %v3614_v42, %v3619_v45 }
  0x5d   :  { %2039 = vmatprep.subr.bf16.mxu0 %v2852_v47  ;;  %v3629_v47 = vld [vmem:[%s4071_s0 + $0x70] sm:$0xff] }
  0x5e   :  { %v2981_v26 = vld [vmem:[%s4070_s1 + $0x2d4] ss:$8 sps:$4 sm:$0xff]   ;;  %v2982_v29 = vld [vmem:[%s4070_s1 + $0x6d0] ss:$8 sps:$4 sm:$0xff]  }
  0x5f   :  { %1828 = vmatpush1.bf16.msra.mxu1 %v2847_v51  ;;  %v2362_v51 = vcombine.high %v3624_v46, %v3629_v47 }
  0x60   :  { %2040 = vmatpush1.bf16.msra.mxu0 %v2850_v52  ;;  %1829 = vmatprep.subr.bf16.mxu1 %v2855_v54  ;;  %v2919_v52 = vld [vmem:[%s4070_s1 + $0x230] ss:$8 sps:$4 sm:$0xff]   ;;  %v2927_v54 = vld [vmem:[%s4070_s1 + $0x244] ss:$8 sps:$4 sm:$0xff]  }
  0x61   :  { %2041 = vmatprep.subr.bf16.mxu0 %v2858_v55  ;;  %v2930_v55 = vld [vmem:[%s4070_s1 + $0x644] ss:$8 sps:$4 sm:$0xff]  }
  0x63   :  { %1830 = vmatpush1.bf16.msra.mxu1 %v2853_v56  ;;  %v2925_v56 = vld [vmem:[%s4070_s1 + $0x240] ss:$8 sps:$4 sm:$0xff]  }
  0x64   :  { %2042 = vmatpush1.bf16.msra.mxu0 %v2856_v57  ;;  %1831 = vmatprep.subr.bf16.mxu1 %v2861_v58  ;;  %v2928_v57 = vld [vmem:[%s4070_s1 + $0x640] ss:$8 sps:$4 sm:$0xff]   ;;  %v2933_v58 = vld [vmem:[%s4070_s1 + $0x254] ss:$8 sps:$4 sm:$0xff]  }
  0x65   :  { %2043 = vmatprep.subr.bf16.mxu0 %v2864_v59  ;;  %v2936_v59 = vld [vmem:[%s4070_s1 + $0x654] ss:$8 sps:$4 sm:$0xff]  }
  0x67   :  { %1832 = vmatpush1.bf16.msra.mxu1 %v2859_v60  ;;  %v2931_v60 = vld [vmem:[%s4070_s1 + $0x250] ss:$8 sps:$4 sm:$0xff]  }
  0x68   :  { %2044 = vmatpush1.bf16.msra.mxu0 %v2862_v61  ;;  %1833 = vmatprep.subr.bf16.mxu1 %v2867_v62  ;;  %v2934_v61 = vld [vmem:[%s4070_s1 + $0x650] ss:$8 sps:$4 sm:$0xff]   ;;  %v2939_v62 = vld [vmem:[%s4070_s1 + $0x264] ss:$8 sps:$4 sm:$0xff]  }
  0x69   :  { %2045 = vmatprep.subr.bf16.mxu0 %v2870_v63  ;;  %v2942_v63 = vld [vmem:[%s4070_s1 + $0x664] ss:$8 sps:$4 sm:$0xff]  }
  0x6b   :  { %1834 = vmatpush1.bf16.msra.mxu1 %v2865_v0  ;;  %v2937_v0 = vld [vmem:[%s4070_s1 + $0x260] ss:$8 sps:$4 sm:$0xff]  }
  0x6c   :  { %2046 = vmatpush1.bf16.msra.mxu0 %v2868_v1  ;;  %1835 = vmatprep.subr.bf16.mxu1 %v2873_v2  ;;  %v2940_v1 = vld [vmem:[%s4070_s1 + $0x660] ss:$8 sps:$4 sm:$0xff]   ;;  %v2945_v2 = vld [vmem:[%s4070_s1 + $0x274] ss:$8 sps:$4 sm:$0xff]  }
  0x6d   :  { %2047 = vmatprep.subr.bf16.mxu0 %v2876_v3  ;;  %v2948_v3 = vld [vmem:[%s4070_s1 + $0x674] ss:$8 sps:$4 sm:$0xff]  }
  0x6f   :  { %1836 = vmatpush1.bf16.msra.mxu1 %v2871_v4  ;;  %v2943_v4 = vld [vmem:[%s4070_s1 + $0x270] ss:$8 sps:$4 sm:$0xff]  }
  0x70   :  { %2048 = vmatpush1.bf16.msra.mxu0 %v2874_v5  ;;  %1837 = vmatprep.subr.bf16.mxu1 %v2879_v6  ;;  %v2946_v5 = vld [vmem:[%s4070_s1 + $0x670] ss:$8 sps:$4 sm:$0xff]   ;;  %v2951_v6 = vld [vmem:[%s4070_s1 + $0x284] ss:$8 sps:$4 sm:$0xff]  }
  0x71   :  { %2049 = vmatprep.subr.bf16.mxu0 %v2882_v7  ;;  %v2954_v7 = vld [vmem:[%s4070_s1 + $0x684] ss:$8 sps:$4 sm:$0xff]  }
  0x73   :  { %1838 = vmatpush1.bf16.msra.mxu1 %v2877_v8  ;;  %v2949_v8 = vld [vmem:[%s4070_s1 + $0x280] ss:$8 sps:$4 sm:$0xff]  }
  0x74   :  { %2050 = vmatpush1.bf16.msra.mxu0 %v2880_v9  ;;  %1839 = vmatprep.subr.bf16.mxu1 %v2885_v10  ;;  %v2952_v9 = vld [vmem:[%s4070_s1 + $0x680] ss:$8 sps:$4 sm:$0xff]   ;;  %v2957_v10 = vld [vmem:[%s4070_s1 + $0x294] ss:$8 sps:$4 sm:$0xff]  }
  0x75   :  { %2051 = vmatprep.subr.bf16.mxu0 %v2888_v11  ;;  %v2960_v11 = vld [vmem:[%s4070_s1 + $0x694] ss:$8 sps:$4 sm:$0xff]  }
  0x77   :  { %1840 = vmatpush1.bf16.msra.mxu1 %v2883_v12  ;;  %v2955_v12 = vld [vmem:[%s4070_s1 + $0x290] ss:$8 sps:$4 sm:$0xff]  }
  0x78   :  { %2052 = vmatpush1.bf16.msra.mxu0 %v2886_v13  ;;  %1841 = vmatprep.subr.bf16.mxu1 %v2891_v14  ;;  %v2958_v13 = vld [vmem:[%s4070_s1 + $0x690] ss:$8 sps:$4 sm:$0xff]   ;;  %v2963_v14 = vld [vmem:[%s4070_s1 + $0x2a4] ss:$8 sps:$4 sm:$0xff]  }
  0x79   :  { %2053 = vmatprep.subr.bf16.mxu0 %v2894_v15  ;;  %v2966_v15 = vld [vmem:[%s4070_s1 + $0x6a4] ss:$8 sps:$4 sm:$0xff]  }
  0x7b   :  { %1842 = vmatpush1.bf16.msra.mxu1 %v2889_v16  ;;  %v2961_v16 = vld [vmem:[%s4070_s1 + $0x2a0] ss:$8 sps:$4 sm:$0xff]  }
  0x7c   :  { %2054 = vmatpush1.bf16.msra.mxu0 %v2892_v17  ;;  %1843 = vmatprep.subr.bf16.mxu1 %v2897_v18  ;;  %v2964_v17 = vld [vmem:[%s4070_s1 + $0x6a0] ss:$8 sps:$4 sm:$0xff]   ;;  %v2969_v18 = vld [vmem:[%s4070_s1 + $0x2b4] ss:$8 sps:$4 sm:$0xff]  }
  0x7d   :  { %2055 = vmatprep.subr.bf16.mxu0 %v2900_v19  ;;  %v2972_v19 = vld [vmem:[%s4070_s1 + $0x6b4] ss:$8 sps:$4 sm:$0xff]  }
  0x7f   :  { %1844 = vmatpush1.bf16.msra.mxu1 %v2895_v20  ;;  %v2967_v20 = vld [vmem:[%s4070_s1 + $0x2b0] ss:$8 sps:$4 sm:$0xff]  }
  0x80   :  { %2056 = vmatpush1.bf16.msra.mxu0 %v2898_v21  ;;  %1866 = vmatprep.subr.bf16.mxu1 %v2903_v22  ;;  %v2970_v21 = vld [vmem:[%s4070_s1 + $0x6b0] ss:$8 sps:$4 sm:$0xff]   ;;  %v2975_v22 = vld [vmem:[%s4070_s1 + $0x2c4] ss:$8 sps:$4 sm:$0xff]  }
  0x81   :  { %2078 = vmatprep.subr.bf16.mxu0 %v2906_v23  ;;  %v2978_v23 = vld [vmem:[%s4070_s1 + $0x6c4] ss:$8 sps:$4 sm:$0xff]  }
  0x82   :  { %1846 = vmatmul.mubr.bf16.vlgmr.msra.gmra.mrb[0].mxu1 %v2351_v27  ;;  %v2984_v27 = vld [vmem:[%s4070_s1 + $0x6d4] ss:$8 sps:$4 sm:$0xff]  }
  0x83   :  { %2058 = vmatmul.mubr.bf16.vlgmr.msra.gmra.mrb[0].mxu0 %v2359_v28  ;;  %1867 = vmatpush1.bf16.msra.mxu1 %v2901_v24  ;;  %v2973_v24 = vld [vmem:[%s4070_s1 + $0x2c0] ss:$8 sps:$4 sm:$0xff]   ;;  %v2979_v28 = vld [vmem:[%s4070_s1 + $0x2d0] ss:$8 sps:$4 sm:$0xff]  }
  0x84   :  { %2079 = vmatpush1.bf16.msra.mxu0 %v2904_v25  ;;  %1868 = vmatprep.subr.bf16.mxu1 %v2909_v30  ;;  %v2976_v25 = vld [vmem:[%s4070_s1 + $0x6c0] ss:$8 sps:$4 sm:$0xff]   ;;  %v2987_v30 = vld [vmem:[%s4070_s1 + $0x2e4] ss:$8 sps:$4 sm:$0xff]  }
  0x85   :  { %2080 = vmatprep.subr.bf16.mxu0 %v2912_v31  ;;  %1855 = vmatprep.mubr.bf16.mxu1 %v2368_v34  ;;  %v2990_v31 = vld [vmem:[%s4070_s1 + $0x6e4] ss:$8 sps:$4 sm:$0xff]   ;;  %v2993_v34 = vld [vmem:[%s4070_s1 + $0x2f4] ss:$8 sps:$4 sm:$0xff]  }
  0x86   :  { %2067 = vmatprep.mubr.bf16.mxu0 %v2376_v35  ;;  %v2996_v35 = vld [vmem:[%s4070_s1 + $0x6f4] ss:$8 sps:$4 sm:$0xff]  }
  0x87   :  { %1869 = vmatpush1.bf16.msra.mxu1 %v2907_v36  ;;  %v2991_v36 = vld [vmem:[%s4070_s1 + $0x2f0] ss:$8 sps:$4 sm:$0xff]  }
  0x88   :  { %2081 = vmatpush1.bf16.msra.mxu0 %v2910_v37  ;;  %1870 = vmatprep.subr.bf16.mxu1 %v2915_v38  ;;  %v2994_v37 = vld [vmem:[%s4070_s1 + $0x6f0] ss:$8 sps:$4 sm:$0xff]   ;;  %v2999_v38 = vld [vmem:[%s4070_s1 + $0x304] ss:$8 sps:$4 sm:$0xff]  }
  0x89   :  { %2082 = vmatprep.subr.bf16.mxu0 %v2918_v39  ;;  %v3002_v39 = vld [vmem:[%s4070_s1 + $0x704] ss:$8 sps:$4 sm:$0xff]  }
  0x8a   :  { %1856 = vmatmul.mubr.bf16.gmra.mrb[4].mxu1 %v2367_v43  ;;  %v2361_v43 = vcombine.low %v3624_v46, %v3629_v47  ;;  %v3005_v46 = vld [vmem:[%s4070_s1 + $0x314] ss:$8 sps:$4 sm:$0xff]  }
  0x8b   :  { %2068 = vmatmul.mubr.bf16.gmra.mrb[4].mxu0 %v2375_v44  ;;  %1871 = vmatpush1.bf16.msra.mxu1 %v2913_v40  ;;  %v38_v40 = vld [vmem:[%s4071_s0 + $0x90] sm:$0xff] }
  0x8c   :  { %2083 = vmatpush1.bf16.msra.mxu0 %v2916_v41  ;;  %1872 = vmatprep.subr.bf16.mxu1 %v2921_v48  ;;  %v2353_v41 = vcombine.low %v3614_v42, %v3619_v45  ;;  %v46_v44 = vld [vmem:[%s4071_s0 + $0xd0] sm:$0xff]  ;;  %v2997_v42 = vld [vmem:[%s4070_s1 + $0x300] ss:$8 sps:$4 sm:$0xff]  }
  0x8d   :  { %2084 = vmatprep.subr.bf16.mxu0 %v2924_v49  ;;  %1898 = vmatprep.mubr.bf16.mxu1 %v2354_v50  ;;  %v42_v48 = vld [vmem:[%s4071_s0 + $0xb0] sm:$0xff]  ;;  %v3000_v45 = vld [vmem:[%s4070_s1 + $0x700] ss:$8 sps:$4 sm:$0xff]   ;;  %v2370_v50 = vcombine.high %v38_v40, %v46_v44 }
  0x8e   :  { %2110 = vmatprep.mubr.bf16.mxu0 %v2362_v51  ;;  %v50_v49 = vld [vmem:[%s4071_s0 + $0xf0] sm:$0xff] }
  0x8f   :  { %1873 = vmatpush1.bf16.msra.mxu1 %v2919_v52  ;;  %v3008_v47 = vld [vmem:[%s4070_s1 + $0x714] ss:$8 sps:$4 sm:$0xff]   ;;  %v2378_v51 = vcombine.high %v42_v48, %v50_v49  ;;  %v3003_v52 = vld [vmem:[%s4070_s1 + $0x310] ss:$8 sps:$4 sm:$0xff]  }
  0x90   :  { %2085 = vmatpush1.bf16.msra.mxu0 %v2922_v53  ;;  %1874 = vmatprep.subr.bf16.mxu1 %v2927_v54  ;;  %v3006_v53 = vld [vmem:[%s4070_s1 + $0x710] ss:$8 sps:$4 sm:$0xff]   ;;  %v3011_v54 = vld [vmem:[%s4070_s1 + $0x324] ss:$8 sps:$4 sm:$0xff]  }
  0x91   :  { %2086 = vmatprep.subr.bf16.mxu0 %v2930_v55  ;;  %v3014_v55 = vld [vmem:[%s4070_s1 + $0x724] ss:$8 sps:$4 sm:$0xff]  }
  0x93   :  { %1875 = vmatpush1.bf16.msra.mxu1 %v2925_v56  ;;  %v3840_v56 = vld [vmem:[%s4071_s0 + $0x18] sm:$0xff] }
  0x94   :  { %2087 = vmatpush1.bf16.msra.mxu0 %v2928_v57  ;;  %1876 = vmatprep.subr.bf16.mxu1 %v2933_v58  ;;  %v2369_v57 = vcombine.low %v38_v40, %v46_v44  ;;  %v2377_v58 = vcombine.low %v42_v48, %v50_v49  ;;  %v3069_v40 = vld [vmem:[%s4070_s1 + $0x3c0] ss:$8 sps:$4 sm:$0xff]   ;;  %v3080_v44 = vld [vmem:[%s4070_s1 + $0x7d4] ss:$8 sps:$4 sm:$0xff]   ;;  %v3075_v48 = vld [vmem:[%s4070_s1 + $0x3d0] ss:$8 sps:$4 sm:$0xff]  }
  0x95   :  { %2088 = vmatprep.subr.bf16.mxu0 %v2936_v59  ;;  %v3845_v59 = vld [vmem:[%s4071_s0 + $0x58] sm:$0xff] }
  0x96   :  { %v3078_v49 = vld [vmem:[%s4070_s1 + $0x7d0] ss:$8 sps:$4 sm:$0xff]  }
  0x97   :  { %1877 = vmatpush1.bf16.msra.mxu1 %v2931_v60  ;;  %v3850_v60 = vld [vmem:[%s4071_s0 + $0x38] sm:$0xff] }
  0x98   :  { %2089 = vmatpush1.bf16.msra.mxu0 %v2934_v61  ;;  %1878 = vmatprep.subr.bf16.mxu1 %v2939_v62  ;;  %v3855_v61 = vld [vmem:[%s4071_s0 + $0x78] sm:$0xff]  ;;  %v3009_v62 = vld [vmem:[%s4070_s1 + $0x320] ss:$8 sps:$4 sm:$0xff]  }
  0x99   :  { %2090 = vmatprep.subr.bf16.mxu0 %v2942_v63  ;;  %v3012_v63 = vld [vmem:[%s4070_s1 + $0x720] ss:$8 sps:$4 sm:$0xff]  }
  0x9b   :  { %1879 = vmatpush1.bf16.msra.mxu1 %v2937_v0  ;;  %v3017_v0 = vld [vmem:[%s4070_s1 + $0x334] ss:$8 sps:$4 sm:$0xff]  }
  0x9c   :  { %2091 = vmatpush1.bf16.msra.mxu0 %v2940_v1  ;;  %1880 = vmatprep.subr.bf16.mxu1 %v2945_v2  ;;  %v3020_v1 = vld [vmem:[%s4070_s1 + $0x734] ss:$8 sps:$4 sm:$0xff]   ;;  %v2356_v2 = vcombine.high %v3840_v56, %v3845_v59 }
  0x9d   :  { %2092 = vmatprep.subr.bf16.mxu0 %v2948_v3  ;;  %v2364_v3 = vcombine.high %v3850_v60, %v3855_v61 }
  0x9f   :  { %1881 = vmatpush1.bf16.msra.mxu1 %v2943_v4  ;;  %v3015_v4 = vld [vmem:[%s4070_s1 + $0x330] ss:$8 sps:$4 sm:$0xff]  }
  0xa0   :  { %2093 = vmatpush1.bf16.msra.mxu0 %v2946_v5  ;;  %1882 = vmatprep.subr.bf16.mxu1 %v2951_v6  ;;  %v3018_v5 = vld [vmem:[%s4070_s1 + $0x730] ss:$8 sps:$4 sm:$0xff]   ;;  %v3023_v6 = vld [vmem:[%s4070_s1 + $0x344] ss:$8 sps:$4 sm:$0xff]  }
  0xa1   :  { %2094 = vmatprep.subr.bf16.mxu0 %v2954_v7  ;;  %v3026_v7 = vld [vmem:[%s4070_s1 + $0x744] ss:$8 sps:$4 sm:$0xff]  }
  0xa3   :  { %1883 = vmatpush1.bf16.msra.mxu1 %v2949_v8  ;;  %v3021_v8 = vld [vmem:[%s4070_s1 + $0x340] ss:$8 sps:$4 sm:$0xff]  }
  0xa4   :  { %2095 = vmatpush1.bf16.msra.mxu0 %v2952_v9  ;;  %1884 = vmatprep.subr.bf16.mxu1 %v2957_v10  ;;  %v3024_v9 = vld [vmem:[%s4070_s1 + $0x740] ss:$8 sps:$4 sm:$0xff]   ;;  %v3029_v10 = vld [vmem:[%s4070_s1 + $0x354] ss:$8 sps:$4 sm:$0xff]  }
  0xa5   :  { %2096 = vmatprep.subr.bf16.mxu0 %v2960_v11  ;;  %v3032_v11 = vld [vmem:[%s4070_s1 + $0x754] ss:$8 sps:$4 sm:$0xff]  }
  0xa7   :  { %1885 = vmatpush1.bf16.msra.mxu1 %v2955_v12  ;;  %v3027_v12 = vld [vmem:[%s4070_s1 + $0x350] ss:$8 sps:$4 sm:$0xff]  }
  0xa8   :  { %2097 = vmatpush1.bf16.msra.mxu0 %v2958_v13  ;;  %1886 = vmatprep.subr.bf16.mxu1 %v2963_v14  ;;  %v3030_v13 = vld [vmem:[%s4070_s1 + $0x750] ss:$8 sps:$4 sm:$0xff]   ;;  %v3035_v14 = vld [vmem:[%s4070_s1 + $0x364] ss:$8 sps:$4 sm:$0xff]  }
  0xa9   :  { %2098 = vmatprep.subr.bf16.mxu0 %v2966_v15  ;;  %v3038_v15 = vld [vmem:[%s4070_s1 + $0x764] ss:$8 sps:$4 sm:$0xff]  }
  0xab   :  { %1887 = vmatpush1.bf16.msra.mxu1 %v2961_v16  ;;  %v3033_v16 = vld [vmem:[%s4070_s1 + $0x360] ss:$8 sps:$4 sm:$0xff]  }
  0xac   :  { %2099 = vmatpush1.bf16.msra.mxu0 %v2964_v17  ;;  %1888 = vmatprep.subr.bf16.mxu1 %v2969_v18  ;;  %v3036_v17 = vld [vmem:[%s4070_s1 + $0x760] ss:$8 sps:$4 sm:$0xff]   ;;  %v3041_v18 = vld [vmem:[%s4070_s1 + $0x374] ss:$8 sps:$4 sm:$0xff]  }
  0xad   :  { %2100 = vmatprep.subr.bf16.mxu0 %v2972_v19  ;;  %v3044_v19 = vld [vmem:[%s4070_s1 + $0x774] ss:$8 sps:$4 sm:$0xff]  }
  0xaf   :  { %1889 = vmatpush1.bf16.msra.mxu1 %v2967_v20  ;;  %v3039_v20 = vld [vmem:[%s4070_s1 + $0x370] ss:$8 sps:$4 sm:$0xff]  }
  0xb0   :  { %2101 = vmatpush1.bf16.msra.mxu0 %v2970_v21  ;;  %1890 = vmatprep.subr.bf16.mxu1 %v2975_v22  ;;  %v3042_v21 = vld [vmem:[%s4070_s1 + $0x770] ss:$8 sps:$4 sm:$0xff]   ;;  %v3047_v22 = vld [vmem:[%s4070_s1 + $0x384] ss:$8 sps:$4 sm:$0xff]  }
  0xb1   :  { %2102 = vmatprep.subr.bf16.mxu0 %v2978_v23  ;;  %v3050_v23 = vld [vmem:[%s4070_s1 + $0x784] ss:$8 sps:$4 sm:$0xff]  }
  0xb3   :  { %1891 = vmatpush1.bf16.msra.mxu1 %v2973_v24  ;;  %v3045_v24 = vld [vmem:[%s4070_s1 + $0x380] ss:$8 sps:$4 sm:$0xff]  }
  0xb4   :  { %2103 = vmatpush1.bf16.msra.mxu0 %v2976_v25  ;;  %1892 = vmatprep.subr.bf16.mxu1 %v2981_v26  ;;  %v3048_v25 = vld [vmem:[%s4070_s1 + $0x780] ss:$8 sps:$4 sm:$0xff]   ;;  %v3053_v26 = vld [vmem:[%s4070_s1 + $0x394] ss:$8 sps:$4 sm:$0xff]  }
  0xb5   :  { %2104 = vmatprep.subr.bf16.mxu0 %v2984_v27  ;;  %v3056_v27 = vld [vmem:[%s4070_s1 + $0x794] ss:$8 sps:$4 sm:$0xff]  }
  0xb7   :  { %1893 = vmatpush1.bf16.msra.mxu1 %v2979_v28  ;;  %v3051_v28 = vld [vmem:[%s4070_s1 + $0x390] ss:$8 sps:$4 sm:$0xff]  }
  0xb8   :  { %2105 = vmatpush1.bf16.msra.mxu0 %v2982_v29  ;;  %1894 = vmatprep.subr.bf16.mxu1 %v2987_v30  ;;  %v3054_v29 = vld [vmem:[%s4070_s1 + $0x790] ss:$8 sps:$4 sm:$0xff]   ;;  %v3059_v30 = vld [vmem:[%s4070_s1 + $0x3a4] ss:$8 sps:$4 sm:$0xff]  }
  0xb9   :  { %2106 = vmatprep.subr.bf16.mxu0 %v2990_v31  ;;  %v3062_v31 = vld [vmem:[%s4070_s1 + $0x7a4] ss:$8 sps:$4 sm:$0xff]  }
  0xbb   :  { %1895 = vmatpush1.bf16.msra.mxu1 %v2985_v32  ;;  %v3057_v32 = vld [vmem:[%s4070_s1 + $0x3a0] ss:$8 sps:$4 sm:$0xff]  }
  0xbc   :  { %2107 = vmatpush1.bf16.msra.mxu0 %v2988_v33  ;;  %1896 = vmatprep.subr.bf16.mxu1 %v2993_v34  ;;  %v3060_v33 = vld [vmem:[%s4070_s1 + $0x7a0] ss:$8 sps:$4 sm:$0xff]   ;;  %v3065_v34 = vld [vmem:[%s4070_s1 + $0x3b4] ss:$8 sps:$4 sm:$0xff]  }
  0xbd   :  { %2108 = vmatprep.subr.bf16.mxu0 %v2996_v35  ;;  %v3068_v35 = vld [vmem:[%s4070_s1 + $0x7b4] ss:$8 sps:$4 sm:$0xff]  }
  0xbf   :  { %1897 = vmatpush1.bf16.msra.mxu1 %v2991_v36  ;;  %v3063_v36 = vld [vmem:[%s4070_s1 + $0x3b0] ss:$8 sps:$4 sm:$0xff]  }
  0xc0   :  { %2109 = vmatpush1.bf16.msra.mxu0 %v2994_v37  ;;  %1919 = vmatprep.subr.bf16.mxu1 %v2999_v38  ;;  %v3066_v37 = vld [vmem:[%s4070_s1 + $0x7b0] ss:$8 sps:$4 sm:$0xff]   ;;  %v3071_v38 = vld [vmem:[%s4070_s1 + $0x3c4] ss:$8 sps:$4 sm:$0xff]  }
  0xc1   :  { %2131 = vmatprep.subr.bf16.mxu0 %v3002_v39  ;;  %v3074_v39 = vld [vmem:[%s4070_s1 + $0x7c4] ss:$8 sps:$4 sm:$0xff]  }
  0xc2   :  { %1899 = vmatmul.mubr.bf16.vlgmr.msra.gmra.mrb[0].mxu1 %v2353_v41  ;;  %v3072_v41 = vld [vmem:[%s4070_s1 + $0x7c0] ss:$8 sps:$4 sm:$0xff]  }
  0xc3   :  { %2111 = vmatmul.mubr.bf16.vlgmr.msra.gmra.mrb[0].mxu0 %v2361_v43  ;;  %1920 = vmatpush1.bf16.msra.mxu1 %v2997_v42  ;;  %v3077_v43 = vld [vmem:[%s4070_s1 + $0x3d4] ss:$8 sps:$4 sm:$0xff]   ;;  %v3083_v42 = vld [vmem:[%s4070_s1 + $0x3e4] ss:$8 sps:$4 sm:$0xff]  }
  0xc4   :  { %2132 = vmatpush1.bf16.msra.mxu0 %v3000_v45  ;;  %1921 = vmatprep.subr.bf16.mxu1 %v3005_v46  ;;  %v3086_v45 = vld [vmem:[%s4070_s1 + $0x7e4] ss:$8 sps:$4 sm:$0xff]   ;;  %v3081_v46 = vld [vmem:[%s4070_s1 + $0x3e0] ss:$8 sps:$4 sm:$0xff]  }
  0xc5   :  { %2133 = vmatprep.subr.bf16.mxu0 %v3008_v47  ;;  %1908 = vmatprep.mubr.bf16.mxu1 %v2370_v50  ;;  %v3084_v47 = vld [vmem:[%s4070_s1 + $0x7e0] ss:$8 sps:$4 sm:$0xff]   ;;  %v3089_v50 = vld [vmem:[%s4070_s1 + $0x3f4] ss:$8 sps:$4 sm:$0xff]  }
  0xc6   :  { %2120 = vmatprep.mubr.bf16.mxu0 %v2378_v51  ;;  %v3092_v51 = vld [vmem:[%s4070_s1 + $0x7f4] ss:$8 sps:$4 sm:$0xff]  }
  0xc7   :  { %1922 = vmatpush1.bf16.msra.mxu1 %v3003_v52  ;;  %v3087_v52 = vld [vmem:[%s4070_s1 + $0x3f0] ss:$8 sps:$4 sm:$0xff]  }
  0xc8   :  { %2134 = vmatpush1.bf16.msra.mxu0 %v3006_v53  ;;  %1923 = vmatprep.subr.bf16.mxu1 %v3011_v54  ;;  %v3090_v53 = vld [vmem:[%s4070_s1 + $0x7f0] ss:$8 sps:$4 sm:$0xff]  }
  0xc9   :  { %2135 = vmatprep.subr.bf16.mxu0 %v3014_v55  ;;  %v39_v54 = vld [vmem:[%s4071_s0 + $0x98] sm:$0xff] }
  0xca   :  { %1909 = vmatmul.mubr.bf16.gmra.mrb[4].mxu1 %v2369_v57  ;;  %v47_v55 = vld [vmem:[%s4071_s0 + $0xd8] sm:$0xff] }
  0xcb   :  { %2121 = vmatmul.mubr.bf16.gmra.mrb[4].mxu0 %v2377_v58  ;;  %1924 = vmatpush1.bf16.msra.mxu1 %v3009_v62  ;;  %v43_v57 = vld [vmem:[%s4071_s0 + $0xb8] sm:$0xff]  ;;  %v2355_v62 = vcombine.low %v3840_v56, %v3845_v59  ;;  %v308_v56 = vld [vmem:[%s4072_s2] sm:$0x3] }
  0xcc   :  { %2136 = vmatpush1.bf16.msra.mxu0 %v3012_v63  ;;  %1925 = vmatprep.subr.bf16.mxu1 %v3017_v0  ;;  %v51_v58 = vld [vmem:[%s4071_s0 + $0xf8] sm:$0xff]  ;;  %v2363_v63 = vcombine.low %v3850_v60, %v3855_v61  ;;  %v2372_v0 = vcombine.high %v39_v54, %v47_v55 }
  0xcd   :  { %2137 = vmatprep.subr.bf16.mxu0 %v3020_v1  ;;  %1951 = vmatprep.mubr.bf16.mxu1 %v2356_v2  ;;  %v2380_v1 = vcombine.high %v43_v57, %v51_v58  ;;  %v2371_v2 = vcombine.low %v39_v54, %v47_v55 }
  0xce   :  { %2163 = vmatprep.mubr.bf16.mxu0 %v2364_v3  ;;  %v2379_v3 = vcombine.low %v43_v57, %v51_v58 }
  0xcf   :  { %1926 = vmatpush1.bf16.msra.mxu1 %v3015_v4  ;;  %v310_v4 = vlaneseq }
  0xd0   :  { %2138 = vmatpush1.bf16.msra.mxu0 %v3018_v5  ;;  %1927 = vmatprep.subr.bf16.mxu1 %v3023_v6 }
  0xd1   :  { %2139 = vmatprep.subr.bf16.mxu0 %v3026_v7  ;;  %v311_v5 = vshrl.u32 %v310_v4, 7 }
  0xd3   :  { %1928 = vmatpush1.bf16.msra.mxu1 %v3021_v8  ;;  %v4039_v6 = vsub.s32 0, %v311_v5  ;;  %v4044_v59 = vsub.s32 1, %v311_v5 }
  0xd4   :  { %2140 = vmatpush1.bf16.msra.mxu0 %v3024_v9  ;;  %1929 = vmatprep.subr.bf16.mxu1 %v3029_v10 }
  0xd5   :  { %2141 = vmatprep.subr.bf16.mxu0 %v3032_v11  ;;  %v313_v60 = vrot.slane %v308_v56, %v4039_v6  ;;  %v317_v61 = vrot.slane %v308_v56, %v4044_v59 }
  0xd7   :  { %1930 = vmatpush1.bf16.msra.mxu1 %v3027_v12 }
  0xd8   :  { %2142 = vmatpush1.bf16.msra.mxu0 %v3030_v13  ;;  %1931 = vmatprep.subr.bf16.mxu1 %v3035_v14 }
  0xd9   :  { %2143 = vmatprep.subr.bf16.mxu0 %v3038_v15 }
  0xdb   :  { %1932 = vmatpush1.bf16.msra.mxu1 %v3033_v16 }
  0xdc   :  { %2144 = vmatpush1.bf16.msra.mxu0 %v3036_v17  ;;  %1933 = vmatprep.subr.bf16.mxu1 %v3041_v18 }
  0xdd   :  { %2145 = vmatprep.subr.bf16.mxu0 %v3044_v19 }
  0xdf   :  { %1934 = vmatpush1.bf16.msra.mxu1 %v3039_v20 }
  0xe0   :  { %2146 = vmatpush1.bf16.msra.mxu0 %v3042_v21  ;;  %1935 = vmatprep.subr.bf16.mxu1 %v3047_v22 }
  0xe1   :  { %2147 = vmatprep.subr.bf16.mxu0 %v3050_v23 }
  0xe3   :  { %1936 = vmatpush1.bf16.msra.mxu1 %v3045_v24 }
  0xe4   :  { %2148 = vmatpush1.bf16.msra.mxu0 %v3048_v25  ;;  %1937 = vmatprep.subr.bf16.mxu1 %v3053_v26 }
  0xe5   :  { %2149 = vmatprep.subr.bf16.mxu0 %v3056_v27 }
  0xe7   :  { %1938 = vmatpush1.bf16.msra.mxu1 %v3051_v28 }
  0xe8   :  { %2150 = vmatpush1.bf16.msra.mxu0 %v3054_v29  ;;  %1939 = vmatprep.subr.bf16.mxu1 %v3059_v30 }
  0xe9   :  { %2151 = vmatprep.subr.bf16.mxu0 %v3062_v31 }
  0xeb   :  { %1940 = vmatpush1.bf16.msra.mxu1 %v3057_v32 }
  0xec   :  { %2152 = vmatpush1.bf16.msra.mxu0 %v3060_v33  ;;  %1941 = vmatprep.subr.bf16.mxu1 %v3065_v34 }
  0xed   :  { %2153 = vmatprep.subr.bf16.mxu0 %v3068_v35 }
  0xef   :  { %1942 = vmatpush1.bf16.msra.mxu1 %v3063_v36 }
  0xf0   :  { %2154 = vmatpush1.bf16.msra.mxu0 %v3066_v37  ;;  %1943 = vmatprep.subr.bf16.mxu1 %v3071_v38 }
  0xf1   :  { %2155 = vmatprep.subr.bf16.mxu0 %v3074_v39 }
  0xf3   :  { %1944 = vmatpush1.bf16.msra.mxu1 %v3069_v40 }
  0xf4   :  { %2156 = vmatpush1.bf16.msra.mxu0 %v3072_v41  ;;  %1945 = vmatprep.subr.bf16.mxu1 %v3077_v43 }
  0xf5   :  { %2157 = vmatprep.subr.bf16.mxu0 %v3080_v44 }
  0xf7   :  { %1946 = vmatpush1.bf16.msra.mxu1 %v3075_v48 }
  0xf8   :  { %2158 = vmatpush1.bf16.msra.mxu0 %v3078_v49  ;;  %1947 = vmatprep.subr.bf16.mxu1 %v3083_v42 }
  0xf9   :  { %2159 = vmatprep.subr.bf16.mxu0 %v3086_v45 }
  0xfb   :  { %1948 = vmatpush1.bf16.msra.mxu1 %v3081_v46 }
  0xfc   :  { %2160 = vmatpush1.bf16.msra.mxu0 %v3084_v47  ;;  %1949 = vmatprep.subr.bf16.mxu1 %v3089_v50 }
  0xfd   :  { %2161 = vmatprep.subr.bf16.mxu0 %v3092_v51 }
  0xff   :  { %1950 = vmatpush1.bf16.msra.mxu1 %v3087_v52 }
 0x100   :  { %2162 = vmatpush1.bf16.msra.mxu0 %v3090_v53 }
 0x102   :  { %1952 = vmatmul.mubr.bf16.vlgmr.msra.gmra.mrb[0].mxu1 %v2355_v62 }
 0x103   :  { %2164 = vmatmul.mubr.bf16.vlgmr.msra.gmra.mrb[0].mxu0 %v2363_v63  ;;  %1961 = vmatprep.mubr.bf16.mxu1 %v2372_v0 }
 0x104   :  { %2173 = vmatprep.mubr.bf16.mxu0 %v2380_v1 }
 0x10a   :  { %1962 = vmatmul.mubr.bf16.gmra.mrb[4].mxu1 %v2371_v2 }
 0x10b   :  { %2174 = vmatmul.mubr.bf16.gmra.mrb[4].mxu0 %v2379_v3 }
 0x1d5   :  { %v1953_v7 = vpop.f32.mrb[0].mxu1 }
 0x1d6   :  { %v2165_v8 = vpop.f32.mrb[0].mxu0  ;;  %v2645_v9 = vadd.f32 %v1953_v7, %v313_v60  ;;  %v1955_v10 = vpop.f32.mrb[1].mxu1 }
 0x1d7   :  { %v2167_v11 = vpop.f32.mrb[1].mxu0  ;;  %v2647_v12 = vadd.f32 %v1955_v10, %v317_v61  ;;  %v1957_v13 = vpop.f32.mrb[2].mxu1 }
 0x1d8   :  { %v2169_v14 = vpop.f32.mrb[2].mxu0  ;;  %v2646_v15 = vadd.f32 %v2645_v9, %v2165_v8  ;;  %v2649_v16 = vadd.f32 %v1957_v13, %v313_v60  ;;  %v1959_v17 = vpop.f32.mrb[3].mxu1 }
 0x1d9   :  { %v2171_v18 = vpop.f32.mrb[3].mxu0  ;;  %v2648_v19 = vadd.f32 %v2647_v12, %v2167_v11  ;;  %v2651_v20 = vadd.f32 %v1959_v17, %v317_v61 }
 0x1da   :  { %v2650_v21 = vadd.f32 %v2649_v16, %v2169_v14 }
 0x1db   :  { %v2652_v22 = vadd.f32 %v2651_v20, %v2171_v18 }
 0x1dc   :  { %v2184_v23 = vadd.f32 %v2650_v21, %v2646_v15 }
 0x1dd   :  { %v2193_v24 = vadd.f32 %v2652_v22, %v2648_v19  ;;  %v1963_v25 = vpop.f32.mrb[4].mxu1 }
 0x1de   :  { %v2175_v26 = vpop.f32.mrb[4].mxu0  ;;  %v2653_v27 = vadd.f32 %v1963_v25, %v313_v60  ;;  %v1965_v28 = vpop.f32.mrb[5].mxu1 }
 0x1df   :  { %v2177_v29 = vpop.f32.mrb[5].mxu0  ;;  %v2655_v30 = vadd.f32 %v1965_v28, %v317_v61  ;;  %v1967_v31 = vpop.f32.mrb[6].mxu1 }
 0x1e0   :  { %v2179_v32 = vpop.f32.mrb[6].mxu0  ;;  %v2654_v33 = vadd.f32 %v2653_v27, %v2175_v26  ;;  %v2657_v34 = vadd.f32 %v1967_v31, %v313_v60  ;;  %v1969_v35 = vpop.f32.mrb[7].mxu1 }
 0x1e1   :  { %v2181_v36 = vpop.f32.mrb[7].mxu0  ;;  %v2656_v37 = vadd.f32 %v2655_v30, %v2177_v29  ;;  %v2659_v38 = vadd.f32 %v1969_v35, %v317_v61  ;;  %v2253_v35 = vld [vmem:[%s4073_s3] sm:$0x3] }
 0x1e2   :  { %v2185_v39 = vadd.f32 %v2654_v33, %v2184_v23  ;;  %v2658_v40 = vadd.f32 %v2657_v34, %v2179_v32 }
 0x1e3   :  { %v2194_v41 = vadd.f32 %v2656_v37, %v2193_v24  ;;  %v2660_v43 = vadd.f32 %v2659_v38, %v2181_v36  ;;  %v2273_v36 = vld [vmem:[%s4074_s4] sm:$0x3] }
 0x1e4   :  { %v2186_v44 = vadd.f32 %v2658_v40, %v2185_v39  ;;  %v2278_v39 = vrot.slane %v2273_v36, %v4039_v6 }
 0x1e5   :  { %v2195_v48 = vadd.f32 %v2660_v43, %v2194_v41  ;;  %v2282_v41 = vrot.slane %v2273_v36, %v4044_v59 }
 0x1e6   :  { %v2187_v49 = vrot.slane %v2186_v44, 4 }
 0x1e7   :  { %v2196_v42 = vrot.slane %v2195_v48, 4 }
 0x1e8   :  { %v2188_v45 = vadd.f32 %v2187_v49, %v2186_v44 }
 0x1e9   :  { %v2197_v46 = vadd.f32 %v2196_v42, %v2195_v48 }
 0x1ea   :  { %v2189_v47 = vrot.slane %v2188_v45, 2 }
 0x1eb   :  { %v2198_v50 = vrot.slane %v2197_v46, 2 }
 0x1ec   :  { %v2190_v51 = vadd.f32 %v2189_v47, %v2188_v45 }
 0x1ed   :  { %v2199_v52 = vadd.f32 %v2198_v50, %v2197_v46 }
 0x1ee   :  { %v2191_v53 = vrot.slane %v2190_v51, 1 }
 0x1ef   :  { %v2200_v54 = vrot.slane %v2199_v52, 1 }
 0x1f0   :  { %v2192_v55 = vadd.f32 %v2191_v53, %v2190_v51 }
 0x1f1   :  { %v2201_v57 = vadd.f32 %v2200_v54, %v2199_v52 }
 0x1f2   :  { %v2203_v58 = vmul.f32 0.03125, %v2192_v55 }
 0x1f3   :  { %v2204_v62 = vmul.f32 0.03125, %v2201_v57 }
 0x1f4   :  { %v2205_v63 = vsub.f32 %v2646_v15, %v2203_v58  ;;  %v2207_v0 = vsub.f32 %v2650_v21, %v2203_v58  ;;  %v2209_v1 = vsub.f32 %v2654_v33, %v2203_v58  ;;  %v2211_v2 = vsub.f32 %v2658_v40, %v2203_v58 }
 0x1f5   :  { %v2206_v3 = vsub.f32 %v2648_v19, %v2204_v62  ;;  %v2208_v4 = vsub.f32 %v2652_v22, %v2204_v62  ;;  %v2210_v5 = vsub.f32 %v2656_v37, %v2204_v62  ;;  %v2212_v56 = vsub.f32 %v2660_v43, %v2204_v62 }
 0x1f6   :  { %v2213_v60 = vmul.f32 %v2205_v63, %v2205_v63  ;;  %v2215_v61 = vmul.f32 %v2207_v0, %v2207_v0  ;;  %v2217_v9 = vmul.f32 %v2209_v1, %v2209_v1  ;;  %v2219_v13 = vmul.f32 %v2211_v2, %v2211_v2 }
 0x1f7   :  { %v2214_v7 = vmul.f32 %v2206_v3, %v2206_v3  ;;  %v2216_v8 = vmul.f32 %v2208_v4, %v2208_v4  ;;  %v2218_v11 = vmul.f32 %v2210_v5, %v2210_v5  ;;  %v2220_v16 = vmul.f32 %v2212_v56, %v2212_v56 }
 0x1f8   :  { %v2221_v10 = vadd.f32 %v2215_v61, %v2213_v60  ;;  %v2258_v37 = vrot.slane %v2253_v35, %v4039_v6  ;;  %v2262_v40 = vrot.slane %v2253_v35, %v4044_v59 }
 0x1f9   :  { %v2230_v12 = vadd.f32 %v2216_v8, %v2214_v7 }
 0x1fa   :  { %v2222_v14 = vadd.f32 %v2221_v10, %v2217_v9 }
 0x1fb   :  { %v2231_v17 = vadd.f32 %v2230_v12, %v2218_v11 }
 0x1fc   :  { %v2223_v15 = vadd.f32 %v2222_v14, %v2219_v13 }
 0x1fd   :  { %v2232_v18 = vadd.f32 %v2231_v17, %v2220_v16 }
 0x1fe   :  { %v2224_v20 = vrot.slane %v2223_v15, 4 }
 0x1ff   :  { %v2233_v21 = vrot.slane %v2232_v18, 4 }
 0x200   :  { %v2225_v19 = vadd.f32 %v2224_v20, %v2223_v15 }
 0x201   :  { %v2234_v22 = vadd.f32 %v2233_v21, %v2232_v18 }
 0x202   :  { %v2226_v23 = vrot.slane %v2225_v19, 2 }
 0x203   :  { %v2235_v24 = vrot.slane %v2234_v22, 2 }
 0x204   :  { %v2227_v25 = vadd.f32 %v2226_v23, %v2225_v19 }
 0x205   :  { %v2236_v26 = vadd.f32 %v2235_v24, %v2234_v22 }
 0x206   :  { %v2228_v27 = vrot.slane %v2227_v25, 1 }
 0x207   :  { %v2237_v28 = vrot.slane %v2236_v26, 1 }
 0x208   :  { %v2229_v29 = vadd.f32 %v2228_v27, %v2227_v25 }
 0x209   :  { %v2238_v30 = vadd.f32 %v2237_v28, %v2236_v26 }
 0x20a   :  { %v2239_v31 = vmul.f32 0.03125, %v2229_v29 }
 0x20b   :  { %v2240_v32 = vmul.f32 0.03125, %v2238_v30 }
 0x20c   :  { %v2241_v33 = vadd.f32 1e-05, %v2239_v31 }
 0x20d   :  { %v2242_v34 = vadd.f32 1e-05, %v2240_v32 }
 0x20e   :  { %3093 = vrsqrt.f32 %v2241_v33 }
 0x20f   :  { %3095 = vrsqrt.f32 %v2242_v34 }
 0x218   :  { %v3094_v38 = vpop.eup %3093 }
 0x219   :  { %v3096_v43 = vpop.eup %3095  ;;  %v2245_v44 = vmul.f32 %v3094_v38, %v2205_v63  ;;  %v2247_v48 = vmul.f32 %v3094_v38, %v2207_v0  ;;  %v2249_v49 = vmul.f32 %v3094_v38, %v2209_v1  ;;  %v2251_v42 = vmul.f32 %v3094_v38, %v2211_v2 }
 0x21a   :  { %v2246_v45 = vmul.f32 %v3096_v43, %v2206_v3  ;;  %v2248_v46 = vmul.f32 %v3096_v43, %v2208_v4  ;;  %v2250_v47 = vmul.f32 %v3096_v43, %v2210_v5  ;;  %v2252_v50 = vmul.f32 %v3096_v43, %v2212_v56 }
 0x21b   :  { %v2265_v51 = vmul.f32 %v2258_v37, %v2245_v44  ;;  %v2267_v52 = vmul.f32 %v2258_v37, %v2247_v48  ;;  %v2269_v53 = vmul.f32 %v2258_v37, %v2249_v49  ;;  %v2271_v54 = vmul.f32 %v2258_v37, %v2251_v42 }
 0x21c   :  { %v2266_v55 = vmul.f32 %v2262_v40, %v2246_v45  ;;  %v2268_v57 = vmul.f32 %v2262_v40, %v2248_v46  ;;  %v2270_v6 = vmul.f32 %v2262_v40, %v2250_v47  ;;  %v2272_v58 = vmul.f32 %v2262_v40, %v2252_v50 }
 0x21d   :  { %v2285_v62 = vadd.f32 %v2278_v39, %v2265_v51  ;;  %v2287_v60 = vadd.f32 %v2278_v39, %v2267_v52  ;;  %v2289_v59 = vadd.f32 %v2278_v39, %v2269_v53  ;;  %v2291_v61 = vadd.f32 %v2278_v39, %v2271_v54 }
 0x21e   :  { %v2286_v63 = vadd.f32 %v2282_v41, %v2266_v55  ;;  %v2288_v0 = vadd.f32 %v2282_v41, %v2268_v57  ;;  %v2290_v1 = vadd.f32 %v2282_v41, %v2270_v6  ;;  %v2292_v2 = vadd.f32 %v2282_v41, %v2272_v58 }
 0x21f   :  { %vm2293_vm0 = vcmp.ge.f32.partialorder %v2285_v62, 0.0  ;;  %vm2295_vm1 = vcmp.ge.f32.partialorder %v2287_v60, 0.0  ;;  %vm2297_vm2 = vcmp.ge.f32.partialorder %v2289_v59, 0.0  ;;  %vm2299_vm3 = vcmp.ge.f32.partialorder %v2291_v61, 0.0 }
 0x220   :  { %v2301_v3 = vmul.f32 0.0, %v2285_v62  ;;  %v2303_v4 = vmul.f32 0.0, %v2287_v60  ;;  %v2305_v5 = vmul.f32 0.0, %v2289_v59  ;;  %v2307_v56 = vmul.f32 0.0, %v2291_v61 }
 0x221   :  { %vm2294_vm4 = vcmp.ge.f32.partialorder %v2286_v63, 0.0  ;;  %vm2296_vm5 = vcmp.ge.f32.partialorder %v2288_v0, 0.0  ;;  %vm2298_vm6 = vcmp.ge.f32.partialorder %v2290_v1, 0.0  ;;  %vm2300_vm7 = vcmp.ge.f32.partialorder %v2292_v2, 0.0 }
 0x222   :  { %v2309_v7 = vsel %vm2293_vm0, %v2285_v62, %v2301_v3  ;;  %v2311_v8 = vsel %vm2295_vm1, %v2287_v60, %v2303_v4  ;;  %v2313_v9 = vsel %vm2297_vm2, %v2289_v59, %v2305_v5  ;;  %v2315_v10 = vsel %vm2299_vm3, %v2291_v61, %v2307_v56 }
 0x223   :  { %v2302_v11 = vmul.f32 0.0, %v2286_v63  ;;  %v2304_v12 = vmul.f32 0.0, %v2288_v0  ;;  %v2306_v13 = vmul.f32 0.0, %v2290_v1  ;;  %v2308_v14 = vmul.f32 0.0, %v2292_v2 }
 0x225   :  { %v2310_v16 = vsel %vm2294_vm4, %v2286_v63, %v2302_v11  ;;  %v2312_v17 = vsel %vm2296_vm5, %v2288_v0, %v2304_v12  ;;  %v2314_v15 = vsel %vm2298_vm6, %v2290_v1, %v2306_v13  ;;  %v2316_v18 = vsel %vm2300_vm7, %v2292_v2, %v2308_v14 }
 0x226   :  { %v2641_v20 = vpack.c.bf16 %v2310_v16, %v2309_v7  ;;  %v2642_v21 = vpack.c.bf16 %v2312_v17, %v2311_v8  ;;  %v2643_v19 = vpack.c.bf16 %v2314_v15, %v2313_v9  ;;  %v2644_v22 = vpack.c.bf16 %v2316_v18, %v2315_v10 }
 0x228   :  { %2341 = vst [vmem:[%s4075_s5] sm:$0xff] %v2641_v20  ;;  %2342 = vst [vmem:[%s4075_s5 + $0x8] sm:$0xff] %v2642_v21 }
 0x229   :  { %2343 = vst [vmem:[%s4075_s5 + $0x10] sm:$0xff] %v2643_v19  ;;  %2344 = vst [vmem:[%s4075_s5 + $0x18] sm:$0xff] %v2644_v22 }

// kernel: vae_forward.7
= control target key start
LH: loop header
LB: loop body
LE: loop exit
PB: predicated region body
PF: predicated region fallthrough
CT: control target
= control target key end

     0   :  { %v5523_v22 = vmov 1966171168   ;;  %v557_v24 = vlaneseq  ;;  %s5525_s12 = smov 96   ;;  %vm3520_vm0 = vcmask 261120   ;;  %s6780_s1 = inlined_call_operand.vmem [shape: bf16[4096,128], index: 1, kind: input, shape index: {}]   ;;  %s6781_s0 = inlined_call_operand.vmem [shape: bf16[2,4096], index: 0, kind: input, shape index: {}]   ;;  %s6782_s2 = inlined_call_operand.vmem [shape: f32[1,128], index: 2, kind: input, shape index: {}]   ;;  %s6783_s4 = inlined_call_operand.vmem [shape: bf16[32,4096], index: 4, kind: input, shape index: {}]   ;;  %s6784_s6 = inlined_call_operand.vmem [shape: f32[2,128], index: 6, kind: output, shape index: {0}]   ;;  %s6785_s3 = inlined_call_operand.vmem [shape: f32[2,32], index: 3, kind: input, shape index: {}]   ;;  %s6786_s5 = inlined_call_operand.vmem [shape: f32[1,4096], index: 5, kind: input, shape index: {}]   ;;  %s6787_s7 = inlined_call_operand.vmem [shape: bf16[2,4096], index: 7, kind: output, shape index: {1}]  }
   0x1   :  { %v5261_v0 = vld [vmem:[%s6780_s1 + $0x40] sm:$0xff]   ;;  %v5265_v4 = vld [vmem:[%s6780_s1 + $0x48] sm:$0xff]   ;;  %v5269_v8 = vld [vmem:[%s6780_s1 + $0x50] sm:$0xff]   ;;  %v555_v23 = vunpack.c.l.s4 %v5523_v22 }
   0x2   :  { %v5262_v1 = vld [vmem:[%s6780_s1 + $0xc0] sm:$0xff]   ;;  %4906 = vmatprep.subr.bf16.mxu0 %v5261_v0  ;;  %v5266_v5 = vld [vmem:[%s6780_s1 + $0xc8] sm:$0xff]   ;;  %v5270_v9 = vld [vmem:[%s6780_s1 + $0xd0] sm:$0xff]   ;;  %v5644_v30 = vshrl.u32 %v557_v24, 7 }
   0x3   :  { %v5263_v2 = vld [vmem:[%s6780_s1] sm:$0xff]   ;;  %4928 = vmatprep.subr.bf16.mxu1 %v5262_v1  ;;  %v5267_v6 = vld [vmem:[%s6780_s1 + $0x8] sm:$0xff]   ;;  %v5271_v10 = vld [vmem:[%s6780_s1 + $0x10] sm:$0xff]   ;;  %v556_v29 = vunpack.c.0.s8 %v555_v23 }
   0x4   :  { %v5264_v3 = vld [vmem:[%s6780_s1 + $0x80] sm:$0xff]   ;;  %4907 = vmatpush3.bf16.msra.mxu0 %v5263_v2  ;;  %v5268_v7 = vld [vmem:[%s6780_s1 + $0x88] sm:$0xff]   ;;  %v5272_v11 = vld [vmem:[%s6780_s1 + $0x90] sm:$0xff]  }
   0x5   :  { %4929 = vmatpush3.bf16.msra.mxu1 %v5264_v3  ;;  %4908 = vmatprep.subr.bf16.mxu0 %v5265_v4  ;;  %v5273_v12 = vld [vmem:[%s6780_s1 + $0x58] sm:$0xff]   ;;  %v5277_v16 = vld [vmem:[%s6780_s1 + $0x60] sm:$0xff]   ;;  %v5281_v20 = vld [vmem:[%s6780_s1 + $0x68] sm:$0xff]   ;;  %v5659_v35 = vsub.s32 %v556_v29, %v5644_v30 }
   0x6   :  { %4930 = vmatprep.subr.bf16.mxu1 %v5266_v5  ;;  %v5274_v13 = vld [vmem:[%s6780_s1 + $0xd8] sm:$0xff]   ;;  %v5278_v17 = vld [vmem:[%s6780_s1 + $0xe0] sm:$0xff]   ;;  %v5282_v21 = vld [vmem:[%s6780_s1 + $0xe8] sm:$0xff]  }
   0x7   :  { %v5275_v14 = vld [vmem:[%s6780_s1 + $0x18] sm:$0xff]   ;;  %v5279_v18 = vld [vmem:[%s6780_s1 + $0x20] sm:$0xff]   ;;  %v5283_v25 = vld [vmem:[%s6780_s1 + $0x28] sm:$0xff]  }
   0x8   :  { %4909 = vmatpush3.bf16.msra.mxu0 %v5267_v6  ;;  %v5276_v15 = vld [vmem:[%s6780_s1 + $0x98] sm:$0xff]   ;;  %v5280_v19 = vld [vmem:[%s6780_s1 + $0xa0] sm:$0xff]   ;;  %v5284_v26 = vld [vmem:[%s6780_s1 + $0xa8] sm:$0xff]  }
   0x9   :  { %4931 = vmatpush3.bf16.msra.mxu1 %v5268_v7  ;;  %4910 = vmatprep.subr.bf16.mxu0 %v5269_v8  ;;  %v5285_v27 = vld [vmem:[%s6780_s1 + $0x70] sm:$0xff]   ;;  %v5289_v33 = vld [vmem:[%s6780_s1 + $0x78] sm:$0xff]   ;;  %v26_v38 = vld [vmem:[%s6781_s0] sm:$0xff] }
   0xa   :  { %4932 = vmatprep.subr.bf16.mxu1 %v5270_v9  ;;  %v5286_v28 = vld [vmem:[%s6780_s1 + $0xf0] sm:$0xff]   ;;  %v5290_v34 = vld [vmem:[%s6780_s1 + $0xf8] sm:$0xff]   ;;  %v553_v39 = vcombine.high %v26_v38, %v26_v38  ;;  %v560_v40 = vrot.slane %v26_v38, %v5659_v35  ;;  %v5294_v41 = vld [vmem:[%s6780_s1 + $0x140] sm:$0xff]  }
   0xb   :  { %v5287_v31 = vld [vmem:[%s6780_s1 + $0x30] sm:$0xff]   ;;  %v5291_v36 = vld [vmem:[%s6780_s1 + $0x38] sm:$0xff]   ;;  %v5295_v42 = vld [vmem:[%s6780_s1 + $0x1c0] sm:$0xff]  }
   0xc   :  { %4911 = vmatpush3.bf16.msra.mxu0 %v5271_v10  ;;  %v5288_v32 = vld [vmem:[%s6780_s1 + $0xb0] sm:$0xff]   ;;  %v5292_v37 = vld [vmem:[%s6780_s1 + $0xb8] sm:$0xff]   ;;  %v568_v43 = vcombine.high %v560_v40, %v560_v40  ;;  %v576_v44 = vrot.slane %v560_v40, %v5659_v35  ;;  %v5679_v45 = vrot.slane %v553_v39, %v5659_v35  ;;  %v5296_v46 = vld [vmem:[%s6780_s1 + $0x100] sm:$0xff]  }
   0xd   :  { %4933 = vmatpush3.bf16.msra.mxu1 %v5272_v11  ;;  %4912 = vmatprep.subr.bf16.mxu0 %v5273_v12  ;;  %v5297_v48 = vld [vmem:[%s6780_s1 + $0x180] sm:$0xff]   ;;  %v5298_v51 = vld [vmem:[%s6780_s1 + $0x148] sm:$0xff]   ;;  %v5302_v58 = vld [vmem:[%s6780_s1 + $0x150] sm:$0xff]  }
   0xe   :  { %4934 = vmatprep.subr.bf16.mxu1 %v5274_v13  ;;  %v590_v47 = vrot.slane %v568_v43, %v5659_v35  ;;  %v569_v49 = vcombine.high %v5679_v45, %v5679_v45  ;;  %v598_v50 = vcombine.high %v576_v44, %v576_v44  ;;  %v5299_v53 = vld [vmem:[%s6780_s1 + $0x1c8] sm:$0xff]   ;;  %v5303_v59 = vld [vmem:[%s6780_s1 + $0x1d0] sm:$0xff]   ;;  %v5306_v62 = vld [vmem:[%s6780_s1 + $0x158] sm:$0xff]  }
   0xf   :  { %v5300_v55 = vld [vmem:[%s6780_s1 + $0x108] sm:$0xff]   ;;  %v5304_v60 = vld [vmem:[%s6780_s1 + $0x110] sm:$0xff]   ;;  %v5307_v63 = vld [vmem:[%s6780_s1 + $0x1d8] sm:$0xff]  }
  0x10   :  { %4913 = vmatpush3.bf16.msra.mxu0 %v5275_v14  ;;  %2349 = vmatprep.mubr.bf16.mxu0 %v590_v47  ;;  %v600_v52 = vcombine.high %v590_v47, %v590_v47  ;;  %v597_v54 = vrot.slane %v569_v49, %v5659_v35  ;;  %v5301_v56 = vld [vmem:[%s6780_s1 + $0x188] sm:$0xff]   ;;  %v5305_v61 = vld [vmem:[%s6780_s1 + $0x190] sm:$0xff]   ;;  %v5308_v0 = vld [vmem:[%s6780_s1 + $0x118] sm:$0xff]  }
  0x11   :  { %4935 = vmatpush3.bf16.msra.mxu1 %v5276_v15  ;;  %4914 = vmatprep.subr.bf16.mxu0 %v5277_v16  ;;  %v5309_v1 = vld [vmem:[%s6780_s1 + $0x198] sm:$0xff]   ;;  %v5310_v2 = vld [vmem:[%s6780_s1 + $0x160] sm:$0xff]   ;;  %v5314_v6 = vld [vmem:[%s6780_s1 + $0x168] sm:$0xff]  }
  0x12   :  { %4936 = vmatprep.subr.bf16.mxu1 %v5278_v17  ;;  %2389 = vmatprep.mubr.bf16.mxu1 %v600_v52  ;;  %v601_v57 = vcombine.high %v597_v54, %v597_v54  ;;  %v5311_v3 = vld [vmem:[%s6780_s1 + $0x1e0] sm:$0xff]   ;;  %v5315_v7 = vld [vmem:[%s6780_s1 + $0x1e8] sm:$0xff]   ;;  %v5318_v10 = vld [vmem:[%s6780_s1 + $0x170] sm:$0xff]  }
  0x13   :  { %v5312_v4 = vld [vmem:[%s6780_s1 + $0x120] sm:$0xff]   ;;  %v5316_v8 = vld [vmem:[%s6780_s1 + $0x128] sm:$0xff]   ;;  %v5319_v11 = vld [vmem:[%s6780_s1 + $0x1f0] sm:$0xff]  }
  0x14   :  { %4915 = vmatpush3.bf16.msra.mxu0 %v5279_v18  ;;  %v5313_v5 = vld [vmem:[%s6780_s1 + $0x1a0] sm:$0xff]   ;;  %v5317_v9 = vld [vmem:[%s6780_s1 + $0x1a8] sm:$0xff]   ;;  %v5320_v12 = vld [vmem:[%s6780_s1 + $0x130] sm:$0xff]   ;;  %v583_v18 = vrot.slane %v5679_v45, %v5659_v35 }
  0x15   :  { %4937 = vmatpush3.bf16.msra.mxu1 %v5280_v19  ;;  %4916 = vmatprep.subr.bf16.mxu0 %v5281_v20  ;;  %v5321_v13 = vld [vmem:[%s6780_s1 + $0x1b0] sm:$0xff]   ;;  %v5322_v14 = vld [vmem:[%s6780_s1 + $0x178] sm:$0xff]   ;;  %v5326_v19 = vld [vmem:[%s6780_s1 + $0x240] sm:$0xff]  }
  0x16   :  { %4938 = vmatprep.subr.bf16.mxu1 %v5282_v21  ;;  %v5323_v15 = vld [vmem:[%s6780_s1 + $0x1f8] sm:$0xff]   ;;  %v5327_v20 = vld [vmem:[%s6780_s1 + $0x2c0] sm:$0xff]   ;;  %v599_v23 = vcombine.high %v583_v18, %v583_v18  ;;  %v5330_v24 = vld [vmem:[%s6780_s1 + $0x248] sm:$0xff]  }
  0x17   :  { %v5324_v16 = vld [vmem:[%s6780_s1 + $0x138] sm:$0xff]   ;;  %v5328_v21 = vld [vmem:[%s6780_s1 + $0x200] sm:$0xff]   ;;  %v5335_v29 = vld [vmem:[%s6780_s1 + $0x2d0] sm:$0xff]  }
  0x18   :  { %4917 = vmatpush3.bf16.msra.mxu0 %v5283_v25  ;;  %v5325_v17 = vld [vmem:[%s6780_s1 + $0x1b8] sm:$0xff]   ;;  %v5329_v22 = vld [vmem:[%s6780_s1 + $0x280] sm:$0xff]   ;;  %v5331_v25 = vld [vmem:[%s6780_s1 + $0x2c8] sm:$0xff]  }
  0x19   :  { %4939 = vmatpush3.bf16.msra.mxu1 %v5284_v26  ;;  %4918 = vmatprep.subr.bf16.mxu0 %v5285_v27  ;;  %v5332_v26 = vld [vmem:[%s6780_s1 + $0x208] sm:$0xff]   ;;  %v5342_v38 = vld [vmem:[%s6780_s1 + $0x260] sm:$0xff]   ;;  %v5351_v47 = vld [vmem:[%s6780_s1 + $0x2f0] sm:$0xff]  }
  0x1a   :  { %4940 = vmatprep.subr.bf16.mxu1 %v5286_v28  ;;  %v5333_v27 = vld [vmem:[%s6780_s1 + $0x288] sm:$0xff]   ;;  %v5334_v28 = vld [vmem:[%s6780_s1 + $0x250] sm:$0xff]   ;;  %v5343_v39 = vld [vmem:[%s6780_s1 + $0x2e0] sm:$0xff]  }
  0x1b   :  { %v5344_v40 = vld [vmem:[%s6780_s1 + $0x220] sm:$0xff]   ;;  %v5347_v43 = vld [vmem:[%s6780_s1 + $0x2e8] sm:$0xff]   ;;  %v5353_v49 = vld [vmem:[%s6780_s1 + $0x2b0] sm:$0xff]  }
  0x1c   :  { %4919 = vmatpush3.bf16.msra.mxu0 %v5287_v31  ;;  %v5336_v31 = vld [vmem:[%s6780_s1 + $0x210] sm:$0xff]   ;;  %v5349_v45 = vld [vmem:[%s6780_s1 + $0x2a8] sm:$0xff]   ;;  %v5356_v52 = vld [vmem:[%s6780_s1 + $0x238] sm:$0xff]  }
  0x1d   :  { %4941 = vmatpush3.bf16.msra.mxu1 %v5288_v32  ;;  %4920 = vmatprep.subr.bf16.mxu0 %v5289_v33  ;;  %v5337_v32 = vld [vmem:[%s6780_s1 + $0x290] sm:$0xff]   ;;  %v5338_v33 = vld [vmem:[%s6780_s1 + $0x258] sm:$0xff]  }
  0x1e   :  { %4942 = vmatprep.subr.bf16.mxu1 %v5290_v34  ;;  %v5339_v34 = vld [vmem:[%s6780_s1 + $0x2d8] sm:$0xff]  }
  0x20   :  { %4921 = vmatpush3.bf16.msra.mxu0 %v5291_v36  ;;  %v5340_v36 = vld [vmem:[%s6780_s1 + $0x218] sm:$0xff]  }
  0x21   :  { %4943 = vmatpush3.bf16.msra.mxu1 %v5292_v37  ;;  %4950 = vmatprep.subr.bf16.mxu0 %v5294_v41  ;;  %v5341_v37 = vld [vmem:[%s6780_s1 + $0x298] sm:$0xff]   ;;  %v5345_v41 = vld [vmem:[%s6780_s1 + $0x2a0] sm:$0xff]  }
  0x22   :  { %4972 = vmatprep.subr.bf16.mxu1 %v5295_v42  ;;  %v5346_v42 = vld [vmem:[%s6780_s1 + $0x268] sm:$0xff]  }
  0x23   :  { %2350 = vmatmul.mubr.bf16.vlgmr.msra.gmra.mrb[0].mxu0 %v576_v44  ;;  %v5348_v44 = vld [vmem:[%s6780_s1 + $0x228] sm:$0xff]  }
  0x24   :  { %4951 = vmatpush3.bf16.msra.mxu0 %v5296_v46  ;;  %2390 = vmatmul.mubr.bf16.vlgmr.msra.gmra.mrb[0].mxu1 %v598_v50  ;;  %v5350_v46 = vld [vmem:[%s6780_s1 + $0x270] sm:$0xff]   ;;  %v5354_v50 = vld [vmem:[%s6780_s1 + $0x278] sm:$0xff]  }
  0x25   :  { %4952 = vmatprep.subr.bf16.mxu0 %v5298_v51  ;;  %4973 = vmatpush3.bf16.msra.mxu1 %v5297_v48  ;;  %v5352_v48 = vld [vmem:[%s6780_s1 + $0x230] sm:$0xff]   ;;  %v5355_v51 = vld [vmem:[%s6780_s1 + $0x2f8] sm:$0xff]  }
  0x26   :  { %2429 = vmatprep.mubr.bf16.mxu0 %v597_v54  ;;  %4974 = vmatprep.subr.bf16.mxu1 %v5299_v53  ;;  %v27_v53 = vld [vmem:[%s6781_s0 + $0x8] sm:$0xff]  ;;  %v5357_v54 = vld [vmem:[%s6780_s1 + $0x2b8] sm:$0xff]  }
  0x27   :  { %2469 = vmatprep.mubr.bf16.mxu1 %v601_v57  ;;  %v5358_v57 = vld [vmem:[%s6780_s1 + $0x340] sm:$0xff]  }
  0x28   :  { %4953 = vmatpush3.bf16.msra.mxu0 %v5300_v55  ;;  %v609_v55 = vrot.slane %v27_v53, %v5659_v35 }
  0x29   :  { %4954 = vmatprep.subr.bf16.mxu0 %v5302_v58  ;;  %4975 = vmatpush3.bf16.msra.mxu1 %v5301_v56  ;;  %v602_v56 = vcombine.high %v27_v53, %v27_v53  ;;  %v5406_v53 = vld [vmem:[%s6780_s1 + $0x498] sm:$0xff]  }
  0x2a   :  { %4976 = vmatprep.subr.bf16.mxu1 %v5303_v59  ;;  %v617_v58 = vcombine.high %v609_v55, %v609_v55  ;;  %v625_v59 = vrot.slane %v609_v55, %v5659_v35  ;;  %v5408_v55 = vld [vmem:[%s6780_s1 + $0x4e0] sm:$0xff]  }
  0x2c   :  { %4955 = vmatpush3.bf16.msra.mxu0 %v5304_v60  ;;  %v5359_v60 = vld [vmem:[%s6780_s1 + $0x3c0] sm:$0xff]  }
  0x2d   :  { %4956 = vmatprep.subr.bf16.mxu0 %v5306_v62  ;;  %4977 = vmatpush3.bf16.msra.mxu1 %v5305_v61  ;;  %v5885_v61 = vrot.slane %v602_v56, %v5659_v35  ;;  %v5360_v62 = vld [vmem:[%s6780_s1 + $0x300] sm:$0xff]  }
  0x2e   :  { %4978 = vmatprep.subr.bf16.mxu1 %v5307_v63  ;;  %v639_v63 = vrot.slane %v617_v58, %v5659_v35  ;;  %v5409_v56 = vld [vmem:[%s6780_s1 + $0x420] sm:$0xff]   ;;  %v5411_v58 = vld [vmem:[%s6780_s1 + $0x468] sm:$0xff]  }
  0x30   :  { %4957 = vmatpush3.bf16.msra.mxu0 %v5308_v0  ;;  %v5361_v0 = vld [vmem:[%s6780_s1 + $0x380] sm:$0xff]  }
  0x31   :  { %4958 = vmatprep.subr.bf16.mxu0 %v5310_v2  ;;  %4979 = vmatpush3.bf16.msra.mxu1 %v5309_v1  ;;  %v618_v1 = vcombine.high %v5885_v61, %v5885_v61  ;;  %v647_v2 = vcombine.high %v625_v59, %v625_v59 }
  0x32   :  { %4980 = vmatprep.subr.bf16.mxu1 %v5311_v3  ;;  %v5362_v3 = vld [vmem:[%s6780_s1 + $0x348] sm:$0xff]  }
  0x34   :  { %4959 = vmatpush3.bf16.msra.mxu0 %v5312_v4  ;;  %v649_v4 = vcombine.high %v639_v63, %v639_v63 }
  0x35   :  { %4960 = vmatprep.subr.bf16.mxu0 %v5314_v6  ;;  %4981 = vmatpush3.bf16.msra.mxu1 %v5313_v5  ;;  %v5363_v5 = vld [vmem:[%s6780_s1 + $0x3c8] sm:$0xff]   ;;  %v646_v6 = vrot.slane %v618_v1, %v5659_v35  ;;  %v5418_v1 = vld [vmem:[%s6780_s1 + $0x4b0] sm:$0xff]  }
  0x36   :  { %4982 = vmatprep.subr.bf16.mxu1 %v5315_v7  ;;  %v5364_v7 = vld [vmem:[%s6780_s1 + $0x308] sm:$0xff]  }
  0x38   :  { %4961 = vmatpush3.bf16.msra.mxu0 %v5316_v8  ;;  %v5365_v8 = vld [vmem:[%s6780_s1 + $0x388] sm:$0xff]  }
  0x39   :  { %4962 = vmatprep.subr.bf16.mxu0 %v5318_v10  ;;  %4983 = vmatpush3.bf16.msra.mxu1 %v5317_v9  ;;  %v650_v9 = vcombine.high %v646_v6, %v646_v6  ;;  %v5366_v10 = vld [vmem:[%s6780_s1 + $0x350] sm:$0xff]  }
  0x3a   :  { %4984 = vmatprep.subr.bf16.mxu1 %v5319_v11  ;;  %v5367_v11 = vld [vmem:[%s6780_s1 + $0x3d0] sm:$0xff]  }
  0x3c   :  { %4963 = vmatpush3.bf16.msra.mxu0 %v5320_v12  ;;  %v5368_v12 = vld [vmem:[%s6780_s1 + $0x310] sm:$0xff]  }
  0x3d   :  { %4964 = vmatprep.subr.bf16.mxu0 %v5322_v14  ;;  %4985 = vmatpush3.bf16.msra.mxu1 %v5321_v13  ;;  %v5369_v13 = vld [vmem:[%s6780_s1 + $0x390] sm:$0xff]   ;;  %v5370_v14 = vld [vmem:[%s6780_s1 + $0x358] sm:$0xff]  }
  0x3e   :  { %4986 = vmatprep.subr.bf16.mxu1 %v5323_v15  ;;  %v5371_v15 = vld [vmem:[%s6780_s1 + $0x3d8] sm:$0xff]  }
  0x40   :  { %4965 = vmatpush3.bf16.msra.mxu0 %v5324_v16  ;;  %v5372_v16 = vld [vmem:[%s6780_s1 + $0x318] sm:$0xff]  }
  0x41   :  { %4994 = vmatprep.subr.bf16.mxu0 %v5326_v19  ;;  %4987 = vmatpush3.bf16.msra.mxu1 %v5325_v17  ;;  %v5373_v17 = vld [vmem:[%s6780_s1 + $0x398] sm:$0xff]   ;;  %v5375_v19 = vld [vmem:[%s6780_s1 + $0x3e0] sm:$0xff]  }
  0x42   :  { %5016 = vmatprep.subr.bf16.mxu1 %v5327_v20  ;;  %v5376_v20 = vld [vmem:[%s6780_s1 + $0x320] sm:$0xff]  }
  0x43   :  { %2430 = vmatmul.mubr.bf16.vlgmr.msra.gmra.mrb[4].mxu0 %v583_v18  ;;  %v5374_v18 = vld [vmem:[%s6780_s1 + $0x360] sm:$0xff]  }
  0x44   :  { %4995 = vmatpush3.bf16.msra.mxu0 %v5328_v21  ;;  %2470 = vmatmul.mubr.bf16.vlgmr.msra.gmra.mrb[4].mxu1 %v599_v23  ;;  %v5377_v21 = vld [vmem:[%s6780_s1 + $0x3a0] sm:$0xff]   ;;  %v5379_v23 = vld [vmem:[%s6780_s1 + $0x3e8] sm:$0xff]  }
  0x45   :  { %4996 = vmatprep.subr.bf16.mxu0 %v5330_v24  ;;  %5017 = vmatpush3.bf16.msra.mxu1 %v5329_v22  ;;  %v5378_v22 = vld [vmem:[%s6780_s1 + $0x368] sm:$0xff]  }
  0x46   :  { %5018 = vmatprep.subr.bf16.mxu1 %v5331_v25  ;;  %2509 = vmatprep.mubr.bf16.mxu0 %v639_v63  ;;  %v5380_v24 = vld [vmem:[%s6780_s1 + $0x328] sm:$0xff]   ;;  %v5416_v63 = vld [vmem:[%s6780_s1 + $0x4f0] sm:$0xff]  }
  0x47   :  { %2549 = vmatprep.mubr.bf16.mxu1 %v649_v4  ;;  %v5381_v25 = vld [vmem:[%s6780_s1 + $0x3a8] sm:$0xff]   ;;  %v5421_v4 = vld [vmem:[%s6780_s1 + $0x438] sm:$0xff]  }
  0x48   :  { %4997 = vmatpush3.bf16.msra.mxu0 %v5332_v26  ;;  %v5382_v26 = vld [vmem:[%s6780_s1 + $0x370] sm:$0xff]  }
  0x49   :  { %4998 = vmatprep.subr.bf16.mxu0 %v5334_v28  ;;  %5019 = vmatpush3.bf16.msra.mxu1 %v5333_v27  ;;  %v5383_v27 = vld [vmem:[%s6780_s1 + $0x3f0] sm:$0xff]  }
  0x4a   :  { %5020 = vmatprep.subr.bf16.mxu1 %v5335_v29  ;;  %v5384_v28 = vld [vmem:[%s6780_s1 + $0x330] sm:$0xff]  }
  0x4b   :  { %v5385_v29 = vld [vmem:[%s6780_s1 + $0x3b0] sm:$0xff]  }
  0x4c   :  { %4999 = vmatpush3.bf16.msra.mxu0 %v5336_v31  ;;  %v5386_v31 = vld [vmem:[%s6780_s1 + $0x378] sm:$0xff]  }
  0x4d   :  { %5000 = vmatprep.subr.bf16.mxu0 %v5338_v33  ;;  %5021 = vmatpush3.bf16.msra.mxu1 %v5337_v32  ;;  %v5387_v32 = vld [vmem:[%s6780_s1 + $0x3f8] sm:$0xff]  }
  0x4e   :  { %5022 = vmatprep.subr.bf16.mxu1 %v5339_v34  ;;  %v5388_v33 = vld [vmem:[%s6780_s1 + $0x338] sm:$0xff]  }
  0x4f   :  { %v5389_v34 = vld [vmem:[%s6780_s1 + $0x3b8] sm:$0xff]  }
  0x50   :  { %5001 = vmatpush3.bf16.msra.mxu0 %v5340_v36  ;;  %v632_v36 = vrot.slane %v5885_v61, %v5659_v35  ;;  %v5414_v61 = vld [vmem:[%s6780_s1 + $0x4a8] sm:$0xff]  }
  0x51   :  { %5002 = vmatprep.subr.bf16.mxu0 %v5342_v38  ;;  %5023 = vmatpush3.bf16.msra.mxu1 %v5341_v37  ;;  %v5391_v37 = vld [vmem:[%s6780_s1 + $0x440] sm:$0xff]  }
  0x52   :  { %5024 = vmatprep.subr.bf16.mxu1 %v5343_v39  ;;  %v5392_v38 = vld [vmem:[%s6780_s1 + $0x4c0] sm:$0xff]  }
  0x53   :  { %v5393_v39 = vld [vmem:[%s6780_s1 + $0x400] sm:$0xff]  }
  0x54   :  { %5003 = vmatpush3.bf16.msra.mxu0 %v5344_v40  ;;  %v5394_v40 = vld [vmem:[%s6780_s1 + $0x480] sm:$0xff]  }
  0x55   :  { %5004 = vmatprep.subr.bf16.mxu0 %v5346_v42  ;;  %5025 = vmatpush3.bf16.msra.mxu1 %v5345_v41  ;;  %v648_v41 = vcombine.high %v632_v36, %v632_v36  ;;  %v5395_v42 = vld [vmem:[%s6780_s1 + $0x448] sm:$0xff]  }
  0x56   :  { %5026 = vmatprep.subr.bf16.mxu1 %v5347_v43  ;;  %v5396_v43 = vld [vmem:[%s6780_s1 + $0x4c8] sm:$0xff]  }
  0x58   :  { %5005 = vmatpush3.bf16.msra.mxu0 %v5348_v44  ;;  %v5397_v44 = vld [vmem:[%s6780_s1 + $0x408] sm:$0xff]  }
  0x59   :  { %5006 = vmatprep.subr.bf16.mxu0 %v5350_v46  ;;  %5027 = vmatpush3.bf16.msra.mxu1 %v5349_v45  ;;  %v5398_v45 = vld [vmem:[%s6780_s1 + $0x488] sm:$0xff]   ;;  %v5399_v46 = vld [vmem:[%s6780_s1 + $0x450] sm:$0xff]  }
  0x5a   :  { %5028 = vmatprep.subr.bf16.mxu1 %v5351_v47  ;;  %v5400_v47 = vld [vmem:[%s6780_s1 + $0x4d0] sm:$0xff]  }
  0x5c   :  { %5007 = vmatpush3.bf16.msra.mxu0 %v5352_v48  ;;  %v5401_v48 = vld [vmem:[%s6780_s1 + $0x410] sm:$0xff]  }
  0x5d   :  { %5008 = vmatprep.subr.bf16.mxu0 %v5354_v50  ;;  %5029 = vmatpush3.bf16.msra.mxu1 %v5353_v49  ;;  %v5402_v49 = vld [vmem:[%s6780_s1 + $0x490] sm:$0xff]   ;;  %v5403_v50 = vld [vmem:[%s6780_s1 + $0x458] sm:$0xff]  }
  0x5e   :  { %5030 = vmatprep.subr.bf16.mxu1 %v5355_v51  ;;  %v5404_v51 = vld [vmem:[%s6780_s1 + $0x4d8] sm:$0xff]  }
  0x60   :  { %5009 = vmatpush3.bf16.msra.mxu0 %v5356_v52  ;;  %v5405_v52 = vld [vmem:[%s6780_s1 + $0x418] sm:$0xff]  }
  0x61   :  { %5038 = vmatprep.subr.bf16.mxu0 %v5358_v57  ;;  %5031 = vmatpush3.bf16.msra.mxu1 %v5357_v54  ;;  %v5407_v54 = vld [vmem:[%s6780_s1 + $0x460] sm:$0xff]  }
  0x62   :  { %5060 = vmatprep.subr.bf16.mxu1 %v5359_v60  ;;  %v5410_v57 = vld [vmem:[%s6780_s1 + $0x4a0] sm:$0xff]   ;;  %v5413_v60 = vld [vmem:[%s6780_s1 + $0x428] sm:$0xff]  }
  0x63   :  { %2510 = vmatmul.mubr.bf16.vlgmr.msra.gmra.mrb[8].mxu0 %v625_v59  ;;  %v5412_v59 = vld [vmem:[%s6780_s1 + $0x4e8] sm:$0xff]  }
  0x64   :  { %5039 = vmatpush3.bf16.msra.mxu0 %v5360_v62  ;;  %2550 = vmatmul.mubr.bf16.vlgmr.msra.gmra.mrb[8].mxu1 %v647_v2  ;;  %v5415_v62 = vld [vmem:[%s6780_s1 + $0x470] sm:$0xff]   ;;  %v5419_v2 = vld [vmem:[%s6780_s1 + $0x478] sm:$0xff]  }
  0x65   :  { %5040 = vmatprep.subr.bf16.mxu0 %v5362_v3  ;;  %5061 = vmatpush3.bf16.msra.mxu1 %v5361_v0  ;;  %v5417_v0 = vld [vmem:[%s6780_s1 + $0x430] sm:$0xff]   ;;  %v5420_v3 = vld [vmem:[%s6780_s1 + $0x4f8] sm:$0xff]  }
  0x66   :  { %2589 = vmatprep.mubr.bf16.mxu0 %v646_v6  ;;  %5062 = vmatprep.subr.bf16.mxu1 %v5363_v5  ;;  %v28_v5 = vld [vmem:[%s6781_s0 + $0x10] sm:$0xff]  ;;  %v5422_v6 = vld [vmem:[%s6780_s1 + $0x4b8] sm:$0xff]  }
  0x67   :  { %2629 = vmatprep.mubr.bf16.mxu1 %v650_v9  ;;  %v5423_v9 = vld [vmem:[%s6780_s1 + $0x540] sm:$0xff]  }
  0x68   :  { %5041 = vmatpush3.bf16.msra.mxu0 %v5364_v7  ;;  %v658_v7 = vrot.slane %v28_v5, %v5659_v35 }
  0x69   :  { %5042 = vmatprep.subr.bf16.mxu0 %v5366_v10  ;;  %5063 = vmatpush3.bf16.msra.mxu1 %v5365_v8  ;;  %v651_v8 = vcombine.high %v28_v5, %v28_v5  ;;  %v5471_v5 = vld [vmem:[%s6780_s1 + $0x698] sm:$0xff]  }
  0x6a   :  { %5064 = vmatprep.subr.bf16.mxu1 %v5367_v11  ;;  %v666_v10 = vcombine.high %v658_v7, %v658_v7  ;;  %v674_v11 = vrot.slane %v658_v7, %v5659_v35  ;;  %v5473_v7 = vld [vmem:[%s6780_s1 + $0x6e0] sm:$0xff]  }
  0x6c   :  { %5043 = vmatpush3.bf16.msra.mxu0 %v5368_v12  ;;  %v5424_v12 = vld [vmem:[%s6780_s1 + $0x5c0] sm:$0xff]  }
  0x6d   :  { %5044 = vmatprep.subr.bf16.mxu0 %v5370_v14  ;;  %5065 = vmatpush3.bf16.msra.mxu1 %v5369_v13  ;;  %v6091_v13 = vrot.slane %v651_v8, %v5659_v35  ;;  %v5425_v14 = vld [vmem:[%s6780_s1 + $0x500] sm:$0xff]  }
  0x6e   :  { %5066 = vmatprep.subr.bf16.mxu1 %v5371_v15  ;;  %v688_v15 = vrot.slane %v666_v10, %v5659_v35  ;;  %v5474_v8 = vld [vmem:[%s6780_s1 + $0x620] sm:$0xff]   ;;  %v5476_v10 = vld [vmem:[%s6780_s1 + $0x668] sm:$0xff]  }
  0x70   :  { %5045 = vmatpush3.bf16.msra.mxu0 %v5372_v16  ;;  %v5426_v16 = vld [vmem:[%s6780_s1 + $0x580] sm:$0xff]  }
  0x71   :  { %5046 = vmatprep.subr.bf16.mxu0 %v5374_v18  ;;  %5067 = vmatpush3.bf16.msra.mxu1 %v5373_v17  ;;  %v667_v17 = vcombine.high %v6091_v13, %v6091_v13  ;;  %v696_v18 = vcombine.high %v674_v11, %v674_v11 }
  0x72   :  { %5068 = vmatprep.subr.bf16.mxu1 %v5375_v19  ;;  %v5427_v19 = vld [vmem:[%s6780_s1 + $0x548] sm:$0xff]  }
  0x74   :  { %5047 = vmatpush3.bf16.msra.mxu0 %v5376_v20  ;;  %v698_v20 = vcombine.high %v688_v15, %v688_v15 }
  0x75   :  { %5048 = vmatprep.subr.bf16.mxu0 %v5378_v22  ;;  %5069 = vmatpush3.bf16.msra.mxu1 %v5377_v21  ;;  %v5428_v21 = vld [vmem:[%s6780_s1 + $0x5c8] sm:$0xff]   ;;  %v695_v22 = vrot.slane %v667_v17, %v5659_v35  ;;  %v5483_v17 = vld [vmem:[%s6780_s1 + $0x6b0] sm:$0xff]  }
  0x76   :  { %5070 = vmatprep.subr.bf16.mxu1 %v5379_v23  ;;  %v5429_v23 = vld [vmem:[%s6780_s1 + $0x508] sm:$0xff]  }
  0x78   :  { %5049 = vmatpush3.bf16.msra.mxu0 %v5380_v24  ;;  %v5430_v24 = vld [vmem:[%s6780_s1 + $0x588] sm:$0xff]  }
  0x79   :  { %5050 = vmatprep.subr.bf16.mxu0 %v5382_v26  ;;  %5071 = vmatpush3.bf16.msra.mxu1 %v5381_v25  ;;  %v699_v25 = vcombine.high %v695_v22, %v695_v22  ;;  %v5431_v26 = vld [vmem:[%s6780_s1 + $0x550] sm:$0xff]  }
  0x7a   :  { %5072 = vmatprep.subr.bf16.mxu1 %v5383_v27  ;;  %v5432_v27 = vld [vmem:[%s6780_s1 + $0x5d0] sm:$0xff]  }
  0x7c   :  { %5051 = vmatpush3.bf16.msra.mxu0 %v5384_v28  ;;  %v5433_v28 = vld [vmem:[%s6780_s1 + $0x510] sm:$0xff]  }
  0x7d   :  { %5052 = vmatprep.subr.bf16.mxu0 %v5386_v31  ;;  %5073 = vmatpush3.bf16.msra.mxu1 %v5385_v29  ;;  %v5434_v29 = vld [vmem:[%s6780_s1 + $0x590] sm:$0xff]   ;;  %v5435_v31 = vld [vmem:[%s6780_s1 + $0x558] sm:$0xff]  }
  0x7e   :  { %5074 = vmatprep.subr.bf16.mxu1 %v5387_v32  ;;  %v5436_v32 = vld [vmem:[%s6780_s1 + $0x5d8] sm:$0xff]  }
  0x80   :  { %5053 = vmatpush3.bf16.msra.mxu0 %v5388_v33  ;;  %v5437_v33 = vld [vmem:[%s6780_s1 + $0x518] sm:$0xff]  }
  0x81   :  { %5082 = vmatprep.subr.bf16.mxu0 %v5391_v37  ;;  %5075 = vmatpush3.bf16.msra.mxu1 %v5389_v34  ;;  %v5438_v34 = vld [vmem:[%s6780_s1 + $0x598] sm:$0xff]   ;;  %v5440_v37 = vld [vmem:[%s6780_s1 + $0x5e0] sm:$0xff]  }
  0x82   :  { %5104 = vmatprep.subr.bf16.mxu1 %v5392_v38  ;;  %v5441_v38 = vld [vmem:[%s6780_s1 + $0x520] sm:$0xff]  }
  0x83   :  { %2590 = vmatmul.mubr.bf16.vlgmr.msra.gmra.mrb[12].mxu0 %v632_v36  ;;  %v5439_v36 = vld [vmem:[%s6780_s1 + $0x560] sm:$0xff]  }
  0x84   :  { %5083 = vmatpush3.bf16.msra.mxu0 %v5393_v39  ;;  %2630 = vmatmul.mubr.bf16.vlgmr.msra.gmra.mrb[12].mxu1 %v648_v41  ;;  %v5442_v39 = vld [vmem:[%s6780_s1 + $0x5a0] sm:$0xff]   ;;  %v5444_v41 = vld [vmem:[%s6780_s1 + $0x5e8] sm:$0xff]  }
  0x85   :  { %5084 = vmatprep.subr.bf16.mxu0 %v5395_v42  ;;  %5105 = vmatpush3.bf16.msra.mxu1 %v5394_v40  ;;  %v5443_v40 = vld [vmem:[%s6780_s1 + $0x568] sm:$0xff]  }
  0x86   :  { %5106 = vmatprep.subr.bf16.mxu1 %v5396_v43  ;;  %2669 = vmatprep.mubr.bf16.mxu0 %v688_v15  ;;  %v5445_v42 = vld [vmem:[%s6780_s1 + $0x528] sm:$0xff]   ;;  %v5481_v15 = vld [vmem:[%s6780_s1 + $0x6f0] sm:$0xff]  }
  0x87   :  { %2709 = vmatprep.mubr.bf16.mxu1 %v698_v20  ;;  %v5446_v43 = vld [vmem:[%s6780_s1 + $0x5a8] sm:$0xff]   ;;  %v5486_v20 = vld [vmem:[%s6780_s1 + $0x638] sm:$0xff]  }
  0x88   :  { %5085 = vmatpush3.bf16.msra.mxu0 %v5397_v44  ;;  %v5447_v44 = vld [vmem:[%s6780_s1 + $0x570] sm:$0xff]  }
  0x89   :  { %5086 = vmatprep.subr.bf16.mxu0 %v5399_v46  ;;  %5107 = vmatpush3.bf16.msra.mxu1 %v5398_v45  ;;  %v5448_v45 = vld [vmem:[%s6780_s1 + $0x5f0] sm:$0xff]  }
  0x8a   :  { %5108 = vmatprep.subr.bf16.mxu1 %v5400_v47  ;;  %v5449_v46 = vld [vmem:[%s6780_s1 + $0x530] sm:$0xff]  }
  0x8b   :  { %v5450_v47 = vld [vmem:[%s6780_s1 + $0x5b0] sm:$0xff]  }
  0x8c   :  { %5087 = vmatpush3.bf16.msra.mxu0 %v5401_v48  ;;  %v5451_v48 = vld [vmem:[%s6780_s1 + $0x578] sm:$0xff]  }
  0x8d   :  { %5088 = vmatprep.subr.bf16.mxu0 %v5403_v50  ;;  %5109 = vmatpush3.bf16.msra.mxu1 %v5402_v49  ;;  %v5452_v49 = vld [vmem:[%s6780_s1 + $0x5f8] sm:$0xff]  }
  0x8e   :  { %5110 = vmatprep.subr.bf16.mxu1 %v5404_v51  ;;  %v5453_v50 = vld [vmem:[%s6780_s1 + $0x538] sm:$0xff]  }
  0x8f   :  { %v5454_v51 = vld [vmem:[%s6780_s1 + $0x5b8] sm:$0xff]  }
  0x90   :  { %5089 = vmatpush3.bf16.msra.mxu0 %v5405_v52  ;;  %v681_v52 = vrot.slane %v6091_v13, %v5659_v35  ;;  %v5479_v13 = vld [vmem:[%s6780_s1 + $0x6a8] sm:$0xff]  }
  0x91   :  { %5090 = vmatprep.subr.bf16.mxu0 %v5407_v54  ;;  %5111 = vmatpush3.bf16.msra.mxu1 %v5406_v53  ;;  %v5456_v53 = vld [vmem:[%s6780_s1 + $0x640] sm:$0xff]  }
  0x92   :  { %5112 = vmatprep.subr.bf16.mxu1 %v5408_v55  ;;  %v5457_v54 = vld [vmem:[%s6780_s1 + $0x6c0] sm:$0xff]  }
  0x93   :  { %v5458_v55 = vld [vmem:[%s6780_s1 + $0x600] sm:$0xff]  }
  0x94   :  { %5091 = vmatpush3.bf16.msra.mxu0 %v5409_v56  ;;  %v5459_v56 = vld [vmem:[%s6780_s1 + $0x680] sm:$0xff]  }
  0x95   :  { %5092 = vmatprep.subr.bf16.mxu0 %v5411_v58  ;;  %5113 = vmatpush3.bf16.msra.mxu1 %v5410_v57  ;;  %v697_v57 = vcombine.high %v681_v52, %v681_v52  ;;  %v5460_v58 = vld [vmem:[%s6780_s1 + $0x648] sm:$0xff]  }
  0x96   :  { %5114 = vmatprep.subr.bf16.mxu1 %v5412_v59  ;;  %v5461_v59 = vld [vmem:[%s6780_s1 + $0x6c8] sm:$0xff]  }
  0x98   :  { %5093 = vmatpush3.bf16.msra.mxu0 %v5413_v60  ;;  %v5462_v60 = vld [vmem:[%s6780_s1 + $0x608] sm:$0xff]  }
  0x99   :  { %5094 = vmatprep.subr.bf16.mxu0 %v5415_v62  ;;  %5115 = vmatpush3.bf16.msra.mxu1 %v5414_v61  ;;  %v5463_v61 = vld [vmem:[%s6780_s1 + $0x688] sm:$0xff]   ;;  %v5464_v62 = vld [vmem:[%s6780_s1 + $0x650] sm:$0xff]  }
  0x9a   :  { %5116 = vmatprep.subr.bf16.mxu1 %v5416_v63  ;;  %v5465_v63 = vld [vmem:[%s6780_s1 + $0x6d0] sm:$0xff]  }
  0x9c   :  { %5095 = vmatpush3.bf16.msra.mxu0 %v5417_v0  ;;  %v5466_v0 = vld [vmem:[%s6780_s1 + $0x610] sm:$0xff]  }
  0x9d   :  { %5096 = vmatprep.subr.bf16.mxu0 %v5419_v2  ;;  %5117 = vmatpush3.bf16.msra.mxu1 %v5418_v1  ;;  %v5467_v1 = vld [vmem:[%s6780_s1 + $0x690] sm:$0xff]   ;;  %v5468_v2 = vld [vmem:[%s6780_s1 + $0x658] sm:$0xff]  }
  0x9e   :  { %5118 = vmatprep.subr.bf16.mxu1 %v5420_v3  ;;  %v5469_v3 = vld [vmem:[%s6780_s1 + $0x6d8] sm:$0xff]  }
  0xa0   :  { %5097 = vmatpush3.bf16.msra.mxu0 %v5421_v4  ;;  %v5470_v4 = vld [vmem:[%s6780_s1 + $0x618] sm:$0xff]  }
  0xa1   :  { %5126 = vmatprep.subr.bf16.mxu0 %v5423_v9  ;;  %5119 = vmatpush3.bf16.msra.mxu1 %v5422_v6  ;;  %v5472_v6 = vld [vmem:[%s6780_s1 + $0x660] sm:$0xff]  }
  0xa2   :  { %5148 = vmatprep.subr.bf16.mxu1 %v5424_v12  ;;  %v5475_v9 = vld [vmem:[%s6780_s1 + $0x6a0] sm:$0xff]   ;;  %v5478_v12 = vld [vmem:[%s6780_s1 + $0x628] sm:$0xff]  }
  0xa3   :  { %2670 = vmatmul.mubr.bf16.vlgmr.msra.gmra.mrb[16].mxu0 %v674_v11  ;;  %v5477_v11 = vld [vmem:[%s6780_s1 + $0x6e8] sm:$0xff]  }
  0xa4   :  { %5127 = vmatpush3.bf16.msra.mxu0 %v5425_v14  ;;  %2710 = vmatmul.mubr.bf16.vlgmr.msra.gmra.mrb[16].mxu1 %v696_v18  ;;  %v5480_v14 = vld [vmem:[%s6780_s1 + $0x670] sm:$0xff]   ;;  %v5484_v18 = vld [vmem:[%s6780_s1 + $0x678] sm:$0xff]  }
  0xa5   :  { %5128 = vmatprep.subr.bf16.mxu0 %v5427_v19  ;;  %5149 = vmatpush3.bf16.msra.mxu1 %v5426_v16  ;;  %v5482_v16 = vld [vmem:[%s6780_s1 + $0x630] sm:$0xff]   ;;  %v5485_v19 = vld [vmem:[%s6780_s1 + $0x6f8] sm:$0xff]  }
  0xa6   :  { %2749 = vmatprep.mubr.bf16.mxu0 %v695_v22  ;;  %5150 = vmatprep.subr.bf16.mxu1 %v5428_v21  ;;  %v29_v21 = vld [vmem:[%s6781_s0 + $0x18] sm:$0xff] }
  0xa7   :  { %2789 = vmatprep.mubr.bf16.mxu1 %v699_v25  ;;  %v707_v22 = vrot.slane %v29_v21, %v5659_v35  ;;  %v5487_v25 = vld [vmem:[%s6780_s1 + $0x6b8] sm:$0xff]  }
  0xa8   :  { %5129 = vmatpush3.bf16.msra.mxu0 %v5429_v23  ;;  %v5488_v23 = vld [vmem:[%s6780_s1 + $0x740] sm:$0xff]  }
  0xa9   :  { %5130 = vmatprep.subr.bf16.mxu0 %v5431_v26  ;;  %5151 = vmatpush3.bf16.msra.mxu1 %v5430_v24  ;;  %v700_v24 = vcombine.high %v29_v21, %v29_v21  ;;  %v715_v26 = vcombine.high %v707_v22, %v707_v22 }
  0xaa   :  { %5152 = vmatprep.subr.bf16.mxu1 %v5432_v27  ;;  %v723_v27 = vrot.slane %v707_v22, %v5659_v35 }
  0xac   :  { %5131 = vmatpush3.bf16.msra.mxu0 %v5433_v28  ;;  %v5489_v28 = vld [vmem:[%s6780_s1 + $0x7c0] sm:$0xff]  }
  0xad   :  { %5132 = vmatprep.subr.bf16.mxu0 %v5435_v31  ;;  %5153 = vmatpush3.bf16.msra.mxu1 %v5434_v29  ;;  %v6297_v29 = vrot.slane %v700_v24, %v5659_v35  ;;  %v737_v31 = vrot.slane %v715_v26, %v5659_v35 }
  0xae   :  { %5154 = vmatprep.subr.bf16.mxu1 %v5436_v32  ;;  %v5490_v32 = vld [vmem:[%s6780_s1 + $0x700] sm:$0xff]  }
  0xb0   :  { %5133 = vmatpush3.bf16.msra.mxu0 %v5437_v33  ;;  %v716_v33 = vcombine.high %v6297_v29, %v6297_v29 }
  0xb1   :  { %5134 = vmatprep.subr.bf16.mxu0 %v5439_v36  ;;  %5155 = vmatpush3.bf16.msra.mxu1 %v5438_v34  ;;  %v745_v34 = vcombine.high %v723_v27, %v723_v27  ;;  %v5492_v36 = vld [vmem:[%s6780_s1 + $0x748] sm:$0xff]  }
  0xb2   :  { %5156 = vmatprep.subr.bf16.mxu1 %v5440_v37  ;;  %v747_v37 = vcombine.high %v737_v31, %v737_v31 }
  0xb4   :  { %5135 = vmatpush3.bf16.msra.mxu0 %v5441_v38  ;;  %v5491_v38 = vld [vmem:[%s6780_s1 + $0x780] sm:$0xff]  }
  0xb5   :  { %5136 = vmatprep.subr.bf16.mxu0 %v5443_v40  ;;  %5157 = vmatpush3.bf16.msra.mxu1 %v5442_v39  ;;  %v744_v39 = vrot.slane %v716_v33, %v5659_v35  ;;  %v5493_v40 = vld [vmem:[%s6780_s1 + $0x7c8] sm:$0xff]  }
  0xb6   :  { %5158 = vmatprep.subr.bf16.mxu1 %v5444_v41  ;;  %v5494_v41 = vld [vmem:[%s6780_s1 + $0x708] sm:$0xff]  }
  0xb8   :  { %5137 = vmatpush3.bf16.msra.mxu0 %v5445_v42  ;;  %v748_v42 = vcombine.high %v744_v39, %v744_v39 }
  0xb9   :  { %5138 = vmatprep.subr.bf16.mxu0 %v5447_v44  ;;  %5159 = vmatpush3.bf16.msra.mxu1 %v5446_v43  ;;  %v5496_v43 = vld [vmem:[%s6780_s1 + $0x750] sm:$0xff]   ;;  %v5495_v44 = vld [vmem:[%s6780_s1 + $0x788] sm:$0xff]  }
  0xba   :  { %5160 = vmatprep.subr.bf16.mxu1 %v5448_v45  ;;  %v5497_v45 = vld [vmem:[%s6780_s1 + $0x7d0] sm:$0xff]  }
  0xbc   :  { %5139 = vmatpush3.bf16.msra.mxu0 %v5449_v46  ;;  %v5498_v46 = vld [vmem:[%s6780_s1 + $0x710] sm:$0xff]  }
  0xbd   :  { %5140 = vmatprep.subr.bf16.mxu0 %v5451_v48  ;;  %5161 = vmatpush3.bf16.msra.mxu1 %v5450_v47  ;;  %v5500_v47 = vld [vmem:[%s6780_s1 + $0x758] sm:$0xff]   ;;  %v5499_v48 = vld [vmem:[%s6780_s1 + $0x790] sm:$0xff]  }
  0xbe   :  { %5162 = vmatprep.subr.bf16.mxu1 %v5452_v49  ;;  %v5501_v49 = vld [vmem:[%s6780_s1 + $0x7d8] sm:$0xff]  }
  0xc0   :  { %5141 = vmatpush3.bf16.msra.mxu0 %v5453_v50  ;;  %v5502_v50 = vld [vmem:[%s6780_s1 + $0x718] sm:$0xff]  }
  0xc1   :  { %5170 = vmatprep.subr.bf16.mxu0 %v5456_v53  ;;  %5163 = vmatpush3.bf16.msra.mxu1 %v5454_v51  ;;  %v5504_v51 = vld [vmem:[%s6780_s1 + $0x760] sm:$0xff]  }
  0xc2   :  { %5192 = vmatprep.subr.bf16.mxu1 %v5457_v54  ;;  %v5505_v53 = vld [vmem:[%s6780_s1 + $0x7e0] sm:$0xff]  }
  0xc3   :  { %2750 = vmatmul.mubr.bf16.vlgmr.msra.gmra.mrb[20].mxu0 %v681_v52  ;;  %v5503_v52 = vld [vmem:[%s6780_s1 + $0x798] sm:$0xff]   ;;  %v5506_v54 = vld [vmem:[%s6780_s1 + $0x720] sm:$0xff]  }
  0xc4   :  { %5171 = vmatpush3.bf16.msra.mxu0 %v5458_v55  ;;  %2790 = vmatmul.mubr.bf16.vlgmr.msra.gmra.mrb[20].mxu1 %v697_v57  ;;  %v5508_v55 = vld [vmem:[%s6780_s1 + $0x768] sm:$0xff]  }
  0xc5   :  { %5172 = vmatprep.subr.bf16.mxu0 %v5460_v58  ;;  %5193 = vmatpush3.bf16.msra.mxu1 %v5459_v56  ;;  %v5507_v56 = vld [vmem:[%s6780_s1 + $0x7a0] sm:$0xff]   ;;  %v5509_v57 = vld [vmem:[%s6780_s1 + $0x7e8] sm:$0xff]  }
  0xc6   :  { %5194 = vmatprep.subr.bf16.mxu1 %v5461_v59  ;;  %2829 = vmatprep.mubr.bf16.mxu0 %v737_v31  ;;  %v4553_v58 = vld [vmem:[%s6782_s2] ss:$0 sm:$0xff]  ;;  %v5510_v59 = vld [vmem:[%s6780_s1 + $0x728] sm:$0xff]  }
  0xc7   :  { %2869 = vmatprep.mubr.bf16.mxu1 %v747_v37 }
  0xc8   :  { %5173 = vmatpush3.bf16.msra.mxu0 %v5462_v60 }
  0xc9   :  { %5174 = vmatprep.subr.bf16.mxu0 %v5464_v62  ;;  %5195 = vmatpush3.bf16.msra.mxu1 %v5463_v61  ;;  %v5512_v61 = vld [vmem:[%s6780_s1 + $0x770] sm:$0xff]  }
  0xca   :  { %5196 = vmatprep.subr.bf16.mxu1 %v5465_v63  ;;  %v5511_v63 = vld [vmem:[%s6780_s1 + $0x7a8] sm:$0xff]  }
  0xcc   :  { %5175 = vmatpush3.bf16.msra.mxu0 %v5466_v0 }
  0xcd   :  { %5176 = vmatprep.subr.bf16.mxu0 %v5468_v2  ;;  %5197 = vmatpush3.bf16.msra.mxu1 %v5467_v1 }
  0xce   :  { %5198 = vmatprep.subr.bf16.mxu1 %v5469_v3  ;;  %v5513_v3 = vld [vmem:[%s6780_s1 + $0x7f0] sm:$0xff]  }
  0xd0   :  { %5177 = vmatpush3.bf16.msra.mxu0 %v5470_v4  ;;  %v5514_v4 = vld [vmem:[%s6780_s1 + $0x730] sm:$0xff]  }
  0xd1   :  { %5178 = vmatprep.subr.bf16.mxu0 %v5472_v6  ;;  %5199 = vmatpush3.bf16.msra.mxu1 %v5471_v5 }
  0xd2   :  { %5200 = vmatprep.subr.bf16.mxu1 %v5473_v7 }
  0xd4   :  { %5179 = vmatpush3.bf16.msra.mxu0 %v5474_v8 }
  0xd5   :  { %5180 = vmatprep.subr.bf16.mxu0 %v5476_v10  ;;  %5201 = vmatpush3.bf16.msra.mxu1 %v5475_v9  ;;  %v5516_v10 = vld [vmem:[%s6780_s1 + $0x778] sm:$0xff]  }
  0xd6   :  { %5202 = vmatprep.subr.bf16.mxu1 %v5477_v11 }
  0xd8   :  { %5181 = vmatpush3.bf16.msra.mxu0 %v5478_v12  ;;  %v5515_v12 = vld [vmem:[%s6780_s1 + $0x7b0] sm:$0xff]  }
  0xd9   :  { %5182 = vmatprep.subr.bf16.mxu0 %v5480_v14  ;;  %5203 = vmatpush3.bf16.msra.mxu1 %v5479_v13  ;;  %v5517_v14 = vld [vmem:[%s6780_s1 + $0x7f8] sm:$0xff]  }
  0xda   :  { %5204 = vmatprep.subr.bf16.mxu1 %v5481_v15  ;;  %v5518_v15 = vld [vmem:[%s6780_s1 + $0x738] sm:$0xff]  }
  0xdc   :  { %5183 = vmatpush3.bf16.msra.mxu0 %v5482_v16  ;;  %v730_v16 = vrot.slane %v6297_v29, %v5659_v35 }
  0xdd   :  { %5184 = vmatprep.subr.bf16.mxu0 %v5484_v18  ;;  %5205 = vmatpush3.bf16.msra.mxu1 %v5483_v17  ;;  %v5519_v17 = vld [vmem:[%s6780_s1 + $0x7b8] sm:$0xff]  }
  0xde   :  { %5206 = vmatprep.subr.bf16.mxu1 %v5485_v19  ;;  %v746_v18 = vcombine.high %v730_v16, %v730_v16 }
  0xe0   :  { %5185 = vmatpush3.bf16.msra.mxu0 %v5486_v20 }
  0xe1   :  { %5214 = vmatprep.subr.bf16.mxu0 %v5488_v23  ;;  %5207 = vmatpush3.bf16.msra.mxu1 %v5487_v25 }
  0xe2   :  { %5236 = vmatprep.subr.bf16.mxu1 %v5489_v28 }
  0xe3   :  { %2830 = vmatmul.mubr.bf16.vlgmr.msra.gmra.mrb[24].mxu0 %v723_v27 }
  0xe4   :  { %5215 = vmatpush3.bf16.msra.mxu0 %v5490_v32  ;;  %2870 = vmatmul.mubr.bf16.vlgmr.msra.gmra.mrb[24].mxu1 %v745_v34 }
  0xe5   :  { %5216 = vmatprep.subr.bf16.mxu0 %v5492_v36  ;;  %5237 = vmatpush3.bf16.msra.mxu1 %v5491_v38 }
  0xe6   :  { %2909 = vmatprep.mubr.bf16.mxu0 %v744_v39  ;;  %5238 = vmatprep.subr.bf16.mxu1 %v5493_v40 }
  0xe7   :  { %2949 = vmatprep.mubr.bf16.mxu1 %v748_v42 }
  0xe8   :  { %5217 = vmatpush3.bf16.msra.mxu0 %v5494_v41 }
  0xe9   :  { %5218 = vmatprep.subr.bf16.mxu0 %v5496_v43  ;;  %5239 = vmatpush3.bf16.msra.mxu1 %v5495_v44 }
  0xea   :  { %5240 = vmatprep.subr.bf16.mxu1 %v5497_v45 }
  0xec   :  { %5219 = vmatpush3.bf16.msra.mxu0 %v5498_v46 }
  0xed   :  { %5220 = vmatprep.subr.bf16.mxu0 %v5500_v47  ;;  %5241 = vmatpush3.bf16.msra.mxu1 %v5499_v48 }
  0xee   :  { %5242 = vmatprep.subr.bf16.mxu1 %v5501_v49 }
  0xf0   :  { %5221 = vmatpush3.bf16.msra.mxu0 %v5502_v50 }
  0xf1   :  { %5222 = vmatprep.subr.bf16.mxu0 %v5504_v51  ;;  %5243 = vmatpush3.bf16.msra.mxu1 %v5503_v52 }
  0xf2   :  { %5244 = vmatprep.subr.bf16.mxu1 %v5505_v53 }
  0xf4   :  { %5223 = vmatpush3.bf16.msra.mxu0 %v5506_v54 }
  0xf5   :  { %5224 = vmatprep.subr.bf16.mxu0 %v5508_v55  ;;  %5245 = vmatpush3.bf16.msra.mxu1 %v5507_v56 }
  0xf6   :  { %v4922_v60 = vpop.f32.mrb[0].mxu0  ;;  %5246 = vmatprep.subr.bf16.mxu1 %v5509_v57  ;;  %v2968_v57 = vld [vmem:[%s6783_s4] sm:$0xff] }
  0xf7   :  { %v4923_v62 = vpop.f32.mrb[1].mxu0  ;;  %v4944_v0 = vpop.f32.mrb[0].mxu1 }
  0xf8   :  { %v4924_v1 = vadd.f32 %v4923_v62, %v4922_v60  ;;  %v4925_v2 = vpop.f32.mrb[2].mxu0  ;;  %v4945_v5 = vpop.f32.mrb[1].mxu1  ;;  %5225 = vmatpush3.bf16.msra.mxu0 %v5510_v59  ;;  %v2969_v59 = vld [vmem:[%s6783_s4 + $0x8] sm:$0xff] }
  0xf9   :  { %v4926_v6 = vpop.f32.mrb[3].mxu0  ;;  %v4946_v8 = vadd.f32 %v4945_v5, %v4944_v0  ;;  %v4947_v9 = vpop.f32.mrb[2].mxu1  ;;  %5226 = vmatprep.subr.bf16.mxu0 %v5512_v61  ;;  %5247 = vmatpush3.bf16.msra.mxu1 %v5511_v63  ;;  %v2985_v62 = vld [vmem:[%s6783_s4 + $0x88] sm:$0xff] }
  0xfa   :  { %v2352_v7 = vadd.f32 %v4924_v1, %v4553_v58  ;;  %v4948_v11 = vpop.f32.mrb[3].mxu1  ;;  %5248 = vmatprep.subr.bf16.mxu1 %v5513_v3  ;;  %v2984_v58 = vld [vmem:[%s6783_s4 + $0x80] sm:$0xff]  ;;  %v4812_v63 = vcombine.low %v2969_v59, %v2985_v62  ;;  %v4813_v0 = vcombine.high %v2969_v59, %v2985_v62  ;;  %v2986_v62 = vld [vmem:[%s6783_s4 + $0x90] sm:$0xff] }
  0xfb   :  { %v4810_v60 = vcombine.low %v2968_v57, %v2984_v58  ;;  %v4811_v61 = vcombine.high %v2968_v57, %v2984_v58  ;;  %v3017_v57 = vld [vmem:[%s6783_s4 + $0x188] sm:$0xff] }
  0xfc   :  { %v2392_v13 = vadd.f32 %v4946_v8, %v2352_v7  ;;  %5227 = vmatpush3.bf16.msra.mxu0 %v5514_v4 }
  0xfd   :  { %5228 = vmatprep.subr.bf16.mxu0 %v5516_v10  ;;  %5249 = vmatpush3.bf16.msra.mxu1 %v5515_v12 }
  0xfe   :  { %5250 = vmatprep.subr.bf16.mxu1 %v5517_v14 }
 0x100   :  { %5229 = vmatpush3.bf16.msra.mxu0 %v5518_v15 }
 0x101   :  { %5251 = vmatpush3.bf16.msra.mxu1 %v5519_v17  ;;  %3524 = vmatprep.subr.bf16.mxu0 %v4811_v61  ;;  %v2970_v61 = vld [vmem:[%s6783_s4 + $0x10] sm:$0xff] }
 0x102   :  { %3565 = vmatprep.subr.bf16.mxu1 %v4813_v0  ;;  %v4814_v0 = vcombine.low %v2970_v61, %v2986_v62 }
 0x103   :  { %2910 = vmatmul.mubr.bf16.vlgmr.msra.gmra.mrb[28].mxu0 %v730_v16 }
 0x104   :  { %2950 = vmatmul.mubr.bf16.vlgmr.msra.gmra.mrb[28].mxu1 %v746_v18  ;;  %3525 = vmatpush1.bf16.msra.mxu0 %v4810_v60 }
 0x105   :  { %3566 = vmatpush1.bf16.msra.mxu1 %v4812_v63  ;;  %v2971_v63 = vld [vmem:[%s6783_s4 + $0x18] sm:$0xff] }
 0x116   :  { %v4966_v19 = vpop.f32.mrb[4].mxu0 }
 0x117   :  { %v4967_v20 = vpop.f32.mrb[5].mxu0  ;;  %v4988_v21 = vpop.f32.mrb[4].mxu1 }
 0x118   :  { %v4968_v22 = vadd.f32 %v4967_v20, %v4966_v19  ;;  %v4969_v23 = vpop.f32.mrb[6].mxu0  ;;  %v4989_v24 = vpop.f32.mrb[5].mxu1 }
 0x119   :  { %v4970_v25 = vpop.f32.mrb[7].mxu0  ;;  %v4990_v27 = vadd.f32 %v4989_v24, %v4988_v21  ;;  %v4991_v28 = vpop.f32.mrb[6].mxu1 }
 0x11a   :  { %v2432_v26 = vadd.f32 %v4968_v22, %v2392_v13  ;;  %v4992_v29 = vpop.f32.mrb[7].mxu1 }
 0x11c   :  { %v2472_v31 = vadd.f32 %v4990_v27, %v2432_v26 }
 0x136   :  { %v5010_v32 = vpop.f32.mrb[8].mxu0 }
 0x137   :  { %v5011_v33 = vpop.f32.mrb[9].mxu0  ;;  %v5032_v34 = vpop.f32.mrb[8].mxu1 }
 0x138   :  { %v5012_v36 = vadd.f32 %v5011_v33, %v5010_v32  ;;  %v5013_v37 = vpop.f32.mrb[10].mxu0  ;;  %v5033_v38 = vpop.f32.mrb[9].mxu1 }
 0x139   :  { %v5014_v39 = vpop.f32.mrb[11].mxu0  ;;  %v5034_v41 = vadd.f32 %v5033_v38, %v5032_v34  ;;  %v5035_v42 = vpop.f32.mrb[10].mxu1 }
 0x13a   :  { %v2512_v40 = vadd.f32 %v5012_v36, %v2472_v31  ;;  %v5036_v43 = vpop.f32.mrb[11].mxu1 }
 0x13c   :  { %v2552_v44 = vadd.f32 %v5034_v41, %v2512_v40 }
 0x156   :  { %v5054_v45 = vpop.f32.mrb[12].mxu0 }
 0x157   :  { %v5055_v46 = vpop.f32.mrb[13].mxu0  ;;  %v5076_v47 = vpop.f32.mrb[12].mxu1 }
 0x158   :  { %v5056_v48 = vadd.f32 %v5055_v46, %v5054_v45  ;;  %v5057_v49 = vpop.f32.mrb[14].mxu0  ;;  %v5077_v50 = vpop.f32.mrb[13].mxu1 }
 0x159   :  { %v5058_v51 = vpop.f32.mrb[15].mxu0  ;;  %v5078_v53 = vadd.f32 %v5077_v50, %v5076_v47  ;;  %v5079_v54 = vpop.f32.mrb[14].mxu1 }
 0x15a   :  { %v2592_v52 = vadd.f32 %v5056_v48, %v2552_v44  ;;  %v5080_v55 = vpop.f32.mrb[15].mxu1  ;;  %v3016_v54 = vld [vmem:[%s6783_s4 + $0x180] sm:$0xff] }
 0x15b   :  { %v3001_v55 = vld [vmem:[%s6783_s4 + $0x108] sm:$0xff] }
 0x15c   :  { %v2632_v56 = vadd.f32 %v5078_v53, %v2592_v52  ;;  %v3000_v53 = vld [vmem:[%s6783_s4 + $0x100] sm:$0xff]  ;;  %v4844_v59 = vcombine.low %v3001_v55, %v3017_v57  ;;  %v4845_v60 = vcombine.high %v3001_v55, %v3017_v57  ;;  %v2993_v55 = vld [vmem:[%s6783_s4 + $0xc8] sm:$0xff] }
 0x15d   :  { %v4842_v58 = vcombine.low %v3000_v53, %v3016_v54 }
 0x15e   :  { %3567 = vmatprep.subr.bf16.mxu1 %v4845_v60  ;;  %v3008_v60 = vld [vmem:[%s6783_s4 + $0x140] sm:$0xff] }
 0x15f   :  { %3568 = vmatpush1.bf16.msra.mxu1 %v4844_v59 }
 0x176   :  { %v5098_v1 = vpop.f32.mrb[16].mxu0 }
 0x177   :  { %v5099_v2 = vpop.f32.mrb[17].mxu0  ;;  %v5120_v3 = vpop.f32.mrb[16].mxu1 }
 0x178   :  { %v5100_v4 = vadd.f32 %v5099_v2, %v5098_v1  ;;  %v5101_v5 = vpop.f32.mrb[18].mxu0  ;;  %v5121_v6 = vpop.f32.mrb[17].mxu1  ;;  %v4815_v1 = vcombine.high %v2970_v61, %v2986_v62  ;;  %v2987_v2 = vld [vmem:[%s6783_s4 + $0x98] sm:$0xff]  ;;  %v3024_v61 = vld [vmem:[%s6783_s4 + $0x1c0] sm:$0xff]  ;;  %v3009_v62 = vld [vmem:[%s6783_s4 + $0x148] sm:$0xff] }
 0x179   :  { %v5102_v7 = vpop.f32.mrb[19].mxu0  ;;  %v5122_v9 = vadd.f32 %v5121_v6, %v5120_v3  ;;  %v5123_v10 = vpop.f32.mrb[18].mxu1  ;;  %v5524_v3 = vmov 0   ;;  %v4817_v5 = vcombine.high %v2971_v63, %v2987_v2 }
 0x17a   :  { %v2672_v8 = vadd.f32 %v5100_v4, %v2632_v56  ;;  %v5124_v11 = vpop.f32.mrb[19].mxu1  ;;  %v4843_v56 = vcombine.high %v3000_v53, %v3016_v54  ;;  %3556 = vmatprep.mubr.bf16.mxu0 %v5524_v3  ;;  %v4816_v4 = vcombine.low %v2971_v63, %v2987_v2  ;;  %3597 = vmatprep.mubr.bf16.mxu1 %v5524_v3  ;;  %v2957_v7 = vld [vmem:[%s6785_s3] sm:$0x3]  ;;  %v3002_v10 = vld [vmem:[%s6783_s4 + $0x110] sm:$0xff]  ;;  %v2977_v54 = vld [vmem:[%s6783_s4 + $0x48] sm:$0xff] }
 0x17b   :  { %3647 = vmatprep.subr.bf16.mxu1 %v4817_v5  ;;  %v3018_v11 = vld [vmem:[%s6783_s4 + $0x190] sm:$0xff]  ;;  %v2992_v53 = vld [vmem:[%s6783_s4 + $0xc0] sm:$0xff]  ;;  %v4829_v59 = vcombine.high %v2977_v54, %v2993_v55  ;;  %v3025_v63 = vld [vmem:[%s6783_s4 + $0x1c8] sm:$0xff]  ;;  %v4859_v2 = vcombine.high %v3008_v60, %v3024_v61 }
 0x17c   :  { %v2712_v12 = vadd.f32 %v5122_v9, %v2672_v8  ;;  %3526 = vmatprep.subr.bf16.mxu0 %v4843_v56  ;;  %v2978_v5 = vld [vmem:[%s6783_s4 + $0x50] sm:$0xff] }
 0x17d   :  { %3527 = vmatpush1.bf16.msra.mxu0 %v4842_v58 }
 0x17e   :  { %3606 = vmatprep.subr.bf16.mxu0 %v4815_v1  ;;  %v4828_v1 = vcombine.low %v2977_v54, %v2993_v55 }
 0x196   :  { %v5142_v13 = vpop.f32.mrb[20].mxu0 }
 0x197   :  { %v5143_v14 = vpop.f32.mrb[21].mxu0  ;;  %v5164_v15 = vpop.f32.mrb[20].mxu1 }
 0x198   :  { %v5144_v16 = vadd.f32 %v5143_v14, %v5142_v13  ;;  %v5145_v17 = vpop.f32.mrb[22].mxu0  ;;  %v5165_v18 = vpop.f32.mrb[21].mxu1  ;;  %v3019_v13 = vld [vmem:[%s6783_s4 + $0x198] sm:$0xff] }
 0x199   :  { %v5146_v19 = vpop.f32.mrb[23].mxu0  ;;  %v5166_v21 = vadd.f32 %v5165_v18, %v5164_v15  ;;  %v5167_v22 = vpop.f32.mrb[22].mxu1  ;;  %v2972_v18 = vld [vmem:[%s6783_s4 + $0x20] sm:$0xff] }
 0x19a   :  { %v2752_v20 = vadd.f32 %v5144_v16, %v2712_v12  ;;  %v5168_v23 = vpop.f32.mrb[23].mxu1  ;;  %v3003_v12 = vld [vmem:[%s6783_s4 + $0x118] sm:$0xff]  ;;  %v4847_v16 = vcombine.high %v3002_v10, %v3018_v11  ;;  %v2988_v19 = vld [vmem:[%s6783_s4 + $0xa0] sm:$0xff]  ;;  %v4846_v22 = vcombine.low %v3002_v10, %v3018_v11  ;;  %v4860_v10 = vcombine.low %v3009_v62, %v3025_v63 }
 0x19b   :  { %v4849_v17 = vcombine.high %v3003_v12, %v3019_v13  ;;  %v4848_v23 = vcombine.low %v3003_v12, %v3019_v13  ;;  %v3010_v13 = vld [vmem:[%s6783_s4 + $0x150] sm:$0xff] }
 0x19c   :  { %v2792_v24 = vadd.f32 %v5166_v21, %v2752_v20  ;;  %v2973_v20 = vld [vmem:[%s6783_s4 + $0x28] sm:$0xff] }
 0x19d   :  { %v2989_v21 = vld [vmem:[%s6783_s4 + $0xa8] sm:$0xff] }
 0x1b6   :  { %v5186_v25 = vpop.f32.mrb[24].mxu0 }
 0x1b7   :  { %v5187_v26 = vpop.f32.mrb[25].mxu0  ;;  %v5208_v27 = vpop.f32.mrb[24].mxu1 }
 0x1b8   :  { %v5188_v28 = vadd.f32 %v5187_v26, %v5186_v25  ;;  %v5189_v29 = vpop.f32.mrb[26].mxu0  ;;  %v5209_v31 = vpop.f32.mrb[25].mxu1  ;;  %v4821_v25 = vcombine.high %v2973_v20, %v2989_v21  ;;  %v3004_v26 = vld [vmem:[%s6783_s4 + $0x120] sm:$0xff] }
 0x1b9   :  { %v5190_v32 = vpop.f32.mrb[27].mxu0  ;;  %v5210_v34 = vadd.f32 %v5209_v31, %v5208_v27  ;;  %v5211_v36 = vpop.f32.mrb[26].mxu1  ;;  %v3020_v27 = vld [vmem:[%s6783_s4 + $0x1a0] sm:$0xff]  ;;  %v3021_v29 = vld [vmem:[%s6783_s4 + $0x1a8] sm:$0xff]  ;;  %v4818_v31 = vcombine.low %v2972_v18, %v2988_v19 }
 0x1ba   :  { %v2832_v33 = vadd.f32 %v5188_v28, %v2792_v24  ;;  %v5212_v37 = vpop.f32.mrb[27].mxu1  ;;  %v4819_v24 = vcombine.high %v2972_v18, %v2988_v19  ;;  %v3005_v28 = vld [vmem:[%s6783_s4 + $0x128] sm:$0xff]  ;;  %v4820_v32 = vcombine.low %v2973_v20, %v2989_v21  ;;  %v2974_v36 = vld [vmem:[%s6783_s4 + $0x30] sm:$0xff] }
 0x1bb   :  { %v2990_v37 = vld [vmem:[%s6783_s4 + $0xb0] sm:$0xff] }
 0x1bc   :  { %v2872_v38 = vadd.f32 %v5210_v34, %v2832_v33  ;;  %v4851_v33 = vcombine.high %v3004_v26, %v3020_v27  ;;  %v4853_v34 = vcombine.high %v3005_v28, %v3021_v29 }
 0x1d6   :  { %v5230_v39 = vpop.f32.mrb[28].mxu0 }
 0x1d7   :  { %v5231_v40 = vpop.f32.mrb[29].mxu0  ;;  %v5252_v41 = vpop.f32.mrb[28].mxu1 }
 0x1d8   :  { %v5232_v42 = vadd.f32 %v5231_v40, %v5230_v39  ;;  %v5233_v43 = vpop.f32.mrb[30].mxu0  ;;  %v5253_v44 = vpop.f32.mrb[29].mxu1  ;;  %v2991_v39 = vld [vmem:[%s6783_s4 + $0xb8] sm:$0xff]  ;;  %v4850_v40 = vcombine.low %v3004_v26, %v3020_v27 }
 0x1d9   :  { %v5234_v45 = vpop.f32.mrb[31].mxu0  ;;  %v5254_v47 = vadd.f32 %v5253_v44, %v5252_v41  ;;  %v5255_v48 = vpop.f32.mrb[30].mxu1  ;;  %v4852_v41 = vcombine.low %v3005_v28, %v3021_v29  ;;  %v3006_v44 = vld [vmem:[%s6783_s4 + $0x130] sm:$0xff] }
 0x1da   :  { %v2912_v46 = vadd.f32 %v5232_v42, %v2872_v38  ;;  %v5256_v49 = vpop.f32.mrb[31].mxu1  ;;  %v2975_v38 = vld [vmem:[%s6783_s4 + $0x38] sm:$0xff]  ;;  %v4823_v42 = vcombine.high %v2974_v36, %v2990_v37  ;;  %v3022_v45 = vld [vmem:[%s6783_s4 + $0x1b0] sm:$0xff]  ;;  %v4822_v48 = vcombine.low %v2974_v36, %v2990_v37 }
 0x1db   :  { %v4825_v43 = vcombine.high %v2975_v38, %v2991_v39  ;;  %v4824_v49 = vcombine.low %v2975_v38, %v2991_v39  ;;  %v4854_v56 = vcombine.low %v3006_v44, %v3022_v45 }
 0x1dc   :  { %v2952_v50 = vadd.f32 %v5254_v47, %v2912_v46  ;;  %v3007_v46 = vld [vmem:[%s6783_s4 + $0x138] sm:$0xff] }
 0x1dd   :  { %v3023_v47 = vld [vmem:[%s6783_s4 + $0x1b8] sm:$0xff] }
 0x1de   :  { %v2958_v51 = vmul.f32 0.5, %v2952_v50  ;;  %4276 = vst [vmem:[%s6784_s6] sm:$0x3] %v2952_v50  ;;  %v4856_v57 = vcombine.low %v3007_v46, %v3023_v47 }
 0x1e0   :  { %v2959_v52 = vmul.f32 1.442695, %v2958_v51  ;;  %v4857_v51 = vcombine.high %v3007_v46, %v3023_v47 }
 0x1e2   :  { %5521 = vpow2.f32 %v2959_v52  ;;  %v2976_v52 = vld [vmem:[%s6783_s4 + $0x40] sm:$0xff] }
 0x1e3   :  { %v4827_v58 = vcombine.high %v2976_v52, %v2992_v53 }
 0x1ec   :  { %v5522_v6 = vpop.eup %5521 }
 0x1ed   :  { %2962 = vrot.lane.b32.xlu0 %v5522_v6, %s5525_s12  ;;  %v2994_v6 = vld [vmem:[%s6783_s4 + $0xd0] sm:$0xff] }
 0x1ee   :  { %v4831_v11 = vcombine.high %v2978_v5, %v2994_v6  ;;  %v4830_v18 = vcombine.low %v2978_v5, %v2994_v6 }
 0x25f   :  { %v2963_v8 = vpop.permute.xlu0 %2962 }
 0x260   :  { %v2965_v9 = vmul.f32 %v2963_v8, %v2957_v7  ;;  %v2979_v7 = vld [vmem:[%s6783_s4 + $0x58] sm:$0xff] }
 0x261   :  { %v2995_v8 = vld [vmem:[%s6783_s4 + $0xd8] sm:$0xff] }
 0x262   :  { %v2966_v14 = vadd.f32 %v2965_v9, %v2952_v50  ;;  %v4855_v50 = vcombine.high %v3006_v44, %v3022_v45  ;;  %v4858_v9 = vcombine.low %v3008_v60, %v3024_v61  ;;  %v4833_v12 = vcombine.high %v2979_v7, %v2995_v8  ;;  %v3032_v60 = vld [vmem:[%s6786_s5] sm:$0xff] }
 0x263   :  { %v4832_v19 = vcombine.low %v2979_v7, %v2995_v8  ;;  %v6659_v61 = vsub.s32 3, %v5644_v30  ;;  %v6666_v8 = vsub.s32 4, %v5644_v30 }
 0x264   :  { %v6454_v15 = vpack.c.bf16 %v2966_v14, %v2966_v14  ;;  %v3026_v14 = vld [vmem:[%s6783_s4 + $0x1d0] sm:$0xff] }
 0x265   :  { %v4863_v20 = vcombine.high %v3010_v13, %v3026_v14  ;;  %v4862_v26 = vcombine.low %v3010_v13, %v3026_v14  ;;  %v6672_v14 = vsub.s32 5, %v5644_v30 }
 0x266   :  { %4874 = vmatmul.mubr.msk.bf16.vlgmr.msra.gmra.mrb[32].mxu0 %vm3520_vm0, %v6454_v15  ;;  %4875 = vmatmul.mubr.msk.bf16.vlgmr.msra.gmra.mrb[32].mxu1 %vm3520_vm0, %v6454_v15 }
 0x267   :  { %3607 = vmatpush1.bf16.msra.mxu0 %v4814_v0  ;;  %3648 = vmatpush1.bf16.msra.mxu1 %v4816_v4  ;;  %v4826_v0 = vcombine.low %v2976_v52, %v2992_v53  ;;  %v4861_v4 = vcombine.high %v3009_v62, %v3025_v63 }
 0x268   :  { %3608 = vmatprep.subr.bf16.mxu0 %v4847_v16  ;;  %3649 = vmatprep.subr.bf16.mxu1 %v4849_v17  ;;  %v3011_v16 = vld [vmem:[%s6783_s4 + $0x158] sm:$0xff] }
 0x269   :  { %3638 = vmatprep.mubr.bf16.mxu0 %v5524_v3  ;;  %3679 = vmatprep.mubr.bf16.mxu1 %v5524_v3  ;;  %v3027_v17 = vld [vmem:[%s6783_s4 + $0x1d8] sm:$0xff] }
 0x26a   :  { %v4865_v21 = vcombine.high %v3011_v16, %v3027_v17  ;;  %v4864_v27 = vcombine.low %v3011_v16, %v3027_v17  ;;  %v6675_v16 = vsub.s32 7, %v5644_v30 }
 0x26b   :  { %3609 = vmatpush1.bf16.msra.mxu0 %v4846_v22  ;;  %3650 = vmatpush1.bf16.msra.mxu1 %v4848_v23  ;;  %v2980_v22 = vld [vmem:[%s6783_s4 + $0x60] sm:$0xff] }
 0x26c   :  { %3688 = vmatprep.subr.bf16.mxu0 %v4819_v24  ;;  %3729 = vmatprep.subr.bf16.mxu1 %v4821_v25  ;;  %v2996_v23 = vld [vmem:[%s6783_s4 + $0xe0] sm:$0xff]  ;;  %v2981_v24 = vld [vmem:[%s6783_s4 + $0x68] sm:$0xff] }
 0x26d   :  { %v2997_v25 = vld [vmem:[%s6783_s4 + $0xe8] sm:$0xff]  ;;  %v4835_v28 = vcombine.high %v2980_v22, %v2996_v23  ;;  %v4834_v36 = vcombine.low %v2980_v22, %v2996_v23 }
 0x26e   :  { %4876 = vmatmul.mubr.msk.bf16.vlgmr.msra.gmra.mrb[36].mxu0 %vm3520_vm0, %v6454_v15  ;;  %4877 = vmatmul.mubr.msk.bf16.vlgmr.msra.gmra.mrb[36].mxu1 %vm3520_vm0, %v6454_v15  ;;  %v4837_v29 = vcombine.high %v2981_v24, %v2997_v25  ;;  %v4836_v37 = vcombine.low %v2981_v24, %v2997_v25  ;;  %v3059_v25 = vrot.slane %v3032_v60, %v6666_v8 }
 0x26f   :  { %3689 = vmatpush1.bf16.msra.mxu0 %v4818_v31  ;;  %3730 = vmatpush1.bf16.msra.mxu1 %v4820_v32  ;;  %v3012_v31 = vld [vmem:[%s6783_s4 + $0x160] sm:$0xff] }
 0x270   :  { %3690 = vmatprep.subr.bf16.mxu0 %v4851_v33  ;;  %3731 = vmatprep.subr.bf16.mxu1 %v4853_v34  ;;  %v3028_v32 = vld [vmem:[%s6783_s4 + $0x1e0] sm:$0xff]  ;;  %v3013_v33 = vld [vmem:[%s6783_s4 + $0x168] sm:$0xff] }
 0x271   :  { %3720 = vmatprep.mubr.bf16.mxu0 %v5524_v3  ;;  %3761 = vmatprep.mubr.bf16.mxu1 %v5524_v3  ;;  %v3029_v34 = vld [vmem:[%s6783_s4 + $0x1e8] sm:$0xff]  ;;  %v4867_v38 = vcombine.high %v3012_v31, %v3028_v32  ;;  %v4866_v44 = vcombine.low %v3012_v31, %v3028_v32 }
 0x272   :  { %v4869_v39 = vcombine.high %v3013_v33, %v3029_v34  ;;  %v4868_v45 = vcombine.low %v3013_v33, %v3029_v34 }
 0x273   :  { %3691 = vmatpush1.bf16.msra.mxu0 %v4850_v40  ;;  %3732 = vmatpush1.bf16.msra.mxu1 %v4852_v41  ;;  %v2982_v40 = vld [vmem:[%s6783_s4 + $0x70] sm:$0xff] }
 0x274   :  { %3770 = vmatprep.subr.bf16.mxu0 %v4823_v42  ;;  %3811 = vmatprep.subr.bf16.mxu1 %v4825_v43  ;;  %v2998_v41 = vld [vmem:[%s6783_s4 + $0xf0] sm:$0xff]  ;;  %v2983_v42 = vld [vmem:[%s6783_s4 + $0x78] sm:$0xff] }
 0x275   :  { %v2999_v43 = vld [vmem:[%s6783_s4 + $0xf8] sm:$0xff]  ;;  %v4839_v46 = vcombine.high %v2982_v40, %v2998_v41  ;;  %v4838_v52 = vcombine.low %v2982_v40, %v2998_v41 }
 0x276   :  { %4878 = vmatmul.mubr.msk.bf16.vlgmr.msra.gmra.mrb[40].mxu0 %vm3520_vm0, %v6454_v15  ;;  %4879 = vmatmul.mubr.msk.bf16.vlgmr.msra.gmra.mrb[40].mxu1 %vm3520_vm0, %v6454_v15  ;;  %v4841_v47 = vcombine.high %v2983_v42, %v2999_v43  ;;  %v4840_v53 = vcombine.low %v2983_v42, %v2999_v43 }
 0x277   :  { %3771 = vmatpush1.bf16.msra.mxu0 %v4822_v48  ;;  %3812 = vmatpush1.bf16.msra.mxu1 %v4824_v49  ;;  %v3014_v48 = vld [vmem:[%s6783_s4 + $0x170] sm:$0xff] }
 0x278   :  { %3772 = vmatprep.subr.bf16.mxu0 %v4855_v50  ;;  %3813 = vmatprep.subr.bf16.mxu1 %v4857_v51  ;;  %v3030_v49 = vld [vmem:[%s6783_s4 + $0x1f0] sm:$0xff]  ;;  %v3015_v50 = vld [vmem:[%s6783_s4 + $0x178] sm:$0xff] }
 0x279   :  { %3802 = vmatprep.mubr.bf16.mxu0 %v5524_v3  ;;  %3843 = vmatprep.mubr.bf16.mxu1 %v5524_v3  ;;  %v3031_v51 = vld [vmem:[%s6783_s4 + $0x1f8] sm:$0xff]  ;;  %v4871_v54 = vcombine.high %v3014_v48, %v3030_v49 }
 0x27a   :  { %v4873_v55 = vcombine.high %v3015_v50, %v3031_v51 }
 0x27b   :  { %3773 = vmatpush1.bf16.msra.mxu0 %v4854_v56  ;;  %3814 = vmatpush1.bf16.msra.mxu1 %v4856_v57  ;;  %v4870_v56 = vcombine.low %v3014_v48, %v3030_v49  ;;  %v4872_v57 = vcombine.low %v3015_v50, %v3031_v51 }
 0x27c   :  { %3852 = vmatprep.subr.bf16.mxu0 %v4827_v58  ;;  %3893 = vmatprep.subr.bf16.mxu1 %v4829_v59  ;;  %v6647_v58 = vsub.s32 0, %v5644_v30  ;;  %v6650_v59 = vsub.s32 2, %v5644_v30 }
 0x27e   :  { %4880 = vmatmul.mubr.msk.bf16.vlgmr.msra.gmra.mrb[44].mxu0 %vm3520_vm0, %v6454_v15  ;;  %4881 = vmatmul.mubr.msk.bf16.vlgmr.msra.gmra.mrb[44].mxu1 %vm3520_vm0, %v6454_v15  ;;  %v3043_v62 = vrot.slane %v3032_v60, %v6647_v58 }
 0x27f   :  { %3853 = vmatpush1.bf16.msra.mxu0 %v4826_v0  ;;  %3894 = vmatpush1.bf16.msra.mxu1 %v4828_v1  ;;  %v3055_v0 = vrot.slane %v3032_v60, %v6659_v61 }
 0x280   :  { %3854 = vmatprep.subr.bf16.mxu0 %v4859_v2  ;;  %3895 = vmatprep.subr.bf16.mxu1 %v4861_v4 }
 0x281   :  { %3884 = vmatprep.mubr.bf16.mxu0 %v5524_v3  ;;  %3925 = vmatprep.mubr.bf16.mxu1 %v5524_v3 }
 0x283   :  { %3855 = vmatpush1.bf16.msra.mxu0 %v4858_v9  ;;  %3896 = vmatpush1.bf16.msra.mxu1 %v4860_v10  ;;  %v6669_v9 = vsub.s32 6, %v5644_v30 }
 0x284   :  { %3934 = vmatprep.subr.bf16.mxu0 %v4831_v11  ;;  %3975 = vmatprep.subr.bf16.mxu1 %v4833_v12 }
 0x286   :  { %4882 = vmatmul.mubr.msk.bf16.vlgmr.msra.gmra.mrb[48].mxu0 %vm3520_vm0, %v6454_v15  ;;  %4883 = vmatmul.mubr.msk.bf16.vlgmr.msra.gmra.mrb[48].mxu1 %vm3520_vm0, %v6454_v15 }
 0x287   :  { %3935 = vmatpush1.bf16.msra.mxu0 %v4830_v18  ;;  %3976 = vmatpush1.bf16.msra.mxu1 %v4832_v19 }
 0x288   :  { %3936 = vmatprep.subr.bf16.mxu0 %v4863_v20  ;;  %3977 = vmatprep.subr.bf16.mxu1 %v4865_v21 }
 0x289   :  { %3966 = vmatprep.mubr.bf16.mxu0 %v5524_v3  ;;  %4007 = vmatprep.mubr.bf16.mxu1 %v5524_v3 }
 0x28b   :  { %3937 = vmatpush1.bf16.msra.mxu0 %v4862_v26  ;;  %3978 = vmatpush1.bf16.msra.mxu1 %v4864_v27  ;;  %v3067_v26 = vrot.slane %v3032_v60, %v6669_v9 }
 0x28c   :  { %4016 = vmatprep.subr.bf16.mxu0 %v4835_v28  ;;  %4057 = vmatprep.subr.bf16.mxu1 %v4837_v29  ;;  %v3071_v29 = vrot.slane %v3032_v60, %v6675_v16 }
 0x28e   :  { %4884 = vmatmul.mubr.msk.bf16.vlgmr.msra.gmra.mrb[52].mxu0 %vm3520_vm0, %v6454_v15  ;;  %4885 = vmatmul.mubr.msk.bf16.vlgmr.msra.gmra.mrb[52].mxu1 %vm3520_vm0, %v6454_v15 }
 0x28f   :  { %4017 = vmatpush1.bf16.msra.mxu0 %v4834_v36  ;;  %4058 = vmatpush1.bf16.msra.mxu1 %v4836_v37 }
 0x290   :  { %4018 = vmatprep.subr.bf16.mxu0 %v4867_v38  ;;  %4059 = vmatprep.subr.bf16.mxu1 %v4869_v39 }
 0x291   :  { %4048 = vmatprep.mubr.bf16.mxu0 %v5524_v3  ;;  %4089 = vmatprep.mubr.bf16.mxu1 %v5524_v3 }
 0x293   :  { %4019 = vmatpush1.bf16.msra.mxu0 %v4866_v44  ;;  %4060 = vmatpush1.bf16.msra.mxu1 %v4868_v45 }
 0x294   :  { %4098 = vmatprep.subr.bf16.mxu0 %v4839_v46  ;;  %4139 = vmatprep.subr.bf16.mxu1 %v4841_v47  ;;  %v6686_v46 = vld [vmem:[%s6786_s5 + $0x8] sm:$0xff] }
 0x296   :  { %4886 = vmatmul.mubr.msk.bf16.vlgmr.msra.gmra.mrb[56].mxu0 %vm3520_vm0, %v6454_v15  ;;  %4887 = vmatmul.mubr.msk.bf16.vlgmr.msra.gmra.mrb[56].mxu1 %vm3520_vm0, %v6454_v15 }
 0x297   :  { %4099 = vmatpush1.bf16.msra.mxu0 %v4838_v52  ;;  %4140 = vmatpush1.bf16.msra.mxu1 %v4840_v53 }
 0x298   :  { %4100 = vmatprep.subr.bf16.mxu0 %v4871_v54  ;;  %4141 = vmatprep.subr.bf16.mxu1 %v4873_v55  ;;  %v3075_v55 = vrot.slane %v6686_v46, %v6647_v58 }
 0x299   :  { %4130 = vmatprep.mubr.bf16.mxu0 %v5524_v3  ;;  %4171 = vmatprep.mubr.bf16.mxu1 %v5524_v3  ;;  %v6656_v3 = vsub.s32 1, %v5644_v30  ;;  %v3063_v30 = vrot.slane %v3032_v60, %v6672_v14 }
 0x29b   :  { %4101 = vmatpush1.bf16.msra.mxu0 %v4870_v56  ;;  %4142 = vmatpush1.bf16.msra.mxu1 %v4872_v57  ;;  %v3047_v63 = vrot.slane %v3032_v60, %v6656_v3  ;;  %v3083_v56 = vrot.slane %v6686_v46, %v6650_v59 }
 0x29e   :  { %4888 = vmatmul.mubr.msk.bf16.vlgmr.msra.gmra.mrb[60].mxu0 %vm3520_vm0, %v6454_v15  ;;  %4889 = vmatmul.mubr.msk.bf16.vlgmr.msra.gmra.mrb[60].mxu1 %vm3520_vm0, %v6454_v15  ;;  %v3051_v15 = vrot.slane %v3032_v60, %v6650_v59 }
 0x339   :  { %v3558_v1 = vpop.f32.mrb[32].mxu0  ;;  %v3599_v2 = vpop.f32.mrb[32].mxu1 }
 0x33a   :  { %v3559_v4 = vadd.f32 %v3558_v1, %v3043_v62  ;;  %v3600_v5 = vadd.f32 %v3599_v2, %v3051_v15  ;;  %v3560_v6 = vpop.f32.mrb[33].mxu0  ;;  %v3601_v7 = vpop.f32.mrb[33].mxu1  ;;  %v3079_v62 = vrot.slane %v6686_v46, %v6656_v3  ;;  %v3087_v15 = vrot.slane %v6686_v46, %v6659_v61 }
 0x33b   :  { %v3561_v10 = vadd.f32 %v3560_v6, %v3047_v63  ;;  %v3602_v11 = vadd.f32 %v3601_v7, %v3055_v0  ;;  %v3562_v12 = vpop.f32.mrb[34].mxu0  ;;  %v3603_v13 = vpop.f32.mrb[34].mxu1 }
 0x33c   :  { %vm4180_vm1 = vcmp.ge.f32.partialorder %v3559_v4, 0.0  ;;  %v4212_v17 = vmul.f32 0.2, %v3559_v4  ;;  %vm4182_vm2 = vcmp.ge.f32.partialorder %v3600_v5, 0.0  ;;  %v4214_v18 = vmul.f32 0.2, %v3600_v5 }
 0x33d   :  { %vm4181_vm3 = vcmp.ge.f32.partialorder %v3561_v10, 0.0  ;;  %v4213_v19 = vmul.f32 0.2, %v3561_v10  ;;  %vm4183_vm4 = vcmp.ge.f32.partialorder %v3602_v11, 0.0  ;;  %v4215_v20 = vmul.f32 0.2, %v3602_v11 }
 0x33e   :  { %v4244_v21 = vsel %vm4180_vm1, %v3559_v4, %v4212_v17  ;;  %v4246_v22 = vsel %vm4182_vm2, %v3600_v5, %v4214_v18  ;;  %v3563_v23 = vpop.f32.mrb[35].mxu0  ;;  %v3604_v24 = vpop.f32.mrb[35].mxu1  ;;  %v3091_v12 = vrot.slane %v6686_v46, %v6666_v8 }
 0x33f   :  { %v4245_v27 = vsel %vm4181_vm3, %v3561_v10, %v4213_v19  ;;  %v4247_v28 = vsel %vm4183_vm4, %v3602_v11, %v4215_v20 }
 0x340   :  { %v4890_v31 = vpack.c.bf16 %v4245_v27, %v4244_v21  ;;  %v4891_v32 = vpack.c.bf16 %v4247_v28, %v4246_v22  ;;  %v3099_v21 = vrot.slane %v6686_v46, %v6669_v9 }
 0x341   :  { %v3640_v33 = vpop.f32.mrb[36].mxu0  ;;  %v3681_v34 = vpop.f32.mrb[36].mxu1 }
 0x342   :  { %v4351_v36 = vrot.slane %v4890_v31, %v5659_v35  ;;  %v4358_v37 = vrot.slane %v4891_v32, %v5659_v35  ;;  %v3641_v38 = vadd.f32 %v3640_v33, %v3059_v25  ;;  %v3682_v39 = vadd.f32 %v3681_v34, %v3067_v26  ;;  %v3642_v40 = vpop.f32.mrb[37].mxu0  ;;  %v3683_v41 = vpop.f32.mrb[37].mxu1 }
 0x343   :  { %v3643_v42 = vadd.f32 %v3642_v40, %v3063_v30  ;;  %v3684_v43 = vadd.f32 %v3683_v41, %v3071_v29  ;;  %v3644_v44 = vpop.f32.mrb[38].mxu0  ;;  %v3685_v45 = vpop.f32.mrb[38].mxu1  ;;  %v3095_v31 = vrot.slane %v6686_v46, %v6672_v14 }
 0x344   :  { %v4373_v47 = vcombine.low %v4351_v36, %v4358_v37  ;;  %vm4184_vm5 = vcmp.ge.f32.partialorder %v3641_v38, 0.0  ;;  %v4216_v48 = vmul.f32 0.2, %v3641_v38  ;;  %vm4186_vm6 = vcmp.ge.f32.partialorder %v3682_v39, 0.0  ;;  %v3645_v49 = vpop.f32.mrb[39].mxu0  ;;  %v3686_v50 = vpop.f32.mrb[39].mxu1 }
 0x345   :  { %v4218_v51 = vmul.f32 0.2, %v3682_v39  ;;  %vm4185_vm7 = vcmp.ge.f32.partialorder %v3643_v42, 0.0  ;;  %v4217_v52 = vmul.f32 0.2, %v3643_v42  ;;  %vm4187_vm8 = vcmp.ge.f32.partialorder %v3684_v43, 0.0 }
 0x346   :  { %v4248_v53 = vsel %vm4184_vm5, %v3641_v38, %v4216_v48  ;;  %v4219_v54 = vmul.f32 0.2, %v3684_v43  ;;  %v4381_v32 = vrot.slane %v4373_v47, %v5659_v35  ;;  %v3103_v36 = vrot.slane %v6686_v46, %v6675_v16 }
 0x347   :  { %v4250_v57 = vsel %vm4186_vm6, %v3682_v39, %v4218_v51  ;;  %v4249_v60 = vsel %vm4185_vm7, %v3643_v42, %v4217_v52  ;;  %v6711_v39 = vld [vmem:[%s6786_s5 + $0x10] sm:$0xff] }
 0x348   :  { %v4892_v63 = vpack.c.bf16 %v4249_v60, %v4248_v53  ;;  %v4251_v0 = vsel %vm4187_vm8, %v3684_v43, %v4219_v54  ;;  %v3107_v54 = vrot.slane %v6711_v39, %v6647_v58 }
 0x349   :  { %v4893_v1 = vpack.c.bf16 %v4251_v0, %v4250_v57  ;;  %v3722_v2 = vpop.f32.mrb[40].mxu0  ;;  %v3763_v4 = vpop.f32.mrb[40].mxu1 }
 0x34a   :  { %v4365_v5 = vrot.slane %v4892_v63, %v5659_v35  ;;  %v3723_v6 = vadd.f32 %v3722_v2, %v3075_v55  ;;  %v3764_v7 = vadd.f32 %v3763_v4, %v3083_v56  ;;  %v3724_v10 = vpop.f32.mrb[41].mxu0  ;;  %v3765_v11 = vpop.f32.mrb[41].mxu1  ;;  %v3115_v2 = vrot.slane %v6711_v39, %v6650_v59 }
 0x34b   :  { %v4372_v13 = vrot.slane %v4893_v1, %v5659_v35  ;;  %v3725_v17 = vadd.f32 %v3724_v10, %v3079_v62  ;;  %v3766_v18 = vadd.f32 %v3765_v11, %v3087_v15  ;;  %v3726_v19 = vpop.f32.mrb[42].mxu0  ;;  %v3767_v20 = vpop.f32.mrb[42].mxu1 }
 0x34c   :  { %vm4188_vm9 = vcmp.ge.f32.partialorder %v3723_v6, 0.0  ;;  %v4220_v22 = vmul.f32 0.2, %v3723_v6  ;;  %vm4190_vm10 = vcmp.ge.f32.partialorder %v3764_v7, 0.0  ;;  %v4222_v23 = vmul.f32 0.2, %v3764_v7 }
 0x34d   :  { %v4374_v24 = vcombine.low %v4365_v5, %v4372_v13  ;;  %vm4189_vm11 = vcmp.ge.f32.partialorder %v3725_v17, 0.0  ;;  %v4221_v25 = vmul.f32 0.2, %v3725_v17  ;;  %vm4191_vm12 = vcmp.ge.f32.partialorder %v3766_v18, 0.0  ;;  %v3727_v26 = vpop.f32.mrb[43].mxu0  ;;  %v3768_v27 = vpop.f32.mrb[43].mxu1 }
 0x34e   :  { %v4252_v28 = vsel %vm4188_vm9, %v3723_v6, %v4220_v22  ;;  %v4254_v30 = vsel %vm4190_vm10, %v3764_v7, %v4222_v23  ;;  %v4223_v29 = vmul.f32 0.2, %v3766_v18  ;;  %v3111_v5 = vrot.slane %v6711_v39, %v6656_v3 }
 0x34f   :  { %v4388_v33 = vrot.slane %v4374_v24, %v5659_v35  ;;  %v4253_v34 = vsel %vm4189_vm11, %v3725_v17, %v4221_v25  ;;  %v3119_v6 = vrot.slane %v6711_v39, %v6659_v61  ;;  %v3123_v22 = vrot.slane %v6711_v39, %v6666_v8 }
 0x350   :  { %v4894_v37 = vpack.c.bf16 %v4253_v34, %v4252_v28  ;;  %v4255_v38 = vsel %vm4191_vm12, %v3766_v18, %v4223_v29  ;;  %v3131_v28 = vrot.slane %v6711_v39, %v6669_v9 }
 0x351   :  { %v4389_v40 = vcombine.low %v4381_v32, %v4388_v33  ;;  %v4895_v41 = vpack.c.bf16 %v4255_v38, %v4254_v30  ;;  %v3804_v42 = vpop.f32.mrb[44].mxu0  ;;  %v3845_v43 = vpop.f32.mrb[44].mxu1 }
 0x352   :  { %v4400_v44 = vrot.slane %v4894_v37, %v5659_v35  ;;  %v3805_v45 = vadd.f32 %v3804_v42, %v3091_v12  ;;  %v3846_v47 = vadd.f32 %v3845_v43, %v3099_v21  ;;  %v3806_v48 = vpop.f32.mrb[45].mxu0  ;;  %v3847_v49 = vpop.f32.mrb[45].mxu1 }
 0x353   :  { %4541 = vst [vmem:[%s6787_s7] sm:$0xff] %v4389_v40  ;;  %v4407_v46 = vrot.slane %v4895_v41, %v5659_v35  ;;  %v3807_v50 = vadd.f32 %v3806_v48, %v3095_v31  ;;  %v3848_v51 = vadd.f32 %v3847_v49, %v3103_v36  ;;  %v3808_v52 = vpop.f32.mrb[46].mxu0  ;;  %v3849_v53 = vpop.f32.mrb[46].mxu1  ;;  %v3127_v40 = vrot.slane %v6711_v39, %v6672_v14  ;;  %v6741_v48 = vld [vmem:[%s6786_s5 + $0x18] sm:$0xff] }
 0x354   :  { %vm4192_vm13 = vcmp.ge.f32.partialorder %v3805_v45, 0.0  ;;  %v4224_v55 = vmul.f32 0.2, %v3805_v45  ;;  %vm4194_vm14 = vcmp.ge.f32.partialorder %v3846_v47, 0.0  ;;  %v4226_v56 = vmul.f32 0.2, %v3846_v47 }
 0x355   :  { %v4422_v57 = vcombine.low %v4400_v44, %v4407_v46  ;;  %vm4193_vm15 = vcmp.ge.f32.partialorder %v3807_v50, 0.0  ;;  %v4225_v60 = vmul.f32 0.2, %v3807_v50  ;;  %vm4195_vm0 = vcmp.ge.f32.partialorder %v3848_v51, 0.0  ;;  %v3809_v62 = vpop.f32.mrb[47].mxu0  ;;  %v3850_v15 = vpop.f32.mrb[47].mxu1 }
 0x356   :  { %v4256_v63 = vsel %vm4192_vm13, %v3805_v45, %v4224_v55  ;;  %v4258_v0 = vsel %vm4194_vm14, %v3846_v47, %v4226_v56  ;;  %v4227_v1 = vmul.f32 0.2, %v3848_v51  ;;  %v3135_v44 = vrot.slane %v6711_v39, %v6675_v16 }
 0x357   :  { %v4257_v4 = vsel %vm4193_vm15, %v3807_v50, %v4225_v60  ;;  %v4430_v41 = vrot.slane %v4422_v57, %v5659_v35 }
 0x358   :  { %v4896_v7 = vpack.c.bf16 %v4257_v4, %v4256_v63  ;;  %v4259_v10 = vsel %vm4195_vm0, %v3848_v51, %v4227_v1  ;;  %v3139_v63 = vrot.slane %v6741_v48, %v6647_v58  ;;  %v3143_v58 = vrot.slane %v6741_v48, %v6656_v3 }
 0x359   :  { %v4897_v11 = vpack.c.bf16 %v4259_v10, %v4258_v0  ;;  %v3886_v12 = vpop.f32.mrb[48].mxu0  ;;  %v3927_v13 = vpop.f32.mrb[48].mxu1 }
 0x35a   :  { %v4414_v17 = vrot.slane %v4896_v7, %v5659_v35  ;;  %v3887_v18 = vadd.f32 %v3886_v12, %v3107_v54  ;;  %v3928_v19 = vadd.f32 %v3927_v13, %v3115_v2  ;;  %v3888_v20 = vpop.f32.mrb[49].mxu0  ;;  %v3929_v21 = vpop.f32.mrb[49].mxu1  ;;  %v3147_v12 = vrot.slane %v6741_v48, %v6650_v59 }
 0x35b   :  { %v4421_v23 = vrot.slane %v4897_v11, %v5659_v35  ;;  %v3889_v24 = vadd.f32 %v3888_v20, %v3111_v5  ;;  %v3930_v25 = vadd.f32 %v3929_v21, %v3119_v6  ;;  %v3890_v26 = vpop.f32.mrb[50].mxu0  ;;  %v3931_v27 = vpop.f32.mrb[50].mxu1  ;;  %v3155_v59 = vrot.slane %v6741_v48, %v6666_v8 }
 0x35c   :  { %vm4196_vm1 = vcmp.ge.f32.partialorder %v3887_v18, 0.0  ;;  %v4228_v30 = vmul.f32 0.2, %v3887_v18  ;;  %vm4198_vm2 = vcmp.ge.f32.partialorder %v3928_v19, 0.0  ;;  %v4230_v29 = vmul.f32 0.2, %v3928_v19 }
 0x35d   :  { %v4423_v31 = vcombine.low %v4414_v17, %v4421_v23  ;;  %vm4197_vm3 = vcmp.ge.f32.partialorder %v3889_v24, 0.0  ;;  %v4229_v32 = vmul.f32 0.2, %v3889_v24  ;;  %vm4199_vm4 = vcmp.ge.f32.partialorder %v3930_v25, 0.0  ;;  %v3891_v33 = vpop.f32.mrb[51].mxu0  ;;  %v3932_v34 = vpop.f32.mrb[51].mxu1 }
 0x35e   :  { %v4260_v36 = vsel %vm4196_vm1, %v3887_v18, %v4228_v30  ;;  %v4262_v37 = vsel %vm4198_vm2, %v3928_v19, %v4230_v29  ;;  %v4231_v38 = vmul.f32 0.2, %v3930_v25  ;;  %v3151_v17 = vrot.slane %v6741_v48, %v6659_v61 }
 0x35f   :  { %v4437_v42 = vrot.slane %v4423_v31, %v5659_v35  ;;  %v4261_v43 = vsel %vm4197_vm3, %v3889_v24, %v4229_v32  ;;  %v3163_v31 = vrot.slane %v6741_v48, %v6669_v9 }
 0x360   :  { %v4898_v45 = vpack.c.bf16 %v4261_v43, %v4260_v36  ;;  %v4263_v47 = vsel %vm4199_vm4, %v3930_v25, %v4231_v38 }
 0x361   :  { %v4438_v49 = vcombine.low %v4430_v41, %v4437_v42  ;;  %v4899_v46 = vpack.c.bf16 %v4263_v47, %v4262_v37  ;;  %v3968_v50 = vpop.f32.mrb[52].mxu0  ;;  %v4009_v51 = vpop.f32.mrb[52].mxu1  ;;  %v3159_v42 = vrot.slane %v6741_v48, %v6672_v14 }
 0x362   :  { %v4449_v52 = vrot.slane %v4898_v45, %v5659_v35  ;;  %v3969_v53 = vadd.f32 %v3968_v50, %v3123_v22  ;;  %v4010_v54 = vadd.f32 %v4009_v51, %v3131_v28  ;;  %v3970_v55 = vpop.f32.mrb[53].mxu0  ;;  %v4011_v56 = vpop.f32.mrb[53].mxu1  ;;  %v3167_v45 = vrot.slane %v6741_v48, %v6675_v16 }
 0x363   :  { %4542 = vst [vmem:[%s6787_s7 + $0x8] sm:$0xff] %v4438_v49  ;;  %v4456_v39 = vrot.slane %v4899_v46, %v5659_v35  ;;  %v3971_v57 = vadd.f32 %v3970_v55, %v3127_v40  ;;  %v4012_v60 = vadd.f32 %v4011_v56, %v3135_v44  ;;  %v3972_v62 = vpop.f32.mrb[54].mxu0  ;;  %v4013_v15 = vpop.f32.mrb[54].mxu1 }
 0x364   :  { %vm4200_vm5 = vcmp.ge.f32.partialorder %v3969_v53, 0.0  ;;  %v4232_v0 = vmul.f32 0.2, %v3969_v53  ;;  %vm4202_vm6 = vcmp.ge.f32.partialorder %v4010_v54, 0.0  ;;  %v4234_v1 = vmul.f32 0.2, %v4010_v54 }
 0x365   :  { %v4471_v2 = vcombine.low %v4449_v52, %v4456_v39  ;;  %vm4201_vm7 = vcmp.ge.f32.partialorder %v3971_v57, 0.0  ;;  %v4233_v4 = vmul.f32 0.2, %v3971_v57  ;;  %vm4203_vm8 = vcmp.ge.f32.partialorder %v4012_v60, 0.0  ;;  %v3973_v5 = vpop.f32.mrb[55].mxu0  ;;  %v4014_v6 = vpop.f32.mrb[55].mxu1 }
 0x366   :  { %v4264_v7 = vsel %vm4200_vm5, %v3969_v53, %v4232_v0  ;;  %v4266_v10 = vsel %vm4202_vm6, %v4010_v54, %v4234_v1  ;;  %v4235_v11 = vmul.f32 0.2, %v4012_v60 }
 0x367   :  { %v4265_v13 = vsel %vm4201_vm7, %v3971_v57, %v4233_v4  ;;  %v4479_v43 = vrot.slane %v4471_v2, %v5659_v35 }
 0x368   :  { %v4900_v18 = vpack.c.bf16 %v4265_v13, %v4264_v7  ;;  %v4267_v19 = vsel %vm4203_vm8, %v4012_v60, %v4235_v11 }
 0x369   :  { %v4901_v20 = vpack.c.bf16 %v4267_v19, %v4266_v10  ;;  %v4050_v21 = vpop.f32.mrb[56].mxu0  ;;  %v4091_v22 = vpop.f32.mrb[56].mxu1 }
 0x36a   :  { %v4463_v23 = vrot.slane %v4900_v18, %v5659_v35  ;;  %v4051_v24 = vadd.f32 %v4050_v21, %v3139_v63  ;;  %v4092_v25 = vadd.f32 %v4091_v22, %v3147_v12  ;;  %v4052_v26 = vpop.f32.mrb[57].mxu0  ;;  %v4093_v27 = vpop.f32.mrb[57].mxu1 }
 0x36b   :  { %v4470_v28 = vrot.slane %v4901_v20, %v5659_v35  ;;  %v4053_v3 = vadd.f32 %v4052_v26, %v3143_v58  ;;  %v4094_v30 = vadd.f32 %v4093_v27, %v3151_v17  ;;  %v4054_v29 = vpop.f32.mrb[58].mxu0  ;;  %v4095_v61 = vpop.f32.mrb[58].mxu1 }
 0x36c   :  { %vm4204_vm9 = vcmp.ge.f32.partialorder %v4051_v24, 0.0  ;;  %v4236_v32 = vmul.f32 0.2, %v4051_v24  ;;  %vm4206_vm10 = vcmp.ge.f32.partialorder %v4092_v25, 0.0  ;;  %v4238_v33 = vmul.f32 0.2, %v4092_v25 }
 0x36d   :  { %v4472_v34 = vcombine.low %v4463_v23, %v4470_v28  ;;  %vm4205_vm11 = vcmp.ge.f32.partialorder %v4053_v3, 0.0  ;;  %v4237_v36 = vmul.f32 0.2, %v4053_v3  ;;  %vm4207_vm12 = vcmp.ge.f32.partialorder %v4094_v30, 0.0  ;;  %v4055_v37 = vpop.f32.mrb[59].mxu0  ;;  %v4096_v38 = vpop.f32.mrb[59].mxu1 }
 0x36e   :  { %v4268_v8 = vsel %vm4204_vm9, %v4051_v24, %v4236_v32  ;;  %v4270_v40 = vsel %vm4206_vm10, %v4092_v25, %v4238_v33  ;;  %v4239_v41 = vmul.f32 0.2, %v4094_v30 }
 0x36f   :  { %v4486_v9 = vrot.slane %v4472_v34, %v5659_v35  ;;  %v4269_v44 = vsel %vm4205_vm11, %v4053_v3, %v4237_v36 }
 0x370   :  { %v4902_v47 = vpack.c.bf16 %v4269_v44, %v4268_v8  ;;  %v4271_v49 = vsel %vm4207_vm12, %v4094_v30, %v4239_v41 }
 0x371   :  { %v4487_v46 = vcombine.low %v4479_v43, %v4486_v9  ;;  %v4903_v50 = vpack.c.bf16 %v4271_v49, %v4270_v40  ;;  %v4132_v51 = vpop.f32.mrb[60].mxu0  ;;  %v4173_v52 = vpop.f32.mrb[60].mxu1 }
 0x372   :  { %v4498_v53 = vrot.slane %v4902_v47, %v5659_v35  ;;  %v4133_v54 = vadd.f32 %v4132_v51, %v3155_v59  ;;  %v4174_v55 = vadd.f32 %v4173_v52, %v3163_v31  ;;  %v4134_v56 = vpop.f32.mrb[61].mxu0  ;;  %v4175_v14 = vpop.f32.mrb[61].mxu1 }
 0x373   :  { %4543 = vst [vmem:[%s6787_s7 + $0x10] sm:$0xff] %v4487_v46  ;;  %v4505_v39 = vrot.slane %v4903_v50, %v5659_v35  ;;  %v4135_v57 = vadd.f32 %v4134_v56, %v3159_v42  ;;  %v4176_v16 = vadd.f32 %v4175_v14, %v3167_v45  ;;  %v4136_v48 = vpop.f32.mrb[62].mxu0  ;;  %v4177_v60 = vpop.f32.mrb[62].mxu1 }
 0x374   :  { %vm4208_vm13 = vcmp.ge.f32.partialorder %v4133_v54, 0.0  ;;  %v4240_v62 = vmul.f32 0.2, %v4133_v54  ;;  %vm4210_vm14 = vcmp.ge.f32.partialorder %v4174_v55, 0.0  ;;  %v4242_v15 = vmul.f32 0.2, %v4174_v55 }
 0x375   :  { %v4520_v63 = vcombine.low %v4498_v53, %v4505_v39  ;;  %vm4209_vm15 = vcmp.ge.f32.partialorder %v4135_v57, 0.0  ;;  %v4241_v0 = vmul.f32 0.2, %v4135_v57  ;;  %vm4211_vm0 = vcmp.ge.f32.partialorder %v4176_v16, 0.0  ;;  %v4137_v1 = vpop.f32.mrb[63].mxu0  ;;  %v4178_v2 = vpop.f32.mrb[63].mxu1 }
 0x376   :  { %v4272_v4 = vsel %vm4208_vm13, %v4133_v54, %v4240_v62  ;;  %v4274_v5 = vsel %vm4210_vm14, %v4174_v55, %v4242_v15  ;;  %v4243_v6 = vmul.f32 0.2, %v4176_v16 }
 0x377   :  { %v4273_v7 = vsel %vm4209_vm15, %v4135_v57, %v4241_v0  ;;  %v4528_v18 = vrot.slane %v4520_v63, %v5659_v35 }
 0x378   :  { %v4904_v10 = vpack.c.bf16 %v4273_v7, %v4272_v4  ;;  %v4275_v11 = vsel %vm4211_vm0, %v4176_v16, %v4243_v6 }
 0x379   :  { %v4905_v12 = vpack.c.bf16 %v4275_v11, %v4274_v5 }
 0x37a   :  { %v4512_v13 = vrot.slane %v4904_v10, %v5659_v35 }
 0x37b   :  { %v4519_v58 = vrot.slane %v4905_v12, %v5659_v35 }
 0x37d   :  { %v4521_v17 = vcombine.low %v4512_v13, %v4519_v58 }
 0x37f   :  { %v4535_v19 = vrot.slane %v4521_v17, %v5659_v35 }
 0x381   :  { %v4536_v20 = vcombine.low %v4528_v18, %v4535_v19 }
 0x383   :  { %4544 = vst [vmem:[%s6787_s7 + $0x18] sm:$0xff] %v4536_v20 }

// kernel: vae_forward.8
= control target key start
LH: loop header
LB: loop body
LE: loop exit
PB: predicated region body
PF: predicated region fallthrough
CT: control target
= control target key end

     0   :  { %s6392_s1 = inlined_call_operand.vmem [shape: bf16[4,1024,128], index: 1, kind: input, shape index: {}]   ;;  %s6393_s0 = inlined_call_operand.vmem [shape: bf16[4,32,1024], index: 0, kind: input, shape index: {}]   ;;  %s6394_s2 = inlined_call_operand.vmem [shape: f32[1,128], index: 2, kind: input, shape index: {}]   ;;  %s6395_s3 = inlined_call_operand.vmem [shape: f32[1,128], index: 3, kind: input, shape index: {}]   ;;  %s6396_s4 = inlined_call_operand.vmem [shape: f32[1,128], index: 4, kind: input, shape index: {}]   ;;  %s6397_s5 = inlined_call_operand.vmem [shape: bf16[128,128], index: 5, kind: output, shape index: {}]  }
   0x1   :  { %v4891_v0 = vld [vmem:[%s6392_s1 + $0x40] sm:$0xff]   ;;  %v4895_v4 = vld [vmem:[%s6392_s1 + $0x48] sm:$0xff]   ;;  %v4899_v8 = vld [vmem:[%s6392_s1 + $0x50] sm:$0xff]  }
   0x2   :  { %v4892_v1 = vld [vmem:[%s6392_s1 + $0xc0] sm:$0xff]   ;;  %4443 = vmatprep.subr.bf16.mxu0 %v4891_v0  ;;  %v4896_v5 = vld [vmem:[%s6392_s1 + $0xc8] sm:$0xff]   ;;  %v4900_v9 = vld [vmem:[%s6392_s1 + $0xd0] sm:$0xff]  }
   0x3   :  { %v4893_v2 = vld [vmem:[%s6392_s1] sm:$0xff]   ;;  %4471 = vmatprep.subr.bf16.mxu1 %v4892_v1  ;;  %v4897_v6 = vld [vmem:[%s6392_s1 + $0x8] sm:$0xff]   ;;  %v4901_v10 = vld [vmem:[%s6392_s1 + $0x10] sm:$0xff]  }
   0x4   :  { %v4894_v3 = vld [vmem:[%s6392_s1 + $0x80] sm:$0xff]   ;;  %4444 = vmatpush3.bf16.msra.mxu0 %v4893_v2  ;;  %v4898_v7 = vld [vmem:[%s6392_s1 + $0x88] sm:$0xff]   ;;  %v4902_v11 = vld [vmem:[%s6392_s1 + $0x90] sm:$0xff]  }
   0x5   :  { %4472 = vmatpush3.bf16.msra.mxu1 %v4894_v3  ;;  %4445 = vmatprep.subr.bf16.mxu0 %v4895_v4  ;;  %v4903_v12 = vld [vmem:[%s6392_s1 + $0x58] sm:$0xff]   ;;  %v4907_v16 = vld [vmem:[%s6392_s1 + $0x60] sm:$0xff]   ;;  %v4911_v20 = vld [vmem:[%s6392_s1 + $0x68] sm:$0xff]  }
   0x6   :  { %4473 = vmatprep.subr.bf16.mxu1 %v4896_v5  ;;  %v4904_v13 = vld [vmem:[%s6392_s1 + $0xd8] sm:$0xff]   ;;  %v4908_v17 = vld [vmem:[%s6392_s1 + $0xe0] sm:$0xff]   ;;  %v4912_v21 = vld [vmem:[%s6392_s1 + $0xe8] sm:$0xff]  }
   0x7   :  { %v4905_v14 = vld [vmem:[%s6392_s1 + $0x18] sm:$0xff]   ;;  %v4909_v18 = vld [vmem:[%s6392_s1 + $0x20] sm:$0xff]   ;;  %v4913_v22 = vld [vmem:[%s6392_s1 + $0x28] sm:$0xff]  }
   0x8   :  { %4446 = vmatpush3.bf16.msra.mxu0 %v4897_v6  ;;  %v4906_v15 = vld [vmem:[%s6392_s1 + $0x98] sm:$0xff]   ;;  %v4910_v19 = vld [vmem:[%s6392_s1 + $0xa0] sm:$0xff]   ;;  %v4914_v23 = vld [vmem:[%s6392_s1 + $0xa8] sm:$0xff]  }
   0x9   :  { %4474 = vmatpush3.bf16.msra.mxu1 %v4898_v7  ;;  %4447 = vmatprep.subr.bf16.mxu0 %v4899_v8  ;;  %v4915_v24 = vld [vmem:[%s6392_s1 + $0x70] sm:$0xff]   ;;  %v4919_v28 = vld [vmem:[%s6392_s1 + $0x78] sm:$0xff]   ;;  %v21_v32 = vld [vmem:[%s6393_s0] sm:$0xff] }
   0xa   :  { %4475 = vmatprep.subr.bf16.mxu1 %v4900_v9  ;;  %v4916_v25 = vld [vmem:[%s6392_s1 + $0xf0] sm:$0xff]   ;;  %v4920_v29 = vld [vmem:[%s6392_s1 + $0xf8] sm:$0xff]   ;;  %v25_v33 = vld [vmem:[%s6393_s0 + $0x20] sm:$0xff] }
   0xb   :  { %v4917_v26 = vld [vmem:[%s6392_s1 + $0x30] sm:$0xff]   ;;  %v4921_v30 = vld [vmem:[%s6392_s1 + $0x38] sm:$0xff]   ;;  %v22_v34 = vld [vmem:[%s6393_s0 + $0x8] sm:$0xff]  ;;  %v3604_v35 = vcombine.low %v21_v32, %v25_v33  ;;  %v3605_v36 = vcombine.high %v21_v32, %v25_v33 }
   0xc   :  { %4448 = vmatpush3.bf16.msra.mxu0 %v4901_v10  ;;  %v4918_v27 = vld [vmem:[%s6392_s1 + $0xb0] sm:$0xff]   ;;  %v4922_v31 = vld [vmem:[%s6392_s1 + $0xb8] sm:$0xff]   ;;  %v26_v37 = vld [vmem:[%s6393_s0 + $0x28] sm:$0xff] }
   0xd   :  { %4476 = vmatpush3.bf16.msra.mxu1 %v4902_v11  ;;  %4449 = vmatprep.subr.bf16.mxu0 %v4903_v12  ;;  %v3606_v38 = vcombine.low %v22_v34, %v26_v37  ;;  %v3607_v39 = vcombine.high %v22_v34, %v26_v37  ;;  %v4923_v40 = vld [vmem:[%s6392_s1 + $0x140] sm:$0xff]   ;;  %v4927_v44 = vld [vmem:[%s6392_s1 + $0x148] sm:$0xff]   ;;  %v4931_v48 = vld [vmem:[%s6392_s1 + $0x150] sm:$0xff]  }
   0xe   :  { %4477 = vmatprep.subr.bf16.mxu1 %v4904_v13  ;;  %668 = vmatprep.mubr.bf16.mxu0 %v3605_v36  ;;  %v4924_v41 = vld [vmem:[%s6392_s1 + $0x1c0] sm:$0xff]   ;;  %v4928_v45 = vld [vmem:[%s6392_s1 + $0x1c8] sm:$0xff]   ;;  %v4932_v49 = vld [vmem:[%s6392_s1 + $0x1d0] sm:$0xff]  }
   0xf   :  { %717 = vmatprep.mubr.bf16.mxu1 %v3607_v39  ;;  %v4925_v42 = vld [vmem:[%s6392_s1 + $0x100] sm:$0xff]   ;;  %v4929_v46 = vld [vmem:[%s6392_s1 + $0x108] sm:$0xff]   ;;  %v4933_v50 = vld [vmem:[%s6392_s1 + $0x110] sm:$0xff]  }
  0x10   :  { %4450 = vmatpush3.bf16.msra.mxu0 %v4905_v14  ;;  %v4926_v43 = vld [vmem:[%s6392_s1 + $0x180] sm:$0xff]   ;;  %v4930_v47 = vld [vmem:[%s6392_s1 + $0x188] sm:$0xff]   ;;  %v4934_v51 = vld [vmem:[%s6392_s1 + $0x190] sm:$0xff]  }
  0x11   :  { %4478 = vmatpush3.bf16.msra.mxu1 %v4906_v15  ;;  %4451 = vmatprep.subr.bf16.mxu0 %v4907_v16  ;;  %v4935_v52 = vld [vmem:[%s6392_s1 + $0x158] sm:$0xff]   ;;  %v4939_v56 = vld [vmem:[%s6392_s1 + $0x160] sm:$0xff]   ;;  %v4943_v60 = vld [vmem:[%s6392_s1 + $0x168] sm:$0xff]  }
  0x12   :  { %4479 = vmatprep.subr.bf16.mxu1 %v4908_v17  ;;  %v4936_v53 = vld [vmem:[%s6392_s1 + $0x1d8] sm:$0xff]   ;;  %v4940_v57 = vld [vmem:[%s6392_s1 + $0x1e0] sm:$0xff]   ;;  %v4944_v61 = vld [vmem:[%s6392_s1 + $0x1e8] sm:$0xff]  }
  0x13   :  { %v4937_v54 = vld [vmem:[%s6392_s1 + $0x118] sm:$0xff]   ;;  %v4941_v58 = vld [vmem:[%s6392_s1 + $0x120] sm:$0xff]   ;;  %v4945_v1 = vld [vmem:[%s6392_s1 + $0x128] sm:$0xff]  }
  0x14   :  { %4452 = vmatpush3.bf16.msra.mxu0 %v4909_v18  ;;  %v4938_v55 = vld [vmem:[%s6392_s1 + $0x198] sm:$0xff]   ;;  %v4942_v59 = vld [vmem:[%s6392_s1 + $0x1a0] sm:$0xff]   ;;  %v4946_v3 = vld [vmem:[%s6392_s1 + $0x1a8] sm:$0xff]  }
  0x15   :  { %4480 = vmatpush3.bf16.msra.mxu1 %v4910_v19  ;;  %4453 = vmatprep.subr.bf16.mxu0 %v4911_v20  ;;  %v29_v62 = vld [vmem:[%s6393_s0 + $0x40] sm:$0xff]  ;;  %v30_v4 = vld [vmem:[%s6393_s0 + $0x48] sm:$0xff]  ;;  %v4947_v8 = vld [vmem:[%s6392_s1 + $0x170] sm:$0xff]  }
  0x16   :  { %4481 = vmatprep.subr.bf16.mxu1 %v4912_v21  ;;  %v33_v63 = vld [vmem:[%s6393_s0 + $0x60] sm:$0xff]  ;;  %v34_v5 = vld [vmem:[%s6393_s0 + $0x68] sm:$0xff]  ;;  %v4948_v9 = vld [vmem:[%s6392_s1 + $0x1f0] sm:$0xff]  }
  0x17   :  { %v3613_v0 = vcombine.high %v29_v62, %v33_v63  ;;  %v3612_v2 = vcombine.low %v29_v62, %v33_v63  ;;  %v3615_v6 = vcombine.high %v30_v4, %v34_v5  ;;  %v3614_v7 = vcombine.low %v30_v4, %v34_v5  ;;  %v4949_v10 = vld [vmem:[%s6392_s1 + $0x130] sm:$0xff]   ;;  %v4951_v12 = vld [vmem:[%s6392_s1 + $0x178] sm:$0xff]   ;;  %v3685_v4 = vld [vmem:[%s6393_s0 + $0x88] sm:$0xff] }
  0x18   :  { %4454 = vmatpush3.bf16.msra.mxu0 %v4913_v22  ;;  %v4950_v11 = vld [vmem:[%s6392_s1 + $0x1b0] sm:$0xff]   ;;  %v4952_v13 = vld [vmem:[%s6392_s1 + $0x1f8] sm:$0xff]   ;;  %v3689_v5 = vld [vmem:[%s6393_s0 + $0xa8] sm:$0xff] }
  0x19   :  { %4482 = vmatpush3.bf16.msra.mxu1 %v4914_v23  ;;  %4455 = vmatprep.subr.bf16.mxu0 %v4915_v24  ;;  %v4953_v14 = vld [vmem:[%s6392_s1 + $0x138] sm:$0xff]   ;;  %v23_v16 = vld [vmem:[%s6393_s0 + $0x10] sm:$0xff]  ;;  %v4955_v24 = vld [vmem:[%s6392_s1 + $0x240] sm:$0xff]  }
  0x1a   :  { %4483 = vmatprep.subr.bf16.mxu1 %v4916_v25  ;;  %v4954_v15 = vld [vmem:[%s6392_s1 + $0x1b8] sm:$0xff]   ;;  %v27_v17 = vld [vmem:[%s6393_s0 + $0x30] sm:$0xff]  ;;  %v4956_v25 = vld [vmem:[%s6392_s1 + $0x2c0] sm:$0xff]  }
  0x1b   :  { %v24_v18 = vld [vmem:[%s6393_s0 + $0x18] sm:$0xff]  ;;  %v3608_v20 = vcombine.low %v23_v16, %v27_v17  ;;  %v3609_v21 = vcombine.high %v23_v16, %v27_v17  ;;  %v31_v32 = vld [vmem:[%s6393_s0 + $0x50] sm:$0xff] }
  0x1c   :  { %4456 = vmatpush3.bf16.msra.mxu0 %v4917_v26  ;;  %v28_v19 = vld [vmem:[%s6393_s0 + $0x38] sm:$0xff]  ;;  %v4957_v26 = vld [vmem:[%s6392_s1 + $0x200] sm:$0xff]   ;;  %v35_v33 = vld [vmem:[%s6393_s0 + $0x70] sm:$0xff] }
  0x1d   :  { %4484 = vmatpush3.bf16.msra.mxu1 %v4918_v27  ;;  %4457 = vmatprep.subr.bf16.mxu0 %v4919_v28  ;;  %v3610_v22 = vcombine.low %v24_v18, %v28_v19  ;;  %v3611_v23 = vcombine.high %v24_v18, %v28_v19  ;;  %v4958_v27 = vld [vmem:[%s6392_s1 + $0x280] sm:$0xff]   ;;  %v4959_v28 = vld [vmem:[%s6392_s1 + $0x248] sm:$0xff]   ;;  %v3617_v34 = vcombine.high %v31_v32, %v35_v33  ;;  %v4963_v36 = vld [vmem:[%s6392_s1 + $0x250] sm:$0xff]  }
  0x1e   :  { %4485 = vmatprep.subr.bf16.mxu1 %v4920_v29  ;;  %v4960_v29 = vld [vmem:[%s6392_s1 + $0x2c8] sm:$0xff]   ;;  %v4964_v37 = vld [vmem:[%s6392_s1 + $0x2d0] sm:$0xff]   ;;  %v36_v39 = vld [vmem:[%s6393_s0 + $0x78] sm:$0xff] }
  0x1f   :  { %v4985_v62 = vld [vmem:[%s6392_s1 + $0x238] sm:$0xff]   ;;  %v4995_v16 = vld [vmem:[%s6392_s1 + $0x350] sm:$0xff]  }
  0x20   :  { %4458 = vmatpush3.bf16.msra.mxu0 %v4921_v30  ;;  %v4961_v30 = vld [vmem:[%s6392_s1 + $0x208] sm:$0xff]   ;;  %v4986_v63 = vld [vmem:[%s6392_s1 + $0x2b8] sm:$0xff]   ;;  %v4996_v17 = vld [vmem:[%s6392_s1 + $0x3d0] sm:$0xff]  }
  0x21   :  { %4486 = vmatpush3.bf16.msra.mxu1 %v4922_v31  ;;  %4499 = vmatprep.subr.bf16.mxu0 %v4923_v40  ;;  %v4962_v31 = vld [vmem:[%s6392_s1 + $0x288] sm:$0xff]   ;;  %v4997_v18 = vld [vmem:[%s6392_s1 + $0x310] sm:$0xff]  }
  0x22   :  { %4527 = vmatprep.subr.bf16.mxu1 %v4924_v41  ;;  %v4965_v41 = vld [vmem:[%s6392_s1 + $0x210] sm:$0xff]  }
  0x23   :  { %669 = vmatmul.mubr.bf16.vlgmr.msra.gmra.mrb[0].mxu0 %v3604_v35  ;;  %v3616_v35 = vcombine.low %v31_v32, %v35_v33  ;;  %v4998_v19 = vld [vmem:[%s6392_s1 + $0x390] sm:$0xff]   ;;  %v5009_v33 = vld [vmem:[%s6392_s1 + $0x328] sm:$0xff]  }
  0x24   :  { %718 = vmatmul.mubr.bf16.vlgmr.msra.gmra.mrb[0].mxu1 %v3606_v38  ;;  %4500 = vmatpush3.bf16.msra.mxu0 %v4925_v42  ;;  %v32_v38 = vld [vmem:[%s6393_s0 + $0x58] sm:$0xff] }
  0x25   :  { %4528 = vmatpush3.bf16.msra.mxu1 %v4926_v43  ;;  %4501 = vmatprep.subr.bf16.mxu0 %v4927_v44  ;;  %v3619_v40 = vcombine.high %v32_v38, %v36_v39  ;;  %v3618_v42 = vcombine.low %v32_v38, %v36_v39  ;;  %v4966_v43 = vld [vmem:[%s6392_s1 + $0x290] sm:$0xff]   ;;  %v4967_v44 = vld [vmem:[%s6392_s1 + $0x258] sm:$0xff]  }
  0x26   :  { %4529 = vmatprep.subr.bf16.mxu1 %v4928_v45  ;;  %676 = vmatprep.mubr.bf16.mxu0 %v3613_v0  ;;  %v4968_v45 = vld [vmem:[%s6392_s1 + $0x2d8] sm:$0xff]   ;;  %v3684_v0 = vld [vmem:[%s6393_s0 + $0x80] sm:$0xff] }
  0x27   :  { %725 = vmatprep.mubr.bf16.mxu1 %v3615_v6  ;;  %v3830_v6 = vcombine.low %v3685_v4, %v3689_v5 }
  0x28   :  { %4502 = vmatpush3.bf16.msra.mxu0 %v4929_v46  ;;  %v4969_v46 = vld [vmem:[%s6392_s1 + $0x218] sm:$0xff]  }
  0x29   :  { %4530 = vmatpush3.bf16.msra.mxu1 %v4930_v47  ;;  %4503 = vmatprep.subr.bf16.mxu0 %v4931_v48  ;;  %v4970_v47 = vld [vmem:[%s6392_s1 + $0x298] sm:$0xff]   ;;  %v4971_v48 = vld [vmem:[%s6392_s1 + $0x260] sm:$0xff]  }
  0x2a   :  { %4531 = vmatprep.subr.bf16.mxu1 %v4932_v49  ;;  %v4972_v49 = vld [vmem:[%s6392_s1 + $0x2e0] sm:$0xff]  }
  0x2b   :  { %677 = vmatmul.mubr.bf16.gmra.mrb[4].mxu0 %v3612_v2 }
  0x2c   :  { %4504 = vmatpush3.bf16.msra.mxu0 %v4933_v50  ;;  %726 = vmatmul.mubr.bf16.gmra.mrb[4].mxu1 %v3614_v7  ;;  %v4973_v50 = vld [vmem:[%s6392_s1 + $0x220] sm:$0xff]   ;;  %v3831_v7 = vcombine.high %v3685_v4, %v3689_v5  ;;  %v5027_v4 = vld [vmem:[%s6392_s1 + $0x450] sm:$0xff]  }
  0x2d   :  { %4532 = vmatpush3.bf16.msra.mxu1 %v4934_v51  ;;  %4505 = vmatprep.subr.bf16.mxu0 %v4935_v52  ;;  %v4974_v51 = vld [vmem:[%s6392_s1 + $0x2a0] sm:$0xff]   ;;  %v4975_v52 = vld [vmem:[%s6392_s1 + $0x268] sm:$0xff]   ;;  %v5028_v5 = vld [vmem:[%s6392_s1 + $0x4d0] sm:$0xff]  }
  0x2e   :  { %4533 = vmatprep.subr.bf16.mxu1 %v4936_v53  ;;  %766 = vmatprep.mubr.bf16.mxu0 %v3609_v21  ;;  %v4976_v53 = vld [vmem:[%s6392_s1 + $0x2e8] sm:$0xff]   ;;  %v5000_v21 = vld [vmem:[%s6392_s1 + $0x3d8] sm:$0xff]  }
  0x2f   :  { %815 = vmatprep.mubr.bf16.mxu1 %v3611_v23  ;;  %v5002_v23 = vld [vmem:[%s6392_s1 + $0x398] sm:$0xff]  }
  0x30   :  { %4506 = vmatpush3.bf16.msra.mxu0 %v4937_v54  ;;  %v4977_v54 = vld [vmem:[%s6392_s1 + $0x228] sm:$0xff]  }
  0x31   :  { %4534 = vmatpush3.bf16.msra.mxu1 %v4938_v55  ;;  %4507 = vmatprep.subr.bf16.mxu0 %v4939_v56  ;;  %v4978_v55 = vld [vmem:[%s6392_s1 + $0x2a8] sm:$0xff]   ;;  %v4979_v56 = vld [vmem:[%s6392_s1 + $0x270] sm:$0xff]  }
  0x32   :  { %4535 = vmatprep.subr.bf16.mxu1 %v4940_v57  ;;  %v4980_v57 = vld [vmem:[%s6392_s1 + $0x2f0] sm:$0xff]  }
  0x34   :  { %4508 = vmatpush3.bf16.msra.mxu0 %v4941_v58  ;;  %v4981_v58 = vld [vmem:[%s6392_s1 + $0x230] sm:$0xff]  }
  0x35   :  { %4536 = vmatpush3.bf16.msra.mxu1 %v4942_v59  ;;  %4509 = vmatprep.subr.bf16.mxu0 %v4943_v60  ;;  %v4982_v59 = vld [vmem:[%s6392_s1 + $0x2b0] sm:$0xff]   ;;  %v4983_v60 = vld [vmem:[%s6392_s1 + $0x278] sm:$0xff]  }
  0x36   :  { %4537 = vmatprep.subr.bf16.mxu1 %v4944_v61  ;;  %v4984_v61 = vld [vmem:[%s6392_s1 + $0x2f8] sm:$0xff]  }
  0x38   :  { %4510 = vmatpush3.bf16.msra.mxu0 %v4945_v1  ;;  %v3688_v1 = vld [vmem:[%s6393_s0 + $0xa0] sm:$0xff] }
  0x39   :  { %4538 = vmatpush3.bf16.msra.mxu1 %v4946_v3  ;;  %4511 = vmatprep.subr.bf16.mxu0 %v4947_v8  ;;  %v3828_v2 = vcombine.low %v3684_v0, %v3688_v1  ;;  %v3829_v3 = vcombine.high %v3684_v0, %v3688_v1  ;;  %v4987_v8 = vld [vmem:[%s6392_s1 + $0x340] sm:$0xff]   ;;  %v3694_v0 = vld [vmem:[%s6393_s0 + $0xd0] sm:$0xff] }
  0x3a   :  { %4539 = vmatprep.subr.bf16.mxu1 %v4948_v9  ;;  %v4988_v9 = vld [vmem:[%s6392_s1 + $0x3c0] sm:$0xff]   ;;  %v3698_v1 = vld [vmem:[%s6393_s0 + $0xf0] sm:$0xff] }
  0x3c   :  { %4512 = vmatpush3.bf16.msra.mxu0 %v4949_v10  ;;  %v4989_v10 = vld [vmem:[%s6392_s1 + $0x300] sm:$0xff]  }
  0x3d   :  { %4540 = vmatpush3.bf16.msra.mxu1 %v4950_v11  ;;  %4513 = vmatprep.subr.bf16.mxu0 %v4951_v12  ;;  %v4990_v11 = vld [vmem:[%s6392_s1 + $0x380] sm:$0xff]   ;;  %v4991_v12 = vld [vmem:[%s6392_s1 + $0x348] sm:$0xff]  }
  0x3e   :  { %4541 = vmatprep.subr.bf16.mxu1 %v4952_v13  ;;  %v4992_v13 = vld [vmem:[%s6392_s1 + $0x3c8] sm:$0xff]  }
  0x40   :  { %4514 = vmatpush3.bf16.msra.mxu0 %v4953_v14  ;;  %v4993_v14 = vld [vmem:[%s6392_s1 + $0x308] sm:$0xff]  }
  0x41   :  { %4542 = vmatpush3.bf16.msra.mxu1 %v4954_v15  ;;  %4555 = vmatprep.subr.bf16.mxu0 %v4955_v24  ;;  %v4994_v15 = vld [vmem:[%s6392_s1 + $0x388] sm:$0xff]   ;;  %v5003_v24 = vld [vmem:[%s6392_s1 + $0x360] sm:$0xff]  }
  0x42   :  { %4583 = vmatprep.subr.bf16.mxu1 %v4956_v25  ;;  %v5004_v25 = vld [vmem:[%s6392_s1 + $0x3e0] sm:$0xff]  }
  0x43   :  { %767 = vmatmul.mubr.bf16.vlgmr.msra.gmra.mrb[8].mxu0 %v3608_v20  ;;  %v4999_v20 = vld [vmem:[%s6392_s1 + $0x358] sm:$0xff]  }
  0x44   :  { %816 = vmatmul.mubr.bf16.vlgmr.msra.gmra.mrb[8].mxu1 %v3610_v22  ;;  %4556 = vmatpush3.bf16.msra.mxu0 %v4957_v26  ;;  %v5001_v22 = vld [vmem:[%s6392_s1 + $0x318] sm:$0xff]   ;;  %v5005_v26 = vld [vmem:[%s6392_s1 + $0x320] sm:$0xff]  }
  0x45   :  { %4584 = vmatpush3.bf16.msra.mxu1 %v4958_v27  ;;  %4557 = vmatprep.subr.bf16.mxu0 %v4959_v28  ;;  %v5006_v27 = vld [vmem:[%s6392_s1 + $0x3a0] sm:$0xff]   ;;  %v5007_v28 = vld [vmem:[%s6392_s1 + $0x368] sm:$0xff]  }
  0x46   :  { %4585 = vmatprep.subr.bf16.mxu1 %v4960_v29  ;;  %774 = vmatprep.mubr.bf16.mxu0 %v3617_v34  ;;  %v5008_v29 = vld [vmem:[%s6392_s1 + $0x3e8] sm:$0xff]  }
  0x47   :  { %823 = vmatprep.mubr.bf16.mxu1 %v3619_v40  ;;  %v5011_v40 = vld [vmem:[%s6392_s1 + $0x370] sm:$0xff]  }
  0x48   :  { %4558 = vmatpush3.bf16.msra.mxu0 %v4961_v30  ;;  %v3692_v30 = vld [vmem:[%s6393_s0 + $0xc0] sm:$0xff] }
  0x49   :  { %4586 = vmatpush3.bf16.msra.mxu1 %v4962_v31  ;;  %4559 = vmatprep.subr.bf16.mxu0 %v4963_v36  ;;  %v3696_v31 = vld [vmem:[%s6393_s0 + $0xe0] sm:$0xff]  ;;  %v3693_v36 = vld [vmem:[%s6393_s0 + $0xc8] sm:$0xff] }
  0x4a   :  { %4587 = vmatprep.subr.bf16.mxu1 %v4964_v37  ;;  %v3837_v32 = vcombine.high %v3692_v30, %v3696_v31  ;;  %v3836_v34 = vcombine.low %v3692_v30, %v3696_v31  ;;  %v3697_v37 = vld [vmem:[%s6393_s0 + $0xe8] sm:$0xff]  ;;  %v5049_v30 = vld [vmem:[%s6392_s1 + $0x438] sm:$0xff]  }
  0x4b   :  { %775 = vmatmul.mubr.bf16.gmra.mrb[12].mxu0 %v3616_v35  ;;  %v5010_v35 = vld [vmem:[%s6392_s1 + $0x3a8] sm:$0xff]   ;;  %v3839_v38 = vcombine.high %v3693_v36, %v3697_v37  ;;  %v3838_v39 = vcombine.low %v3693_v36, %v3697_v37  ;;  %v5050_v31 = vld [vmem:[%s6392_s1 + $0x4b8] sm:$0xff]  }
  0x4c   :  { %4560 = vmatpush3.bf16.msra.mxu0 %v4965_v41  ;;  %824 = vmatmul.mubr.bf16.gmra.mrb[12].mxu1 %v3618_v42  ;;  %v5012_v41 = vld [vmem:[%s6392_s1 + $0x3f0] sm:$0xff]  }
  0x4d   :  { %4588 = vmatpush3.bf16.msra.mxu1 %v4966_v43  ;;  %4561 = vmatprep.subr.bf16.mxu0 %v4967_v44  ;;  %v5013_v42 = vld [vmem:[%s6392_s1 + $0x330] sm:$0xff]   ;;  %v5015_v44 = vld [vmem:[%s6392_s1 + $0x378] sm:$0xff]  }
  0x4e   :  { %4589 = vmatprep.subr.bf16.mxu1 %v4968_v45  ;;  %1474 = vmatprep.mubr.bf16.mxu0 %v3829_v3  ;;  %v5014_v43 = vld [vmem:[%s6392_s1 + $0x3b0] sm:$0xff]   ;;  %v5016_v45 = vld [vmem:[%s6392_s1 + $0x3f8] sm:$0xff]   ;;  %v3840_v3 = vcombine.low %v3694_v0, %v3698_v1 }
  0x4f   :  { %1523 = vmatprep.mubr.bf16.mxu1 %v3831_v7  ;;  %v3699_v7 = vld [vmem:[%s6393_s0 + $0xf8] sm:$0xff] }
  0x50   :  { %4562 = vmatpush3.bf16.msra.mxu0 %v4969_v46  ;;  %v5017_v46 = vld [vmem:[%s6392_s1 + $0x338] sm:$0xff]  }
  0x51   :  { %4590 = vmatpush3.bf16.msra.mxu1 %v4970_v47  ;;  %4563 = vmatprep.subr.bf16.mxu0 %v4971_v48  ;;  %v5018_v47 = vld [vmem:[%s6392_s1 + $0x3b8] sm:$0xff]   ;;  %v3686_v48 = vld [vmem:[%s6393_s0 + $0x90] sm:$0xff] }
  0x52   :  { %4591 = vmatprep.subr.bf16.mxu1 %v4972_v49  ;;  %v3690_v49 = vld [vmem:[%s6393_s0 + $0xb0] sm:$0xff] }
  0x54   :  { %4564 = vmatpush3.bf16.msra.mxu0 %v4973_v50  ;;  %v3687_v50 = vld [vmem:[%s6393_s0 + $0x98] sm:$0xff] }
  0x55   :  { %4592 = vmatpush3.bf16.msra.mxu1 %v4974_v51  ;;  %4565 = vmatprep.subr.bf16.mxu0 %v4975_v52  ;;  %v3832_v51 = vcombine.low %v3686_v48, %v3690_v49  ;;  %v3833_v52 = vcombine.high %v3686_v48, %v3690_v49  ;;  %v5059_v48 = vld [vmem:[%s6392_s1 + $0x550] sm:$0xff]  }
  0x56   :  { %4593 = vmatprep.subr.bf16.mxu1 %v4976_v53  ;;  %v3691_v53 = vld [vmem:[%s6393_s0 + $0xb8] sm:$0xff]  ;;  %v5060_v49 = vld [vmem:[%s6392_s1 + $0x5d0] sm:$0xff]  }
  0x58   :  { %4566 = vmatpush3.bf16.msra.mxu0 %v4977_v54  ;;  %v3834_v54 = vcombine.low %v3687_v50, %v3691_v53 }
  0x59   :  { %4594 = vmatpush3.bf16.msra.mxu1 %v4978_v55  ;;  %4567 = vmatprep.subr.bf16.mxu0 %v4979_v56  ;;  %v3835_v55 = vcombine.high %v3687_v50, %v3691_v53  ;;  %v5019_v56 = vld [vmem:[%s6392_s1 + $0x440] sm:$0xff]   ;;  %v5061_v50 = vld [vmem:[%s6392_s1 + $0x510] sm:$0xff]   ;;  %v5064_v53 = vld [vmem:[%s6392_s1 + $0x5d8] sm:$0xff]  }
  0x5a   :  { %4595 = vmatprep.subr.bf16.mxu1 %v4980_v57  ;;  %v5020_v57 = vld [vmem:[%s6392_s1 + $0x4c0] sm:$0xff]  }
  0x5c   :  { %4568 = vmatpush3.bf16.msra.mxu0 %v4981_v58  ;;  %v5021_v58 = vld [vmem:[%s6392_s1 + $0x400] sm:$0xff]  }
  0x5d   :  { %4596 = vmatpush3.bf16.msra.mxu1 %v4982_v59  ;;  %4569 = vmatprep.subr.bf16.mxu0 %v4983_v60  ;;  %v5022_v59 = vld [vmem:[%s6392_s1 + $0x480] sm:$0xff]   ;;  %v5023_v60 = vld [vmem:[%s6392_s1 + $0x448] sm:$0xff]  }
  0x5e   :  { %4597 = vmatprep.subr.bf16.mxu1 %v4984_v61  ;;  %v5024_v61 = vld [vmem:[%s6392_s1 + $0x4c8] sm:$0xff]  }
  0x60   :  { %4570 = vmatpush3.bf16.msra.mxu0 %v4985_v62  ;;  %v5025_v62 = vld [vmem:[%s6392_s1 + $0x408] sm:$0xff]  }
  0x61   :  { %4598 = vmatpush3.bf16.msra.mxu1 %v4986_v63  ;;  %4611 = vmatprep.subr.bf16.mxu0 %v4987_v8  ;;  %v5026_v63 = vld [vmem:[%s6392_s1 + $0x488] sm:$0xff]  }
  0x62   :  { %4639 = vmatprep.subr.bf16.mxu1 %v4988_v9  ;;  %v5029_v9 = vld [vmem:[%s6392_s1 + $0x410] sm:$0xff]  }
  0x63   :  { %1475 = vmatmul.mubr.bf16.vlgmr.msra.gmra.mrb[16].mxu0 %v3828_v2  ;;  %v3841_v2 = vcombine.high %v3694_v0, %v3698_v1  ;;  %v5073_v1 = vld [vmem:[%s6392_s1 + $0x528] sm:$0xff]  }
  0x64   :  { %1524 = vmatmul.mubr.bf16.vlgmr.msra.gmra.mrb[16].mxu1 %v3830_v6  ;;  %4612 = vmatpush3.bf16.msra.mxu0 %v4989_v10  ;;  %v3695_v6 = vld [vmem:[%s6393_s0 + $0xd8] sm:$0xff] }
  0x65   :  { %4640 = vmatpush3.bf16.msra.mxu1 %v4990_v11  ;;  %4613 = vmatprep.subr.bf16.mxu0 %v4991_v12  ;;  %v3843_v8 = vcombine.high %v3695_v6, %v3699_v7  ;;  %v3842_v10 = vcombine.low %v3695_v6, %v3699_v7  ;;  %v5030_v11 = vld [vmem:[%s6392_s1 + $0x490] sm:$0xff]   ;;  %v5031_v12 = vld [vmem:[%s6392_s1 + $0x458] sm:$0xff]  }
  0x66   :  { %4641 = vmatprep.subr.bf16.mxu1 %v4992_v13  ;;  %1482 = vmatprep.mubr.bf16.mxu0 %v3837_v32  ;;  %v5032_v13 = vld [vmem:[%s6392_s1 + $0x4d8] sm:$0xff]   ;;  %v3908_v32 = vld [vmem:[%s6393_s0 + $0x100] sm:$0xff] }
  0x67   :  { %1531 = vmatprep.mubr.bf16.mxu1 %v3839_v38 }
  0x68   :  { %4614 = vmatpush3.bf16.msra.mxu0 %v4993_v14  ;;  %v5033_v14 = vld [vmem:[%s6392_s1 + $0x418] sm:$0xff]  }
  0x69   :  { %4642 = vmatpush3.bf16.msra.mxu1 %v4994_v15  ;;  %4615 = vmatprep.subr.bf16.mxu0 %v4995_v16  ;;  %v5034_v15 = vld [vmem:[%s6392_s1 + $0x498] sm:$0xff]   ;;  %v5035_v16 = vld [vmem:[%s6392_s1 + $0x460] sm:$0xff]  }
  0x6a   :  { %4643 = vmatprep.subr.bf16.mxu1 %v4996_v17  ;;  %v5036_v17 = vld [vmem:[%s6392_s1 + $0x4e0] sm:$0xff]  }
  0x6b   :  { %1483 = vmatmul.mubr.bf16.gmra.mrb[20].mxu0 %v3836_v34  ;;  %v3909_v34 = vld [vmem:[%s6393_s0 + $0x108] sm:$0xff] }
  0x6c   :  { %4616 = vmatpush3.bf16.msra.mxu0 %v4997_v18  ;;  %1532 = vmatmul.mubr.bf16.gmra.mrb[20].mxu1 %v3838_v39  ;;  %v5037_v18 = vld [vmem:[%s6392_s1 + $0x420] sm:$0xff]  }
  0x6d   :  { %4644 = vmatpush3.bf16.msra.mxu1 %v4998_v19  ;;  %4617 = vmatprep.subr.bf16.mxu0 %v4999_v20  ;;  %v5038_v19 = vld [vmem:[%s6392_s1 + $0x4a0] sm:$0xff]   ;;  %v5039_v20 = vld [vmem:[%s6392_s1 + $0x468] sm:$0xff]  }
  0x6e   :  { %4645 = vmatprep.subr.bf16.mxu1 %v5000_v21  ;;  %1572 = vmatprep.mubr.bf16.mxu0 %v3833_v52  ;;  %v5040_v21 = vld [vmem:[%s6392_s1 + $0x4e8] sm:$0xff]   ;;  %v5063_v52 = vld [vmem:[%s6392_s1 + $0x558] sm:$0xff]  }
  0x6f   :  { %1621 = vmatprep.mubr.bf16.mxu1 %v3835_v55  ;;  %v5066_v55 = vld [vmem:[%s6392_s1 + $0x598] sm:$0xff]  }
  0x70   :  { %4618 = vmatpush3.bf16.msra.mxu0 %v5001_v22  ;;  %v5041_v22 = vld [vmem:[%s6392_s1 + $0x428] sm:$0xff]  }
  0x71   :  { %4646 = vmatpush3.bf16.msra.mxu1 %v5002_v23  ;;  %4619 = vmatprep.subr.bf16.mxu0 %v5003_v24  ;;  %v5042_v23 = vld [vmem:[%s6392_s1 + $0x4a8] sm:$0xff]   ;;  %v5043_v24 = vld [vmem:[%s6392_s1 + $0x470] sm:$0xff]  }
  0x72   :  { %4647 = vmatprep.subr.bf16.mxu1 %v5004_v25  ;;  %v5044_v25 = vld [vmem:[%s6392_s1 + $0x4f0] sm:$0xff]  }
  0x74   :  { %4620 = vmatpush3.bf16.msra.mxu0 %v5005_v26  ;;  %v5045_v26 = vld [vmem:[%s6392_s1 + $0x430] sm:$0xff]  }
  0x75   :  { %4648 = vmatpush3.bf16.msra.mxu1 %v5006_v27  ;;  %4621 = vmatprep.subr.bf16.mxu0 %v5007_v28  ;;  %v5046_v27 = vld [vmem:[%s6392_s1 + $0x4b0] sm:$0xff]   ;;  %v5047_v28 = vld [vmem:[%s6392_s1 + $0x478] sm:$0xff]  }
  0x76   :  { %4649 = vmatprep.subr.bf16.mxu1 %v5008_v29  ;;  %v5048_v29 = vld [vmem:[%s6392_s1 + $0x4f8] sm:$0xff]  }
  0x78   :  { %4622 = vmatpush3.bf16.msra.mxu0 %v5009_v33  ;;  %v3912_v33 = vld [vmem:[%s6393_s0 + $0x120] sm:$0xff] }
  0x79   :  { %4650 = vmatpush3.bf16.msra.mxu1 %v5010_v35  ;;  %4623 = vmatprep.subr.bf16.mxu0 %v5011_v40  ;;  %v3913_v35 = vld [vmem:[%s6393_s0 + $0x128] sm:$0xff]  ;;  %v4052_v36 = vcombine.low %v3908_v32, %v3912_v33  ;;  %v4053_v37 = vcombine.high %v3908_v32, %v3912_v33  ;;  %v5051_v40 = vld [vmem:[%s6392_s1 + $0x540] sm:$0xff]   ;;  %v3918_v32 = vld [vmem:[%s6393_s0 + $0x150] sm:$0xff] }
  0x7a   :  { %4651 = vmatprep.subr.bf16.mxu1 %v5012_v41  ;;  %v4054_v38 = vcombine.low %v3909_v34, %v3913_v35  ;;  %v4055_v39 = vcombine.high %v3909_v34, %v3913_v35  ;;  %v5052_v41 = vld [vmem:[%s6392_s1 + $0x5c0] sm:$0xff]   ;;  %v3922_v33 = vld [vmem:[%s6393_s0 + $0x170] sm:$0xff] }
  0x7b   :  { %v4065_v34 = vcombine.high %v3918_v32, %v3922_v33  ;;  %v4064_v35 = vcombine.low %v3918_v32, %v3922_v33  ;;  %v5128_v32 = vld [vmem:[%s6392_s1 + $0x7d8] sm:$0xff]  }
  0x7c   :  { %4624 = vmatpush3.bf16.msra.mxu0 %v5013_v42  ;;  %v5053_v42 = vld [vmem:[%s6392_s1 + $0x500] sm:$0xff]  }
  0x7d   :  { %4652 = vmatpush3.bf16.msra.mxu1 %v5014_v43  ;;  %4625 = vmatprep.subr.bf16.mxu0 %v5015_v44  ;;  %v5054_v43 = vld [vmem:[%s6392_s1 + $0x580] sm:$0xff]   ;;  %v5055_v44 = vld [vmem:[%s6392_s1 + $0x548] sm:$0xff]  }
  0x7e   :  { %4653 = vmatprep.subr.bf16.mxu1 %v5016_v45  ;;  %v5056_v45 = vld [vmem:[%s6392_s1 + $0x5c8] sm:$0xff]  }
  0x80   :  { %4626 = vmatpush3.bf16.msra.mxu0 %v5017_v46  ;;  %v5057_v46 = vld [vmem:[%s6392_s1 + $0x508] sm:$0xff]  }
  0x81   :  { %4654 = vmatpush3.bf16.msra.mxu1 %v5018_v47  ;;  %4667 = vmatprep.subr.bf16.mxu0 %v5019_v56  ;;  %v5058_v47 = vld [vmem:[%s6392_s1 + $0x588] sm:$0xff]   ;;  %v5067_v56 = vld [vmem:[%s6392_s1 + $0x560] sm:$0xff]  }
  0x82   :  { %4695 = vmatprep.subr.bf16.mxu1 %v5020_v57  ;;  %v5068_v57 = vld [vmem:[%s6392_s1 + $0x5e0] sm:$0xff]  }
  0x83   :  { %1573 = vmatmul.mubr.bf16.vlgmr.msra.gmra.mrb[24].mxu0 %v3832_v51  ;;  %v5062_v51 = vld [vmem:[%s6392_s1 + $0x590] sm:$0xff]  }
  0x84   :  { %1622 = vmatmul.mubr.bf16.vlgmr.msra.gmra.mrb[24].mxu1 %v3834_v54  ;;  %4668 = vmatpush3.bf16.msra.mxu0 %v5021_v58  ;;  %v5065_v54 = vld [vmem:[%s6392_s1 + $0x518] sm:$0xff]   ;;  %v5069_v58 = vld [vmem:[%s6392_s1 + $0x520] sm:$0xff]  }
  0x85   :  { %4696 = vmatpush3.bf16.msra.mxu1 %v5022_v59  ;;  %4669 = vmatprep.subr.bf16.mxu0 %v5023_v60  ;;  %v5070_v59 = vld [vmem:[%s6392_s1 + $0x5a0] sm:$0xff]   ;;  %v5071_v60 = vld [vmem:[%s6392_s1 + $0x568] sm:$0xff]  }
  0x86   :  { %4697 = vmatprep.subr.bf16.mxu1 %v5024_v61  ;;  %1580 = vmatprep.mubr.bf16.mxu0 %v3841_v2  ;;  %v5072_v61 = vld [vmem:[%s6392_s1 + $0x5e8] sm:$0xff]  }
  0x87   :  { %1629 = vmatprep.mubr.bf16.mxu1 %v3843_v8  ;;  %v5075_v8 = vld [vmem:[%s6392_s1 + $0x570] sm:$0xff]  }
  0x88   :  { %4670 = vmatpush3.bf16.msra.mxu0 %v5025_v62  ;;  %v3916_v62 = vld [vmem:[%s6393_s0 + $0x140] sm:$0xff] }
  0x89   :  { %4698 = vmatpush3.bf16.msra.mxu1 %v5026_v63  ;;  %4671 = vmatprep.subr.bf16.mxu0 %v5027_v4  ;;  %v3920_v63 = vld [vmem:[%s6393_s0 + $0x160] sm:$0xff]  ;;  %v3917_v4 = vld [vmem:[%s6393_s0 + $0x148] sm:$0xff] }
  0x8a   :  { %4699 = vmatprep.subr.bf16.mxu1 %v5028_v5  ;;  %v4061_v0 = vcombine.high %v3916_v62, %v3920_v63  ;;  %v4060_v2 = vcombine.low %v3916_v62, %v3920_v63  ;;  %v3921_v5 = vld [vmem:[%s6393_s0 + $0x168] sm:$0xff]  ;;  %v5113_v62 = vld [vmem:[%s6392_s1 + $0x638] sm:$0xff]  }
  0x8b   :  { %1581 = vmatmul.mubr.bf16.gmra.mrb[28].mxu0 %v3840_v3  ;;  %v5074_v3 = vld [vmem:[%s6392_s1 + $0x5a8] sm:$0xff]   ;;  %v4063_v6 = vcombine.high %v3917_v4, %v3921_v5  ;;  %v4062_v7 = vcombine.low %v3917_v4, %v3921_v5  ;;  %v5114_v63 = vld [vmem:[%s6392_s1 + $0x6b8] sm:$0xff]  }
  0x8c   :  { %4672 = vmatpush3.bf16.msra.mxu0 %v5029_v9  ;;  %1630 = vmatmul.mubr.bf16.gmra.mrb[28].mxu1 %v3842_v10  ;;  %v5076_v9 = vld [vmem:[%s6392_s1 + $0x5f0] sm:$0xff]   ;;  %v4137_v5 = vld [vmem:[%s6393_s0 + $0x1a8] sm:$0xff] }
  0x8d   :  { %4700 = vmatpush3.bf16.msra.mxu1 %v5030_v11  ;;  %4673 = vmatprep.subr.bf16.mxu0 %v5031_v12  ;;  %v5077_v10 = vld [vmem:[%s6392_s1 + $0x530] sm:$0xff]   ;;  %v5079_v12 = vld [vmem:[%s6392_s1 + $0x578] sm:$0xff]  }
  0x8e   :  { %4701 = vmatprep.subr.bf16.mxu1 %v5032_v13  ;;  %2280 = vmatprep.mubr.bf16.mxu0 %v4053_v37  ;;  %v5078_v11 = vld [vmem:[%s6392_s1 + $0x5b0] sm:$0xff]   ;;  %v5080_v13 = vld [vmem:[%s6392_s1 + $0x5f8] sm:$0xff]  }
  0x8f   :  { %2329 = vmatprep.mubr.bf16.mxu1 %v4055_v39  ;;  %v5092_v37 = vld [vmem:[%s6392_s1 + $0x6d0] sm:$0xff]   ;;  %v3923_v39 = vld [vmem:[%s6393_s0 + $0x178] sm:$0xff] }
  0x90   :  { %4674 = vmatpush3.bf16.msra.mxu0 %v5033_v14  ;;  %v5081_v14 = vld [vmem:[%s6392_s1 + $0x538] sm:$0xff]  }
  0x91   :  { %4702 = vmatpush3.bf16.msra.mxu1 %v5034_v15  ;;  %4675 = vmatprep.subr.bf16.mxu0 %v5035_v16  ;;  %v5082_v15 = vld [vmem:[%s6392_s1 + $0x5b8] sm:$0xff]   ;;  %v3910_v16 = vld [vmem:[%s6393_s0 + $0x110] sm:$0xff] }
  0x92   :  { %4703 = vmatprep.subr.bf16.mxu1 %v5036_v17  ;;  %v3914_v17 = vld [vmem:[%s6393_s0 + $0x130] sm:$0xff] }
  0x94   :  { %4676 = vmatpush3.bf16.msra.mxu0 %v5037_v18  ;;  %v4056_v18 = vcombine.low %v3910_v16, %v3914_v17 }
  0x95   :  { %4704 = vmatpush3.bf16.msra.mxu1 %v5038_v19  ;;  %4677 = vmatprep.subr.bf16.mxu0 %v5039_v20  ;;  %v4057_v19 = vcombine.high %v3910_v16, %v3914_v17  ;;  %v3911_v20 = vld [vmem:[%s6393_s0 + $0x118] sm:$0xff]  ;;  %v5122_v17 = vld [vmem:[%s6392_s1 + $0x788] sm:$0xff]  }
  0x96   :  { %4705 = vmatprep.subr.bf16.mxu1 %v5040_v21  ;;  %v3915_v21 = vld [vmem:[%s6393_s0 + $0x138] sm:$0xff] }
  0x98   :  { %4678 = vmatpush3.bf16.msra.mxu0 %v5041_v22  ;;  %v4058_v22 = vcombine.low %v3911_v20, %v3915_v21 }
  0x99   :  { %4706 = vmatpush3.bf16.msra.mxu1 %v5042_v23  ;;  %4679 = vmatprep.subr.bf16.mxu0 %v5043_v24  ;;  %v4059_v23 = vcombine.high %v3911_v20, %v3915_v21  ;;  %v5083_v24 = vld [vmem:[%s6392_s1 + $0x640] sm:$0xff]  }
  0x9a   :  { %4707 = vmatprep.subr.bf16.mxu1 %v5044_v25  ;;  %v5084_v25 = vld [vmem:[%s6392_s1 + $0x6c0] sm:$0xff]  }
  0x9c   :  { %4680 = vmatpush3.bf16.msra.mxu0 %v5045_v26  ;;  %v5085_v26 = vld [vmem:[%s6392_s1 + $0x600] sm:$0xff]  }
  0x9d   :  { %4708 = vmatpush3.bf16.msra.mxu1 %v5046_v27  ;;  %4681 = vmatprep.subr.bf16.mxu0 %v5047_v28  ;;  %v5086_v27 = vld [vmem:[%s6392_s1 + $0x680] sm:$0xff]   ;;  %v5087_v28 = vld [vmem:[%s6392_s1 + $0x648] sm:$0xff]  }
  0x9e   :  { %4709 = vmatprep.subr.bf16.mxu1 %v5048_v29  ;;  %v5088_v29 = vld [vmem:[%s6392_s1 + $0x6c8] sm:$0xff]  }
  0xa0   :  { %4682 = vmatpush3.bf16.msra.mxu0 %v5049_v30  ;;  %v5089_v30 = vld [vmem:[%s6392_s1 + $0x608] sm:$0xff]  }
  0xa1   :  { %4710 = vmatpush3.bf16.msra.mxu1 %v5050_v31  ;;  %4723 = vmatprep.subr.bf16.mxu0 %v5051_v40  ;;  %v5090_v31 = vld [vmem:[%s6392_s1 + $0x688] sm:$0xff]  }
  0xa2   :  { %4751 = vmatprep.subr.bf16.mxu1 %v5052_v41  ;;  %v5093_v41 = vld [vmem:[%s6392_s1 + $0x610] sm:$0xff]  }
  0xa3   :  { %2281 = vmatmul.mubr.bf16.vlgmr.msra.gmra.mrb[32].mxu0 %v4052_v36  ;;  %v5091_v36 = vld [vmem:[%s6392_s1 + $0x650] sm:$0xff]  }
  0xa4   :  { %2330 = vmatmul.mubr.bf16.vlgmr.msra.gmra.mrb[32].mxu1 %v4054_v38  ;;  %4724 = vmatpush3.bf16.msra.mxu0 %v5053_v42  ;;  %v3919_v38 = vld [vmem:[%s6393_s0 + $0x158] sm:$0xff] }
  0xa5   :  { %4752 = vmatpush3.bf16.msra.mxu1 %v5054_v43  ;;  %4725 = vmatprep.subr.bf16.mxu0 %v5055_v44  ;;  %v4067_v40 = vcombine.high %v3919_v38, %v3923_v39  ;;  %v4066_v42 = vcombine.low %v3919_v38, %v3923_v39  ;;  %v5094_v43 = vld [vmem:[%s6392_s1 + $0x690] sm:$0xff]   ;;  %v5095_v44 = vld [vmem:[%s6392_s1 + $0x658] sm:$0xff]   ;;  %v5133_v38 = vld [vmem:[%s6392_s1 + $0x720] sm:$0xff]  }
  0xa6   :  { %4753 = vmatprep.subr.bf16.mxu1 %v5056_v45  ;;  %2288 = vmatprep.mubr.bf16.mxu0 %v4061_v0  ;;  %v5096_v45 = vld [vmem:[%s6392_s1 + $0x6d8] sm:$0xff]   ;;  %v4132_v0 = vld [vmem:[%s6393_s0 + $0x180] sm:$0xff] }
  0xa7   :  { %2337 = vmatprep.mubr.bf16.mxu1 %v4063_v6  ;;  %v5134_v39 = vld [vmem:[%s6392_s1 + $0x7a0] sm:$0xff]  }
  0xa8   :  { %4726 = vmatpush3.bf16.msra.mxu0 %v5057_v46  ;;  %v5097_v46 = vld [vmem:[%s6392_s1 + $0x618] sm:$0xff]  }
  0xa9   :  { %4754 = vmatpush3.bf16.msra.mxu1 %v5058_v47  ;;  %4727 = vmatprep.subr.bf16.mxu0 %v5059_v48  ;;  %v5098_v47 = vld [vmem:[%s6392_s1 + $0x698] sm:$0xff]   ;;  %v5099_v48 = vld [vmem:[%s6392_s1 + $0x660] sm:$0xff]  }
  0xaa   :  { %4755 = vmatprep.subr.bf16.mxu1 %v5060_v49  ;;  %v5100_v49 = vld [vmem:[%s6392_s1 + $0x6e0] sm:$0xff]  }
  0xab   :  { %2289 = vmatmul.mubr.bf16.gmra.mrb[36].mxu0 %v4060_v2  ;;  %v4133_v2 = vld [vmem:[%s6393_s0 + $0x188] sm:$0xff] }
  0xac   :  { %4728 = vmatpush3.bf16.msra.mxu0 %v5061_v50  ;;  %2338 = vmatmul.mubr.bf16.gmra.mrb[36].mxu1 %v4062_v7  ;;  %v5101_v50 = vld [vmem:[%s6392_s1 + $0x620] sm:$0xff]   ;;  %v4278_v6 = vcombine.low %v4133_v2, %v4137_v5  ;;  %v4279_v7 = vcombine.high %v4133_v2, %v4137_v5  ;;  %v5146_v5 = vld [vmem:[%s6392_s1 + $0x7b8] sm:$0xff]  }
  0xad   :  { %4756 = vmatpush3.bf16.msra.mxu1 %v5062_v51  ;;  %4729 = vmatprep.subr.bf16.mxu0 %v5063_v52  ;;  %v5102_v51 = vld [vmem:[%s6392_s1 + $0x6a0] sm:$0xff]   ;;  %v5103_v52 = vld [vmem:[%s6392_s1 + $0x668] sm:$0xff]  }
  0xae   :  { %4757 = vmatprep.subr.bf16.mxu1 %v5064_v53  ;;  %2378 = vmatprep.mubr.bf16.mxu0 %v4057_v19  ;;  %v5104_v53 = vld [vmem:[%s6392_s1 + $0x6e8] sm:$0xff]   ;;  %v5123_v19 = vld [vmem:[%s6392_s1 + $0x750] sm:$0xff]  }
  0xaf   :  { %2427 = vmatprep.mubr.bf16.mxu1 %v4059_v23 }
  0xb0   :  { %4730 = vmatpush3.bf16.msra.mxu0 %v5065_v54  ;;  %v5105_v54 = vld [vmem:[%s6392_s1 + $0x628] sm:$0xff]  }
  0xb1   :  { %4758 = vmatpush3.bf16.msra.mxu1 %v5066_v55  ;;  %4731 = vmatprep.subr.bf16.mxu0 %v5067_v56  ;;  %v5106_v55 = vld [vmem:[%s6392_s1 + $0x6a8] sm:$0xff]   ;;  %v5107_v56 = vld [vmem:[%s6392_s1 + $0x670] sm:$0xff]  }
  0xb2   :  { %4759 = vmatprep.subr.bf16.mxu1 %v5068_v57  ;;  %v5108_v57 = vld [vmem:[%s6392_s1 + $0x6f0] sm:$0xff]  }
  0xb4   :  { %4732 = vmatpush3.bf16.msra.mxu0 %v5069_v58  ;;  %v5109_v58 = vld [vmem:[%s6392_s1 + $0x630] sm:$0xff]  }
  0xb5   :  { %4760 = vmatpush3.bf16.msra.mxu1 %v5070_v59  ;;  %4733 = vmatprep.subr.bf16.mxu0 %v5071_v60  ;;  %v5110_v59 = vld [vmem:[%s6392_s1 + $0x6b0] sm:$0xff]   ;;  %v5111_v60 = vld [vmem:[%s6392_s1 + $0x678] sm:$0xff]  }
  0xb6   :  { %4761 = vmatprep.subr.bf16.mxu1 %v5072_v61  ;;  %v5112_v61 = vld [vmem:[%s6392_s1 + $0x6f8] sm:$0xff]  }
  0xb8   :  { %4734 = vmatpush3.bf16.msra.mxu0 %v5073_v1  ;;  %v4136_v1 = vld [vmem:[%s6393_s0 + $0x1a0] sm:$0xff] }
  0xb9   :  { %4762 = vmatpush3.bf16.msra.mxu1 %v5074_v3  ;;  %4735 = vmatprep.subr.bf16.mxu0 %v5075_v8  ;;  %v4276_v3 = vcombine.low %v4132_v0, %v4136_v1  ;;  %v4277_v4 = vcombine.high %v4132_v0, %v4136_v1  ;;  %v5115_v8 = vld [vmem:[%s6392_s1 + $0x740] sm:$0xff]   ;;  %v5144_v0 = vld [vmem:[%s6392_s1 + $0x7f8] sm:$0xff]  }
  0xba   :  { %4763 = vmatprep.subr.bf16.mxu1 %v5076_v9  ;;  %v5116_v9 = vld [vmem:[%s6392_s1 + $0x7c0] sm:$0xff]  }
  0xbc   :  { %4736 = vmatpush3.bf16.msra.mxu0 %v5077_v10  ;;  %v5117_v10 = vld [vmem:[%s6392_s1 + $0x700] sm:$0xff]  }
  0xbd   :  { %4764 = vmatpush3.bf16.msra.mxu1 %v5078_v11  ;;  %4737 = vmatprep.subr.bf16.mxu0 %v5079_v12  ;;  %v5118_v11 = vld [vmem:[%s6392_s1 + $0x780] sm:$0xff]   ;;  %v5119_v12 = vld [vmem:[%s6392_s1 + $0x748] sm:$0xff]  }
  0xbe   :  { %4765 = vmatprep.subr.bf16.mxu1 %v5080_v13  ;;  %v5120_v13 = vld [vmem:[%s6392_s1 + $0x7c8] sm:$0xff]  }
  0xc0   :  { %4738 = vmatpush3.bf16.msra.mxu0 %v5081_v14 }
  0xc1   :  { %4766 = vmatpush3.bf16.msra.mxu1 %v5082_v15  ;;  %4779 = vmatprep.subr.bf16.mxu0 %v5083_v24  ;;  %v5121_v15 = vld [vmem:[%s6392_s1 + $0x708] sm:$0xff]  }
  0xc2   :  { %4807 = vmatprep.subr.bf16.mxu1 %v5084_v25  ;;  %v5125_v25 = vld [vmem:[%s6392_s1 + $0x710] sm:$0xff]  }
  0xc3   :  { %2379 = vmatmul.mubr.bf16.vlgmr.msra.gmra.mrb[40].mxu0 %v4056_v18 }
  0xc4   :  { %2428 = vmatmul.mubr.bf16.vlgmr.msra.gmra.mrb[40].mxu1 %v4058_v22  ;;  %4780 = vmatpush3.bf16.msra.mxu0 %v5085_v26  ;;  %v5124_v22 = vld [vmem:[%s6392_s1 + $0x7d0] sm:$0xff]  }
  0xc5   :  { %4808 = vmatpush3.bf16.msra.mxu1 %v5086_v27  ;;  %4781 = vmatprep.subr.bf16.mxu0 %v5087_v28  ;;  %v5126_v27 = vld [vmem:[%s6392_s1 + $0x790] sm:$0xff]  }
  0xc6   :  { %4809 = vmatprep.subr.bf16.mxu1 %v5088_v29  ;;  %2386 = vmatprep.mubr.bf16.mxu0 %v4065_v34  ;;  %v5127_v29 = vld [vmem:[%s6392_s1 + $0x758] sm:$0xff]  }
  0xc7   :  { %2435 = vmatprep.mubr.bf16.mxu1 %v4067_v40  ;;  %v5129_v34 = vld [vmem:[%s6392_s1 + $0x718] sm:$0xff]   ;;  %v6070_v40 = vld [vmem:[%s6394_s2] ss:$0 sm:$0xff] }
  0xc8   :  { %4782 = vmatpush3.bf16.msra.mxu0 %v5089_v30 }
  0xc9   :  { %4810 = vmatpush3.bf16.msra.mxu1 %v5090_v31  ;;  %4783 = vmatprep.subr.bf16.mxu0 %v5091_v36  ;;  %v5131_v36 = vld [vmem:[%s6392_s1 + $0x760] sm:$0xff]  }
  0xca   :  { %4811 = vmatprep.subr.bf16.mxu1 %v5092_v37  ;;  %v5132_v37 = vld [vmem:[%s6392_s1 + $0x7e0] sm:$0xff]  }
  0xcb   :  { %2387 = vmatmul.mubr.bf16.gmra.mrb[44].mxu0 %v4064_v35  ;;  %v5130_v35 = vld [vmem:[%s6392_s1 + $0x798] sm:$0xff]  }
  0xcc   :  { %4784 = vmatpush3.bf16.msra.mxu0 %v5093_v41  ;;  %2436 = vmatmul.mubr.bf16.gmra.mrb[44].mxu1 %v4066_v42  ;;  %v4140_v41 = vld [vmem:[%s6393_s0 + $0x1c0] sm:$0xff] }
  0xcd   :  { %4812 = vmatpush3.bf16.msra.mxu1 %v5094_v43  ;;  %4785 = vmatprep.subr.bf16.mxu0 %v5095_v44  ;;  %v4144_v43 = vld [vmem:[%s6393_s0 + $0x1e0] sm:$0xff] }
  0xce   :  { %4813 = vmatprep.subr.bf16.mxu1 %v5096_v45  ;;  %3086 = vmatprep.mubr.bf16.mxu0 %v4277_v4  ;;  %v4285_v45 = vcombine.high %v4140_v41, %v4144_v43 }
  0xcf   :  { %3135 = vmatprep.mubr.bf16.mxu1 %v4279_v7 }
  0xd0   :  { %4786 = vmatpush3.bf16.msra.mxu0 %v5097_v46  ;;  %v5135_v46 = vld [vmem:[%s6392_s1 + $0x768] sm:$0xff]  }
  0xd1   :  { %4814 = vmatpush3.bf16.msra.mxu1 %v5098_v47  ;;  %4787 = vmatprep.subr.bf16.mxu0 %v5099_v48  ;;  %v4284_v47 = vcombine.low %v4140_v41, %v4144_v43 }
  0xd2   :  { %4815 = vmatprep.subr.bf16.mxu1 %v5100_v49  ;;  %v5136_v49 = vld [vmem:[%s6392_s1 + $0x7e8] sm:$0xff]  }
  0xd4   :  { %4788 = vmatpush3.bf16.msra.mxu0 %v5101_v50 }
  0xd5   :  { %4816 = vmatpush3.bf16.msra.mxu1 %v5102_v51  ;;  %4789 = vmatprep.subr.bf16.mxu0 %v5103_v52  ;;  %v5137_v51 = vld [vmem:[%s6392_s1 + $0x728] sm:$0xff]  }
  0xd6   :  { %4817 = vmatprep.subr.bf16.mxu1 %v5104_v53  ;;  %v5138_v52 = vld [vmem:[%s6392_s1 + $0x7a8] sm:$0xff]  }
  0xd7   :  { %v4141_v53 = vld [vmem:[%s6393_s0 + $0x1c8] sm:$0xff] }
  0xd8   :  { %4790 = vmatpush3.bf16.msra.mxu0 %v5105_v54  ;;  %v4145_v54 = vld [vmem:[%s6393_s0 + $0x1e8] sm:$0xff] }
  0xd9   :  { %4818 = vmatpush3.bf16.msra.mxu1 %v5106_v55  ;;  %4791 = vmatprep.subr.bf16.mxu0 %v5107_v56  ;;  %v4287_v55 = vcombine.high %v4141_v53, %v4145_v54  ;;  %v4286_v56 = vcombine.low %v4141_v53, %v4145_v54 }
  0xda   :  { %4819 = vmatprep.subr.bf16.mxu1 %v5108_v57  ;;  %v5139_v57 = vld [vmem:[%s6392_s1 + $0x770] sm:$0xff]  }
  0xdc   :  { %4792 = vmatpush3.bf16.msra.mxu0 %v5109_v58  ;;  %v5140_v58 = vld [vmem:[%s6392_s1 + $0x7f0] sm:$0xff]  }
  0xdd   :  { %4820 = vmatpush3.bf16.msra.mxu1 %v5110_v59  ;;  %4793 = vmatprep.subr.bf16.mxu0 %v5111_v60  ;;  %v5141_v59 = vld [vmem:[%s6392_s1 + $0x730] sm:$0xff]  }
  0xde   :  { %4821 = vmatprep.subr.bf16.mxu1 %v5112_v61  ;;  %v5142_v60 = vld [vmem:[%s6392_s1 + $0x7b0] sm:$0xff]  }
  0xe0   :  { %4794 = vmatpush3.bf16.msra.mxu0 %v5113_v62  ;;  %v5143_v62 = vld [vmem:[%s6392_s1 + $0x778] sm:$0xff]  }
  0xe1   :  { %4822 = vmatpush3.bf16.msra.mxu1 %v5114_v63  ;;  %4835 = vmatprep.subr.bf16.mxu0 %v5115_v8  ;;  %v4134_v8 = vld [vmem:[%s6393_s0 + $0x190] sm:$0xff] }
  0xe2   :  { %4863 = vmatprep.subr.bf16.mxu1 %v5116_v9  ;;  %v4138_v9 = vld [vmem:[%s6393_s0 + $0x1b0] sm:$0xff] }
  0xe3   :  { %3087 = vmatmul.mubr.bf16.vlgmr.msra.gmra.mrb[48].mxu0 %v4276_v3  ;;  %v5145_v3 = vld [vmem:[%s6392_s1 + $0x738] sm:$0xff]  }
  0xe4   :  { %3136 = vmatmul.mubr.bf16.vlgmr.msra.gmra.mrb[48].mxu1 %v4278_v6  ;;  %4836 = vmatpush3.bf16.msra.mxu0 %v5117_v10  ;;  %v4135_v10 = vld [vmem:[%s6393_s0 + $0x198] sm:$0xff] }
  0xe5   :  { %4864 = vmatpush3.bf16.msra.mxu1 %v5118_v11  ;;  %4837 = vmatprep.subr.bf16.mxu0 %v5119_v12 }
  0xe6   :  { %4865 = vmatprep.subr.bf16.mxu1 %v5120_v13  ;;  %3094 = vmatprep.mubr.bf16.mxu0 %v4285_v45  ;;  %v4280_v13 = vcombine.low %v4134_v8, %v4138_v9 }
  0xe7   :  { %3143 = vmatprep.mubr.bf16.mxu1 %v4287_v55 }
  0xe8   :  { %4838 = vmatpush3.bf16.msra.mxu0 %v5121_v15  ;;  %v4139_v15 = vld [vmem:[%s6393_s0 + $0x1b8] sm:$0xff] }
  0xe9   :  { %4866 = vmatpush3.bf16.msra.mxu1 %v5122_v17  ;;  %4839 = vmatprep.subr.bf16.mxu0 %v5123_v19  ;;  %v4146_v17 = vld [vmem:[%s6393_s0 + $0x1f0] sm:$0xff] }
  0xea   :  { %4867 = vmatprep.subr.bf16.mxu1 %v5124_v22 }
  0xeb   :  { %3095 = vmatmul.mubr.bf16.gmra.mrb[52].mxu0 %v4284_v47 }
  0xec   :  { %4840 = vmatpush3.bf16.msra.mxu0 %v5125_v25  ;;  %3144 = vmatmul.mubr.bf16.gmra.mrb[52].mxu1 %v4286_v56 }
  0xed   :  { %4868 = vmatpush3.bf16.msra.mxu1 %v5126_v27  ;;  %4841 = vmatprep.subr.bf16.mxu0 %v5127_v29 }
  0xee   :  { %4869 = vmatprep.subr.bf16.mxu1 %v5128_v32 }
  0xf0   :  { %4842 = vmatpush3.bf16.msra.mxu0 %v5129_v34 }
  0xf1   :  { %4870 = vmatpush3.bf16.msra.mxu1 %v5130_v35  ;;  %4843 = vmatprep.subr.bf16.mxu0 %v5131_v36 }
  0xf2   :  { %4871 = vmatprep.subr.bf16.mxu1 %v5132_v37 }
  0xf4   :  { %4844 = vmatpush3.bf16.msra.mxu0 %v5133_v38 }
  0xf5   :  { %4872 = vmatpush3.bf16.msra.mxu1 %v5134_v39  ;;  %4845 = vmatprep.subr.bf16.mxu0 %v5135_v46 }
  0xf6   :  { %v4459_v14 = vpop.f32.mrb[0].mxu0  ;;  %4873 = vmatprep.subr.bf16.mxu1 %v5136_v49 }
  0xf7   :  { %v4487_v16 = vpop.f32.mrb[0].mxu1  ;;  %v4460_v18 = vpop.f32.mrb[1].mxu0 }
  0xf8   :  { %v4461_v20 = vadd.f32 %v4460_v18, %v4459_v14  ;;  %v4488_v21 = vpop.f32.mrb[1].mxu1  ;;  %v4462_v24 = vpop.f32.mrb[2].mxu0  ;;  %4846 = vmatpush3.bf16.msra.mxu0 %v5137_v51  ;;  %v4281_v14 = vcombine.high %v4134_v8, %v4138_v9 }
  0xf9   :  { %v4489_v23 = vadd.f32 %v4488_v21, %v4487_v16  ;;  %v4490_v26 = vpop.f32.mrb[2].mxu1  ;;  %v4463_v28 = vpop.f32.mrb[3].mxu0  ;;  %4874 = vmatpush3.bf16.msra.mxu1 %v5138_v52  ;;  %4847 = vmatprep.subr.bf16.mxu0 %v5139_v57  ;;  %v4142_v16 = vld [vmem:[%s6393_s0 + $0x1d0] sm:$0xff]  ;;  %v4283_v21 = vcombine.high %v4135_v10, %v4139_v15 }
  0xfa   :  { %v4464_v30 = vadd.f32 %v4463_v28, %v4462_v24  ;;  %v4491_v31 = vpop.f32.mrb[3].mxu1  ;;  %v671_v42 = vadd.f32 %v4461_v20, %v6070_v40  ;;  %4875 = vmatprep.subr.bf16.mxu1 %v5140_v58  ;;  %v4282_v20 = vcombine.low %v4135_v10, %v4139_v15  ;;  %v4289_v22 = vcombine.high %v4142_v16, %v4146_v17  ;;  %v4147_v24 = vld [vmem:[%s6393_s0 + $0x1f8] sm:$0xff] }
  0xfb   :  { %v4492_v33 = vadd.f32 %v4491_v31, %v4490_v26  ;;  %3184 = vmatprep.mubr.bf16.mxu0 %v4281_v14  ;;  %3233 = vmatprep.mubr.bf16.mxu1 %v4283_v21 }
  0xfc   :  { %v674_v44 = vadd.f32 %v4464_v30, %v6070_v40  ;;  %v6083_v48 = vadd.f32 %v4489_v23, %v671_v42  ;;  %4848 = vmatpush3.bf16.msra.mxu0 %v5141_v59  ;;  %v4143_v23 = vld [vmem:[%s6393_s0 + $0x1d8] sm:$0xff] }
  0xfd   :  { %4876 = vmatpush3.bf16.msra.mxu1 %v5142_v60  ;;  %4849 = vmatprep.subr.bf16.mxu0 %v5143_v62  ;;  %v4291_v26 = vcombine.high %v4143_v23, %v4147_v24  ;;  %v4290_v36 = vcombine.low %v4143_v23, %v4147_v24 }
  0xfe   :  { %v6088_v50 = vadd.f32 %v4492_v33, %v674_v44  ;;  %v4465_v61 = vpop.f32.mrb[4].mxu0  ;;  %4877 = vmatprep.subr.bf16.mxu1 %v5144_v0  ;;  %v4288_v33 = vcombine.low %v4142_v16, %v4146_v17 }
  0xff   :  { %v4466_v63 = vpop.f32.mrb[5].mxu0  ;;  %v4493_v4 = vpop.f32.mrb[4].mxu1 }
 0x100   :  { %v4467_v1 = vadd.f32 %v4466_v63, %v4465_v61  ;;  %v4468_v2 = vpop.f32.mrb[6].mxu0  ;;  %4850 = vmatpush3.bf16.msra.mxu0 %v5145_v3  ;;  %v4494_v12 = vpop.f32.mrb[5].mxu1 }
 0x101   :  { %v4469_v7 = vpop.f32.mrb[7].mxu0  ;;  %4878 = vmatpush3.bf16.msra.mxu1 %v5146_v5  ;;  %v4495_v18 = vadd.f32 %v4494_v12, %v4493_v4  ;;  %v4496_v19 = vpop.f32.mrb[6].mxu1 }
 0x102   :  { %v679_v6 = vadd.f32 %v4467_v1, %v6070_v40  ;;  %v4470_v11 = vadd.f32 %v4469_v7, %v4468_v2  ;;  %v4497_v25 = vpop.f32.mrb[7].mxu1 }
 0x103   :  { %3185 = vmatmul.mubr.bf16.vlgmr.msra.gmra.mrb[56].mxu0 %v4280_v13  ;;  %v4498_v29 = vadd.f32 %v4497_v25, %v4496_v19 }
 0x104   :  { %v682_v27 = vadd.f32 %v4470_v11, %v6070_v40  ;;  %v728_v28 = vadd.f32 %v4495_v18, %v679_v6  ;;  %3234 = vmatmul.mubr.bf16.vlgmr.msra.gmra.mrb[56].mxu1 %v4282_v20  ;;  %3192 = vmatprep.mubr.bf16.mxu0 %v4289_v22 }
 0x105   :  { %3241 = vmatprep.mubr.bf16.mxu1 %v4291_v26 }
 0x106   :  { %v731_v30 = vadd.f32 %v4498_v29, %v682_v27 }
 0x10b   :  { %3193 = vmatmul.mubr.bf16.gmra.mrb[60].mxu0 %v4288_v33 }
 0x10c   :  { %3242 = vmatmul.mubr.bf16.gmra.mrb[60].mxu1 %v4290_v36 }
 0x116   :  { %v4515_v31 = vpop.f32.mrb[8].mxu0 }
 0x117   :  { %v4543_v32 = vpop.f32.mrb[8].mxu1  ;;  %v4516_v34 = vpop.f32.mrb[9].mxu0 }
 0x118   :  { %v4544_v35 = vpop.f32.mrb[9].mxu1  ;;  %v4517_v37 = vadd.f32 %v4516_v34, %v4515_v31  ;;  %v4518_v39 = vpop.f32.mrb[10].mxu0 }
 0x119   :  { %v4545_v38 = vadd.f32 %v4544_v35, %v4543_v32  ;;  %v4546_v41 = vpop.f32.mrb[10].mxu1  ;;  %v4519_v42 = vpop.f32.mrb[11].mxu0 }
 0x11a   :  { %v4547_v43 = vpop.f32.mrb[11].mxu1  ;;  %v769_v44 = vadd.f32 %v4517_v37, %v6083_v48  ;;  %v4520_v45 = vadd.f32 %v4519_v42, %v4518_v39 }
 0x11b   :  { %v4548_v46 = vadd.f32 %v4547_v43, %v4546_v41 }
 0x11c   :  { %v6153_v47 = vadd.f32 %v4545_v38, %v769_v44  ;;  %v772_v49 = vadd.f32 %v4520_v45, %v6088_v50 }
 0x11e   :  { %v6156_v51 = vadd.f32 %v4548_v46, %v772_v49  ;;  %v4521_v52 = vpop.f32.mrb[12].mxu0 }
 0x11f   :  { %v4522_v54 = vpop.f32.mrb[13].mxu0  ;;  %v4549_v48 = vpop.f32.mrb[12].mxu1 }
 0x120   :  { %v3250_v53 = vadd.f32 %v6156_v51, %v6153_v47  ;;  %v4523_v55 = vadd.f32 %v4522_v54, %v4521_v52  ;;  %v4524_v56 = vpop.f32.mrb[14].mxu0  ;;  %v4550_v60 = vpop.f32.mrb[13].mxu1 }
 0x121   :  { %v4525_v57 = vpop.f32.mrb[15].mxu0  ;;  %v4551_v62 = vadd.f32 %v4550_v60, %v4549_v48  ;;  %v4552_v63 = vpop.f32.mrb[14].mxu1 }
 0x122   :  { %v777_v58 = vadd.f32 %v4523_v55, %v728_v28  ;;  %v4526_v59 = vadd.f32 %v4525_v57, %v4524_v56  ;;  %v4553_v0 = vpop.f32.mrb[15].mxu1 }
 0x123   :  { %v4554_v50 = vadd.f32 %v4553_v0, %v4552_v63 }
 0x124   :  { %v780_v61 = vadd.f32 %v4526_v59, %v731_v30  ;;  %v6160_v1 = vadd.f32 %v4551_v62, %v777_v58 }
 0x126   :  { %v3251_v2 = vadd.f32 %v3250_v53, %v6160_v1  ;;  %v6163_v3 = vadd.f32 %v4554_v50, %v780_v61 }
 0x128   :  { %v6166_v4 = vadd.f32 %v3251_v2, %v6163_v3 }
 0x12a   :  { %v3253_v63 = vrot.slane %v6166_v4, 4 }
 0x136   :  { %v4571_v5 = vpop.f32.mrb[16].mxu0 }
 0x137   :  { %v4599_v6 = vpop.f32.mrb[16].mxu1  ;;  %v4572_v7 = vpop.f32.mrb[17].mxu0 }
 0x138   :  { %v4573_v8 = vadd.f32 %v4572_v7, %v4571_v5  ;;  %v4600_v9 = vpop.f32.mrb[17].mxu1  ;;  %v4574_v10 = vpop.f32.mrb[18].mxu0 }
 0x139   :  { %v4601_v11 = vadd.f32 %v4600_v9, %v4599_v6  ;;  %v4602_v12 = vpop.f32.mrb[18].mxu1  ;;  %v4575_v13 = vpop.f32.mrb[19].mxu0 }
 0x13a   :  { %v1477_v14 = vadd.f32 %v4573_v8, %v6070_v40  ;;  %v4576_v15 = vadd.f32 %v4575_v13, %v4574_v10  ;;  %v4603_v16 = vpop.f32.mrb[19].mxu1  ;;  %v3254_v10 = vadd.f32 %v3253_v63, %v6166_v4 }
 0x13b   :  { %v4604_v17 = vadd.f32 %v4603_v16, %v4602_v12 }
 0x13c   :  { %v1526_v18 = vadd.f32 %v4601_v11, %v1477_v14  ;;  %v1480_v19 = vadd.f32 %v4576_v15, %v6070_v40  ;;  %v3255_v15 = vrot.slane %v3254_v10, 2 }
 0x13e   :  { %v1529_v20 = vadd.f32 %v4604_v17, %v1480_v19  ;;  %v4577_v21 = vpop.f32.mrb[20].mxu0 }
 0x13f   :  { %v4578_v22 = vpop.f32.mrb[21].mxu0  ;;  %v4605_v25 = vpop.f32.mrb[20].mxu1 }
 0x140   :  { %v4579_v23 = vadd.f32 %v4578_v22, %v4577_v21  ;;  %v4580_v24 = vpop.f32.mrb[22].mxu0  ;;  %v4606_v27 = vpop.f32.mrb[21].mxu1 }
 0x141   :  { %v4581_v26 = vpop.f32.mrb[23].mxu0  ;;  %v4607_v30 = vadd.f32 %v4606_v27, %v4605_v25  ;;  %v4608_v31 = vpop.f32.mrb[22].mxu1 }
 0x142   :  { %v1485_v28 = vadd.f32 %v4579_v23, %v6070_v40  ;;  %v4582_v29 = vadd.f32 %v4581_v26, %v4580_v24  ;;  %v4609_v32 = vpop.f32.mrb[23].mxu1 }
 0x143   :  { %v4610_v35 = vadd.f32 %v4609_v32, %v4608_v31 }
 0x144   :  { %v1488_v33 = vadd.f32 %v4582_v29, %v6070_v40  ;;  %v1534_v34 = vadd.f32 %v4607_v30, %v1485_v28 }
 0x146   :  { %v1537_v36 = vadd.f32 %v4610_v35, %v1488_v33 }
 0x156   :  { %v4627_v37 = vpop.f32.mrb[24].mxu0 }
 0x157   :  { %v4655_v38 = vpop.f32.mrb[24].mxu1  ;;  %v4628_v39 = vpop.f32.mrb[25].mxu0 }
 0x158   :  { %v4629_v41 = vadd.f32 %v4628_v39, %v4627_v37  ;;  %v4656_v42 = vpop.f32.mrb[25].mxu1  ;;  %v4630_v43 = vpop.f32.mrb[26].mxu0 }
 0x159   :  { %v4657_v44 = vadd.f32 %v4656_v42, %v4655_v38  ;;  %v4658_v45 = vpop.f32.mrb[26].mxu1  ;;  %v4631_v46 = vpop.f32.mrb[27].mxu0 }
 0x15a   :  { %v1575_v49 = vadd.f32 %v4629_v41, %v1526_v18  ;;  %v4632_v52 = vadd.f32 %v4631_v46, %v4630_v43  ;;  %v4659_v53 = vpop.f32.mrb[27].mxu1  ;;  %v3256_v18 = vadd.f32 %v3255_v15, %v3254_v10 }
 0x15b   :  { %v4660_v54 = vadd.f32 %v4659_v53, %v4658_v45 }
 0x15c   :  { %v6172_v55 = vadd.f32 %v4657_v44, %v1575_v49  ;;  %v1578_v56 = vadd.f32 %v4632_v52, %v1529_v20  ;;  %v3257_v21 = vrot.slane %v3256_v18, 1 }
 0x15e   :  { %v6174_v57 = vadd.f32 %v4660_v54, %v1578_v56  ;;  %v4633_v58 = vpop.f32.mrb[28].mxu0  ;;  %v3258_v24 = vadd.f32 %v3257_v21, %v3256_v18 }
 0x15f   :  { %v4634_v59 = vpop.f32.mrb[29].mxu0  ;;  %v4661_v50 = vpop.f32.mrb[28].mxu1 }
 0x160   :  { %v3260_v48 = vadd.f32 %v6174_v57, %v6172_v55  ;;  %v4635_v60 = vadd.f32 %v4634_v59, %v4633_v58  ;;  %v4636_v61 = vpop.f32.mrb[30].mxu0  ;;  %v4662_v5 = vpop.f32.mrb[29].mxu1 }
 0x161   :  { %v4637_v62 = vpop.f32.mrb[31].mxu0  ;;  %v4663_v7 = vadd.f32 %v4662_v5, %v4661_v50  ;;  %v4664_v8 = vpop.f32.mrb[30].mxu1 }
 0x162   :  { %v1583_v0 = vadd.f32 %v4635_v60, %v1534_v34  ;;  %v4638_v2 = vadd.f32 %v4637_v62, %v4636_v61  ;;  %v4665_v9 = vpop.f32.mrb[31].mxu1 }
 0x163   :  { %v4666_v12 = vadd.f32 %v4665_v9, %v4664_v8 }
 0x164   :  { %v1586_v6 = vadd.f32 %v4638_v2, %v1537_v36  ;;  %v6180_v11 = vadd.f32 %v4663_v7, %v1583_v0 }
 0x166   :  { %v3261_v13 = vadd.f32 %v3260_v48, %v6180_v11  ;;  %v6183_v14 = vadd.f32 %v4666_v12, %v1586_v6 }
 0x168   :  { %v3262_v16 = vadd.f32 %v3261_v13, %v6183_v14 }
 0x16a   :  { %v3263_v17 = vrot.slane %v3262_v16, 4 }
 0x16c   :  { %v3264_v19 = vadd.f32 %v3263_v17, %v3262_v16 }
 0x16e   :  { %v3265_v20 = vrot.slane %v3264_v19, 2 }
 0x170   :  { %v3266_v22 = vadd.f32 %v3265_v20, %v3264_v19 }
 0x172   :  { %v3267_v23 = vrot.slane %v3266_v22, 1 }
 0x174   :  { %v3268_v25 = vadd.f32 %v3267_v23, %v3266_v22 }
 0x176   :  { %v6186_v4 = vadd.f32 %v3268_v25, %v3258_v24  ;;  %v4683_v26 = vpop.f32.mrb[32].mxu0 }
 0x177   :  { %v4711_v27 = vpop.f32.mrb[32].mxu1  ;;  %v4684_v28 = vpop.f32.mrb[33].mxu0 }
 0x178   :  { %v4712_v29 = vpop.f32.mrb[33].mxu1  ;;  %v4685_v30 = vadd.f32 %v4684_v28, %v4683_v26  ;;  %v4686_v32 = vpop.f32.mrb[34].mxu0 }
 0x179   :  { %v4713_v31 = vadd.f32 %v4712_v29, %v4711_v27  ;;  %v4714_v33 = vpop.f32.mrb[34].mxu1  ;;  %v4687_v34 = vpop.f32.mrb[35].mxu0 }
 0x17a   :  { %v4715_v35 = vpop.f32.mrb[35].mxu1  ;;  %v2283_v36 = vadd.f32 %v4685_v30, %v6070_v40  ;;  %v4688_v37 = vadd.f32 %v4687_v34, %v4686_v32 }
 0x17b   :  { %v4716_v38 = vadd.f32 %v4715_v35, %v4714_v33 }
 0x17c   :  { %v2332_v39 = vadd.f32 %v4713_v31, %v2283_v36  ;;  %v2286_v41 = vadd.f32 %v4688_v37, %v6070_v40 }
 0x17e   :  { %v2335_v42 = vadd.f32 %v4716_v38, %v2286_v41  ;;  %v4689_v43 = vpop.f32.mrb[36].mxu0 }
 0x17f   :  { %v4690_v44 = vpop.f32.mrb[37].mxu0  ;;  %v4717_v49 = vpop.f32.mrb[36].mxu1 }
 0x180   :  { %v4691_v45 = vadd.f32 %v4690_v44, %v4689_v43  ;;  %v4692_v46 = vpop.f32.mrb[38].mxu0  ;;  %v4718_v56 = vpop.f32.mrb[37].mxu1 }
 0x181   :  { %v4693_v52 = vpop.f32.mrb[39].mxu0  ;;  %v4719_v58 = vadd.f32 %v4718_v56, %v4717_v49  ;;  %v4720_v48 = vpop.f32.mrb[38].mxu1 }
 0x182   :  { %v2291_v53 = vadd.f32 %v4691_v45, %v6070_v40  ;;  %v4694_v54 = vadd.f32 %v4693_v52, %v4692_v46  ;;  %v4721_v60 = vpop.f32.mrb[39].mxu1 }
 0x183   :  { %v4722_v62 = vadd.f32 %v4721_v60, %v4720_v48 }
 0x184   :  { %v2294_v59 = vadd.f32 %v4694_v54, %v6070_v40  ;;  %v2340_v61 = vadd.f32 %v4719_v58, %v2291_v53 }
 0x186   :  { %v2343_v63 = vadd.f32 %v4722_v62, %v2294_v59 }
 0x196   :  { %v4739_v0 = vpop.f32.mrb[40].mxu0 }
 0x197   :  { %v4767_v50 = vpop.f32.mrb[40].mxu1  ;;  %v4740_v2 = vpop.f32.mrb[41].mxu0 }
 0x198   :  { %v4741_v5 = vadd.f32 %v4740_v2, %v4739_v0  ;;  %v4768_v6 = vpop.f32.mrb[41].mxu1  ;;  %v4742_v7 = vpop.f32.mrb[42].mxu0 }
 0x199   :  { %v4769_v8 = vadd.f32 %v4768_v6, %v4767_v50  ;;  %v4770_v9 = vpop.f32.mrb[42].mxu1  ;;  %v4743_v10 = vpop.f32.mrb[43].mxu0 }
 0x19a   :  { %v2381_v12 = vadd.f32 %v4741_v5, %v2332_v39  ;;  %v4744_v13 = vadd.f32 %v4743_v10, %v4742_v7  ;;  %v4771_v15 = vpop.f32.mrb[43].mxu1 }
 0x19b   :  { %v4772_v16 = vadd.f32 %v4771_v15, %v4770_v9 }
 0x19c   :  { %v6192_v17 = vadd.f32 %v4769_v8, %v2381_v12  ;;  %v2384_v18 = vadd.f32 %v4744_v13, %v2335_v42 }
 0x19e   :  { %v6194_v19 = vadd.f32 %v4772_v16, %v2384_v18  ;;  %v4745_v21 = vpop.f32.mrb[44].mxu0 }
 0x19f   :  { %v4746_v22 = vpop.f32.mrb[45].mxu0  ;;  %v4773_v25 = vpop.f32.mrb[44].mxu1 }
 0x1a0   :  { %v3270_v20 = vadd.f32 %v6194_v19, %v6192_v17  ;;  %v4747_v23 = vadd.f32 %v4746_v22, %v4745_v21  ;;  %v4748_v24 = vpop.f32.mrb[46].mxu0  ;;  %v4774_v29 = vpop.f32.mrb[45].mxu1 }
 0x1a1   :  { %v4749_v26 = vpop.f32.mrb[47].mxu0  ;;  %v4775_v30 = vadd.f32 %v4774_v29, %v4773_v25  ;;  %v4776_v31 = vpop.f32.mrb[46].mxu1 }
 0x1a2   :  { %v2389_v27 = vadd.f32 %v4747_v23, %v2340_v61  ;;  %v4750_v28 = vadd.f32 %v4749_v26, %v4748_v24  ;;  %v4777_v33 = vpop.f32.mrb[47].mxu1 }
 0x1a3   :  { %v4778_v35 = vadd.f32 %v4777_v33, %v4776_v31 }
 0x1a4   :  { %v2392_v32 = vadd.f32 %v4750_v28, %v2343_v63  ;;  %v6198_v34 = vadd.f32 %v4775_v30, %v2389_v27 }
 0x1a6   :  { %v3271_v36 = vadd.f32 %v3270_v20, %v6198_v34  ;;  %v6201_v37 = vadd.f32 %v4778_v35, %v2392_v32 }
 0x1a8   :  { %v3272_v38 = vadd.f32 %v3271_v36, %v6201_v37 }
 0x1aa   :  { %v3273_v39 = vrot.slane %v3272_v38, 4 }
 0x1ac   :  { %v3274_v41 = vadd.f32 %v3273_v39, %v3272_v38 }
 0x1ae   :  { %v3275_v42 = vrot.slane %v3274_v41, 2 }
 0x1b0   :  { %v3276_v43 = vadd.f32 %v3275_v42, %v3274_v41 }
 0x1b2   :  { %v3277_v44 = vrot.slane %v3276_v43, 1 }
 0x1b4   :  { %v3278_v45 = vadd.f32 %v3277_v44, %v3276_v43 }
 0x1b6   :  { %v6205_v46 = vadd.f32 %v3278_v45, %v6186_v4  ;;  %v4795_v49 = vpop.f32.mrb[48].mxu0 }
 0x1b7   :  { %v4823_v52 = vpop.f32.mrb[48].mxu1  ;;  %v4796_v53 = vpop.f32.mrb[49].mxu0 }
 0x1b8   :  { %v4797_v54 = vadd.f32 %v4796_v53, %v4795_v49  ;;  %v4824_v56 = vpop.f32.mrb[49].mxu1  ;;  %v4798_v58 = vpop.f32.mrb[50].mxu0 }
 0x1b9   :  { %v4825_v48 = vadd.f32 %v4824_v56, %v4823_v52  ;;  %v4826_v59 = vpop.f32.mrb[50].mxu1  ;;  %v4799_v60 = vpop.f32.mrb[51].mxu0 }
 0x1ba   :  { %v3089_v61 = vadd.f32 %v4797_v54, %v6070_v40  ;;  %v4800_v62 = vadd.f32 %v4799_v60, %v4798_v58  ;;  %v4827_v63 = vpop.f32.mrb[51].mxu1 }
 0x1bb   :  { %v4828_v0 = vadd.f32 %v4827_v63, %v4826_v59 }
 0x1bc   :  { %v3138_v50 = vadd.f32 %v4825_v48, %v3089_v61  ;;  %v3092_v2 = vadd.f32 %v4800_v62, %v6070_v40 }
 0x1be   :  { %v3141_v5 = vadd.f32 %v4828_v0, %v3092_v2  ;;  %v4801_v4 = vpop.f32.mrb[52].mxu0 }
 0x1bf   :  { %v4802_v6 = vpop.f32.mrb[53].mxu0  ;;  %v4829_v12 = vpop.f32.mrb[52].mxu1 }
 0x1c0   :  { %v4803_v7 = vadd.f32 %v4802_v6, %v4801_v4  ;;  %v4804_v8 = vpop.f32.mrb[54].mxu0  ;;  %v4830_v15 = vpop.f32.mrb[53].mxu1 }
 0x1c1   :  { %v4805_v9 = vpop.f32.mrb[55].mxu0  ;;  %v4831_v18 = vadd.f32 %v4830_v15, %v4829_v12  ;;  %v4832_v20 = vpop.f32.mrb[54].mxu1 }
 0x1c2   :  { %v3097_v10 = vadd.f32 %v4803_v7, %v6070_v40  ;;  %v4806_v13 = vadd.f32 %v4805_v9, %v4804_v8  ;;  %v4833_v21 = vpop.f32.mrb[55].mxu1 }
 0x1c3   :  { %v4834_v23 = vadd.f32 %v4833_v21, %v4832_v20 }
 0x1c4   :  { %v3100_v16 = vadd.f32 %v4806_v13, %v6070_v40  ;;  %v3146_v22 = vadd.f32 %v4831_v18, %v3097_v10 }
 0x1c6   :  { %v3149_v24 = vadd.f32 %v4834_v23, %v3100_v16 }
 0x1d6   :  { %v4851_v25 = vpop.f32.mrb[56].mxu0 }
 0x1d7   :  { %v4879_v26 = vpop.f32.mrb[56].mxu1  ;;  %v4852_v27 = vpop.f32.mrb[57].mxu0 }
 0x1d8   :  { %v4853_v28 = vadd.f32 %v4852_v27, %v4851_v25  ;;  %v4880_v29 = vpop.f32.mrb[57].mxu1  ;;  %v4854_v30 = vpop.f32.mrb[58].mxu0 }
 0x1d9   :  { %v4881_v31 = vadd.f32 %v4880_v29, %v4879_v26  ;;  %v4882_v32 = vpop.f32.mrb[58].mxu1  ;;  %v4855_v33 = vpop.f32.mrb[59].mxu0 }
 0x1da   :  { %v3187_v35 = vadd.f32 %v4853_v28, %v3138_v50  ;;  %v4856_v36 = vadd.f32 %v4855_v33, %v4854_v30  ;;  %v4883_v38 = vpop.f32.mrb[59].mxu1 }
 0x1db   :  { %v4884_v39 = vadd.f32 %v4883_v38, %v4882_v32 }
 0x1dc   :  { %v3236_v40 = vadd.f32 %v4881_v31, %v3187_v35  ;;  %v3190_v41 = vadd.f32 %v4856_v36, %v3141_v5 }
 0x1de   :  { %v3239_v42 = vadd.f32 %v4884_v39, %v3190_v41  ;;  %v4857_v43 = vpop.f32.mrb[60].mxu0 }
 0x1df   :  { %v4885_v44 = vpop.f32.mrb[60].mxu1  ;;  %v4858_v45 = vpop.f32.mrb[61].mxu0 }
 0x1e0   :  { %v3280_v49 = vadd.f32 %v3239_v42, %v3236_v40  ;;  %v4859_v52 = vadd.f32 %v4858_v45, %v4857_v43  ;;  %v4886_v53 = vpop.f32.mrb[61].mxu1  ;;  %v4860_v54 = vpop.f32.mrb[62].mxu0 }
 0x1e1   :  { %v4887_v56 = vadd.f32 %v4886_v53, %v4885_v44  ;;  %v4888_v58 = vpop.f32.mrb[62].mxu1  ;;  %v4861_v48 = vpop.f32.mrb[63].mxu0 }
 0x1e2   :  { %v3195_v59 = vadd.f32 %v4859_v52, %v3146_v22  ;;  %v4862_v60 = vadd.f32 %v4861_v48, %v4860_v54  ;;  %v4889_v61 = vpop.f32.mrb[63].mxu1 }
 0x1e3   :  { %v4890_v62 = vadd.f32 %v4889_v61, %v4888_v58 }
 0x1e4   :  { %v3244_v63 = vadd.f32 %v4887_v56, %v3195_v59  ;;  %v3198_v0 = vadd.f32 %v4862_v60, %v3149_v24 }
 0x1e6   :  { %v3281_v50 = vadd.f32 %v3280_v49, %v3244_v63  ;;  %v3247_v2 = vadd.f32 %v4890_v62, %v3198_v0 }
 0x1e8   :  { %v3282_v5 = vadd.f32 %v3281_v50, %v3247_v2 }
 0x1ea   :  { %v3283_v4 = vrot.slane %v3282_v5, 4 }
 0x1ec   :  { %v3284_v6 = vadd.f32 %v3283_v4, %v3282_v5 }
 0x1ee   :  { %v3285_v7 = vrot.slane %v3284_v6, 2 }
 0x1f0   :  { %v3286_v8 = vadd.f32 %v3285_v7, %v3284_v6 }
 0x1f2   :  { %v3287_v9 = vrot.slane %v3286_v8, 1 }
 0x1f4   :  { %v3288_v10 = vadd.f32 %v3287_v9, %v3286_v8 }
 0x1f6   :  { %v3289_v12 = vadd.f32 %v3288_v10, %v6205_v46 }
 0x1f8   :  { %v3291_v13 = vmul.f32 0.0078125, %v3289_v12 }
 0x1fa   :  { %v6213_v15 = vsub.f32 %v6153_v47, %v3291_v13  ;;  %v6216_v16 = vsub.f32 %v6156_v51, %v3291_v13  ;;  %v6219_v18 = vsub.f32 %v6160_v1, %v3291_v13  ;;  %v6222_v20 = vsub.f32 %v6163_v3, %v3291_v13 }
 0x1fb   :  { %v6225_v21 = vsub.f32 %v6172_v55, %v3291_v13  ;;  %v6228_v22 = vsub.f32 %v6174_v57, %v3291_v13  ;;  %v6231_v46 = vsub.f32 %v6180_v11, %v3291_v13  ;;  %v6234_v47 = vsub.f32 %v6183_v14, %v3291_v13 }
 0x1fc   :  { %v3296_v51 = vmul.f32 %v6213_v15, %v6213_v15  ;;  %v3297_v1 = vmul.f32 %v6216_v16, %v6216_v16  ;;  %v3298_v3 = vmul.f32 %v6219_v18, %v6219_v18  ;;  %v3299_v55 = vmul.f32 %v6222_v20, %v6222_v20 }
 0x1fd   :  { %v3314_v57 = vmul.f32 %v6225_v21, %v6225_v21  ;;  %v3315_v11 = vmul.f32 %v6228_v22, %v6228_v22  ;;  %v3316_v14 = vmul.f32 %v6231_v46, %v6231_v46  ;;  %v6251_v24 = vsub.f32 %v6192_v17, %v3291_v13 }
 0x1fe   :  { %v3300_v23 = vadd.f32 %v3297_v1, %v3296_v51  ;;  %v6254_v25 = vsub.f32 %v6194_v19, %v3291_v13  ;;  %v6257_v26 = vsub.f32 %v6198_v34, %v3291_v13  ;;  %v6260_v28 = vsub.f32 %v6201_v37, %v3291_v13 }
 0x1ff   :  { %v3318_v27 = vadd.f32 %v3315_v11, %v3314_v57  ;;  %v6262_v29 = vsub.f32 %v3236_v40, %v3291_v13  ;;  %v6264_v30 = vsub.f32 %v3239_v42, %v3291_v13  ;;  %v3317_v32 = vmul.f32 %v6234_v47, %v6234_v47 }
 0x200   :  { %v3301_v31 = vadd.f32 %v3300_v23, %v3298_v3  ;;  %v3332_v17 = vmul.f32 %v6251_v24, %v6251_v24  ;;  %v3333_v19 = vmul.f32 %v6254_v25, %v6254_v25  ;;  %v3334_v33 = vmul.f32 %v6257_v26, %v6257_v26 }
 0x201   :  { %v3319_v34 = vadd.f32 %v3318_v27, %v3316_v14  ;;  %v6274_v37 = vsub.f32 %v3244_v63, %v3291_v13  ;;  %v6276_v35 = vsub.f32 %v3247_v2, %v3291_v13  ;;  %v3350_v39 = vmul.f32 %v6262_v29, %v6262_v29 }
 0x202   :  { %v3302_v36 = vadd.f32 %v3301_v31, %v3299_v55  ;;  %v3336_v38 = vadd.f32 %v3333_v19, %v3332_v17  ;;  %v3351_v40 = vmul.f32 %v6264_v30, %v6264_v30  ;;  %v3335_v42 = vmul.f32 %v6260_v28, %v6260_v28 }
 0x203   :  { %v3320_v41 = vadd.f32 %v3319_v34, %v3317_v32  ;;  %v3352_v45 = vmul.f32 %v6274_v37, %v6274_v37  ;;  %v3353_v56 = vmul.f32 %v6276_v35, %v6276_v35  ;;  %v6293_v32 = vld [vmem:[%s6395_s3] ss:$0 sm:$0xff] }
 0x204   :  { %v3303_v43 = vrot.slane %v3302_v36, 4  ;;  %v3337_v44 = vadd.f32 %v3336_v38, %v3334_v33  ;;  %v3354_v49 = vadd.f32 %v3351_v40, %v3350_v39 }
 0x205   :  { %v3321_v52 = vrot.slane %v3320_v41, 4 }
 0x206   :  { %v3304_v53 = vadd.f32 %v3303_v43, %v3302_v36  ;;  %v3338_v54 = vadd.f32 %v3337_v44, %v3335_v42  ;;  %v3355_v58 = vadd.f32 %v3354_v49, %v3352_v45  ;;  %v6306_v36 = vld [vmem:[%s6396_s4] ss:$0 sm:$0xff] }
 0x207   :  { %v3322_v48 = vadd.f32 %v3321_v52, %v3320_v41 }
 0x208   :  { %v3305_v59 = vrot.slane %v3304_v53, 2  ;;  %v3339_v60 = vrot.slane %v3338_v54, 4  ;;  %v3356_v61 = vadd.f32 %v3355_v58, %v3353_v56 }
 0x209   :  { %v3323_v62 = vrot.slane %v3322_v48, 2 }
 0x20a   :  { %v3306_v63 = vadd.f32 %v3305_v59, %v3304_v53  ;;  %v3340_v0 = vadd.f32 %v3339_v60, %v3338_v54  ;;  %v3357_v50 = vrot.slane %v3356_v61, 4 }
 0x20b   :  { %v3324_v2 = vadd.f32 %v3323_v62, %v3322_v48 }
 0x20c   :  { %v3307_v5 = vrot.slane %v3306_v63, 1  ;;  %v3341_v4 = vrot.slane %v3340_v0, 2  ;;  %v3358_v6 = vadd.f32 %v3357_v50, %v3356_v61 }
 0x20d   :  { %v3325_v7 = vrot.slane %v3324_v2, 1 }
 0x20e   :  { %v3308_v8 = vadd.f32 %v3307_v5, %v3306_v63  ;;  %v3342_v9 = vadd.f32 %v3341_v4, %v3340_v0  ;;  %v3359_v10 = vrot.slane %v3358_v6, 2 }
 0x20f   :  { %v3326_v12 = vadd.f32 %v3325_v7, %v3324_v2 }
 0x210   :  { %v3343_v13 = vrot.slane %v3342_v9, 1  ;;  %v3360_v51 = vadd.f32 %v3359_v10, %v3358_v6 }
 0x211   :  { %v3327_v1 = vadd.f32 %v3326_v12, %v3308_v8 }
 0x212   :  { %v3344_v3 = vadd.f32 %v3343_v13, %v3342_v9  ;;  %v3361_v55 = vrot.slane %v3360_v51, 1 }
 0x214   :  { %v3345_v57 = vadd.f32 %v3344_v3, %v3327_v1  ;;  %v3362_v11 = vadd.f32 %v3361_v55, %v3360_v51 }
 0x216   :  { %v3363_v14 = vadd.f32 %v3362_v11, %v3345_v57 }
 0x218   :  { %v3364_v23 = vmul.f32 0.0078125, %v3363_v14 }
 0x21a   :  { %v3365_v27 = vadd.f32 1e-05, %v3364_v23 }
 0x21c   :  { %5147 = vrsqrt.f32 %v3365_v27 }
 0x226   :  { %v6288_v31 = vpop.eup %5147 }
 0x227   :  { %v3367_v17 = vmul.f32 %v6288_v31, %v6213_v15  ;;  %v3368_v19 = vmul.f32 %v6288_v31, %v6216_v16  ;;  %v3369_v34 = vmul.f32 %v6288_v31, %v6219_v18  ;;  %v3370_v33 = vmul.f32 %v6288_v31, %v6222_v20 }
 0x228   :  { %v3425_v38 = vmul.f32 %v6288_v31, %v6225_v21  ;;  %v3426_v15 = vmul.f32 %v6288_v31, %v6228_v22  ;;  %v3427_v16 = vmul.f32 %v6288_v31, %v6231_v46  ;;  %v3428_v18 = vmul.f32 %v6288_v31, %v6234_v47 }
 0x229   :  { %v3378_v39 = vmul.f32 %v6293_v32, %v3367_v17  ;;  %v3379_v20 = vmul.f32 %v6293_v32, %v3368_v19  ;;  %v3380_v40 = vmul.f32 %v6293_v32, %v3369_v34  ;;  %v3381_v41 = vmul.f32 %v6293_v32, %v3370_v33 }
 0x22a   :  { %v3436_v42 = vmul.f32 %v6293_v32, %v3425_v38  ;;  %v3437_v21 = vmul.f32 %v6293_v32, %v3426_v15  ;;  %v3438_v22 = vmul.f32 %v6293_v32, %v3427_v16  ;;  %v3439_v43 = vmul.f32 %v6293_v32, %v3428_v18 }
 0x22b   :  { %v3389_v46 = vadd.f32 %v6306_v36, %v3378_v39  ;;  %v3390_v47 = vadd.f32 %v6306_v36, %v3379_v20  ;;  %v3391_v44 = vadd.f32 %v6306_v36, %v3380_v40  ;;  %v3392_v45 = vadd.f32 %v6306_v36, %v3381_v41 }
 0x22c   :  { %v3447_v49 = vadd.f32 %v6306_v36, %v3436_v42  ;;  %v3448_v52 = vadd.f32 %v6306_v36, %v3437_v21  ;;  %v3449_v53 = vadd.f32 %v6306_v36, %v3438_v22  ;;  %v3450_v54 = vadd.f32 %v6306_v36, %v3439_v43 }
 0x22d   :  { %vm3393_vm0 = vcmp.ge.f32.partialorder %v3389_v46, 0.0  ;;  %vm3394_vm1 = vcmp.ge.f32.partialorder %v3390_v47, 0.0  ;;  %vm3395_vm2 = vcmp.ge.f32.partialorder %v3391_v44, 0.0  ;;  %vm3396_vm3 = vcmp.ge.f32.partialorder %v3392_v45, 0.0 }
 0x22e   :  { %v3397_v56 = vmul.f32 0.2, %v3389_v46  ;;  %v3398_v58 = vmul.f32 0.2, %v3390_v47  ;;  %v3399_v48 = vmul.f32 0.2, %v3391_v44  ;;  %v3483_v59 = vmul.f32 %v6288_v31, %v6251_v24 }
 0x22f   :  { %v3400_v60 = vmul.f32 0.2, %v3392_v45  ;;  %vm3451_vm4 = vcmp.ge.f32.partialorder %v3447_v49, 0.0  ;;  %vm3452_vm5 = vcmp.ge.f32.partialorder %v3448_v52, 0.0  ;;  %vm3453_vm6 = vcmp.ge.f32.partialorder %v3449_v53, 0.0 }
 0x230   :  { %v3401_v61 = vsel %vm3393_vm0, %v3389_v46, %v3397_v56  ;;  %v3402_v62 = vsel %vm3394_vm1, %v3390_v47, %v3398_v58  ;;  %v3403_v63 = vsel %vm3395_vm2, %v3391_v44, %v3399_v48  ;;  %vm3454_vm7 = vcmp.ge.f32.partialorder %v3450_v54, 0.0 }
 0x231   :  { %v3404_v0 = vsel %vm3396_vm3, %v3392_v45, %v3400_v60  ;;  %v4399_v50 = vpack.c.bf16 %v3402_v62, %v3401_v61  ;;  %v3455_v2 = vmul.f32 0.2, %v3447_v49  ;;  %v3456_v5 = vmul.f32 0.2, %v3448_v52 }
 0x232   :  { %v4404_v4 = vpack.c.bf16 %v3404_v0, %v3403_v63  ;;  %v3457_v6 = vmul.f32 0.2, %v3449_v53  ;;  %v3458_v7 = vmul.f32 0.2, %v3450_v54  ;;  %v3484_v8 = vmul.f32 %v6288_v31, %v6254_v25 }
 0x233   :  { %4400 = vst [vmem:[%s6397_s5] sm:$0xff] %v4399_v50   ;;  %v3459_v24 = vsel %vm3451_vm4, %v3447_v49, %v3455_v2  ;;  %v3460_v9 = vsel %vm3452_vm5, %v3448_v52, %v3456_v5  ;;  %v3485_v10 = vmul.f32 %v6288_v31, %v6257_v26  ;;  %v3486_v12 = vmul.f32 %v6288_v31, %v6260_v28 }
 0x234   :  { %4436 = vst [vmem:[%s6397_s5 + $0x8] sm:$0xff] %v4404_v4   ;;  %v3461_v25 = vsel %vm3453_vm6, %v3449_v53, %v3457_v6  ;;  %v3462_v13 = vsel %vm3454_vm7, %v3450_v54, %v3458_v7  ;;  %v4409_v51 = vpack.c.bf16 %v3460_v9, %v3459_v24  ;;  %v3494_v1 = vmul.f32 %v6293_v32, %v3483_v59 }
 0x235   :  { %v4414_v3 = vpack.c.bf16 %v3462_v13, %v3461_v25  ;;  %v3495_v55 = vmul.f32 %v6293_v32, %v3484_v8  ;;  %v3496_v57 = vmul.f32 %v6293_v32, %v3485_v10  ;;  %v3497_v26 = vmul.f32 %v6293_v32, %v3486_v12 }
 0x236   :  { %4437 = vst [vmem:[%s6397_s5 + $0x10] sm:$0xff] %v4409_v51   ;;  %v3505_v28 = vadd.f32 %v6306_v36, %v3494_v1  ;;  %v3541_v11 = vmul.f32 %v6288_v31, %v6262_v29  ;;  %v3542_v14 = vmul.f32 %v6288_v31, %v6264_v30  ;;  %v3543_v23 = vmul.f32 %v6288_v31, %v6274_v37 }
 0x237   :  { %4438 = vst [vmem:[%s6397_s5 + $0x18] sm:$0xff] %v4414_v3   ;;  %v3506_v27 = vadd.f32 %v6306_v36, %v3495_v55  ;;  %v3507_v17 = vadd.f32 %v6306_v36, %v3496_v57  ;;  %v3508_v19 = vadd.f32 %v6306_v36, %v3497_v26  ;;  %v3544_v34 = vmul.f32 %v6288_v31, %v6276_v35 }
 0x238   :  { %vm3509_vm8 = vcmp.ge.f32.partialorder %v3505_v28, 0.0  ;;  %v3513_v29 = vmul.f32 0.2, %v3505_v28  ;;  %v3552_v30 = vmul.f32 %v6293_v32, %v3541_v11  ;;  %v3553_v33 = vmul.f32 %v6293_v32, %v3542_v14 }
 0x239   :  { %vm3510_vm9 = vcmp.ge.f32.partialorder %v3506_v27, 0.0  ;;  %vm3511_vm10 = vcmp.ge.f32.partialorder %v3507_v17, 0.0  ;;  %vm3512_vm11 = vcmp.ge.f32.partialorder %v3508_v19, 0.0  ;;  %v3514_v37 = vmul.f32 0.2, %v3506_v27 }
 0x23a   :  { %v3515_v38 = vmul.f32 0.2, %v3507_v17  ;;  %v3516_v15 = vmul.f32 0.2, %v3508_v19  ;;  %v3517_v16 = vsel %vm3509_vm8, %v3505_v28, %v3513_v29  ;;  %v3554_v18 = vmul.f32 %v6293_v32, %v3543_v23 }
 0x23b   :  { %v3518_v39 = vsel %vm3510_vm9, %v3506_v27, %v3514_v37  ;;  %v3555_v20 = vmul.f32 %v6293_v32, %v3544_v34  ;;  %v3563_v35 = vadd.f32 %v6306_v36, %v3552_v30  ;;  %v3564_v31 = vadd.f32 %v6306_v36, %v3553_v33 }
 0x23c   :  { %v3519_v40 = vsel %vm3511_vm10, %v3507_v17, %v3515_v38  ;;  %v3520_v41 = vsel %vm3512_vm11, %v3508_v19, %v3516_v15  ;;  %v4419_v42 = vpack.c.bf16 %v3518_v39, %v3517_v16  ;;  %v3565_v21 = vadd.f32 %v6306_v36, %v3554_v18 }
 0x23d   :  { %v4424_v22 = vpack.c.bf16 %v3520_v41, %v3519_v40  ;;  %v3566_v43 = vadd.f32 %v6306_v36, %v3555_v20  ;;  %vm3567_vm12 = vcmp.ge.f32.partialorder %v3563_v35, 0.0  ;;  %vm3568_vm13 = vcmp.ge.f32.partialorder %v3564_v31, 0.0 }
 0x23e   :  { %4439 = vst [vmem:[%s6397_s5 + $0x20] sm:$0xff] %v4419_v42   ;;  %vm3569_vm14 = vcmp.ge.f32.partialorder %v3565_v21, 0.0  ;;  %v3571_v32 = vmul.f32 0.2, %v3563_v35  ;;  %v3572_v46 = vmul.f32 0.2, %v3564_v31 }
 0x23f   :  { %4440 = vst [vmem:[%s6397_s5 + $0x28] sm:$0xff] %v4424_v22   ;;  %vm3570_vm15 = vcmp.ge.f32.partialorder %v3566_v43, 0.0  ;;  %v3573_v47 = vmul.f32 0.2, %v3565_v21  ;;  %v3574_v44 = vmul.f32 0.2, %v3566_v43 }
 0x240   :  { %v3575_v45 = vsel %vm3567_vm12, %v3563_v35, %v3571_v32  ;;  %v3576_v49 = vsel %vm3568_vm13, %v3564_v31, %v3572_v46 }
 0x241   :  { %v3577_v52 = vsel %vm3569_vm14, %v3565_v21, %v3573_v47  ;;  %v3578_v36 = vsel %vm3570_vm15, %v3566_v43, %v3574_v44  ;;  %v4429_v53 = vpack.c.bf16 %v3576_v49, %v3575_v45 }
 0x242   :  { %v4434_v54 = vpack.c.bf16 %v3578_v36, %v3577_v52 }
 0x243   :  { %4441 = vst [vmem:[%s6397_s5 + $0x30] sm:$0xff] %v4429_v53  }
 0x244   :  { %4442 = vst [vmem:[%s6397_s5 + $0x38] sm:$0xff] %v4434_v54  }

// kernel: vae_forward.9
= control target key start
LH: loop header
LB: loop body
LE: loop exit
PB: predicated region body
PF: predicated region fallthrough
CT: control target
= control target key end

     0   :  { %s1406_s12 = smov 0   ;;  %s1408_s13 = smov 0   ;;  %s1557_s0 = inlined_call_operand.vmem [shape: bf16[4,128,512], index: 0, kind: input, shape index: {}]   ;;  %s1558_s1 = inlined_call_operand.vmem [shape: bf16[4,512,128], index: 1, kind: input, shape index: {}]   ;;  %s1559_s2 = inlined_call_operand.vmem [shape: f32[1,128], index: 2, kind: input, shape index: {}]   ;;  %s1560_s3 = inlined_call_operand.vmem [shape: f32[4,128,128], index: 3, kind: output, shape index: {}]  }
   0x1   :  { %s1410_s14 = smov 0  }
   0x2 LB: > { %s25_s15 = sadd.s32 1, %s1380_s13  ;;  %p1021_p0 = scmp.ge.s32.totalorder %s1384_s14, 1  ;;  %s1384_s14 = sphi %s1410_s14, %s13_s14   ;;  %s1380_s13 = sphi %s1408_s13, %s1562_s13   ;;  %s1376_s12 = sphi %s1406_s12, %s1561_s12  }
   0x3   : > { %p27_p1 = scmp.ge.s32.totalorder %s25_s15, 4  ;;  %p169_p2 = scmp.lt.s32.totalorder %s1384_s14, 5 }
   0x5   : > { %s1564_s15 = smov (%p27_p1, %s25_s15), 0  ;;  %p170_p3 = pnand %p1021_p0, %p169_p2 }
   0x6   : > { %p208_p4 = scmp.lt.s32.totalorder (!%p170_p3), %s1376_s12, 3 }
   0x7   : > { %173 = sbr.rel (%p170_p3) target bundleno = 341 (0x155), region = 32 }
   0xe   : > { %s1566_s12 = smov (!%p208_p4, %s1376_s12), 3 }
   0xf   : > { %s1095_s16 = sshll.u32 %s1566_s12, 8  ;;  %s1097_s25 = sshll.u32 %s1566_s12, 7 }
  0x10   : > { %s1432_s19 = scalar_lea.vmem %s1558_s1, %s1095_s16  ;;  %s1469_s22 = scalar_lea.vmem %s1557_s0, %s1095_s16 }
  0x11   : > { %v1250_v0 = vld [vmem:[%s1432_s19 + $0x40] sm:$0xff]   ;;  %v1254_v4 = vld [vmem:[%s1432_s19 + $0x48] sm:$0xff]   ;;  %v1258_v8 = vld [vmem:[%s1432_s19 + $0x50] sm:$0xff]   ;;  %s1518_s28 = scalar_lea.vmem %s1560_s3, %s1097_s25 }
  0x12   : > { %v1251_v1 = vld [vmem:[%s1432_s19 + $0xc0] sm:$0xff]   ;;  %1098 = vmatprep.subr.bf16.mxu0 %v1250_v0  ;;  %v1255_v5 = vld [vmem:[%s1432_s19 + $0xc8] sm:$0xff]   ;;  %v1259_v9 = vld [vmem:[%s1432_s19 + $0xd0] sm:$0xff]  }
  0x13   : > { %v1252_v2 = vld [vmem:[%s1432_s19] sm:$0xff]   ;;  %1162 = vmatprep.subr.bf16.mxu1 %v1251_v1  ;;  %v1256_v6 = vld [vmem:[%s1432_s19 + $0x8] sm:$0xff]   ;;  %v1260_v10 = vld [vmem:[%s1432_s19 + $0x10] sm:$0xff]  }
  0x14   : > { %v1253_v3 = vld [vmem:[%s1432_s19 + $0x80] sm:$0xff]   ;;  %1099 = vmatpush3.bf16.msra.mxu0 %v1252_v2  ;;  %v1257_v7 = vld [vmem:[%s1432_s19 + $0x88] sm:$0xff]   ;;  %v1261_v11 = vld [vmem:[%s1432_s19 + $0x90] sm:$0xff]  }
  0x15   : > { %1163 = vmatpush3.bf16.msra.mxu1 %v1253_v3  ;;  %1100 = vmatprep.subr.bf16.mxu0 %v1254_v4  ;;  %v1262_v12 = vld [vmem:[%s1432_s19 + $0x58] sm:$0xff]   ;;  %v1266_v16 = vld [vmem:[%s1432_s19 + $0x60] sm:$0xff]   ;;  %v1270_v20 = vld [vmem:[%s1432_s19 + $0x68] sm:$0xff]  }
  0x16   : > { %1164 = vmatprep.subr.bf16.mxu1 %v1255_v5  ;;  %v1263_v13 = vld [vmem:[%s1432_s19 + $0xd8] sm:$0xff]   ;;  %v1267_v17 = vld [vmem:[%s1432_s19 + $0xe0] sm:$0xff]   ;;  %v1271_v21 = vld [vmem:[%s1432_s19 + $0xe8] sm:$0xff]  }
  0x17   : > { %v1264_v14 = vld [vmem:[%s1432_s19 + $0x18] sm:$0xff]   ;;  %v1268_v18 = vld [vmem:[%s1432_s19 + $0x20] sm:$0xff]   ;;  %v1272_v22 = vld [vmem:[%s1432_s19 + $0x28] sm:$0xff]  }
  0x18   : > { %1101 = vmatpush3.bf16.msra.mxu0 %v1256_v6  ;;  %v1265_v15 = vld [vmem:[%s1432_s19 + $0x98] sm:$0xff]   ;;  %v1269_v19 = vld [vmem:[%s1432_s19 + $0xa0] sm:$0xff]   ;;  %v1273_v23 = vld [vmem:[%s1432_s19 + $0xa8] sm:$0xff]  }
  0x19   : > { %1165 = vmatpush3.bf16.msra.mxu1 %v1257_v7  ;;  %1102 = vmatprep.subr.bf16.mxu0 %v1258_v8  ;;  %v1274_v24 = vld [vmem:[%s1432_s19 + $0x70] sm:$0xff]   ;;  %v1278_v28 = vld [vmem:[%s1432_s19 + $0x78] sm:$0xff]   ;;  %v1508_v2 = vld [vmem:[%s1559_s2] ss:$0 sm:$0xff] }
  0x1a   : > { %1166 = vmatprep.subr.bf16.mxu1 %v1259_v9  ;;  %v1275_v25 = vld [vmem:[%s1432_s19 + $0xf0] sm:$0xff]   ;;  %v1279_v29 = vld [vmem:[%s1432_s19 + $0xf8] sm:$0xff]  }
  0x1b   : > { %v1276_v26 = vld [vmem:[%s1432_s19 + $0x30] sm:$0xff]   ;;  %v1280_v30 = vld [vmem:[%s1432_s19 + $0x38] sm:$0xff]  }
  0x1c   : > { %1103 = vmatpush3.bf16.msra.mxu0 %v1260_v10  ;;  %v1277_v27 = vld [vmem:[%s1432_s19 + $0xb0] sm:$0xff]   ;;  %v1281_v31 = vld [vmem:[%s1432_s19 + $0xb8] sm:$0xff]  }
  0x1d   : > { %1167 = vmatpush3.bf16.msra.mxu1 %v1261_v11  ;;  %1104 = vmatprep.subr.bf16.mxu0 %v1262_v12  ;;  %v1282_v32 = vld [vmem:[%s1469_s22] ss:$16 sps:$4 sm:$0xff]   ;;  %v1284_v33 = vld [vmem:[%s1469_s22 + $0x4] ss:$16 sps:$4 sm:$0xff]   ;;  %v1285_v34 = vld [vmem:[%s1469_s22 + $0x8] ss:$16 sps:$4 sm:$0xff]  }
  0x1e   : > { %1168 = vmatprep.subr.bf16.mxu1 %v1263_v13  ;;  %v1287_v35 = vld [vmem:[%s1469_s22 + $0xc] ss:$16 sps:$4 sm:$0xff]   ;;  %721 = vmatprep.mubr.bf16.mxu0 %v1284_v33  ;;  %v1288_v36 = vld [vmem:[%s1469_s22 + $0x24] ss:$16 sps:$4 sm:$0xff]   ;;  %v1292_v38 = vld [vmem:[%s1469_s22 + $0x20] ss:$16 sps:$4 sm:$0xff]  }
  0x1f   : > { %818 = vmatprep.mubr.bf16.mxu1 %v1287_v35  ;;  %v1290_v37 = vld [vmem:[%s1469_s22 + $0x2c] ss:$16 sps:$4 sm:$0xff]   ;;  %v1293_v39 = vld [vmem:[%s1469_s22 + $0x28] ss:$16 sps:$4 sm:$0xff]   ;;  %v1294_v40 = vld [vmem:[%s1469_s22 + $0x44] ss:$16 sps:$4 sm:$0xff]  }
  0x20   : > { %1105 = vmatpush3.bf16.msra.mxu0 %v1264_v14  ;;  %v1296_v41 = vld [vmem:[%s1469_s22 + $0x4c] ss:$16 sps:$4 sm:$0xff]   ;;  %v1298_v42 = vld [vmem:[%s1469_s22 + $0x40] ss:$16 sps:$4 sm:$0xff]   ;;  %v1299_v43 = vld [vmem:[%s1469_s22 + $0x48] ss:$16 sps:$4 sm:$0xff]  }
  0x21   : > { %1169 = vmatpush3.bf16.msra.mxu1 %v1265_v15  ;;  %1106 = vmatprep.subr.bf16.mxu0 %v1266_v16  ;;  %v1300_v44 = vld [vmem:[%s1469_s22 + $0x64] ss:$16 sps:$4 sm:$0xff]   ;;  %v1302_v45 = vld [vmem:[%s1469_s22 + $0x6c] ss:$16 sps:$4 sm:$0xff]   ;;  %v1304_v46 = vld [vmem:[%s1469_s22 + $0x60] ss:$16 sps:$4 sm:$0xff]  }
  0x22   : > { %1170 = vmatprep.subr.bf16.mxu1 %v1267_v17  ;;  %v1305_v47 = vld [vmem:[%s1469_s22 + $0x68] ss:$16 sps:$4 sm:$0xff]   ;;  %v1306_v48 = vld [vmem:[%s1469_s22 + $0x84] ss:$16 sps:$4 sm:$0xff]   ;;  %v1308_v49 = vld [vmem:[%s1469_s22 + $0x8c] ss:$16 sps:$4 sm:$0xff]  }
  0x23   : > { %v1310_v50 = vld [vmem:[%s1469_s22 + $0x80] ss:$16 sps:$4 sm:$0xff]   ;;  %v1311_v51 = vld [vmem:[%s1469_s22 + $0x88] ss:$16 sps:$4 sm:$0xff]   ;;  %v1312_v52 = vld [vmem:[%s1469_s22 + $0xa4] ss:$16 sps:$4 sm:$0xff]  }
  0x24   : > { %1107 = vmatpush3.bf16.msra.mxu0 %v1268_v18  ;;  %v1314_v53 = vld [vmem:[%s1469_s22 + $0xac] ss:$16 sps:$4 sm:$0xff]   ;;  %v1316_v54 = vld [vmem:[%s1469_s22 + $0xa0] ss:$16 sps:$4 sm:$0xff]   ;;  %v1317_v55 = vld [vmem:[%s1469_s22 + $0xa8] ss:$16 sps:$4 sm:$0xff]  }
  0x25   : > { %1171 = vmatpush3.bf16.msra.mxu1 %v1269_v19  ;;  %1108 = vmatprep.subr.bf16.mxu0 %v1270_v20  ;;  %v1318_v56 = vld [vmem:[%s1469_s22 + $0xc4] ss:$16 sps:$4 sm:$0xff]   ;;  %v1320_v57 = vld [vmem:[%s1469_s22 + $0xcc] ss:$16 sps:$4 sm:$0xff]   ;;  %v1322_v58 = vld [vmem:[%s1469_s22 + $0xc0] ss:$16 sps:$4 sm:$0xff]  }
  0x26   : > { %1172 = vmatprep.subr.bf16.mxu1 %v1271_v21  ;;  %v1323_v59 = vld [vmem:[%s1469_s22 + $0xc8] ss:$16 sps:$4 sm:$0xff]   ;;  %v1324_v60 = vld [vmem:[%s1469_s22 + $0xe4] ss:$16 sps:$4 sm:$0xff]   ;;  %v1326_v61 = vld [vmem:[%s1469_s22 + $0xec] ss:$16 sps:$4 sm:$0xff]  }
  0x27   : > { %v1328_v62 = vld [vmem:[%s1469_s22 + $0xe0] ss:$16 sps:$4 sm:$0xff]   ;;  %v1329_v63 = vld [vmem:[%s1469_s22 + $0xe8] ss:$16 sps:$4 sm:$0xff]  }
  0x28   : > { %1109 = vmatpush3.bf16.msra.mxu0 %v1272_v22 }
  0x29   : > { %1173 = vmatpush3.bf16.msra.mxu1 %v1273_v23  ;;  %1110 = vmatprep.subr.bf16.mxu0 %v1274_v24 }
  0x2a   : > { %1174 = vmatprep.subr.bf16.mxu1 %v1275_v25 }
  0x2c   : > { %1111 = vmatpush3.bf16.msra.mxu0 %v1276_v26 }
  0x2d   : > { %1175 = vmatpush3.bf16.msra.mxu1 %v1277_v27  ;;  %1112 = vmatprep.subr.bf16.mxu0 %v1278_v28 }
  0x2e   : > { %1176 = vmatprep.subr.bf16.mxu1 %v1279_v29 }
  0x30   : > { %1113 = vmatpush3.bf16.msra.mxu0 %v1280_v30 }
  0x31   : > { %1177 = vmatpush3.bf16.msra.mxu1 %v1281_v31 }
  0x33   : > { %722 = vmatmul.mubr.bf16.vlgmr.msra.gmra.mrb[0].mxu0 %v1282_v32 }
  0x34   : > { %819 = vmatmul.mubr.bf16.vlgmr.msra.gmra.mrb[0].mxu1 %v1285_v34  ;;  %729 = vmatprep.mubr.bf16.mxu0 %v1288_v36 }
  0x35   : > { %826 = vmatprep.mubr.bf16.mxu1 %v1290_v37 }
  0x3b   : > { %730 = vmatmul.mubr.bf16.gmra.mrb[4].mxu0 %v1292_v38 }
  0x3c   : > { %827 = vmatmul.mubr.bf16.gmra.mrb[4].mxu1 %v1293_v39  ;;  %737 = vmatprep.mubr.bf16.mxu0 %v1294_v40 }
  0x3d   : > { %834 = vmatprep.mubr.bf16.mxu1 %v1296_v41 }
  0x43   : > { %738 = vmatmul.mubr.bf16.gmra.mrb[8].mxu0 %v1298_v42 }
  0x44   : > { %835 = vmatmul.mubr.bf16.gmra.mrb[8].mxu1 %v1299_v43  ;;  %745 = vmatprep.mubr.bf16.mxu0 %v1300_v44 }
  0x45   : > { %842 = vmatprep.mubr.bf16.mxu1 %v1302_v45 }
  0x4b   : > { %746 = vmatmul.mubr.bf16.gmra.mrb[12].mxu0 %v1304_v46 }
  0x4c   : > { %843 = vmatmul.mubr.bf16.gmra.mrb[12].mxu1 %v1305_v47  ;;  %753 = vmatprep.mubr.bf16.mxu0 %v1306_v48 }
  0x4d   : > { %850 = vmatprep.mubr.bf16.mxu1 %v1308_v49 }
  0x53   : > { %754 = vmatmul.mubr.bf16.gmra.mrb[16].mxu0 %v1310_v50 }
  0x54   : > { %851 = vmatmul.mubr.bf16.gmra.mrb[16].mxu1 %v1311_v51  ;;  %761 = vmatprep.mubr.bf16.mxu0 %v1312_v52 }
  0x55   : > { %858 = vmatprep.mubr.bf16.mxu1 %v1314_v53 }
  0x5b   : > { %762 = vmatmul.mubr.bf16.gmra.mrb[20].mxu0 %v1316_v54 }
  0x5c   : > { %859 = vmatmul.mubr.bf16.gmra.mrb[20].mxu1 %v1317_v55  ;;  %769 = vmatprep.mubr.bf16.mxu0 %v1318_v56 }
  0x5d   : > { %866 = vmatprep.mubr.bf16.mxu1 %v1320_v57 }
  0x63   : > { %770 = vmatmul.mubr.bf16.gmra.mrb[24].mxu0 %v1322_v58 }
  0x64   : > { %867 = vmatmul.mubr.bf16.gmra.mrb[24].mxu1 %v1323_v59  ;;  %777 = vmatprep.mubr.bf16.mxu0 %v1324_v60 }
  0x65   : > { %874 = vmatprep.mubr.bf16.mxu1 %v1326_v61 }
  0x6b   : > { %778 = vmatmul.mubr.bf16.gmra.mrb[28].mxu0 %v1328_v62 }
  0x6c   : > { %875 = vmatmul.mubr.bf16.gmra.mrb[28].mxu1 %v1329_v63 }
 0x106   : > { %v1114_v0 = vpop.f32.mrb[0].mxu0 }
 0x107   : > { %v1178_v1 = vpop.f32.mrb[0].mxu1  ;;  %v1115_v3 = vpop.f32.mrb[1].mxu0 }
 0x108   : > { %v1116_v4 = vadd.f32 %v1115_v3, %v1114_v0  ;;  %v1179_v5 = vpop.f32.mrb[1].mxu1  ;;  %v1117_v6 = vpop.f32.mrb[2].mxu0 }
 0x109   : > { %v1180_v7 = vadd.f32 %v1179_v5, %v1178_v1  ;;  %v1181_v8 = vpop.f32.mrb[2].mxu1  ;;  %v1118_v9 = vpop.f32.mrb[3].mxu0 }
 0x10a   : > { %v724_v10 = vadd.f32 %v1116_v4, %v1508_v2  ;;  %v1119_v11 = vadd.f32 %v1118_v9, %v1117_v6  ;;  %v1182_v12 = vpop.f32.mrb[3].mxu1 }
 0x10b   : > { %v1183_v13 = vadd.f32 %v1182_v12, %v1181_v8 }
 0x10c   : > { %v821_v14 = vadd.f32 %v1180_v7, %v724_v10  ;;  %v727_v15 = vadd.f32 %v1119_v11, %v1508_v2 }
 0x10e   : > { %1330 = vtanh.f32 %v821_v14  ;;  %v824_v16 = vadd.f32 %v1183_v13, %v727_v15  ;;  %v1120_v17 = vpop.f32.mrb[4].mxu0 }
 0x10f   : > { %v1184_v18 = vpop.f32.mrb[4].mxu1  ;;  %v1121_v19 = vpop.f32.mrb[5].mxu0 }
 0x110   : > { %1332 = vtanh.f32 %v824_v16  ;;  %v1122_v20 = vadd.f32 %v1121_v19, %v1120_v17  ;;  %v1185_v21 = vpop.f32.mrb[5].mxu1  ;;  %v1123_v22 = vpop.f32.mrb[6].mxu0 }
 0x111   : > { %v1186_v23 = vadd.f32 %v1185_v21, %v1184_v18  ;;  %v1187_v24 = vpop.f32.mrb[6].mxu1  ;;  %v1124_v25 = vpop.f32.mrb[7].mxu0 }
 0x112   : > { %v732_v26 = vadd.f32 %v1122_v20, %v1508_v2  ;;  %v1125_v27 = vadd.f32 %v1124_v25, %v1123_v22  ;;  %v1188_v28 = vpop.f32.mrb[7].mxu1 }
 0x113   : > { %v1189_v29 = vadd.f32 %v1188_v28, %v1187_v24 }
 0x114   : > { %v829_v30 = vadd.f32 %v1186_v23, %v732_v26  ;;  %v735_v31 = vadd.f32 %v1125_v27, %v1508_v2 }
 0x116   : > { %1334 = vtanh.f32 %v829_v30  ;;  %v832_v32 = vadd.f32 %v1189_v29, %v735_v31  ;;  %v1126_v33 = vpop.f32.mrb[8].mxu0 }
 0x117   : > { %v1190_v34 = vpop.f32.mrb[8].mxu1  ;;  %v1127_v35 = vpop.f32.mrb[9].mxu0 }
 0x118   : > { %v1331_v36 = vpop.eup %1330  ;;  %1336 = vtanh.f32 %v832_v32  ;;  %v1128_v37 = vadd.f32 %v1127_v35, %v1126_v33  ;;  %v1191_v38 = vpop.f32.mrb[9].mxu1 }
 0x119   : > { %v1129_v39 = vpop.f32.mrb[10].mxu0  ;;  %899 = vst [vmem:[%s1518_s28] sm:$0xff] %v1331_v36  ;;  %v1192_v40 = vadd.f32 %v1191_v38, %v1190_v34  ;;  %v1193_v41 = vpop.f32.mrb[10].mxu1 }
 0x11a   : > { %v1130_v42 = vpop.f32.mrb[11].mxu0  ;;  %v1333_v43 = vpop.eup %1332  ;;  %v740_v44 = vadd.f32 %v1128_v37, %v1508_v2 }
 0x11b   : > { %v1131_v45 = vadd.f32 %v1130_v42, %v1129_v39  ;;  %v1194_v46 = vpop.f32.mrb[11].mxu1  ;;  %900 = vst [vmem:[%s1518_s28 + $0x8] sm:$0xff] %v1333_v43 }
 0x11c   : > { %v1195_v47 = vadd.f32 %v1194_v46, %v1193_v41  ;;  %v837_v48 = vadd.f32 %v1192_v40, %v740_v44 }
 0x11d   : > { %v743_v49 = vadd.f32 %v1131_v45, %v1508_v2 }
 0x11e   : > { %1338 = vtanh.f32 %v837_v48  ;;  %v1132_v51 = vpop.f32.mrb[12].mxu0 }
 0x11f   : > { %v840_v50 = vadd.f32 %v1195_v47, %v743_v49  ;;  %v1196_v52 = vpop.f32.mrb[12].mxu1  ;;  %v1133_v53 = vpop.f32.mrb[13].mxu0 }
 0x120   : > { %v1335_v54 = vpop.eup %1334  ;;  %v1134_v55 = vadd.f32 %v1133_v53, %v1132_v51  ;;  %v1197_v56 = vpop.f32.mrb[13].mxu1 }
 0x121   : > { %1340 = vtanh.f32 %v840_v50  ;;  %v1135_v57 = vpop.f32.mrb[14].mxu0  ;;  %901 = vst [vmem:[%s1518_s28 + $0x10] sm:$0xff] %v1335_v54  ;;  %v1198_v58 = vadd.f32 %v1197_v56, %v1196_v52  ;;  %v1199_v59 = vpop.f32.mrb[14].mxu1 }
 0x122   : > { %v1136_v60 = vpop.f32.mrb[15].mxu0  ;;  %v1337_v61 = vpop.eup %1336  ;;  %v748_v62 = vadd.f32 %v1134_v55, %v1508_v2 }
 0x123   : > { %v1137_v63 = vadd.f32 %v1136_v60, %v1135_v57  ;;  %v1200_v0 = vpop.f32.mrb[15].mxu1  ;;  %902 = vst [vmem:[%s1518_s28 + $0x18] sm:$0xff] %v1337_v61 }
 0x124   : > { %v1201_v1 = vadd.f32 %v1200_v0, %v1199_v59  ;;  %v845_v3 = vadd.f32 %v1198_v58, %v748_v62 }
 0x125   : > { %v751_v4 = vadd.f32 %v1137_v63, %v1508_v2 }
 0x126   : > { %1342 = vtanh.f32 %v845_v3  ;;  %v1138_v6 = vpop.f32.mrb[16].mxu0 }
 0x127   : > { %v848_v5 = vadd.f32 %v1201_v1, %v751_v4  ;;  %v1202_v7 = vpop.f32.mrb[16].mxu1  ;;  %v1139_v8 = vpop.f32.mrb[17].mxu0 }
 0x128   : > { %v1339_v9 = vpop.eup %1338  ;;  %v1140_v10 = vadd.f32 %v1139_v8, %v1138_v6  ;;  %v1203_v11 = vpop.f32.mrb[17].mxu1 }
 0x129   : > { %1344 = vtanh.f32 %v848_v5  ;;  %v1141_v12 = vpop.f32.mrb[18].mxu0  ;;  %903 = vst [vmem:[%s1518_s28 + $0x20] sm:$0xff] %v1339_v9  ;;  %v1204_v13 = vadd.f32 %v1203_v11, %v1202_v7  ;;  %v1205_v14 = vpop.f32.mrb[18].mxu1 }
 0x12a   : > { %v1142_v15 = vpop.f32.mrb[19].mxu0  ;;  %v756_v17 = vadd.f32 %v1140_v10, %v1508_v2  ;;  %v1206_v19 = vpop.f32.mrb[19].mxu1 }
 0x12b   : > { %v1341_v16 = vpop.eup %1340  ;;  %v1143_v18 = vadd.f32 %v1142_v15, %v1141_v12  ;;  %v1207_v20 = vadd.f32 %v1206_v19, %v1205_v14 }
 0x12c   : > { %904 = vst [vmem:[%s1518_s28 + $0x28] sm:$0xff] %v1341_v16  ;;  %v853_v21 = vadd.f32 %v1204_v13, %v756_v17 }
 0x12d   : > { %v759_v22 = vadd.f32 %v1143_v18, %v1508_v2 }
 0x12e   : > { %1346 = vtanh.f32 %v853_v21  ;;  %v1144_v24 = vpop.f32.mrb[20].mxu0 }
 0x12f   : > { %v856_v23 = vadd.f32 %v1207_v20, %v759_v22  ;;  %v1208_v25 = vpop.f32.mrb[20].mxu1  ;;  %v1145_v26 = vpop.f32.mrb[21].mxu0 }
 0x130   : > { %v1343_v27 = vpop.eup %1342  ;;  %v1146_v28 = vadd.f32 %v1145_v26, %v1144_v24  ;;  %v1209_v29 = vpop.f32.mrb[21].mxu1 }
 0x131   : > { %1348 = vtanh.f32 %v856_v23  ;;  %v1147_v30 = vpop.f32.mrb[22].mxu0  ;;  %905 = vst [vmem:[%s1518_s28 + $0x30] sm:$0xff] %v1343_v27  ;;  %v1210_v31 = vadd.f32 %v1209_v29, %v1208_v25  ;;  %v1211_v32 = vpop.f32.mrb[22].mxu1 }
 0x132   : > { %v1148_v33 = vpop.f32.mrb[23].mxu0  ;;  %v764_v35 = vadd.f32 %v1146_v28, %v1508_v2  ;;  %v1212_v37 = vpop.f32.mrb[23].mxu1 }
 0x133   : > { %v1345_v34 = vpop.eup %1344  ;;  %v1149_v36 = vadd.f32 %v1148_v33, %v1147_v30  ;;  %v1213_v38 = vadd.f32 %v1212_v37, %v1211_v32 }
 0x134   : > { %906 = vst [vmem:[%s1518_s28 + $0x38] sm:$0xff] %v1345_v34  ;;  %v861_v39 = vadd.f32 %v1210_v31, %v764_v35 }
 0x135   : > { %v767_v40 = vadd.f32 %v1149_v36, %v1508_v2 }
 0x136   : > { %1350 = vtanh.f32 %v861_v39  ;;  %v1150_v42 = vpop.f32.mrb[24].mxu0 }
 0x137   : > { %v864_v41 = vadd.f32 %v1213_v38, %v767_v40  ;;  %v1214_v43 = vpop.f32.mrb[24].mxu1  ;;  %v1151_v44 = vpop.f32.mrb[25].mxu0 }
 0x138   : > { %v1347_v45 = vpop.eup %1346  ;;  %v1152_v46 = vadd.f32 %v1151_v44, %v1150_v42  ;;  %v1215_v47 = vpop.f32.mrb[25].mxu1 }
 0x139   : > { %1352 = vtanh.f32 %v864_v41  ;;  %v1153_v48 = vpop.f32.mrb[26].mxu0  ;;  %907 = vst [vmem:[%s1518_s28 + $0x40] sm:$0xff] %v1347_v45  ;;  %v1216_v49 = vadd.f32 %v1215_v47, %v1214_v43  ;;  %v1217_v50 = vpop.f32.mrb[26].mxu1 }
 0x13a   : > { %v1154_v51 = vpop.f32.mrb[27].mxu0  ;;  %v772_v53 = vadd.f32 %v1152_v46, %v1508_v2  ;;  %v1218_v55 = vpop.f32.mrb[27].mxu1 }
 0x13b   : > { %v1349_v52 = vpop.eup %1348  ;;  %v1155_v54 = vadd.f32 %v1154_v51, %v1153_v48  ;;  %v1219_v56 = vadd.f32 %v1218_v55, %v1217_v50 }
 0x13c   : > { %908 = vst [vmem:[%s1518_s28 + $0x48] sm:$0xff] %v1349_v52  ;;  %v869_v57 = vadd.f32 %v1216_v49, %v772_v53 }
 0x13d   : > { %v775_v58 = vadd.f32 %v1155_v54, %v1508_v2 }
 0x13e   : > { %1354 = vtanh.f32 %v869_v57  ;;  %v1156_v60 = vpop.f32.mrb[28].mxu0 }
 0x13f   : > { %v872_v59 = vadd.f32 %v1219_v56, %v775_v58  ;;  %v1220_v61 = vpop.f32.mrb[28].mxu1  ;;  %v1157_v62 = vpop.f32.mrb[29].mxu0 }
 0x140   : > { %v1351_v63 = vpop.eup %1350  ;;  %v1158_v0 = vadd.f32 %v1157_v62, %v1156_v60  ;;  %v1221_v1 = vpop.f32.mrb[29].mxu1 }
 0x141   : > { %1356 = vtanh.f32 %v872_v59  ;;  %v1159_v3 = vpop.f32.mrb[30].mxu0  ;;  %909 = vst [vmem:[%s1518_s28 + $0x50] sm:$0xff] %v1351_v63  ;;  %v1222_v4 = vadd.f32 %v1221_v1, %v1220_v61  ;;  %v1223_v5 = vpop.f32.mrb[30].mxu1 }
 0x142   : > { %v1160_v6 = vpop.f32.mrb[31].mxu0  ;;  %v780_v8 = vadd.f32 %v1158_v0, %v1508_v2  ;;  %v1224_v10 = vpop.f32.mrb[31].mxu1 }
 0x143   : > { %v1353_v7 = vpop.eup %1352  ;;  %v1161_v9 = vadd.f32 %v1160_v6, %v1159_v3  ;;  %v1225_v11 = vadd.f32 %v1224_v10, %v1223_v5 }
 0x144   : > { %910 = vst [vmem:[%s1518_s28 + $0x58] sm:$0xff] %v1353_v7  ;;  %v877_v12 = vadd.f32 %v1222_v4, %v780_v8 }
 0x145   : > { %v783_v13 = vadd.f32 %v1161_v9, %v1508_v2 }
 0x146   : > { %1358 = vtanh.f32 %v877_v12 }
 0x147   : > { %v880_v14 = vadd.f32 %v1225_v11, %v783_v13 }
 0x148   : > { %v1355_v15 = vpop.eup %1354 }
 0x149   : > { %1360 = vtanh.f32 %v880_v14  ;;  %911 = vst [vmem:[%s1518_s28 + $0x60] sm:$0xff] %v1355_v15 }
 0x14b   : > { %v1357_v16 = vpop.eup %1356 }
 0x14c   : > { %912 = vst [vmem:[%s1518_s28 + $0x68] sm:$0xff] %v1357_v16 }
 0x150   : > { %v1359_v17 = vpop.eup %1358 }
 0x151   : > { %913 = vst [vmem:[%s1518_s28 + $0x70] sm:$0xff] %v1359_v17 }
 0x153   : > { %v1361_v18 = vpop.eup %1360 }
 0x154   : > { %914 = vst [vmem:[%s1518_s28 + $0x78] sm:$0xff] %v1361_v18 }
 0x155 PF: > { %s13_s14 = sadd.s32 1, %s1384_s14   ;;  %s1561_s12 = smov %s1380_s13 }
 0x156   : > { %p10_p5 = scmp.ge.s32.totalorder %s13_s14, 6   ;;  %s1562_s13 = smov %s1564_s15 }
 0x158   :  { %12 = sbr.rel (!%p10_p5) target bundleno = 2 (0x2), region = 65 }

</bundles_post_ra>
